<compile_context>
chip_gen: v6e
topology: v6e:2x2x1
jax: 0.10.0
libtpu: 0.0.40
codegen_flags: <defaults>
</compile_context>

<pallas_src>
import functools

import jax
import jax.numpy as jnp
from jax import lax
from jax.experimental import pallas as pl
from jax.experimental.pallas import tpu as pltpu

NEG_INF = -1e30


# ----------------------------------------------------------------------------
# small helpers
# ----------------------------------------------------------------------------
def _round_up(x, m):
    return (x + m - 1) // m * m


def _row_tile(n):
    # 512-row tiles reach ~85% of HBM roofline and keep VMEM headroom on v7x.
    return 512 if n >= 512 else _round_up(n, 8)


def _pad_rows(x2d, n_pad):
    n = x2d.shape[0]
    return x2d if n == n_pad else jnp.pad(x2d, ((0, n_pad - n), (0, 0)))


def _pad_axis(x, axis, size):
    if x.shape[axis] == size:
        return x
    pads = [(0, 0)] * x.ndim
    pads[axis] = (0, size - x.shape[axis])
    return jnp.pad(x, pads)


def _batch_tile_recurrence(b):
    # Batch is the second-to-last block dim in the recurrence kernel, so a
    # partial tile must be a multiple of 8; small batches use one block.
    if b <= 8:
        return b, b
    return 8, _round_up(b, 8)


def _batch_tile_leading(b, cap=4):
    # Batch is the leading (unconstrained) block dim in attention / output.
    if b <= cap:
        return b, b
    return cap, _round_up(b, cap)


def _pad_blocks(x, axis, n_blocks, blk, blk_p):
    """Split `axis` (size n_blocks*blk) into blocks and zero-pad each to blk_p."""
    if blk == blk_p:
        return x
    shape = list(x.shape)
    new_shape = shape[:axis] + [n_blocks, blk] + shape[axis + 1:]
    xr = x.reshape(new_shape)
    pads = [(0, 0)] * len(new_shape)
    pads[axis + 1] = (0, blk_p - blk)
    xp = jnp.pad(xr, pads)
    out_shape = shape[:axis] + [n_blocks * blk_p] + shape[axis + 1:]
    return xp.reshape(out_shape)


# ----------------------------------------------------------------------------
# Kernel 1: embedding projection + 2-layer highway encoder (row-tiled,
#           fused transform/gate matmul, resident bf16 weights).
# ----------------------------------------------------------------------------
def emb_hwy_kernel(x_ref, pw_ref, hw0_ref, hb0_ref, hw1_ref, hb1_ref, o_ref):
    Hp = o_ref.shape[-1]
    x = x_ref[...].astype(jnp.bfloat16)
    h = jnp.dot(x, pw_ref[...], preferred_element_type=jnp.float32)      # (tile, Hp)
    for hw, hb in ((hw0_ref, hb0_ref), (hw1_ref, hb1_ref)):
        tg = jnp.dot(h.astype(jnp.bfloat16), hw[...],
                     preferred_element_type=jnp.float32) + hb[...]        # (tile, 2Hp)
        t = jnp.maximum(tg[:, :Hp], 0.0)
        g = jax.nn.sigmoid(tg[:, Hp:])
        h = g * t + (1.0 - g) * h
    o_ref[...] = h


def run_emb_hwy(x2d, ep, Hp):
    n, e = x2d.shape
    tile = _row_tile(n)
    n_pad = _round_up(n, tile)
    x_p = _pad_rows(x2d, n_pad)
    hw0, hb0 = ep["hwy"][0]
    hw1, hb1 = ep["hwy"][1]
    weights = (ep["proj_w"], hw0, hb0, hw1, hb1)
    w_specs = [pl.BlockSpec(w.shape, lambda i: (0, 0)) for w in weights]
    out = pl.pallas_call(
        emb_hwy_kernel,
        out_shape=jax.ShapeDtypeStruct((n_pad, Hp), jnp.float32),
        grid=(n_pad // tile,),
        in_specs=[pl.BlockSpec((tile, e), lambda i: (i, 0))] + w_specs,
        out_specs=pl.BlockSpec((tile, Hp), lambda i: (i, 0)),
        compiler_params=pltpu.CompilerParams(dimension_semantics=("parallel",)),
    )(x_p, *weights)
    return out[:n]


# ----------------------------------------------------------------------------
# Kernel 2a: row-tiled linear (hoists x @ W_ih + b out of the LSTM loop).
# Weights arrive pre-cast to bf16; output dtype configurable (gx -> bf16).
# ----------------------------------------------------------------------------
def linear_kernel(x_ref, w_ref, b_ref, o_ref):
    acc = jnp.dot(x_ref[...].astype(jnp.bfloat16), w_ref[...],
                  preferred_element_type=jnp.float32)
    o_ref[...] = (acc + b_ref[...]).astype(o_ref.dtype)


def run_linear(x2d, w_bf16, b_f32, out_dtype=jnp.float32):
    n, d = x2d.shape
    g = w_bf16.shape[1]
    tile = _row_tile(n)
    n_pad = _round_up(n, tile)
    x_p = _pad_rows(x2d, n_pad)
    out = pl.pallas_call(
        linear_kernel,
        out_shape=jax.ShapeDtypeStruct((n_pad, g), out_dtype),
        grid=(n_pad // tile,),
        in_specs=[pl.BlockSpec((tile, d), lambda i: (i, 0)),
                  pl.BlockSpec((d, g), lambda i: (0, 0)),
                  pl.BlockSpec((1, g), lambda i: (0, 0))],
        out_specs=pl.BlockSpec((tile, g), lambda i: (i, 0)),
        compiler_params=pltpu.CompilerParams(dimension_semantics=("parallel",)),
    )(x_p, w_bf16, b_f32)
    return out[:n]


# ----------------------------------------------------------------------------
# Kernel 2b: fused bidirectional LSTM recurrence (time-major, batch-tiled).
# Forward step t and backward step T-1-t share one fori_loop iteration and a
# single MXU push via the block-diagonal recurrent weight (2Hp, 8Hp).
# Per-timestep mask gating reproduces pack_padded_sequence semantics exactly.
# ----------------------------------------------------------------------------
def bilstm_recurrence_kernel(gx_ref, m_ref, whh_ref, o_ref):
    T, Bt, _ = gx_ref.shape
    H = o_ref.shape[-1] // 2                       # padded hidden Hp

    def cell(pre, c_prev):
        i = jax.nn.sigmoid(pre[:, 0 * H:1 * H])
        f = jax.nn.sigmoid(pre[:, 1 * H:2 * H])
        g = jnp.tanh(pre[:, 2 * H:3 * H])
        o = jax.nn.sigmoid(pre[:, 3 * H:4 * H])
        c_new = f * c_prev + i * g
        return o * jnp.tanh(c_new), c_new

    def body(t, carry):
        hf, cf, hb, cb = carry
        tb = T - 1 - t
        # Single recurrent matmul for both directions (f32: tiny, avoids drift).
        rec = jnp.dot(jnp.concatenate([hf, hb], axis=1), whh_ref[...],
                      preferred_element_type=jnp.float32)              # (Bt, 8H)
        pre_f = gx_ref[t, :, 0:4 * H].astype(jnp.float32) + rec[:, 0:4 * H]
        pre_b = gx_ref[tb, :, 4 * H:8 * H].astype(jnp.float32) + rec[:, 4 * H:8 * H]
        hf_new, cf_new = cell(pre_f, cf)
        hb_new, cb_new = cell(pre_b, cb)
        m_f = m_ref[t] > 0.0                                           # (Bt, 1)
        m_b = m_ref[tb] > 0.0
        o_ref[t, :, 0:H] = jnp.where(m_f, hf_new, 0.0)
        o_ref[tb, :, H:2 * H] = jnp.where(m_b, hb_new, 0.0)
        return (jnp.where(m_f, hf_new, hf), jnp.where(m_f, cf_new, cf),
                jnp.where(m_b, hb_new, hb), jnp.where(m_b, cb_new, cb))

    z = jnp.zeros((Bt, H), jnp.float32)
    lax.fori_loop(0, T, body, (z, z, z, z))


def bilstm_layer_tm(x_tm, m_tm, lp, Hp):
    # x_tm: (T, B, D) time-major; m_tm: (T, B, 1) float mask.
    T, B, D = x_tm.shape
    gx = run_linear(x_tm.reshape(T * B, D), lp["wih"], lp["b"],
                    out_dtype=jnp.bfloat16)                            # (T*B, 8Hp) bf16
    gx = gx.reshape(T, B, 8 * Hp)

    Bt, Bp = _batch_tile_recurrence(B)
    gx_p = _pad_axis(gx, 1, Bp)
    m_p = _pad_axis(m_tm, 1, Bp)

    out = pl.pallas_call(
        bilstm_recurrence_kernel,
        out_shape=jax.ShapeDtypeStruct((T, Bp, 2 * Hp), jnp.float32),
        grid=(Bp // Bt,),
        in_specs=[pl.BlockSpec((T, Bt, 8 * Hp), lambda i: (0, i, 0)),
                  pl.BlockSpec((T, Bt, 1), lambda i: (0, i, 0)),
                  pl.BlockSpec((2 * Hp, 8 * Hp), lambda i: (0, 0))],
        out_specs=pl.BlockSpec((T, Bt, 2 * Hp), lambda i: (0, i, 0)),
        compiler_params=pltpu.CompilerParams(dimension_semantics=("parallel",)),
    )(gx_p, m_p, lp["whh"])
    return out[:, :B]                                                  # (T, B, 2Hp)


def rnn_encoder_tm(x_tm, m_tm, layers, Hp):
    h = x_tm
    for lp in layers:
        h = bilstm_layer_tm(h, m_tm, lp, Hp)
    return h


# ----------------------------------------------------------------------------
# Kernel 3: BiDAF attention, Bt batch elements per grid step (parallel grid).
# ----------------------------------------------------------------------------
def attention_kernel(c_ref, q_ref, cm_ref, qm_ref,
                     cw_ref, qw_ref, cqw_ref, bias_ref, o_ref):
    c = c_ref[...]                                    # (Bt, Tc, 2Hp) f32
    q = q_ref[...]                                    # (Bt, Tq, 2Hp) f32
    d2 = c.shape[-1]
    cm = cm_ref[...] > 0.0                            # (Bt, Tc, 1)
    qm = qm_ref[...] > 0.0                            # (Bt, 1, Tq)
    c_bf = c.astype(jnp.bfloat16)
    q_bf = q.astype(jnp.bfloat16)

    # similarity: s = c.w_c + (q.w_q) + (c*w_cq) q^T + bias
    s0 = jnp.sum(c * cw_ref[...], axis=-1, keepdims=True)             # (Bt, Tc, 1)
    s1 = jnp.sum(q * qw_ref[...], axis=-1)[:, None, :]                # (Bt, 1, Tq)
    s2 = jnp.einsum('bcd,bqd->bcq', (c * cqw_ref[...]).astype(jnp.bfloat16),
                    q_bf, preferred_element_type=jnp.float32)         # (Bt, Tc, Tq)
    s = s0 + s1 + s2 + bias_ref[...]

    # masked softmax over question positions (last axis)
    sm1 = jnp.where(qm, s, NEG_INF)
    sm1 = sm1 - jnp.max(sm1, axis=-1, keepdims=True)
    e1 = jnp.exp(sm1)
    a1 = e1 * pl.reciprocal(jnp.sum(e1, axis=-1, keepdims=True), approx=True)

    # masked softmax over context positions (axis 1)
    sm2 = jnp.where(cm, s, NEG_INF)
    sm2 = sm2 - jnp.max(sm2, axis=1, keepdims=True)
    e2 = jnp.exp(sm2)
    a2 = e2 * pl.reciprocal(jnp.sum(e2, axis=1, keepdims=True), approx=True)

    a1_bf = a1.astype(jnp.bfloat16)
    a = jnp.einsum('bcq,bqd->bcd', a1_bf, q_bf,
                   preferred_element_type=jnp.float32)                # (Bt, Tc, 2Hp)
    # q2c reassociated: b = a1 @ (a2^T @ c)  (no (Tc, Tc) intermediate)
    qc = jnp.einsum('bcq,bcd->bqd', a2.astype(jnp.bfloat16), c_bf,
                    preferred_element_type=jnp.float32)               # (Bt, Tq, 2Hp)
    bb = jnp.einsum('bcq,bqd->bcd', a1_bf, qc.astype(jnp.bfloat16),
                    preferred_element_type=jnp.float32)               # (Bt, Tc, 2Hp)

    o_ref[:, :, 0 * d2:1 * d2] = c
    o_ref[:, :, 1 * d2:2 * d2] = a
    o_ref[:, :, 2 * d2:3 * d2] = c * a
    o_ref[:, :, 3 * d2:4 * d2] = c * bb


def bidaf_attention(c, q, c_mask, q_mask, ap):
    B, Tc, D2 = c.shape
    Tq = q.shape[1]
    Bt, Bp = _batch_tile_leading(B)
    c_p = _pad_axis(c, 0, Bp)
    q_p = _pad_axis(q, 0, Bp)
    cm = _pad_axis(c_mask.astype(jnp.float32)[:, :, None], 0, Bp)     # (Bp, Tc, 1)
    qm = _pad_axis(q_mask.astype(jnp.float32)[:, None, :], 0, Bp)     # (Bp, 1, Tq)
    out = pl.pallas_call(
        attention_kernel,
        out_shape=jax.ShapeDtypeStruct((Bp, Tc, 4 * D2), jnp.float32),
        grid=(Bp // Bt,),
        in_specs=[
            pl.BlockSpec((Bt, Tc, D2), lambda b: (b, 0, 0)),
            pl.BlockSpec((Bt, Tq, D2), lambda b: (b, 0, 0)),
            pl.BlockSpec((Bt, Tc, 1), lambda b: (b, 0, 0)),
            pl.BlockSpec((Bt, 1, Tq), lambda b: (b, 0, 0)),
            pl.BlockSpec((1, D2), lambda b: (0, 0)),
            pl.BlockSpec((1, D2), lambda b: (0, 0)),
            pl.BlockSpec((1, D2), lambda b: (0, 0)),
            pl.BlockSpec((1, 1), lambda b: (0, 0)),
        ],
        out_specs=pl.BlockSpec((Bt, Tc, 4 * D2), lambda b: (b, 0, 0)),
        compiler_params=pltpu.CompilerParams(dimension_semantics=("parallel",)),
    )(c_p, q_p, cm, qm, ap["c_w"], ap["q_w"], ap["cq_w"], ap["bias"])
    return out[:B]


# ----------------------------------------------------------------------------
# Kernel 4: output layer. One merged (2, 12Hp) span weight -> single MXU push
# per batch element; lane-dense (2, Tc) masked log-softmax.
# ----------------------------------------------------------------------------
def output_kernel(att_ref, mod_ref, mod2_ref, cm_ref, w_ref, b_ref, p_ref):
    Bt = att_ref.shape[0]
    w = w_ref[...].astype(jnp.bfloat16)               # (2, 12Hp)
    b = b_ref[...]                                    # (2, 1)
    for bi in range(Bt):                              # small static unroll
        x = jnp.concatenate([att_ref[bi], mod_ref[bi], mod2_ref[bi]],
                            axis=-1).astype(jnp.bfloat16)             # (Tc, 12Hp)
        logits = lax.dot_general(w, x, (((1,), (1,)), ((), ())),
                                 preferred_element_type=jnp.float32) + b   # (2, Tc)
        m = cm_ref[bi] > 0.0                                          # (1, Tc)
        lm = jnp.where(m, logits, NEG_INF)
        z = lm - jnp.max(lm, axis=-1, keepdims=True)
        lse = jnp.log(jnp.sum(jnp.exp(z), axis=-1, keepdims=True))
        p_ref[bi] = z - lse


def bidaf_output(att, mod, mod2, c_mask, op):
    B, Tc, H8 = att.shape
    H2 = mod.shape[-1]
    Bt, Bp = _batch_tile_leading(B)
    att_p = _pad_axis(att, 0, Bp)
    mod_p = _pad_axis(mod, 0, Bp)
    mod2_p = _pad_axis(mod2, 0, Bp)
    cm = _pad_axis(c_mask.astype(jnp.float32)[:, None, :], 0, Bp)     # (Bp, 1, Tc)
    out = pl.pallas_call(
        output_kernel,
        out_shape=jax.ShapeDtypeStruct((Bp, 2, Tc), jnp.float32),
        grid=(Bp // Bt,),
        in_specs=[
            pl.BlockSpec((Bt, Tc, H8), lambda i: (i, 0, 0)),
            pl.BlockSpec((Bt, Tc, H2), lambda i: (i, 0, 0)),
            pl.BlockSpec((Bt, Tc, H2), lambda i: (i, 0, 0)),
            pl.BlockSpec((Bt, 1, Tc), lambda i: (i, 0, 0)),
            pl.BlockSpec((2, H8 + 2 * H2), lambda i: (0, 0)),
            pl.BlockSpec((2, 1), lambda i: (0, 0)),
        ],
        out_specs=pl.BlockSpec((Bt, 2, Tc), lambda i: (i, 0, 0)),
        compiler_params=pltpu.CompilerParams(dimension_semantics=("parallel",)),
    )(att_p, mod_p, mod2_p, cm, op["w_span"], op["b_span"])
    return out[:B, 0, :], out[:B, 1, :]               # (B, Tc) each


# ----------------------------------------------------------------------------
# Parameter preparation: pad every hidden-sized block to Hp = round_up(H, 128)
# (padded lanes stay exactly zero), pre-cast the large weights to bf16, and
# build the fused highway / block-diagonal recurrent / merged span weights.
# ----------------------------------------------------------------------------
def _prep_lstm(lp, in_blocks, H, Hp):
    wih = jnp.concatenate([lp["wih_f"], lp["wih_b"]], axis=1)         # (Din, 8H)
    wih = _pad_blocks(wih, 1, 8, H, Hp)
    wih = _pad_blocks(wih, 0, in_blocks, H, Hp)                       # (Din_p, 8Hp)
    b = jnp.concatenate([lp["b_f"], lp["b_b"]], axis=1)               # (1, 8H)
    b = _pad_blocks(b, 1, 8, H, Hp)                                   # (1, 8Hp)
    whh_f = _pad_blocks(_pad_blocks(lp["whh_f"], 1, 4, H, Hp), 0, 1, H, Hp)
    whh_b = _pad_blocks(_pad_blocks(lp["whh_b"], 1, 4, H, Hp), 0, 1, H, Hp)
    zero = jnp.zeros((Hp, 4 * Hp), jnp.float32)
    whh = jnp.concatenate(
        [jnp.concatenate([whh_f, zero], axis=1),
         jnp.concatenate([zero, whh_b], axis=1)], axis=0)             # (2Hp, 8Hp)
    return dict(wih=wih.astype(jnp.bfloat16),
                b=b.astype(jnp.float32),
                whh=whh.astype(jnp.float32))


def _prep_emb(ep, H, Hp):
    proj = _pad_blocks(ep["proj_w"], 1, 1, H, Hp).astype(jnp.bfloat16)
    hwy = []
    for l in range(2):
        tw = _pad_blocks(_pad_blocks(ep["hwy_t_w"][l], 1, 1, H, Hp), 0, 1, H, Hp)
        gw = _pad_blocks(_pad_blocks(ep["hwy_g_w"][l], 1, 1, H, Hp), 0, 1, H, Hp)
        w = jnp.concatenate([tw, gw], axis=1).astype(jnp.bfloat16)    # (Hp, 2Hp)
        tb = _pad_blocks(ep["hwy_t_b"][l], 1, 1, H, Hp)
        gb = _pad_blocks(ep["hwy_g_b"][l], 1, 1, H, Hp)
        b = jnp.concatenate([tb, gb], axis=1).astype(jnp.float32)     # (1, 2Hp)
        hwy.append((w, b))
    return dict(proj_w=proj, hwy=hwy)


def _prep_att(ap, H, Hp):
    return dict(
        c_w=_pad_blocks(ap["c_w"].reshape(1, 2 * H), 1, 2, H, Hp),
        q_w=_pad_blocks(ap["q_w"].reshape(1, 2 * H), 1, 2, H, Hp),
        cq_w=_pad_blocks(ap["cq_w"], 1, 2, H, Hp),
        bias=ap["bias"])


def _prep_out(op, H, Hp):
    wa1 = _pad_blocks(op["wa1"].reshape(1, 8 * H), 1, 8, H, Hp)       # (1, 8Hp)
    wa2 = _pad_blocks(op["wa2"].reshape(1, 8 * H), 1, 8, H, Hp)
    wm1 = _pad_blocks(op["wm1"].reshape(1, 2 * H), 1, 2, H, Hp)       # (1, 2Hp)
    wm2 = _pad_blocks(op["wm2"].reshape(1, 2 * H), 1, 2, H, Hp)
    zero = jnp.zeros_like(wm1)
    w_span = jnp.concatenate(
        [jnp.concatenate([wa1, wm1, zero], axis=1),
         jnp.concatenate([wa2, zero, wm2], axis=1)], axis=0)          # (2, 12Hp)
    b_span = jnp.concatenate([op["b1"], op["b2"]], axis=0)            # (2, 1)
    return dict(w_span=w_span.astype(jnp.float32), b_span=b_span,
                rnn=_prep_lstm(op["rnn"], 2, H, Hp))


def prepare_params(p):
    H = p["hidden_size"]
    Hp = _round_up(H, 128)
    return dict(
        hidden=H, hidden_padded=Hp,
        word_vectors=p["word_vectors"],
        emb=_prep_emb(p["emb"], H, Hp),
        enc=[_prep_lstm(lp, 1, H, Hp) for lp in p["enc"]],
        att=_prep_att(p["att"], H, Hp),
        mod=[_prep_lstm(p["mod"][0], 8, H, Hp),
             _prep_lstm(p["mod"][1], 2, H, Hp)],
        out=_prep_out(p["out"], H, Hp),
    )


# ----------------------------------------------------------------------------
# Full BiDAF forward
# ----------------------------------------------------------------------------
def bidaf_forward(pp, cw_idxs, cc_idxs, qw_idxs, qc_idxs):
    del cc_idxs, qc_idxs  # char indices are unused by this baseline forward
    Hp = pp["hidden_padded"]
    wv = pp["word_vectors"]

    cw_tm = jnp.transpose(cw_idxs)                                    # (Tc, B)
    qw_tm = jnp.transpose(qw_idxs)                                    # (Tq, B)
    Tc, B = cw_tm.shape
    Tq = qw_tm.shape[0]
    c_mask = cw_idxs != 0                                             # (B, Tc)
    q_mask = qw_idxs != 0                                             # (B, Tq)
    cm_tm = (cw_tm != 0).astype(jnp.float32)[:, :, None]              # (Tc, B, 1)
    qm_tm = (qw_tm != 0).astype(jnp.float32)[:, :, None]              # (Tq, B, 1)

    # TODO(synk): embedding-table gather is plain JAX glue (no simple Pallas
    # equivalent at this size); everything downstream runs in Pallas kernels.
    c_emb = wv[cw_tm]                                                 # (Tc, B, E)
    q_emb = wv[qw_tm]                                                 # (Tq, B, E)
    E = wv.shape[1]

    # Shared emb+highway weights -> one merged launch for context + question.
    x_all = jnp.concatenate([c_emb.reshape(Tc * B, E),
                             q_emb.reshape(Tq * B, E)], axis=0)
    h_all = run_emb_hwy(x_all, pp["emb"], Hp)
    c_h = h_all[:Tc * B].reshape(Tc, B, Hp)
    q_h = h_all[Tc * B:].reshape(Tq, B, Hp)

    # Shared encoder weights -> one launch: pad question time, concat on batch.
    Tmax = max(Tc, Tq)
    x_enc = jnp.concatenate([_pad_axis(c_h, 0, Tmax),
                             _pad_axis(q_h, 0, Tmax)], axis=1)        # (Tmax, 2B, Hp)
    m_enc = jnp.concatenate([_pad_axis(cm_tm, 0, Tmax),
                             _pad_axis(qm_tm, 0, Tmax)], axis=1)      # (Tmax, 2B, 1)
    enc_out = rnn_encoder_tm(x_enc, m_enc, pp["enc"], Hp)             # (Tmax, 2B, 2Hp)
    c_enc = jnp.transpose(enc_out[:Tc, :B], (1, 0, 2))                # (B, Tc, 2Hp)
    q_enc = jnp.transpose(enc_out[:Tq, B:], (1, 0, 2))                # (B, Tq, 2Hp)

    att = bidaf_attention(c_enc, q_enc, c_mask, q_mask, pp["att"])    # (B, Tc, 8Hp)

    att_tm = jnp.transpose(att, (1, 0, 2))                            # (Tc, B, 8Hp)
    mod_tm = rnn_encoder_tm(att_tm, cm_tm, pp["mod"], Hp)             # (Tc, B, 2Hp)
    mod2_tm = rnn_encoder_tm(mod_tm, cm_tm, [pp["out"]["rnn"]], Hp)   # (Tc, B, 2Hp)

    mod = jnp.transpose(mod_tm, (1, 0, 2))
    mod2 = jnp.transpose(mod2_tm, (1, 0, 2))

    log_p1, log_p2 = bidaf_output(att, mod, mod2, c_mask, pp["out"])
    return log_p1, log_p2


# ----------------------------------------------------------------------------
# Deterministic parameter init (logical shapes follow the torch module)
# ----------------------------------------------------------------------------
def init_params(key, vocab, emb_dim, hidden):
    keys = iter(jax.random.split(key, 64))

    def w(shape, scale=0.1):
        return (scale * jax.random.normal(next(keys), shape)).astype(jnp.float32)

    H = hidden

    def lstm_layer(in_dim):
        return dict(
            wih_f=w((in_dim, 4 * H)), whh_f=w((H, 4 * H)), b_f=w((1, 4 * H)),
            wih_b=w((in_dim, 4 * H)), whh_b=w((H, 4 * H)), b_b=w((1, 4 * H)),
        )

    return dict(
        hidden_size=H,
        word_vectors=w((vocab, emb_dim), 1.0).at[0].set(0.0),  # row 0 = pad
        emb=dict(
            proj_w=w((emb_dim, H)),
            hwy_t_w=[w((H, H)), w((H, H))],
            hwy_t_b=[w((1, H)), w((1, H))],
            hwy_g_w=[w((H, H)), w((H, H))],
            hwy_g_b=[w((1, H)), w((1, H))],
        ),
        enc=[lstm_layer(H)],                                    # 1-layer BiLSTM
        att=dict(c_w=w((2 * H, 1)), q_w=w((2 * H, 1)),
                 cq_w=w((1, 2 * H)), bias=w((1, 1))),
        mod=[lstm_layer(8 * H), lstm_layer(2 * H)],             # 2-layer BiLSTM
        out=dict(
            wa1=w((8 * H, 1)), wm1=w((2 * H, 1)),
            wa2=w((8 * H, 1)), wm2=w((2 * H, 1)),
            b1=w((1, 1)), b2=w((1, 1)),
            rnn=lstm_layer(2 * H),                              # 1-layer BiLSTM
        ),
    )


if __name__ == "__main__":
    key = jax.random.PRNGKey(0)
    kp, kc, kq = jax.random.split(key, 3)

    V, E, H = 50, 64, 32          # vocab, word-vector dim, hidden_size
    B, Tc, Tq = 2, 16, 8          # batch, context len, question len

    raw_params = init_params(kp, V, E, H)
    params = prepare_params(raw_params)   # pad to 128 lanes + pre-cast to bf16

    cw = jax.random.randint(kc, (B, Tc), 1, V)
    qw = jax.random.randint(kq, (B, Tq), 1, V)
    c_lens = jnp.array([12, 16])
    q_lens = jnp.array([6, 8])
    cw = jnp.where(jnp.arange(Tc)[None, :] < c_lens[:, None], cw, 0)
    qw = jnp.where(jnp.arange(Tq)[None, :] < q_lens[:, None], qw, 0)
    cc = jnp.zeros((B, Tc, 5), jnp.int32)   # char idxs (unused by forward)
    qc = jnp.zeros((B, Tq, 5), jnp.int32)

    fwd = jax.jit(functools.partial(bidaf_forward, params))
    log_p1, log_p2 = fwd(cw, cc, qw, qc)
    jax.block_until_ready((log_p1, log_p2))

    assert log_p1.shape == (B, Tc) and log_p2.shape == (B, Tc)
    assert bool(jnp.all(jnp.isfinite(log_p1))) and bool(jnp.all(jnp.isfinite(log_p2)))
    print("KERNEL_OK")
</pallas_src>

<mosaic_0001>
module attributes {stable_mosaic.version = 11 : i64} {
  func.func @linear_kernel(%arg0: i32, %arg1: memref<64x128xf32, #tpu.memory_space<vmem>>, %arg2: memref<128x1024xbf16, #tpu.memory_space<vmem>>, %arg3: memref<1x1024xf32, #tpu.memory_space<vmem>>, %arg4: memref<64x1024xbf16, #tpu.memory_space<vmem>>) attributes {dimension_semantics = [#tpu.dimension_semantics<parallel>], iteration_bounds = array<i64: 1>, scalar_prefetch = 0 : i64, scratch_operands = 0 : i64, tpu.core_type = #tpu.core_type<tc>, window_params = [{transform_indices = @transform_0, window_bounds = array<i64: 64, 128>}, {pipeline_mode = #tpu.pipeline_mode<synchronous>, transform_indices = @transform_1, window_bounds = array<i64: 128, 1024>}, {pipeline_mode = #tpu.pipeline_mode<synchronous>, transform_indices = @transform_2, window_bounds = array<i64: 1, 1024>}, {transform_indices = @transform_3, window_bounds = array<i64: 64, 1024>}]} {
    %c0 = arith.constant 0 : index
    %c0_0 = arith.constant 0 : index
    %0 = vector.load %arg1[%c0, %c0_0] : memref<64x128xf32, #tpu.memory_space<vmem>>, vector<64x128xf32>
    %1 = arith.truncf %0 : vector<64x128xf32> to vector<64x128xbf16>
    %c0_1 = arith.constant 0 : index
    %c0_2 = arith.constant 0 : index
    %2 = vector.load %arg2[%c0_1, %c0_2] : memref<128x1024xbf16, #tpu.memory_space<vmem>>, vector<128x1024xbf16>
    %cst = arith.constant dense<0.000000e+00> : vector<64x1024xf32>
    %3 = tpu.matmul %1, %2, %cst {dimension_numbers = #tpu.dot_dimension_numbers<[1], [0], [0], [1], [0, 0, 1, 1], [], []>} : vector<64x128xbf16>, vector<128x1024xbf16>, vector<64x1024xf32> -> vector<64x1024xf32>
    %c0_3 = arith.constant 0 : index
    %c0_4 = arith.constant 0 : index
    %4 = vector.load %arg3[%c0_3, %c0_4] : memref<1x1024xf32, #tpu.memory_space<vmem>>, vector<1x1024xf32>
    %5 = vector.broadcast %4 : vector<1x1024xf32> to vector<64x1024xf32>
    %6 = arith.addf %3, %5 : vector<64x1024xf32>
    %7 = arith.truncf %6 : vector<64x1024xf32> to vector<64x1024xbf16>
    %c0_5 = arith.constant 0 : index
    %c0_6 = arith.constant 0 : index
    %8 = vector.load %arg4[%c0_5, %c0_6] : memref<64x1024xbf16, #tpu.memory_space<vmem>>, vector<64x1024xbf16>
    tpu.vector_store %arg4[%c0_5, %c0_6], %7 {strides = array<i32>} : memref<64x1024xbf16, #tpu.memory_space<vmem>>, vector<64x1024xbf16>,
    return
  }
  func.func @transform_0(%arg0: i32) -> (i32, i32) {
    %c0_i32 = arith.constant 0 : i32
    %c0_i32_0 = arith.constant 0 : i32
    return %arg0, %c0_i32 : i32, i32
  }
  func.func @transform_1(%arg0: i32) -> (i32, i32) {
    %c0_i32 = arith.constant 0 : i32
    %c0_i32_0 = arith.constant 0 : i32
    %c0_i32_1 = arith.constant 0 : i32
    return %c0_i32, %c0_i32_0 : i32, i32
  }
  func.func @transform_2(%arg0: i32) -> (i32, i32) {
    %c0_i32 = arith.constant 0 : i32
    %c0_i32_0 = arith.constant 0 : i32
    %c0_i32_1 = arith.constant 0 : i32
    return %c0_i32, %c0_i32_0 : i32, i32
  }
  func.func @transform_3(%arg0: i32) -> (i32, i32) {
    %c0_i32 = arith.constant 0 : i32
    %c0_i32_0 = arith.constant 0 : i32
    return %arg0, %c0_i32 : i32, i32
  }
}

module attributes {stable_mosaic.version = 11 : i64} {
  func.func @emb_hwy_kernel(%arg0: i32, %arg1: memref<48x64xf32, #tpu.memory_space<vmem>>, %arg2: memref<64x128xbf16, #tpu.memory_space<vmem>>, %arg3: memref<128x256xbf16, #tpu.memory_space<vmem>>, %arg4: memref<1x256xf32, #tpu.memory_space<vmem>>, %arg5: memref<128x256xbf16, #tpu.memory_space<vmem>>, %arg6: memref<1x256xf32, #tpu.memory_space<vmem>>, %arg7: memref<48x128xf32, #tpu.memory_space<vmem>>) attributes {dimension_semantics = [#tpu.dimension_semantics<parallel>], iteration_bounds = array<i64: 1>, scalar_prefetch = 0 : i64, scratch_operands = 0 : i64, tpu.core_type = #tpu.core_type<tc>, window_params = [{transform_indices = @transform_0, window_bounds = array<i64: 48, 64>}, {pipeline_mode = #tpu.pipeline_mode<synchronous>, transform_indices = @transform_1, window_bounds = array<i64: 64, 128>}, {pipeline_mode = #tpu.pipeline_mode<synchronous>, transform_indices = @transform_2, window_bounds = array<i64: 128, 256>}, {pipeline_mode = #tpu.pipeline_mode<synchronous>, transform_indices = @transform_3, window_bounds = array<i64: 1, 256>}, {pipeline_mode = #tpu.pipeline_mode<synchronous>, transform_indices = @transform_4, window_bounds = array<i64: 128, 256>}, {pipeline_mode = #tpu.pipeline_mode<synchronous>, transform_indices = @transform_5, window_bounds = array<i64: 1, 256>}, {transform_indices = @transform_6, window_bounds = array<i64: 48, 128>}]} {
    %c0 = arith.constant 0 : index
    %c0_0 = arith.constant 0 : index
    %0 = vector.load %arg1[%c0, %c0_0] : memref<48x64xf32, #tpu.memory_space<vmem>>, vector<48x64xf32>
    %1 = arith.truncf %0 : vector<48x64xf32> to vector<48x64xbf16>
    %c0_1 = arith.constant 0 : index
    %c0_2 = arith.constant 0 : index
    %2 = vector.load %arg2[%c0_1, %c0_2] : memref<64x128xbf16, #tpu.memory_space<vmem>>, vector<64x128xbf16>
    %cst = arith.constant dense<0.000000e+00> : vector<48x128xf32>
    %3 = tpu.matmul %1, %2, %cst {dimension_numbers = #tpu.dot_dimension_numbers<[1], [0], [0], [1], [0, 0, 1, 1], [], []>} : vector<48x64xbf16>, vector<64x128xbf16>, vector<48x128xf32> -> vector<48x128xf32>
    %4 = arith.truncf %3 : vector<48x128xf32> to vector<48x128xbf16>
    %c0_3 = arith.constant 0 : index
    %c0_4 = arith.constant 0 : index
    %5 = vector.load %arg3[%c0_3, %c0_4] : memref<128x256xbf16, #tpu.memory_space<vmem>>, vector<128x256xbf16>
    %cst_5 = arith.constant dense<0.000000e+00> : vector<48x256xf32>
    %6 = tpu.matmul %4, %5, %cst_5 {dimension_numbers = #tpu.dot_dimension_numbers<[1], [0], [0], [1], [0, 0, 1, 1], [], []>} : vector<48x128xbf16>, vector<128x256xbf16>, vector<48x256xf32> -> vector<48x256xf32>
    %c0_6 = arith.constant 0 : index
    %c0_7 = arith.constant 0 : index
    %7 = vector.load %arg4[%c0_6, %c0_7] : memref<1x256xf32, #tpu.memory_space<vmem>>, vector<1x256xf32>
    %8 = vector.broadcast %7 : vector<1x256xf32> to vector<48x256xf32>
    %9 = arith.addf %6, %8 : vector<48x256xf32>
    %10 = vector.extract_strided_slice %9 {offsets = [0, 0], sizes = [48, 128], strides = [1, 1]} : vector<48x256xf32> to vector<48x128xf32>
    %cst_8 = arith.constant 0.000000e+00 : f32
    %11 = vector.broadcast %cst_8 : f32 to vector<48x128xf32>
    %12 = arith.maximumf %10, %11 : vector<48x128xf32>
    %13 = vector.extract_strided_slice %9 {offsets = [0, 128], sizes = [48, 128], strides = [1, 1]} : vector<48x256xf32> to vector<48x128xf32>
    %14 = arith.negf %13 : vector<48x128xf32>
    %15 = math.exp %14 : vector<48x128xf32>
    %cst_9 = arith.constant 1.000000e+00 : f32
    %16 = vector.broadcast %cst_9 : f32 to vector<48x128xf32>
    %17 = arith.addf %16, %15 : vector<48x128xf32>
    %18 = arith.divf %16, %17 : vector<48x128xf32>
    %19 = arith.mulf %18, %12 : vector<48x128xf32>
    %cst_10 = arith.constant 1.000000e+00 : f32
    %20 = vector.broadcast %cst_10 : f32 to vector<48x128xf32>
    %21 = arith.subf %20, %18 : vector<48x128xf32>
    %22 = arith.mulf %21, %3 : vector<48x128xf32>
    %23 = arith.addf %19, %22 : vector<48x128xf32>
    %24 = arith.truncf %23 : vector<48x128xf32> to vector<48x128xbf16>
    %c0_11 = arith.constant 0 : index
    %c0_12 = arith.constant 0 : index
    %25 = vector.load %arg5[%c0_11, %c0_12] : memref<128x256xbf16, #tpu.memory_space<vmem>>, vector<128x256xbf16>
    %cst_13 = arith.constant dense<0.000000e+00> : vector<48x256xf32>
    %26 = tpu.matmul %24, %25, %cst_13 {dimension_numbers = #tpu.dot_dimension_numbers<[1], [0], [0], [1], [0, 0, 1, 1], [], []>} : vector<48x128xbf16>, vector<128x256xbf16>, vector<48x256xf32> -> vector<48x256xf32>
    %c0_14 = arith.constant 0 : index
    %c0_15 = arith.constant 0 : index
    %27 = vector.load %arg6[%c0_14, %c0_15] : memref<1x256xf32, #tpu.memory_space<vmem>>, vector<1x256xf32>
    %28 = vector.broadcast %27 : vector<1x256xf32> to vector<48x256xf32>
    %29 = arith.addf %26, %28 : vector<48x256xf32>
    %30 = vector.extract_strided_slice %29 {offsets = [0, 0], sizes = [48, 128], strides = [1, 1]} : vector<48x256xf32> to vector<48x128xf32>
    %cst_16 = arith.constant 0.000000e+00 : f32
    %31 = vector.broadcast %cst_16 : f32 to vector<48x128xf32>
    %32 = arith.maximumf %30, %31 : vector<48x128xf32>
    %33 = vector.extract_strided_slice %29 {offsets = [0, 128], sizes = [48, 128], strides = [1, 1]} : vector<48x256xf32> to vector<48x128xf32>
    %34 = arith.negf %33 : vector<48x128xf32>
    %35 = math.exp %34 : vector<48x128xf32>
    %cst_17 = arith.constant 1.000000e+00 : f32
    %36 = vector.broadcast %cst_17 : f32 to vector<48x128xf32>
    %37 = arith.addf %36, %35 : vector<48x128xf32>
    %38 = arith.divf %36, %37 : vector<48x128xf32>
    %39 = arith.mulf %38, %32 : vector<48x128xf32>
    %cst_18 = arith.constant 1.000000e+00 : f32
    %40 = vector.broadcast %cst_18 : f32 to vector<48x128xf32>
    %41 = arith.subf %40, %38 : vector<48x128xf32>
    %42 = arith.mulf %41, %23 : vector<48x128xf32>
    %43 = arith.addf %39, %42 : vector<48x128xf32>
    %c0_19 = arith.constant 0 : index
    %c0_20 = arith.constant 0 : index
    %44 = vector.load %arg7[%c0_19, %c0_20] : memref<48x128xf32, #tpu.memory_space<vmem>>, vector<48x128xf32>
    tpu.vector_store %arg7[%c0_19, %c0_20], %43 {strides = array<i32>} : memref<48x128xf32, #tpu.memory_space<vmem>>, vector<48x128xf32>,
    return
  }
  func.func @transform_0(%arg0: i32) -> (i32, i32) {
    %c0_i32 = arith.constant 0 : i32
    %c0_i32_0 = arith.constant 0 : i32
    return %arg0, %c0_i32 : i32, i32
  }
  func.func @transform_1(%arg0: i32) -> (i32, i32) {
    %c0_i32 = arith.constant 0 : i32
    %c0_i32_0 = arith.constant 0 : i32
    %c0_i32_1 = arith.constant 0 : i32
    return %c0_i32, %c0_i32_0 : i32, i32
  }
  func.func @transform_2(%arg0: i32) -> (i32, i32) {
    %c0_i32 = arith.constant 0 : i32
    %c0_i32_0 = arith.constant 0 : i32
    %c0_i32_1 = arith.constant 0 : i32
    return %c0_i32, %c0_i32_0 : i32, i32
  }
  func.func @transform_3(%arg0: i32) -> (i32, i32) {
    %c0_i32 = arith.constant 0 : i32
    %c0_i32_0 = arith.constant 0 : i32
    %c0_i32_1 = arith.constant 0 : i32
    return %c0_i32, %c0_i32_0 : i32, i32
  }
  func.func @transform_4(%arg0: i32) -> (i32, i32) {
    %c0_i32 = arith.constant 0 : i32
    %c0_i32_0 = arith.constant 0 : i32
    %c0_i32_1 = arith.constant 0 : i32
    return %c0_i32, %c0_i32_0 : i32, i32
  }
  func.func @transform_5(%arg0: i32) -> (i32, i32) {
    %c0_i32 = arith.constant 0 : i32
    %c0_i32_0 = arith.constant 0 : i32
    %c0_i32_1 = arith.constant 0 : i32
    return %c0_i32, %c0_i32_0 : i32, i32
  }
  func.func @transform_6(%arg0: i32) -> (i32, i32) {
    %c0_i32 = arith.constant 0 : i32
    %c0_i32_0 = arith.constant 0 : i32
    return %arg0, %c0_i32 : i32, i32
  }
}

module attributes {stable_mosaic.version = 11 : i64} {
  func.func @bilstm_recurrence_kernel(%arg0: i32, %arg1: memref<16x4x1024xbf16, #tpu.memory_space<vmem>>, %arg2: memref<16x4x1xf32, #tpu.memory_space<vmem>>, %arg3: memref<256x1024xf32, #tpu.memory_space<vmem>>, %arg4: memref<16x4x256xf32, #tpu.memory_space<vmem>>) attributes {dimension_semantics = [#tpu.dimension_semantics<parallel>], iteration_bounds = array<i64: 1>, scalar_prefetch = 0 : i64, scratch_operands = 0 : i64, tpu.core_type = #tpu.core_type<tc>, window_params = [{transform_indices = @transform_0, window_bounds = array<i64: 16, 4, 1024>}, {transform_indices = @transform_1, window_bounds = array<i64: 16, 4, 1>}, {pipeline_mode = #tpu.pipeline_mode<synchronous>, transform_indices = @transform_2, window_bounds = array<i64: 256, 1024>}, {transform_indices = @transform_3, window_bounds = array<i64: 16, 4, 256>}]} {
    %cst = arith.constant 0.000000e+00 : f32
    %0 = vector.broadcast %cst : f32 to vector<4x128xf32>
    %c0_i32 = arith.constant 0 : i32
    %c16_i32 = arith.constant 16 : i32
    %1 = arith.addi %c0_i32, %c16_i32 : i32
    %c1_i32 = arith.constant 1 : i32
    %2:4 = scf.for %arg5 = %c0_i32 to %1 step %c1_i32 iter_args(%arg6 = %0, %arg7 = %0, %arg8 = %0, %arg9 = %0) -> (vector<4x128xf32>, vector<4x128xf32>, vector<4x128xf32>, vector<4x128xf32>)  : i32 {
      %c15_i32 = arith.constant 15 : i32
      %3 = arith.subi %c15_i32, %arg5 : i32
      %4 = tpu.concatenate %arg6, %arg8 in 1 : vector<4x128xf32>, vector<4x128xf32> -> vector<4x256xf32>
      %c0 = arith.constant 0 : index
      %c0_1 = arith.constant 0 : index
      %5 = vector.load %arg3[%c0, %c0_1] : memref<256x1024xf32, #tpu.memory_space<vmem>>, vector<256x1024xf32>
      %cst_2 = arith.constant dense<0.000000e+00> : vector<4x1024xf32>
      %6 = tpu.matmul %4, %5, %cst_2 {dimension_numbers = #tpu.dot_dimension_numbers<[1], [0], [0], [1], [0, 0, 1, 1], [], []>} : vector<4x256xf32>, vector<256x1024xf32>, vector<4x1024xf32> -> vector<4x1024xf32>
      %7 = arith.index_cast %arg5 : i32 to index
      %c0_3 = arith.constant 0 : index
      %c0_4 = arith.constant 0 : index
      %8 = vector.load %arg1[%7, %c0_3, %c0_4] : memref<16x4x1024xbf16, #tpu.memory_space<vmem>>, vector<1x4x512xbf16>
      %9 = vector.shape_cast %8 : vector<1x4x512xbf16> to vector<4x512xbf16>
      %10 = arith.extf %9 : vector<4x512xbf16> to vector<4x512xf32>
      %11 = vector.extract_strided_slice %6 {offsets = [0, 0], sizes = [4, 512], strides = [1, 1]} : vector<4x1024xf32> to vector<4x512xf32>
      %12 = arith.addf %10, %11 : vector<4x512xf32>
      %13 = arith.index_cast %3 : i32 to index
      %c0_5 = arith.constant 0 : index
      %c512 = arith.constant 512 : index
      %14 = vector.load %arg1[%13, %c0_5, %c512] : memref<16x4x1024xbf16, #tpu.memory_space<vmem>>, vector<1x4x512xbf16>
      %15 = vector.shape_cast %14 : vector<1x4x512xbf16> to vector<4x512xbf16>
      %16 = arith.extf %15 : vector<4x512xbf16> to vector<4x512xf32>
      %17 = vector.extract_strided_slice %6 {offsets = [0, 512], sizes = [4, 512], strides = [1, 1]} : vector<4x1024xf32> to vector<4x512xf32>
      %18 = arith.addf %16, %17 : vector<4x512xf32>
      %19 = vector.extract_strided_slice %12 {offsets = [0, 0], sizes = [4, 128], strides = [1, 1]} : vector<4x512xf32> to vector<4x128xf32>
      %20 = arith.negf %19 : vector<4x128xf32>
      %21 = math.exp %20 : vector<4x128xf32>
      %cst_6 = arith.constant 1.000000e+00 : f32
      %22 = vector.broadcast %cst_6 : f32 to vector<4x128xf32>
      %23 = arith.addf %22, %21 : vector<4x128xf32>
      %24 = arith.divf %22, %23 : vector<4x128xf32>
      %25 = vector.extract_strided_slice %12 {offsets = [0, 128], sizes = [4, 128], strides = [1, 1]} : vector<4x512xf32> to vector<4x128xf32>
      %26 = arith.negf %25 : vector<4x128xf32>
      %27 = math.exp %26 : vector<4x128xf32>
      %cst_7 = arith.constant 1.000000e+00 : f32
      %28 = vector.broadcast %cst_7 : f32 to vector<4x128xf32>
      %29 = arith.addf %28, %27 : vector<4x128xf32>
      %30 = arith.divf %28, %29 : vector<4x128xf32>
      %31 = vector.extract_strided_slice %12 {offsets = [0, 256], sizes = [4, 128], strides = [1, 1]} : vector<4x512xf32> to vector<4x128xf32>
      %32 = math.tanh %31 : vector<4x128xf32>
      %33 = vector.extract_strided_slice %12 {offsets = [0, 384], sizes = [4, 128], strides = [1, 1]} : vector<4x512xf32> to vector<4x128xf32>
      %34 = arith.negf %33 : vector<4x128xf32>
      %35 = math.exp %34 : vector<4x128xf32>
      %cst_8 = arith.constant 1.000000e+00 : f32
      %36 = vector.broadcast %cst_8 : f32 to vector<4x128xf32>
      %37 = arith.addf %36, %35 : vector<4x128xf32>
      %38 = arith.divf %36, %37 : vector<4x128xf32>
      %39 = arith.mulf %30, %arg7 : vector<4x128xf32>
      %40 = arith.mulf %24, %32 : vector<4x128xf32>
      %41 = arith.addf %39, %40 : vector<4x128xf32>
      %42 = math.tanh %41 : vector<4x128xf32>
      %43 = arith.mulf %38, %42 : vector<4x128xf32>
      %44 = vector.extract_strided_slice %18 {offsets = [0, 0], sizes = [4, 128], strides = [1, 1]} : vector<4x512xf32> to vector<4x128xf32>
      %45 = arith.negf %44 : vector<4x128xf32>
      %46 = math.exp %45 : vector<4x128xf32>
      %cst_9 = arith.constant 1.000000e+00 : f32
      %47 = vector.broadcast %cst_9 : f32 to vector<4x128xf32>
      %48 = arith.addf %47, %46 : vector<4x128xf32>
      %49 = arith.divf %47, %48 : vector<4x128xf32>
      %50 = vector.extract_strided_slice %18 {offsets = [0, 128], sizes = [4, 128], strides = [1, 1]} : vector<4x512xf32> to vector<4x128xf32>
      %51 = arith.negf %50 : vector<4x128xf32>
      %52 = math.exp %51 : vector<4x128xf32>
      %cst_10 = arith.constant 1.000000e+00 : f32
      %53 = vector.broadcast %cst_10 : f32 to vector<4x128xf32>
      %54 = arith.addf %53, %52 : vector<4x128xf32>
      %55 = arith.divf %53, %54 : vector<4x128xf32>
      %56 = vector.extract_strided_slice %18 {offsets = [0, 256], sizes = [4, 128], strides = [1, 1]} : vector<4x512xf32> to vector<4x128xf32>
      %57 = math.tanh %56 : vector<4x128xf32>
      %58 = vector.extract_strided_slice %18 {offsets = [0, 384], sizes = [4, 128], strides = [1, 1]} : vector<4x512xf32> to vector<4x128xf32>
      %59 = arith.negf %58 : vector<4x128xf32>
      %60 = math.exp %59 : vector<4x128xf32>
      %cst_11 = arith.constant 1.000000e+00 : f32
      %61 = vector.broadcast %cst_11 : f32 to vector<4x128xf32>
      %62 = arith.addf %61, %60 : vector<4x128xf32>
      %63 = arith.divf %61, %62 : vector<4x128xf32>
      %64 = arith.mulf %55, %arg9 : vector<4x128xf32>
      %65 = arith.mulf %49, %57 : vector<4x128xf32>
      %66 = arith.addf %64, %65 : vector<4x128xf32>
      %67 = math.tanh %66 : vector<4x128xf32>
      %68 = arith.mulf %63, %67 : vector<4x128xf32>
      %69 = arith.index_cast %arg5 : i32 to index
      %c0_12 = arith.constant 0 : index
      %c0_13 = arith.constant 0 : index
      %70 = vector.load %arg2[%69, %c0_12, %c0_13] : memref<16x4x1xf32, #tpu.memory_space<vmem>>, vector<1x4x1xf32>
      %71 = vector.shape_cast %70 : vector<1x4x1xf32> to vector<4x1xf32>
      %cst_14 = arith.constant 0.000000e+00 : f32
      %72 = vector.broadcast %cst_14 : f32 to vector<4x1xf32>
      %73 = arith.cmpf ogt, %71, %72 : vector<4x1xf32>
      %74 = arith.index_cast %3 : i32 to index
      %c0_15 = arith.constant 0 : index
      %c0_16 = arith.constant 0 : index
      %75 = vector.load %arg2[%74, %c0_15, %c0_16] : memref<16x4x1xf32, #tpu.memory_space<vmem>>, vector<1x4x1xf32>
      %76 = vector.shape_cast %75 : vector<1x4x1xf32> to vector<4x1xf32>
      %cst_17 = arith.constant 0.000000e+00 : f32
      %77 = vector.broadcast %cst_17 : f32 to vector<4x1xf32>
      %78 = arith.cmpf ogt, %76, %77 : vector<4x1xf32>
      %cst_18 = arith.constant 0.000000e+00 : f32
      %79 = vector.shape_cast %73 : vector<4x1xi1> to vector<4x1xi1>
      %80 = vector.broadcast %79 : vector<4x1xi1> to vector<4x128xi1>
      %81 = vector.broadcast %cst_18 : f32 to vector<4x128xf32>
      %82 = arith.select %80, %43, %81 : vector<4x128xi1>, vector<4x128xf32>
      %83 = arith.index_cast %arg5 : i32 to index
      %c0_19 = arith.constant 0 : index
      %c0_20 = arith.constant 0 : index
      %84 = vector.load %arg4[%83, %c0_19, %c0_20] : memref<16x4x256xf32, #tpu.memory_space<vmem>>, vector<1x4x128xf32>
      %85 = vector.shape_cast %84 : vector<1x4x128xf32> to vector<4x128xf32>
      %86 = vector.shape_cast %82 : vector<4x128xf32> to vector<1x4x128xf32>
      tpu.vector_store %arg4[%83, %c0_19, %c0_20], %86 {strides = array<i32>} : memref<16x4x256xf32, #tpu.memory_space<vmem>>, vector<1x4x128xf32>,
      %cst_21 = arith.constant 0.000000e+00 : f32
      %87 = vector.shape_cast %78 : vector<4x1xi1> to vector<4x1xi1>
      %88 = vector.broadcast %87 : vector<4x1xi1> to vector<4x128xi1>
      %89 = vector.broadcast %cst_21 : f32 to vector<4x128xf32>
      %90 = arith.select %88, %68, %89 : vector<4x128xi1>, vector<4x128xf32>
      %91 = arith.index_cast %3 : i32 to index
      %c0_22 = arith.constant 0 : index
      %c128 = arith.constant 128 : index
      %92 = vector.load %arg4[%91, %c0_22, %c128] : memref<16x4x256xf32, #tpu.memory_space<vmem>>, vector<1x4x128xf32>
      %93 = vector.shape_cast %92 : vector<1x4x128xf32> to vector<4x128xf32>
      %94 = vector.shape_cast %90 : vector<4x128xf32> to vector<1x4x128xf32>
      tpu.vector_store %arg4[%91, %c0_22, %c128], %94 {strides = array<i32>} : memref<16x4x256xf32, #tpu.memory_space<vmem>>, vector<1x4x128xf32>,
      %95 = vector.shape_cast %73 : vector<4x1xi1> to vector<4x1xi1>
      %96 = vector.broadcast %95 : vector<4x1xi1> to vector<4x128xi1>
      %97 = arith.select %96, %43, %arg6 : vector<4x128xi1>, vector<4x128xf32>
      %98 = vector.shape_cast %73 : vector<4x1xi1> to vector<4x1xi1>
      %99 = vector.broadcast %98 : vector<4x1xi1> to vector<4x128xi1>
      %100 = arith.select %99, %41, %arg7 : vector<4x128xi1>, vector<4x128xf32>
      %101 = vector.shape_cast %78 : vector<4x1xi1> to vector<4x1xi1>
      %102 = vector.broadcast %101 : vector<4x1xi1> to vector<4x128xi1>
      %103 = arith.select %102, %68, %arg8 : vector<4x128xi1>, vector<4x128xf32>
      %104 = vector.shape_cast %78 : vector<4x1xi1> to vector<4x1xi1>
      %105 = vector.broadcast %104 : vector<4x1xi1> to vector<4x128xi1>
      %106 = arith.select %105, %66, %arg9 : vector<4x128xi1>, vector<4x128xf32>
      scf.yield %97, %100, %103, %106 : vector<4x128xf32>, vector<4x128xf32>, vector<4x128xf32>, vector<4x128xf32>
    }
    %c16_i32_0 = arith.constant 16 : i32
    return
  }
  func.func @transform_0(%arg0: i32) -> (i32, i32, i32) {
    %c0_i32 = arith.constant 0 : i32
    %c0_i32_0 = arith.constant 0 : i32
    %c0_i32_1 = arith.constant 0 : i32
    return %c0_i32, %arg0, %c0_i32_0 : i32, i32, i32
  }
  func.func @transform_1(%arg0: i32) -> (i32, i32, i32) {
    %c0_i32 = arith.constant 0 : i32
    %c0_i32_0 = arith.constant 0 : i32
    %c0_i32_1 = arith.constant 0 : i32
    return %c0_i32, %arg0, %c0_i32_0 : i32, i32, i32
  }
  func.func @transform_2(%arg0: i32) -> (i32, i32) {
    %c0_i32 = arith.constant 0 : i32
    %c0_i32_0 = arith.constant 0 : i32
    %c0_i32_1 = arith.constant 0 : i32
    return %c0_i32, %c0_i32_0 : i32, i32
  }
  func.func @transform_3(%arg0: i32) -> (i32, i32, i32) {
    %c0_i32 = arith.constant 0 : i32
    %c0_i32_0 = arith.constant 0 : i32
    %c0_i32_1 = arith.constant 0 : i32
    return %c0_i32, %arg0, %c0_i32_0 : i32, i32, i32
  }
}

module attributes {stable_mosaic.version = 11 : i64} {
  func.func @attention_kernel(%arg0: i32, %arg1: memref<2x16x256xf32, #tpu.memory_space<vmem>>, %arg2: memref<2x8x256xf32, #tpu.memory_space<vmem>>, %arg3: memref<2x16x1xf32, #tpu.memory_space<vmem>>, %arg4: memref<2x1x8xf32, #tpu.memory_space<vmem>>, %arg5: memref<1x256xf32, #tpu.memory_space<vmem>>, %arg6: memref<1x256xf32, #tpu.memory_space<vmem>>, %arg7: memref<1x256xf32, #tpu.memory_space<vmem>>, %arg8: memref<1x1xf32, #tpu.memory_space<vmem>>, %arg9: memref<2x16x1024xf32, #tpu.memory_space<vmem>>) attributes {dimension_semantics = [#tpu.dimension_semantics<parallel>], iteration_bounds = array<i64: 1>, scalar_prefetch = 0 : i64, scratch_operands = 0 : i64, tpu.core_type = #tpu.core_type<tc>, window_params = [{transform_indices = @transform_0, window_bounds = array<i64: 2, 16, 256>}, {transform_indices = @transform_1, window_bounds = array<i64: 2, 8, 256>}, {transform_indices = @transform_2, window_bounds = array<i64: 2, 16, 1>}, {transform_indices = @transform_3, window_bounds = array<i64: 2, 1, 8>}, {pipeline_mode = #tpu.pipeline_mode<synchronous>, transform_indices = @transform_4, window_bounds = array<i64: 1, 256>}, {pipeline_mode = #tpu.pipeline_mode<synchronous>, transform_indices = @transform_5, window_bounds = array<i64: 1, 256>}, {pipeline_mode = #tpu.pipeline_mode<synchronous>, transform_indices = @transform_6, window_bounds = array<i64: 1, 256>}, {pipeline_mode = #tpu.pipeline_mode<synchronous>, transform_indices = @transform_7, window_bounds = array<i64: 1, 1>}, {transform_indices = @transform_8, window_bounds = array<i64: 2, 16, 1024>}]} {
    %c0 = arith.constant 0 : index
    %c0_0 = arith.constant 0 : index
    %c0_1 = arith.constant 0 : index
    %0 = vector.load %arg1[%c0, %c0_0, %c0_1] : memref<2x16x256xf32, #tpu.memory_space<vmem>>, vector<2x16x256xf32>
    %c0_2 = arith.constant 0 : index
    %c0_3 = arith.constant 0 : index
    %c0_4 = arith.constant 0 : index
    %1 = vector.load %arg2[%c0_2, %c0_3, %c0_4] : memref<2x8x256xf32, #tpu.memory_space<vmem>>, vector<2x8x256xf32>
    %c0_5 = arith.constant 0 : index
    %c0_6 = arith.constant 0 : index
    %c0_7 = arith.constant 0 : index
    %2 = vector.load %arg3[%c0_5, %c0_6, %c0_7] : memref<2x16x1xf32, #tpu.memory_space<vmem>>, vector<2x16x1xf32>
    %cst = arith.constant 0.000000e+00 : f32
    %3 = vector.broadcast %cst : f32 to vector<2x16x1xf32>
    %4 = arith.cmpf ogt, %2, %3 : vector<2x16x1xf32>
    %c0_8 = arith.constant 0 : index
    %c0_9 = arith.constant 0 : index
    %c0_10 = arith.constant 0 : index
    %5 = vector.load %arg4[%c0_8, %c0_9, %c0_10] : memref<2x1x8xf32, #tpu.memory_space<vmem>>, vector<2x1x8xf32>
    %cst_11 = arith.constant 0.000000e+00 : f32
    %6 = vector.broadcast %cst_11 : f32 to vector<2x1x8xf32>
    %7 = arith.cmpf ogt, %5, %6 : vector<2x1x8xf32>
    %8 = arith.truncf %0 : vector<2x16x256xf32> to vector<2x16x256xbf16>
    %9 = arith.truncf %1 : vector<2x8x256xf32> to vector<2x8x256xbf16>
    %c0_12 = arith.constant 0 : index
    %c0_13 = arith.constant 0 : index
    %10 = vector.load %arg5[%c0_12, %c0_13] : memref<1x256xf32, #tpu.memory_space<vmem>>, vector<1x256xf32>
    %11 = vector.shape_cast %10 : vector<1x256xf32> to vector<1x1x256xf32>
    %12 = vector.broadcast %11 : vector<1x1x256xf32> to vector<2x16x256xf32>
    %13 = arith.mulf %0, %12 : vector<2x16x256xf32>
    %cst_14 = arith.constant dense<0.000000e+00> : vector<2x16xf32>
    %14 = vector.multi_reduction <add>, %13, %cst_14 [2] : vector<2x16x256xf32> to vector<2x16xf32>
    %15 = vector.shape_cast %14 : vector<2x16xf32> to vector<2x16x1xf32>
    %c0_15 = arith.constant 0 : index
    %c0_16 = arith.constant 0 : index
    %16 = vector.load %arg6[%c0_15, %c0_16] : memref<1x256xf32, #tpu.memory_space<vmem>>, vector<1x256xf32>
    %17 = vector.shape_cast %16 : vector<1x256xf32> to vector<1x1x256xf32>
    %18 = vector.broadcast %17 : vector<1x1x256xf32> to vector<2x8x256xf32>
    %19 = arith.mulf %1, %18 : vector<2x8x256xf32>
    %cst_17 = arith.constant dense<0.000000e+00> : vector<2x8xf32>
    %20 = vector.multi_reduction <add>, %19, %cst_17 [2] : vector<2x8x256xf32> to vector<2x8xf32>
    %21 = vector.shape_cast %20 : vector<2x8xf32> to vector<2x1x8xf32>
    %c0_18 = arith.constant 0 : index
    %c0_19 = arith.constant 0 : index
    %22 = vector.load %arg7[%c0_18, %c0_19] : memref<1x256xf32, #tpu.memory_space<vmem>>, vector<1x256xf32>
    %23 = vector.shape_cast %22 : vector<1x256xf32> to vector<1x1x256xf32>
    %24 = vector.broadcast %23 : vector<1x1x256xf32> to vector<2x16x256xf32>
    %25 = arith.mulf %0, %24 : vector<2x16x256xf32>
    %26 = arith.truncf %25 : vector<2x16x256xf32> to vector<2x16x256xbf16>
    "tpu.trace_start"() <{level = 10 : i32, message = "bcd,bqd->bcq"}> : () -> ()
    %cst_20 = arith.constant dense<0.000000e+00> : vector<2x16x8xf32>
    %27 = tpu.matmul %26, %9, %cst_20 {dimension_numbers = #tpu.dot_dimension_numbers<[2], [2], [1], [1], [0, 0, 0, 1, 1, 1], [0], [0]>} : vector<2x16x256xbf16>, vector<2x8x256xbf16>, vector<2x16x8xf32> -> vector<2x16x8xf32>
    "tpu.trace_stop"() : () -> ()
    %28 = vector.broadcast %15 : vector<2x16x1xf32> to vector<2x16x8xf32>
    %29 = vector.broadcast %21 : vector<2x1x8xf32> to vector<2x16x8xf32>
    %30 = arith.addf %28, %29 : vector<2x16x8xf32>
    %31 = arith.addf %30, %27 : vector<2x16x8xf32>
    %c0_21 = arith.constant 0 : index
    %c0_22 = arith.constant 0 : index
    %32 = vector.load %arg8[%c0_21, %c0_22] : memref<1x1xf32, #tpu.memory_space<vmem>>, vector<1x1xf32>
    %33 = vector.shape_cast %32 : vector<1x1xf32> to vector<1x1x1xf32>
    %34 = vector.broadcast %33 : vector<1x1x1xf32> to vector<2x16x8xf32>
    %35 = arith.addf %31, %34 : vector<2x16x8xf32>
    %cst_23 = arith.constant -1.000000e+30 : f32
    %36 = vector.shape_cast %7 : vector<2x1x8xi1> to vector<2x1x8xi1>
    %37 = vector.broadcast %36 : vector<2x1x8xi1> to vector<2x16x8xi1>
    %38 = vector.broadcast %cst_23 : f32 to vector<2x16x8xf32>
    %39 = arith.select %37, %35, %38 : vector<2x16x8xi1>, vector<2x16x8xf32>
    %cst_24 = arith.constant dense<0xFF800000> : vector<2x16xf32>
    %40 = vector.multi_reduction <maximumf>, %39, %cst_24 [2] : vector<2x16x8xf32> to vector<2x16xf32>
    %41 = vector.shape_cast %40 : vector<2x16xf32> to vector<2x16x1xf32>
    %42 = vector.broadcast %41 : vector<2x16x1xf32> to vector<2x16x8xf32>
    %43 = arith.subf %39, %42 : vector<2x16x8xf32>
    %44 = math.exp %43 : vector<2x16x8xf32>
    %cst_25 = arith.constant dense<0.000000e+00> : vector<2x16xf32>
    %45 = vector.multi_reduction <add>, %44, %cst_25 [2] : vector<2x16x8xf32> to vector<2x16xf32>
    %46 = vector.shape_cast %45 : vector<2x16xf32> to vector<2x16x1xf32>
    %47 = tpu.reciprocal %46 {approx = true} : vector<2x16x1xf32> -> vector<2x16x1xf32>
    %48 = vector.broadcast %47 : vector<2x16x1xf32> to vector<2x16x8xf32>
    %49 = arith.mulf %44, %48 : vector<2x16x8xf32>
    %cst_26 = arith.constant -1.000000e+30 : f32
    %50 = vector.shape_cast %4 : vector<2x16x1xi1> to vector<2x16x1xi1>
    %51 = vector.broadcast %50 : vector<2x16x1xi1> to vector<2x16x8xi1>
    %52 = vector.broadcast %cst_26 : f32 to vector<2x16x8xf32>
    %53 = arith.select %51, %35, %52 : vector<2x16x8xi1>, vector<2x16x8xf32>
    %cst_27 = arith.constant dense<0xFF800000> : vector<2x8xf32>
    %54 = vector.multi_reduction <maximumf>, %53, %cst_27 [1] : vector<2x16x8xf32> to vector<2x8xf32>
    %55 = vector.shape_cast %54 : vector<2x8xf32> to vector<2x1x8xf32>
    %56 = vector.broadcast %55 : vector<2x1x8xf32> to vector<2x16x8xf32>
    %57 = arith.subf %53, %56 : vector<2x16x8xf32>
    %58 = math.exp %57 : vector<2x16x8xf32>
    %cst_28 = arith.constant dense<0.000000e+00> : vector<2x8xf32>
    %59 = vector.multi_reduction <add>, %58, %cst_28 [1] : vector<2x16x8xf32> to vector<2x8xf32>
    %60 = vector.shape_cast %59 : vector<2x8xf32> to vector<2x1x8xf32>
    %61 = tpu.reciprocal %60 {approx = true} : vector<2x1x8xf32> -> vector<2x1x8xf32>
    %62 = vector.broadcast %61 : vector<2x1x8xf32> to vector<2x16x8xf32>
    %63 = arith.mulf %58, %62 : vector<2x16x8xf32>
    %64 = arith.truncf %49 : vector<2x16x8xf32> to vector<2x16x8xbf16>
    "tpu.trace_start"() <{level = 10 : i32, message = "bcq,bqd->bcd"}> : () -> ()
    %cst_29 = arith.constant dense<0.000000e+00> : vector<2x16x256xf32>
    %65 = tpu.matmul %64, %9, %cst_29 {dimension_numbers = #tpu.dot_dimension_numbers<[2], [1], [1], [2], [0, 0, 0, 1, 1, 2], [0], [0]>} : vector<2x16x8xbf16>, vector<2x8x256xbf16>, vector<2x16x256xf32> -> vector<2x16x256xf32>
    "tpu.trace_stop"() : () -> ()
    %66 = arith.truncf %63 : vector<2x16x8xf32> to vector<2x16x8xbf16>
    "tpu.trace_start"() <{level = 10 : i32, message = "bcq,bcd->bqd"}> : () -> ()
    %cst_30 = arith.constant dense<0.000000e+00> : vector<2x8x256xf32>
    %67 = tpu.matmul %66, %8, %cst_30 {dimension_numbers = #tpu.dot_dimension_numbers<[1], [1], [2], [2], [0, 0, 0, 2, 1, 2], [0], [0]>} : vector<2x16x8xbf16>, vector<2x16x256xbf16>, vector<2x8x256xf32> -> vector<2x8x256xf32>
    "tpu.trace_stop"() : () -> ()
    %68 = arith.truncf %67 : vector<2x8x256xf32> to vector<2x8x256xbf16>
    "tpu.trace_start"() <{level = 10 : i32, message = "bcq,bqd->bcd"}> : () -> ()
    %cst_31 = arith.constant dense<0.000000e+00> : vector<2x16x256xf32>
    %69 = tpu.matmul %64, %68, %cst_31 {dimension_numbers = #tpu.dot_dimension_numbers<[2], [1], [1], [2], [0, 0, 0, 1, 1, 2], [0], [0]>} : vector<2x16x8xbf16>, vector<2x8x256xbf16>, vector<2x16x256xf32> -> vector<2x16x256xf32>
    "tpu.trace_stop"() : () -> ()
    %c0_32 = arith.constant 0 : index
    %c0_33 = arith.constant 0 : index
    %c0_34 = arith.constant 0 : index
    %70 = vector.load %arg9[%c0_32, %c0_33, %c0_34] : memref<2x16x1024xf32, #tpu.memory_space<vmem>>, vector<2x16x256xf32>
    tpu.vector_store %arg9[%c0_32, %c0_33, %c0_34], %0 {strides = array<i32>} : memref<2x16x1024xf32, #tpu.memory_space<vmem>>, vector<2x16x256xf32>,
    %c0_35 = arith.constant 0 : index
    %c0_36 = arith.constant 0 : index
    %c256 = arith.constant 256 : index
    %71 = vector.load %arg9[%c0_35, %c0_36, %c256] : memref<2x16x1024xf32, #tpu.memory_space<vmem>>, vector<2x16x256xf32>
    tpu.vector_store %arg9[%c0_35, %c0_36, %c256], %65 {strides = array<i32>} : memref<2x16x1024xf32, #tpu.memory_space<vmem>>, vector<2x16x256xf32>,
    %72 = arith.mulf %0, %65 : vector<2x16x256xf32>
    %c0_37 = arith.constant 0 : index
    %c0_38 = arith.constant 0 : index
    %c512 = arith.constant 512 : index
    %73 = vector.load %arg9[%c0_37, %c0_38, %c512] : memref<2x16x1024xf32, #tpu.memory_space<vmem>>, vector<2x16x256xf32>
    tpu.vector_store %arg9[%c0_37, %c0_38, %c512], %72 {strides = array<i32>} : memref<2x16x1024xf32, #tpu.memory_space<vmem>>, vector<2x16x256xf32>,
    %74 = arith.mulf %0, %69 : vector<2x16x256xf32>
    %c0_39 = arith.constant 0 : index
    %c0_40 = arith.constant 0 : index
    %c768 = arith.constant 768 : index
    %75 = vector.load %arg9[%c0_39, %c0_40, %c768] : memref<2x16x1024xf32, #tpu.memory_space<vmem>>, vector<2x16x256xf32>
    tpu.vector_store %arg9[%c0_39, %c0_40, %c768], %74 {strides = array<i32>} : memref<2x16x1024xf32, #tpu.memory_space<vmem>>, vector<2x16x256xf32>,
    return
  }
  func.func @transform_0(%arg0: i32) -> (i32, i32, i32) {
    %c0_i32 = arith.constant 0 : i32
    %c0_i32_0 = arith.constant 0 : i32
    %c0_i32_1 = arith.constant 0 : i32
    return %arg0, %c0_i32, %c0_i32_0 : i32, i32, i32
  }
  func.func @transform_1(%arg0: i32) -> (i32, i32, i32) {
    %c0_i32 = arith.constant 0 : i32
    %c0_i32_0 = arith.constant 0 : i32
    %c0_i32_1 = arith.constant 0 : i32
    return %arg0, %c0_i32, %c0_i32_0 : i32, i32, i32
  }
  func.func @transform_2(%arg0: i32) -> (i32, i32, i32) {
    %c0_i32 = arith.constant 0 : i32
    %c0_i32_0 = arith.constant 0 : i32
    %c0_i32_1 = arith.constant 0 : i32
    return %arg0, %c0_i32, %c0_i32_0 : i32, i32, i32
  }
  func.func @transform_3(%arg0: i32) -> (i32, i32, i32) {
    %c0_i32 = arith.constant 0 : i32
    %c0_i32_0 = arith.constant 0 : i32
    %c0_i32_1 = arith.constant 0 : i32
    return %arg0, %c0_i32, %c0_i32_0 : i32, i32, i32
  }
  func.func @transform_4(%arg0: i32) -> (i32, i32) {
    %c0_i32 = arith.constant 0 : i32
    %c0_i32_0 = arith.constant 0 : i32
    %c0_i32_1 = arith.constant 0 : i32
    return %c0_i32, %c0_i32_0 : i32, i32
  }
  func.func @transform_5(%arg0: i32) -> (i32, i32) {
    %c0_i32 = arith.constant 0 : i32
    %c0_i32_0 = arith.constant 0 : i32
    %c0_i32_1 = arith.constant 0 : i32
    return %c0_i32, %c0_i32_0 : i32, i32
  }
  func.func @transform_6(%arg0: i32) -> (i32, i32) {
    %c0_i32 = arith.constant 0 : i32
    %c0_i32_0 = arith.constant 0 : i32
    %c0_i32_1 = arith.constant 0 : i32
    return %c0_i32, %c0_i32_0 : i32, i32
  }
  func.func @transform_7(%arg0: i32) -> (i32, i32) {
    %c0_i32 = arith.constant 0 : i32
    %c0_i32_0 = arith.constant 0 : i32
    %c0_i32_1 = arith.constant 0 : i32
    return %c0_i32, %c0_i32_0 : i32, i32
  }
  func.func @transform_8(%arg0: i32) -> (i32, i32, i32) {
    %c0_i32 = arith.constant 0 : i32
    %c0_i32_0 = arith.constant 0 : i32
    %c0_i32_1 = arith.constant 0 : i32
    return %arg0, %c0_i32, %c0_i32_0 : i32, i32, i32
  }
}

module attributes {stable_mosaic.version = 11 : i64} {
  func.func @linear_kernel(%arg0: i32, %arg1: memref<32x1024xf32, #tpu.memory_space<vmem>>, %arg2: memref<1024x1024xbf16, #tpu.memory_space<vmem>>, %arg3: memref<1x1024xf32, #tpu.memory_space<vmem>>, %arg4: memref<32x1024xbf16, #tpu.memory_space<vmem>>) attributes {dimension_semantics = [#tpu.dimension_semantics<parallel>], iteration_bounds = array<i64: 1>, scalar_prefetch = 0 : i64, scratch_operands = 0 : i64, tpu.core_type = #tpu.core_type<tc>, window_params = [{transform_indices = @transform_0, window_bounds = array<i64: 32, 1024>}, {pipeline_mode = #tpu.pipeline_mode<synchronous>, transform_indices = @transform_1, window_bounds = array<i64: 1024, 1024>}, {pipeline_mode = #tpu.pipeline_mode<synchronous>, transform_indices = @transform_2, window_bounds = array<i64: 1, 1024>}, {transform_indices = @transform_3, window_bounds = array<i64: 32, 1024>}]} {
    %c0 = arith.constant 0 : index
    %c0_0 = arith.constant 0 : index
    %0 = vector.load %arg1[%c0, %c0_0] : memref<32x1024xf32, #tpu.memory_space<vmem>>, vector<32x1024xf32>
    %1 = arith.truncf %0 : vector<32x1024xf32> to vector<32x1024xbf16>
    %c0_1 = arith.constant 0 : index
    %c0_2 = arith.constant 0 : index
    %2 = vector.load %arg2[%c0_1, %c0_2] : memref<1024x1024xbf16, #tpu.memory_space<vmem>>, vector<1024x1024xbf16>
    %cst = arith.constant dense<0.000000e+00> : vector<32x1024xf32>
    %3 = tpu.matmul %1, %2, %cst {dimension_numbers = #tpu.dot_dimension_numbers<[1], [0], [0], [1], [0, 0, 1, 1], [], []>} : vector<32x1024xbf16>, vector<1024x1024xbf16>, vector<32x1024xf32> -> vector<32x1024xf32>
    %c0_3 = arith.constant 0 : index
    %c0_4 = arith.constant 0 : index
    %4 = vector.load %arg3[%c0_3, %c0_4] : memref<1x1024xf32, #tpu.memory_space<vmem>>, vector<1x1024xf32>
    %5 = vector.broadcast %4 : vector<1x1024xf32> to vector<32x1024xf32>
    %6 = arith.addf %3, %5 : vector<32x1024xf32>
    %7 = arith.truncf %6 : vector<32x1024xf32> to vector<32x1024xbf16>
    %c0_5 = arith.constant 0 : index
    %c0_6 = arith.constant 0 : index
    %8 = vector.load %arg4[%c0_5, %c0_6] : memref<32x1024xbf16, #tpu.memory_space<vmem>>, vector<32x1024xbf16>
    tpu.vector_store %arg4[%c0_5, %c0_6], %7 {strides = array<i32>} : memref<32x1024xbf16, #tpu.memory_space<vmem>>, vector<32x1024xbf16>,
    return
  }
  func.func @transform_0(%arg0: i32) -> (i32, i32) {
    %c0_i32 = arith.constant 0 : i32
    %c0_i32_0 = arith.constant 0 : i32
    return %arg0, %c0_i32 : i32, i32
  }
  func.func @transform_1(%arg0: i32) -> (i32, i32) {
    %c0_i32 = arith.constant 0 : i32
    %c0_i32_0 = arith.constant 0 : i32
    %c0_i32_1 = arith.constant 0 : i32
    return %c0_i32, %c0_i32_0 : i32, i32
  }
  func.func @transform_2(%arg0: i32) -> (i32, i32) {
    %c0_i32 = arith.constant 0 : i32
    %c0_i32_0 = arith.constant 0 : i32
    %c0_i32_1 = arith.constant 0 : i32
    return %c0_i32, %c0_i32_0 : i32, i32
  }
  func.func @transform_3(%arg0: i32) -> (i32, i32) {
    %c0_i32 = arith.constant 0 : i32
    %c0_i32_0 = arith.constant 0 : i32
    return %arg0, %c0_i32 : i32, i32
  }
}

module attributes {stable_mosaic.version = 11 : i64} {
  func.func @bilstm_recurrence_kernel(%arg0: i32, %arg1: memref<16x2x1024xbf16, #tpu.memory_space<vmem>>, %arg2: memref<16x2x1xf32, #tpu.memory_space<vmem>>, %arg3: memref<256x1024xf32, #tpu.memory_space<vmem>>, %arg4: memref<16x2x256xf32, #tpu.memory_space<vmem>>) attributes {dimension_semantics = [#tpu.dimension_semantics<parallel>], iteration_bounds = array<i64: 1>, scalar_prefetch = 0 : i64, scratch_operands = 0 : i64, tpu.core_type = #tpu.core_type<tc>, window_params = [{transform_indices = @transform_0, window_bounds = array<i64: 16, 2, 1024>}, {transform_indices = @transform_1, window_bounds = array<i64: 16, 2, 1>}, {pipeline_mode = #tpu.pipeline_mode<synchronous>, transform_indices = @transform_2, window_bounds = array<i64: 256, 1024>}, {transform_indices = @transform_3, window_bounds = array<i64: 16, 2, 256>}]} {
    %cst = arith.constant 0.000000e+00 : f32
    %0 = vector.broadcast %cst : f32 to vector<2x128xf32>
    %c0_i32 = arith.constant 0 : i32
    %c16_i32 = arith.constant 16 : i32
    %1 = arith.addi %c0_i32, %c16_i32 : i32
    %c1_i32 = arith.constant 1 : i32
    %2:4 = scf.for %arg5 = %c0_i32 to %1 step %c1_i32 iter_args(%arg6 = %0, %arg7 = %0, %arg8 = %0, %arg9 = %0) -> (vector<2x128xf32>, vector<2x128xf32>, vector<2x128xf32>, vector<2x128xf32>)  : i32 {
      %c15_i32 = arith.constant 15 : i32
      %3 = arith.subi %c15_i32, %arg5 : i32
      %4 = tpu.concatenate %arg6, %arg8 in 1 : vector<2x128xf32>, vector<2x128xf32> -> vector<2x256xf32>
      %c0 = arith.constant 0 : index
      %c0_1 = arith.constant 0 : index
      %5 = vector.load %arg3[%c0, %c0_1] : memref<256x1024xf32, #tpu.memory_space<vmem>>, vector<256x1024xf32>
      %cst_2 = arith.constant dense<0.000000e+00> : vector<2x1024xf32>
      %6 = tpu.matmul %4, %5, %cst_2 {dimension_numbers = #tpu.dot_dimension_numbers<[1], [0], [0], [1], [0, 0, 1, 1], [], []>} : vector<2x256xf32>, vector<256x1024xf32>, vector<2x1024xf32> -> vector<2x1024xf32>
      %7 = arith.index_cast %arg5 : i32 to index
      %c0_3 = arith.constant 0 : index
      %c0_4 = arith.constant 0 : index
      %8 = vector.load %arg1[%7, %c0_3, %c0_4] : memref<16x2x1024xbf16, #tpu.memory_space<vmem>>, vector<1x2x512xbf16>
      %9 = vector.shape_cast %8 : vector<1x2x512xbf16> to vector<2x512xbf16>
      %10 = arith.extf %9 : vector<2x512xbf16> to vector<2x512xf32>
      %11 = vector.extract_strided_slice %6 {offsets = [0, 0], sizes = [2, 512], strides = [1, 1]} : vector<2x1024xf32> to vector<2x512xf32>
      %12 = arith.addf %10, %11 : vector<2x512xf32>
      %13 = arith.index_cast %3 : i32 to index
      %c0_5 = arith.constant 0 : index
      %c512 = arith.constant 512 : index
      %14 = vector.load %arg1[%13, %c0_5, %c512] : memref<16x2x1024xbf16, #tpu.memory_space<vmem>>, vector<1x2x512xbf16>
      %15 = vector.shape_cast %14 : vector<1x2x512xbf16> to vector<2x512xbf16>
      %16 = arith.extf %15 : vector<2x512xbf16> to vector<2x512xf32>
      %17 = vector.extract_strided_slice %6 {offsets = [0, 512], sizes = [2, 512], strides = [1, 1]} : vector<2x1024xf32> to vector<2x512xf32>
      %18 = arith.addf %16, %17 : vector<2x512xf32>
      %19 = vector.extract_strided_slice %12 {offsets = [0, 0], sizes = [2, 128], strides = [1, 1]} : vector<2x512xf32> to vector<2x128xf32>
      %20 = arith.negf %19 : vector<2x128xf32>
      %21 = math.exp %20 : vector<2x128xf32>
      %cst_6 = arith.constant 1.000000e+00 : f32
      %22 = vector.broadcast %cst_6 : f32 to vector<2x128xf32>
      %23 = arith.addf %22, %21 : vector<2x128xf32>
      %24 = arith.divf %22, %23 : vector<2x128xf32>
      %25 = vector.extract_strided_slice %12 {offsets = [0, 128], sizes = [2, 128], strides = [1, 1]} : vector<2x512xf32> to vector<2x128xf32>
      %26 = arith.negf %25 : vector<2x128xf32>
      %27 = math.exp %26 : vector<2x128xf32>
      %cst_7 = arith.constant 1.000000e+00 : f32
      %28 = vector.broadcast %cst_7 : f32 to vector<2x128xf32>
      %29 = arith.addf %28, %27 : vector<2x128xf32>
      %30 = arith.divf %28, %29 : vector<2x128xf32>
      %31 = vector.extract_strided_slice %12 {offsets = [0, 256], sizes = [2, 128], strides = [1, 1]} : vector<2x512xf32> to vector<2x128xf32>
      %32 = math.tanh %31 : vector<2x128xf32>
      %33 = vector.extract_strided_slice %12 {offsets = [0, 384], sizes = [2, 128], strides = [1, 1]} : vector<2x512xf32> to vector<2x128xf32>
      %34 = arith.negf %33 : vector<2x128xf32>
      %35 = math.exp %34 : vector<2x128xf32>
      %cst_8 = arith.constant 1.000000e+00 : f32
      %36 = vector.broadcast %cst_8 : f32 to vector<2x128xf32>
      %37 = arith.addf %36, %35 : vector<2x128xf32>
      %38 = arith.divf %36, %37 : vector<2x128xf32>
      %39 = arith.mulf %30, %arg7 : vector<2x128xf32>
      %40 = arith.mulf %24, %32 : vector<2x128xf32>
      %41 = arith.addf %39, %40 : vector<2x128xf32>
      %42 = math.tanh %41 : vector<2x128xf32>
      %43 = arith.mulf %38, %42 : vector<2x128xf32>
      %44 = vector.extract_strided_slice %18 {offsets = [0, 0], sizes = [2, 128], strides = [1, 1]} : vector<2x512xf32> to vector<2x128xf32>
      %45 = arith.negf %44 : vector<2x128xf32>
      %46 = math.exp %45 : vector<2x128xf32>
      %cst_9 = arith.constant 1.000000e+00 : f32
      %47 = vector.broadcast %cst_9 : f32 to vector<2x128xf32>
      %48 = arith.addf %47, %46 : vector<2x128xf32>
      %49 = arith.divf %47, %48 : vector<2x128xf32>
      %50 = vector.extract_strided_slice %18 {offsets = [0, 128], sizes = [2, 128], strides = [1, 1]} : vector<2x512xf32> to vector<2x128xf32>
      %51 = arith.negf %50 : vector<2x128xf32>
      %52 = math.exp %51 : vector<2x128xf32>
      %cst_10 = arith.constant 1.000000e+00 : f32
      %53 = vector.broadcast %cst_10 : f32 to vector<2x128xf32>
      %54 = arith.addf %53, %52 : vector<2x128xf32>
      %55 = arith.divf %53, %54 : vector<2x128xf32>
      %56 = vector.extract_strided_slice %18 {offsets = [0, 256], sizes = [2, 128], strides = [1, 1]} : vector<2x512xf32> to vector<2x128xf32>
      %57 = math.tanh %56 : vector<2x128xf32>
      %58 = vector.extract_strided_slice %18 {offsets = [0, 384], sizes = [2, 128], strides = [1, 1]} : vector<2x512xf32> to vector<2x128xf32>
      %59 = arith.negf %58 : vector<2x128xf32>
      %60 = math.exp %59 : vector<2x128xf32>
      %cst_11 = arith.constant 1.000000e+00 : f32
      %61 = vector.broadcast %cst_11 : f32 to vector<2x128xf32>
      %62 = arith.addf %61, %60 : vector<2x128xf32>
      %63 = arith.divf %61, %62 : vector<2x128xf32>
      %64 = arith.mulf %55, %arg9 : vector<2x128xf32>
      %65 = arith.mulf %49, %57 : vector<2x128xf32>
      %66 = arith.addf %64, %65 : vector<2x128xf32>
      %67 = math.tanh %66 : vector<2x128xf32>
      %68 = arith.mulf %63, %67 : vector<2x128xf32>
      %69 = arith.index_cast %arg5 : i32 to index
      %c0_12 = arith.constant 0 : index
      %c0_13 = arith.constant 0 : index
      %70 = vector.load %arg2[%69, %c0_12, %c0_13] : memref<16x2x1xf32, #tpu.memory_space<vmem>>, vector<1x2x1xf32>
      %71 = vector.shape_cast %70 : vector<1x2x1xf32> to vector<2x1xf32>
      %cst_14 = arith.constant 0.000000e+00 : f32
      %72 = vector.broadcast %cst_14 : f32 to vector<2x1xf32>
      %73 = arith.cmpf ogt, %71, %72 : vector<2x1xf32>
      %74 = arith.index_cast %3 : i32 to index
      %c0_15 = arith.constant 0 : index
      %c0_16 = arith.constant 0 : index
      %75 = vector.load %arg2[%74, %c0_15, %c0_16] : memref<16x2x1xf32, #tpu.memory_space<vmem>>, vector<1x2x1xf32>
      %76 = vector.shape_cast %75 : vector<1x2x1xf32> to vector<2x1xf32>
      %cst_17 = arith.constant 0.000000e+00 : f32
      %77 = vector.broadcast %cst_17 : f32 to vector<2x1xf32>
      %78 = arith.cmpf ogt, %76, %77 : vector<2x1xf32>
      %cst_18 = arith.constant 0.000000e+00 : f32
      %79 = vector.shape_cast %73 : vector<2x1xi1> to vector<2x1xi1>
      %80 = vector.broadcast %79 : vector<2x1xi1> to vector<2x128xi1>
      %81 = vector.broadcast %cst_18 : f32 to vector<2x128xf32>
      %82 = arith.select %80, %43, %81 : vector<2x128xi1>, vector<2x128xf32>
      %83 = arith.index_cast %arg5 : i32 to index
      %c0_19 = arith.constant 0 : index
      %c0_20 = arith.constant 0 : index
      %84 = vector.load %arg4[%83, %c0_19, %c0_20] : memref<16x2x256xf32, #tpu.memory_space<vmem>>, vector<1x2x128xf32>
      %85 = vector.shape_cast %84 : vector<1x2x128xf32> to vector<2x128xf32>
      %86 = vector.shape_cast %82 : vector<2x128xf32> to vector<1x2x128xf32>
      tpu.vector_store %arg4[%83, %c0_19, %c0_20], %86 {strides = array<i32>} : memref<16x2x256xf32, #tpu.memory_space<vmem>>, vector<1x2x128xf32>,
      %cst_21 = arith.constant 0.000000e+00 : f32
      %87 = vector.shape_cast %78 : vector<2x1xi1> to vector<2x1xi1>
      %88 = vector.broadcast %87 : vector<2x1xi1> to vector<2x128xi1>
      %89 = vector.broadcast %cst_21 : f32 to vector<2x128xf32>
      %90 = arith.select %88, %68, %89 : vector<2x128xi1>, vector<2x128xf32>
      %91 = arith.index_cast %3 : i32 to index
      %c0_22 = arith.constant 0 : index
      %c128 = arith.constant 128 : index
      %92 = vector.load %arg4[%91, %c0_22, %c128] : memref<16x2x256xf32, #tpu.memory_space<vmem>>, vector<1x2x128xf32>
      %93 = vector.shape_cast %92 : vector<1x2x128xf32> to vector<2x128xf32>
      %94 = vector.shape_cast %90 : vector<2x128xf32> to vector<1x2x128xf32>
      tpu.vector_store %arg4[%91, %c0_22, %c128], %94 {strides = array<i32>} : memref<16x2x256xf32, #tpu.memory_space<vmem>>, vector<1x2x128xf32>,
      %95 = vector.shape_cast %73 : vector<2x1xi1> to vector<2x1xi1>
      %96 = vector.broadcast %95 : vector<2x1xi1> to vector<2x128xi1>
      %97 = arith.select %96, %43, %arg6 : vector<2x128xi1>, vector<2x128xf32>
      %98 = vector.shape_cast %73 : vector<2x1xi1> to vector<2x1xi1>
      %99 = vector.broadcast %98 : vector<2x1xi1> to vector<2x128xi1>
      %100 = arith.select %99, %41, %arg7 : vector<2x128xi1>, vector<2x128xf32>
      %101 = vector.shape_cast %78 : vector<2x1xi1> to vector<2x1xi1>
      %102 = vector.broadcast %101 : vector<2x1xi1> to vector<2x128xi1>
      %103 = arith.select %102, %68, %arg8 : vector<2x128xi1>, vector<2x128xf32>
      %104 = vector.shape_cast %78 : vector<2x1xi1> to vector<2x1xi1>
      %105 = vector.broadcast %104 : vector<2x1xi1> to vector<2x128xi1>
      %106 = arith.select %105, %66, %arg9 : vector<2x128xi1>, vector<2x128xf32>
      scf.yield %97, %100, %103, %106 : vector<2x128xf32>, vector<2x128xf32>, vector<2x128xf32>, vector<2x128xf32>
    }
    %c16_i32_0 = arith.constant 16 : i32
    return
  }
  func.func @transform_0(%arg0: i32) -> (i32, i32, i32) {
    %c0_i32 = arith.constant 0 : i32
    %c0_i32_0 = arith.constant 0 : i32
    %c0_i32_1 = arith.constant 0 : i32
    return %c0_i32, %arg0, %c0_i32_0 : i32, i32, i32
  }
  func.func @transform_1(%arg0: i32) -> (i32, i32, i32) {
    %c0_i32 = arith.constant 0 : i32
    %c0_i32_0 = arith.constant 0 : i32
    %c0_i32_1 = arith.constant 0 : i32
    return %c0_i32, %arg0, %c0_i32_0 : i32, i32, i32
  }
  func.func @transform_2(%arg0: i32) -> (i32, i32) {
    %c0_i32 = arith.constant 0 : i32
    %c0_i32_0 = arith.constant 0 : i32
    %c0_i32_1 = arith.constant 0 : i32
    return %c0_i32, %c0_i32_0 : i32, i32
  }
  func.func @transform_3(%arg0: i32) -> (i32, i32, i32) {
    %c0_i32 = arith.constant 0 : i32
    %c0_i32_0 = arith.constant 0 : i32
    %c0_i32_1 = arith.constant 0 : i32
    return %c0_i32, %arg0, %c0_i32_0 : i32, i32, i32
  }
}

module attributes {stable_mosaic.version = 11 : i64} {
  func.func @linear_kernel(%arg0: i32, %arg1: memref<32x256xf32, #tpu.memory_space<vmem>>, %arg2: memref<256x1024xbf16, #tpu.memory_space<vmem>>, %arg3: memref<1x1024xf32, #tpu.memory_space<vmem>>, %arg4: memref<32x1024xbf16, #tpu.memory_space<vmem>>) attributes {dimension_semantics = [#tpu.dimension_semantics<parallel>], iteration_bounds = array<i64: 1>, scalar_prefetch = 0 : i64, scratch_operands = 0 : i64, tpu.core_type = #tpu.core_type<tc>, window_params = [{transform_indices = @transform_0, window_bounds = array<i64: 32, 256>}, {pipeline_mode = #tpu.pipeline_mode<synchronous>, transform_indices = @transform_1, window_bounds = array<i64: 256, 1024>}, {pipeline_mode = #tpu.pipeline_mode<synchronous>, transform_indices = @transform_2, window_bounds = array<i64: 1, 1024>}, {transform_indices = @transform_3, window_bounds = array<i64: 32, 1024>}]} {
    %c0 = arith.constant 0 : index
    %c0_0 = arith.constant 0 : index
    %0 = vector.load %arg1[%c0, %c0_0] : memref<32x256xf32, #tpu.memory_space<vmem>>, vector<32x256xf32>
    %1 = arith.truncf %0 : vector<32x256xf32> to vector<32x256xbf16>
    %c0_1 = arith.constant 0 : index
    %c0_2 = arith.constant 0 : index
    %2 = vector.load %arg2[%c0_1, %c0_2] : memref<256x1024xbf16, #tpu.memory_space<vmem>>, vector<256x1024xbf16>
    %cst = arith.constant dense<0.000000e+00> : vector<32x1024xf32>
    %3 = tpu.matmul %1, %2, %cst {dimension_numbers = #tpu.dot_dimension_numbers<[1], [0], [0], [1], [0, 0, 1, 1], [], []>} : vector<32x256xbf16>, vector<256x1024xbf16>, vector<32x1024xf32> -> vector<32x1024xf32>
    %c0_3 = arith.constant 0 : index
    %c0_4 = arith.constant 0 : index
    %4 = vector.load %arg3[%c0_3, %c0_4] : memref<1x1024xf32, #tpu.memory_space<vmem>>, vector<1x1024xf32>
    %5 = vector.broadcast %4 : vector<1x1024xf32> to vector<32x1024xf32>
    %6 = arith.addf %3, %5 : vector<32x1024xf32>
    %7 = arith.truncf %6 : vector<32x1024xf32> to vector<32x1024xbf16>
    %c0_5 = arith.constant 0 : index
    %c0_6 = arith.constant 0 : index
    %8 = vector.load %arg4[%c0_5, %c0_6] : memref<32x1024xbf16, #tpu.memory_space<vmem>>, vector<32x1024xbf16>
    tpu.vector_store %arg4[%c0_5, %c0_6], %7 {strides = array<i32>} : memref<32x1024xbf16, #tpu.memory_space<vmem>>, vector<32x1024xbf16>,
    return
  }
  func.func @transform_0(%arg0: i32) -> (i32, i32) {
    %c0_i32 = arith.constant 0 : i32
    %c0_i32_0 = arith.constant 0 : i32
    return %arg0, %c0_i32 : i32, i32
  }
  func.func @transform_1(%arg0: i32) -> (i32, i32) {
    %c0_i32 = arith.constant 0 : i32
    %c0_i32_0 = arith.constant 0 : i32
    %c0_i32_1 = arith.constant 0 : i32
    return %c0_i32, %c0_i32_0 : i32, i32
  }
  func.func @transform_2(%arg0: i32) -> (i32, i32) {
    %c0_i32 = arith.constant 0 : i32
    %c0_i32_0 = arith.constant 0 : i32
    %c0_i32_1 = arith.constant 0 : i32
    return %c0_i32, %c0_i32_0 : i32, i32
  }
  func.func @transform_3(%arg0: i32) -> (i32, i32) {
    %c0_i32 = arith.constant 0 : i32
    %c0_i32_0 = arith.constant 0 : i32
    return %arg0, %c0_i32 : i32, i32
  }
}

module attributes {stable_mosaic.version = 11 : i64} {
  func.func @output_kernel(%arg0: i32, %arg1: memref<2x16x1024xf32, #tpu.memory_space<vmem>>, %arg2: memref<2x16x256xf32, #tpu.memory_space<vmem>>, %arg3: memref<2x16x256xf32, #tpu.memory_space<vmem>>, %arg4: memref<2x1x16xf32, #tpu.memory_space<vmem>>, %arg5: memref<2x1536xf32, #tpu.memory_space<vmem>>, %arg6: memref<2x1xf32, #tpu.memory_space<vmem>>, %arg7: memref<2x2x16xf32, #tpu.memory_space<vmem>>) attributes {dimension_semantics = [#tpu.dimension_semantics<parallel>], iteration_bounds = array<i64: 1>, scalar_prefetch = 0 : i64, scratch_operands = 0 : i64, tpu.core_type = #tpu.core_type<tc>, window_params = [{transform_indices = @transform_0, window_bounds = array<i64: 2, 16, 1024>}, {transform_indices = @transform_1, window_bounds = array<i64: 2, 16, 256>}, {transform_indices = @transform_2, window_bounds = array<i64: 2, 16, 256>}, {transform_indices = @transform_3, window_bounds = array<i64: 2, 1, 16>}, {pipeline_mode = #tpu.pipeline_mode<synchronous>, transform_indices = @transform_4, window_bounds = array<i64: 2, 1536>}, {pipeline_mode = #tpu.pipeline_mode<synchronous>, transform_indices = @transform_5, window_bounds = array<i64: 2, 1>}, {transform_indices = @transform_6, window_bounds = array<i64: 2, 2, 16>}]} {
    %c0 = arith.constant 0 : index
    %c0_0 = arith.constant 0 : index
    %0 = vector.load %arg5[%c0, %c0_0] : memref<2x1536xf32, #tpu.memory_space<vmem>>, vector<2x1536xf32>
    %1 = arith.truncf %0 : vector<2x1536xf32> to vector<2x1536xbf16>
    %c0_1 = arith.constant 0 : index
    %c0_2 = arith.constant 0 : index
    %2 = vector.load %arg6[%c0_1, %c0_2] : memref<2x1xf32, #tpu.memory_space<vmem>>, vector<2x1xf32>
    %c0_3 = arith.constant 0 : index
    %c0_4 = arith.constant 0 : index
    %c0_5 = arith.constant 0 : index
    %3 = vector.load %arg1[%c0_3, %c0_4, %c0_5] : memref<2x16x1024xf32, #tpu.memory_space<vmem>>, vector<1x16x1024xf32>
    %4 = vector.shape_cast %3 : vector<1x16x1024xf32> to vector<16x1024xf32>
    %c0_6 = arith.constant 0 : index
    %c0_7 = arith.constant 0 : index
    %c0_8 = arith.constant 0 : index
    %5 = vector.load %arg2[%c0_6, %c0_7, %c0_8] : memref<2x16x256xf32, #tpu.memory_space<vmem>>, vector<1x16x256xf32>
    %6 = vector.shape_cast %5 : vector<1x16x256xf32> to vector<16x256xf32>
    %c0_9 = arith.constant 0 : index
    %c0_10 = arith.constant 0 : index
    %c0_11 = arith.constant 0 : index
    %7 = vector.load %arg3[%c0_9, %c0_10, %c0_11] : memref<2x16x256xf32, #tpu.memory_space<vmem>>, vector<1x16x256xf32>
    %8 = vector.shape_cast %7 : vector<1x16x256xf32> to vector<16x256xf32>
    %9 = tpu.concatenate %4, %6, %8 in 1 : vector<16x1024xf32>, vector<16x256xf32>, vector<16x256xf32> -> vector<16x1536xf32>
    %10 = arith.truncf %9 : vector<16x1536xf32> to vector<16x1536xbf16>
    %cst = arith.constant dense<0.000000e+00> : vector<2x16xf32>
    %11 = tpu.matmul %1, %10, %cst {dimension_numbers = #tpu.dot_dimension_numbers<[1], [1], [0], [0], [0, 0, 1, 0], [], []>} : vector<2x1536xbf16>, vector<16x1536xbf16>, vector<2x16xf32> -> vector<2x16xf32>
    %12 = vector.broadcast %2 : vector<2x1xf32> to vector<2x16xf32>
    %13 = arith.addf %11, %12 : vector<2x16xf32>
    %c0_12 = arith.constant 0 : index
    %c0_13 = arith.constant 0 : index
    %c0_14 = arith.constant 0 : index
    %14 = vector.load %arg4[%c0_12, %c0_13, %c0_14] : memref<2x1x16xf32, #tpu.memory_space<vmem>>, vector<1x1x16xf32>
    %15 = vector.shape_cast %14 : vector<1x1x16xf32> to vector<1x16xf32>
    %cst_15 = arith.constant 0.000000e+00 : f32
    %16 = vector.broadcast %cst_15 : f32 to vector<1x16xf32>
    %17 = arith.cmpf ogt, %15, %16 : vector<1x16xf32>
    %cst_16 = arith.constant -1.000000e+30 : f32
    %18 = vector.shape_cast %17 : vector<1x16xi1> to vector<1x16xi1>
    %19 = vector.broadcast %18 : vector<1x16xi1> to vector<2x16xi1>
    %20 = vector.broadcast %cst_16 : f32 to vector<2x16xf32>
    %21 = arith.select %19, %13, %20 : vector<2x16xi1>, vector<2x16xf32>
    %cst_17 = arith.constant dense<0xFF800000> : vector<2xf32>
    %22 = vector.multi_reduction <maximumf>, %21, %cst_17 [1] : vector<2x16xf32> to vector<2xf32>
    %23 = vector.shape_cast %22 : vector<2xf32> to vector<2x1xf32>
    %24 = vector.broadcast %23 : vector<2x1xf32> to vector<2x16xf32>
    %25 = arith.subf %21, %24 : vector<2x16xf32>
    %26 = math.exp %25 : vector<2x16xf32>
    %cst_18 = arith.constant dense<0.000000e+00> : vector<2xf32>
    %27 = vector.multi_reduction <add>, %26, %cst_18 [1] : vector<2x16xf32> to vector<2xf32>
    %28 = vector.shape_cast %27 : vector<2xf32> to vector<2x1xf32>
    %29 = math.log %28 : vector<2x1xf32>
    %30 = vector.broadcast %29 : vector<2x1xf32> to vector<2x16xf32>
    %31 = arith.subf %25, %30 : vector<2x16xf32>
    %c0_19 = arith.constant 0 : index
    %c0_20 = arith.constant 0 : index
    %c0_21 = arith.constant 0 : index
    %32 = vector.load %arg7[%c0_19, %c0_20, %c0_21] : memref<2x2x16xf32, #tpu.memory_space<vmem>>, vector<1x2x16xf32>
    %33 = vector.shape_cast %32 : vector<1x2x16xf32> to vector<2x16xf32>
    %34 = vector.shape_cast %31 : vector<2x16xf32> to vector<1x2x16xf32>
    tpu.vector_store %arg7[%c0_19, %c0_20, %c0_21], %34 {strides = array<i32>} : memref<2x2x16xf32, #tpu.memory_space<vmem>>, vector<1x2x16xf32>,
    %c1 = arith.constant 1 : index
    %c0_22 = arith.constant 0 : index
    %c0_23 = arith.constant 0 : index
    %35 = vector.load %arg1[%c1, %c0_22, %c0_23] : memref<2x16x1024xf32, #tpu.memory_space<vmem>>, vector<1x16x1024xf32>
    %36 = vector.shape_cast %35 : vector<1x16x1024xf32> to vector<16x1024xf32>
    %c1_24 = arith.constant 1 : index
    %c0_25 = arith.constant 0 : index
    %c0_26 = arith.constant 0 : index
    %37 = vector.load %arg2[%c1_24, %c0_25, %c0_26] : memref<2x16x256xf32, #tpu.memory_space<vmem>>, vector<1x16x256xf32>
    %38 = vector.shape_cast %37 : vector<1x16x256xf32> to vector<16x256xf32>
    %c1_27 = arith.constant 1 : index
    %c0_28 = arith.constant 0 : index
    %c0_29 = arith.constant 0 : index
    %39 = vector.load %arg3[%c1_27, %c0_28, %c0_29] : memref<2x16x256xf32, #tpu.memory_space<vmem>>, vector<1x16x256xf32>
    %40 = vector.shape_cast %39 : vector<1x16x256xf32> to vector<16x256xf32>
    %41 = tpu.concatenate %36, %38, %40 in 1 : vector<16x1024xf32>, vector<16x256xf32>, vector<16x256xf32> -> vector<16x1536xf32>
    %42 = arith.truncf %41 : vector<16x1536xf32> to vector<16x1536xbf16>
    %cst_30 = arith.constant dense<0.000000e+00> : vector<2x16xf32>
    %43 = tpu.matmul %1, %42, %cst_30 {dimension_numbers = #tpu.dot_dimension_numbers<[1], [1], [0], [0], [0, 0, 1, 0], [], []>} : vector<2x1536xbf16>, vector<16x1536xbf16>, vector<2x16xf32> -> vector<2x16xf32>
    %44 = vector.broadcast %2 : vector<2x1xf32> to vector<2x16xf32>
    %45 = arith.addf %43, %44 : vector<2x16xf32>
    %c1_31 = arith.constant 1 : index
    %c0_32 = arith.constant 0 : index
    %c0_33 = arith.constant 0 : index
    %46 = vector.load %arg4[%c1_31, %c0_32, %c0_33] : memref<2x1x16xf32, #tpu.memory_space<vmem>>, vector<1x1x16xf32>
    %47 = vector.shape_cast %46 : vector<1x1x16xf32> to vector<1x16xf32>
    %cst_34 = arith.constant 0.000000e+00 : f32
    %48 = vector.broadcast %cst_34 : f32 to vector<1x16xf32>
    %49 = arith.cmpf ogt, %47, %48 : vector<1x16xf32>
    %cst_35 = arith.constant -1.000000e+30 : f32
    %50 = vector.shape_cast %49 : vector<1x16xi1> to vector<1x16xi1>
    %51 = vector.broadcast %50 : vector<1x16xi1> to vector<2x16xi1>
    %52 = vector.broadcast %cst_35 : f32 to vector<2x16xf32>
    %53 = arith.select %51, %45, %52 : vector<2x16xi1>, vector<2x16xf32>
    %cst_36 = arith.constant dense<0xFF800000> : vector<2xf32>
    %54 = vector.multi_reduction <maximumf>, %53, %cst_36 [1] : vector<2x16xf32> to vector<2xf32>
    %55 = vector.shape_cast %54 : vector<2xf32> to vector<2x1xf32>
    %56 = vector.broadcast %55 : vector<2x1xf32> to vector<2x16xf32>
    %57 = arith.subf %53, %56 : vector<2x16xf32>
    %58 = math.exp %57 : vector<2x16xf32>
    %cst_37 = arith.constant dense<0.000000e+00> : vector<2xf32>
    %59 = vector.multi_reduction <add>, %58, %cst_37 [1] : vector<2x16xf32> to vector<2xf32>
    %60 = vector.shape_cast %59 : vector<2xf32> to vector<2x1xf32>
    %61 = math.log %60 : vector<2x1xf32>
    %62 = vector.broadcast %61 : vector<2x1xf32> to vector<2x16xf32>
    %63 = arith.subf %57, %62 : vector<2x16xf32>
    %c1_38 = arith.constant 1 : index
    %c0_39 = arith.constant 0 : index
    %c0_40 = arith.constant 0 : index
    %64 = vector.load %arg7[%c1_38, %c0_39, %c0_40] : memref<2x2x16xf32, #tpu.memory_space<vmem>>, vector<1x2x16xf32>
    %65 = vector.shape_cast %64 : vector<1x2x16xf32> to vector<2x16xf32>
    %66 = vector.shape_cast %63 : vector<2x16xf32> to vector<1x2x16xf32>
    tpu.vector_store %arg7[%c1_38, %c0_39, %c0_40], %66 {strides = array<i32>} : memref<2x2x16xf32, #tpu.memory_space<vmem>>, vector<1x2x16xf32>,
    return
  }
  func.func @transform_0(%arg0: i32) -> (i32, i32, i32) {
    %c0_i32 = arith.constant 0 : i32
    %c0_i32_0 = arith.constant 0 : i32
    %c0_i32_1 = arith.constant 0 : i32
    return %arg0, %c0_i32, %c0_i32_0 : i32, i32, i32
  }
  func.func @transform_1(%arg0: i32) -> (i32, i32, i32) {
    %c0_i32 = arith.constant 0 : i32
    %c0_i32_0 = arith.constant 0 : i32
    %c0_i32_1 = arith.constant 0 : i32
    return %arg0, %c0_i32, %c0_i32_0 : i32, i32, i32
  }
  func.func @transform_2(%arg0: i32) -> (i32, i32, i32) {
    %c0_i32 = arith.constant 0 : i32
    %c0_i32_0 = arith.constant 0 : i32
    %c0_i32_1 = arith.constant 0 : i32
    return %arg0, %c0_i32, %c0_i32_0 : i32, i32, i32
  }
  func.func @transform_3(%arg0: i32) -> (i32, i32, i32) {
    %c0_i32 = arith.constant 0 : i32
    %c0_i32_0 = arith.constant 0 : i32
    %c0_i32_1 = arith.constant 0 : i32
    return %arg0, %c0_i32, %c0_i32_0 : i32, i32, i32
  }
  func.func @transform_4(%arg0: i32) -> (i32, i32) {
    %c0_i32 = arith.constant 0 : i32
    %c0_i32_0 = arith.constant 0 : i32
    %c0_i32_1 = arith.constant 0 : i32
    return %c0_i32, %c0_i32_0 : i32, i32
  }
  func.func @transform_5(%arg0: i32) -> (i32, i32) {
    %c0_i32 = arith.constant 0 : i32
    %c0_i32_0 = arith.constant 0 : i32
    %c0_i32_1 = arith.constant 0 : i32
    return %c0_i32, %c0_i32_0 : i32, i32
  }
  func.func @transform_6(%arg0: i32) -> (i32, i32, i32) {
    %c0_i32 = arith.constant 0 : i32
    %c0_i32_0 = arith.constant 0 : i32
    %c0_i32_1 = arith.constant 0 : i32
    return %arg0, %c0_i32, %c0_i32_0 : i32, i32, i32
  }
}

</mosaic_0001>

<bundles_post_ra>
// kernel: bidaf_forward.11
= control target key start
LH: loop header
LB: loop body
LE: loop exit
PB: predicated region body
PF: predicated region fallthrough
CT: control target
= control target key end

     0   :  { %11 = vsyncpa [#allocation3], 0  ;;  %s1158_s0 = inlined_call_operand.vmem [shape: f32[48,64], index: 0, kind: input, shape index: {}]   ;;  %s1159_s1 = inlined_call_operand.hbm [shape: bf16[64,128], index: 1, kind: input, shape index: {}]   ;;  %s1160_s2 = inlined_call_operand.hbm [shape: bf16[128,256], index: 2, kind: input, shape index: {}]   ;;  %s1161_s3 = inlined_call_operand.hbm [shape: f32[1,256], index: 3, kind: input, shape index: {}]   ;;  %s1162_s4 = inlined_call_operand.hbm [shape: bf16[128,256], index: 4, kind: input, shape index: {}]   ;;  %s1163_s5 = inlined_call_operand.hbm [shape: f32[1,256], index: 5, kind: input, shape index: {}]   ;;  %s1164_s6 = inlined_call_operand.vmem [shape: f32[48,128], index: 6, kind: output, shape index: {}]  }
   0x1   :  { %12 = vsyncpa [#allocation5], 0 }
   0x2   :  { %13 = vsyncpa [#allocation8], 0  ;;  %s985_s21 = smov [#allocation4]  }
   0x3   :  { %s33_s22 = sshll.u32 %s985_s21, 4  ;;  %s34_s22 = int_to_ptr.vmem [resolvable:$true] %s33_s22 }
   0x4   :  { %s887_s23 = scalar_lea.vmem %s34_s22, 2048  ;;  %p892_p1 = scmp.lt.s32.totalorder %s34_s22, %s34_s22 }
   0x5   :  { %p888_p0 = scmp.ne.s32.totalorder %s34_s22, %s887_s23  ;;  %p893_p2 = scmp.lt.s32.totalorder %s887_s23, %s887_s23 }
   0x7   :  { %p894_p3 = por %p893_p2, %p892_p1 }
   0x9   :  { %p895_p4 = pnand %p894_p3, %p888_p0 }
   0xb   :  { %898 = shalt.err (!%p895_p4)
}
   0xc   :  { %s986_s24 = smov 128   ;;  %s987_s25 = smov 8  }
   0xd   :  { %39 = dma.hbm_to_vmem [thread:$0]  %s1160_s2, 2048, %s34_s22, [#allocation5], %s986_s24, %s986_s24, %s987_s25  }
   0xe   :  { %s988_s28 = smov [#allocation7]   ;;  %s989_s30 = smov [#allocation2]  }
   0xf   :  { %s55_s29 = sshll.u32 %s988_s28, 4  ;;  %s21_s7 = sshll.u32 %s989_s30, 4  ;;  %s56_s29 = int_to_ptr.vmem [resolvable:$true] %s55_s29  ;;  %s22_s7 = int_to_ptr.vmem [resolvable:$true] %s21_s7 }
  0x10   :  { %s907_s8 = scalar_lea.vmem %s56_s29, 2048  ;;  %p912_p6 = scmp.lt.s32.totalorder %s56_s29, %s56_s29 }
  0x11   :  { %p908_p5 = scmp.ne.s32.totalorder %s56_s29, %s907_s8  ;;  %p913_p7 = scmp.lt.s32.totalorder %s907_s8, %s907_s8 }
  0x13   :  { %p914_p8 = por %p913_p7, %p912_p6 }
  0x15   :  { %p915_p9 = pnand %p914_p8, %p908_p5 }
  0x17   :  { %918 = shalt.err (!%p915_p9)
}
  0x18   :  { %61 = dma.hbm_to_vmem [thread:$0]  %s1162_s4, 2048, %s56_s29, [#allocation8], %s986_s24, %s986_s24, %s987_s25  }
  0x19   :  { %s927_s11 = scalar_lea.vmem %s22_s7, 512  ;;  %p932_p11 = scmp.lt.s32.totalorder %s22_s7, %s22_s7 }
  0x1a   :  { %p928_p10 = scmp.ne.s32.totalorder %s22_s7, %s927_s11  ;;  %p933_p12 = scmp.lt.s32.totalorder %s927_s11, %s927_s11 }
  0x1c   :  { %p934_p13 = por %p933_p12, %p932_p11 }
  0x1e   :  { %p935_p0 = pnand %p934_p13, %p928_p10 }
  0x20   :  { %938 = shalt.err (!%p935_p0)
}
  0x21   :  { %s990_s2 = smov 64   ;;  %s991_s12 = smov 4  }
  0x22   :  { %27 = dma.hbm_to_vmem [thread:$0]  %s1159_s1, 512, %s22_s7, [#allocation3], %s990_s2, %s990_s2, %s991_s12  }
  0x23   :  { %s992_s15 = smov [#allocation6]   ;;  %s993_s17 = smov [#allocation9]  }
  0x24   :  { %s46_s16 = sshll.u32 %s992_s15, 4  ;;  %s68_s18 = sshll.u32 %s993_s17, 4  ;;  %s47_s16 = int_to_ptr.vmem [resolvable:$true] %s46_s16  ;;  %s69_s18 = int_to_ptr.vmem [resolvable:$true] %s68_s18 }
  0x25   :  { %s947_s4 = scalar_lea.vmem %s47_s16, 32  ;;  %p952_p2 = scmp.lt.s32.totalorder %s47_s16, %s47_s16 }
  0x26   :  { %p948_p1 = scmp.ne.s32.totalorder %s47_s16, %s947_s4  ;;  %p953_p3 = scmp.lt.s32.totalorder %s947_s4, %s947_s4 }
  0x28   :  { %p954_p4 = por %p953_p3, %p952_p2 }
  0x2a   :  { %p955_p5 = pnand %p954_p4, %p948_p1 }
  0x2c   :  { %958 = shalt.err (!%p955_p5)
}
  0x2d   :  { %49 = dma.hbm_to_vmem [thread:$0]  %s1161_s3, 32, %s47_s16, [#allocation5]  }
  0x2e   :  { %s967_s21 = scalar_lea.vmem %s69_s18, 32  ;;  %p972_p7 = scmp.lt.s32.totalorder %s69_s18, %s69_s18 }
  0x2f   :  { %p968_p6 = scmp.ne.s32.totalorder %s69_s18, %s967_s21  ;;  %p973_p8 = scmp.lt.s32.totalorder %s967_s21, %s967_s21 }
  0x31   :  { %p974_p9 = por %p973_p8, %p972_p7 }
  0x33   :  { %p975_p10 = pnand %p974_p9, %p968_p6 }
  0x35   :  { %978 = shalt.err (!%p975_p10)
}
  0x36   :  { %71 = dma.hbm_to_vmem [thread:$0]  %s1163_s5, 32, %s69_s18, [#allocation8]  }
  0x37   :  { %979 = dma.done.wait [#allocation3], 512  }
  0x38   :  { %980 = vsyncadd [#allocation3], 4294966784 }
  0x39   :  { %981 = dma.done.wait [#allocation5], 2080  }
  0x3a   :  { %982 = vsyncadd [#allocation5], 4294965216 }
  0x3b   :  { %983 = dma.done.wait [#allocation8], 2080  }
  0x3c   :  { %984 = vsyncadd [#allocation8], 4294965216  ;;  %v994_v0 = vmov 0.0   ;;  %vm995_vm0 = vmmov 0   ;;  %v779_v1 = vld [vmem:[#allocation2 + $0x18] sm:$0xff]   ;;  %v780_v2 = vld [vmem:[#allocation2 + $0x10] sm:$0xff]   ;;  %v217_v62 = vlaneseq }
  0x3d   :  { %747 = vmatprep.subr.bf16.mxu0 %v994_v0  ;;  %755 = vmatprep.mubr.msk.bf16.mxu0 %vm995_vm0, %v994_v0  ;;  %v781_v3 = vld [vmem:[#allocation2 + $0x8] sm:$0xff]   ;;  %v783_v4 = vld [vmem:[#allocation4 + $0x74] ss:$8 sps:$4 sm:$0xff]   ;;  %v785_v5 = vld [vmem:[#allocation4 + $0x70] ss:$8 sps:$4 sm:$0xff]   ;;  %vm129_vm1 = vcmask 523264  }
  0x3e   :  { %748 = vmatpush3.bf16.msra.mxu0 %v779_v1  ;;  %v782_v6 = vld [vmem:[#allocation2] sm:$0xff]   ;;  %307 = vmatprep.subr.bf16.mxu1 %v783_v4  ;;  %v89_v9 = vld [vmem:[%s1158_s0 + $0x8] sm:$0xff]  ;;  %v789_v11 = vld [vmem:[#allocation4 + $0x54] ss:$8 sps:$4 sm:$0xff]   ;;  %v996_v30 = vmov 0   ;;  %v1093_v63 = vshrl.u32 %v217_v62, 7 }
  0x3f   :  { %749 = vmatprep.subr.bf16.mxu0 %v994_v0  ;;  %v88_v7 = vld [vmem:[%s1158_s0] sm:$0xff]  ;;  %308 = vmatpush1.bf16.msra.mxu1 %v785_v5  ;;  %v791_v13 = vld [vmem:[#allocation4 + $0x50] ss:$8 sps:$4 sm:$0xff]   ;;  %v795_v18 = vld [vmem:[#allocation4 + $0x34] ss:$8 sps:$4 sm:$0xff]  }
  0x40   :  { %v786_v8 = vld [vmem:[#allocation4 + $0x64] ss:$8 sps:$4 sm:$0xff]   ;;  %v788_v10 = vld [vmem:[#allocation4 + $0x60] ss:$8 sps:$4 sm:$0xff]   ;;  %v94_v12 = vpack.c.bf16 %v89_v9, %v88_v7  ;;  %v90_v16 = vld [vmem:[%s1158_s0 + $0x10] sm:$0xff]  ;;  %339 = vmatprep.mubr.bf16.mxu1 %v996_v30 }
  0x41   :  { %309 = vmatprep.subr.bf16.mxu1 %v786_v8  ;;  %v792_v14 = vld [vmem:[#allocation4 + $0x44] ss:$8 sps:$4 sm:$0xff]   ;;  %v794_v15 = vld [vmem:[#allocation4 + $0x40] ss:$8 sps:$4 sm:$0xff]   ;;  %v91_v17 = vld [vmem:[%s1158_s0 + $0x18] sm:$0xff] }
  0x42   :  { %750 = vmatpush3.bf16.msra.mxu0 %v780_v2  ;;  %v95_v19 = vpack.c.bf16 %v91_v17, %v90_v16  ;;  %v797_v20 = vld [vmem:[#allocation4 + $0x30] ss:$8 sps:$4 sm:$0xff]   ;;  %v798_v21 = vld [vmem:[#allocation4 + $0x24] ss:$8 sps:$4 sm:$0xff]   ;;  %v800_v22 = vld [vmem:[#allocation4 + $0x20] ss:$8 sps:$4 sm:$0xff]  }
  0x43   :  { %751 = vmatprep.subr.bf16.mxu0 %v994_v0  ;;  %310 = vmatpush1.bf16.msra.mxu1 %v788_v10  ;;  %v92_v23 = vld [vmem:[%s1158_s0 + $0x20] sm:$0xff]  ;;  %v93_v24 = vld [vmem:[%s1158_s0 + $0x28] sm:$0xff]  ;;  %v801_v25 = vld [vmem:[#allocation4 + $0x14] ss:$8 sps:$4 sm:$0xff]  }
  0x44   :  { %311 = vmatprep.subr.bf16.mxu1 %v789_v11  ;;  %v96_v26 = vpack.c.bf16 %v93_v24, %v92_v23  ;;  %v803_v27 = vld [vmem:[#allocation4 + $0x10] ss:$8 sps:$4 sm:$0xff]   ;;  %v804_v28 = vld [vmem:[#allocation4 + $0x4] ss:$8 sps:$4 sm:$0xff]   ;;  %v806_v29 = vld [vmem:[#allocation4] ss:$8 sps:$4 sm:$0xff]  }
  0x45   :  { %v809_v46 = vld [vmem:[#allocation7 + $0x74] ss:$8 sps:$4 sm:$0xff]   ;;  %v807_v47 = vld [vmem:[#allocation7 + $0x70] ss:$8 sps:$4 sm:$0xff]   ;;  %v812_v48 = vld [vmem:[#allocation7 + $0x64] ss:$8 sps:$4 sm:$0xff]  }
  0x46   :  { %752 = vmatpush3.bf16.msra.mxu0 %v781_v3  ;;  %v810_v49 = vld [vmem:[#allocation7 + $0x60] ss:$8 sps:$4 sm:$0xff]   ;;  %v815_v50 = vld [vmem:[#allocation7 + $0x54] ss:$8 sps:$4 sm:$0xff]   ;;  %v813_v51 = vld [vmem:[#allocation7 + $0x50] ss:$8 sps:$4 sm:$0xff]  }
  0x47   :  { %753 = vmatprep.subr.bf16.mxu0 %v994_v0  ;;  %312 = vmatpush1.bf16.msra.mxu1 %v791_v13  ;;  %v818_v52 = vld [vmem:[#allocation7 + $0x44] ss:$8 sps:$4 sm:$0xff]   ;;  %v816_v53 = vld [vmem:[#allocation7 + $0x40] ss:$8 sps:$4 sm:$0xff]   ;;  %v821_v54 = vld [vmem:[#allocation7 + $0x34] ss:$8 sps:$4 sm:$0xff]  }
  0x48   :  { %313 = vmatprep.subr.bf16.mxu1 %v792_v14  ;;  %v819_v55 = vld [vmem:[#allocation7 + $0x30] ss:$8 sps:$4 sm:$0xff]   ;;  %v824_v56 = vld [vmem:[#allocation7 + $0x24] ss:$8 sps:$4 sm:$0xff]   ;;  %v822_v57 = vld [vmem:[#allocation7 + $0x20] ss:$8 sps:$4 sm:$0xff]  }
  0x49   :  { %v827_v58 = vld [vmem:[#allocation7 + $0x14] ss:$8 sps:$4 sm:$0xff]   ;;  %v825_v59 = vld [vmem:[#allocation7 + $0x10] ss:$8 sps:$4 sm:$0xff]   ;;  %v828_v60 = vld [vmem:[#allocation7] ss:$8 sps:$4 sm:$0xff]  }
  0x4a   :  { %754 = vmatpush3.bf16.msra.mxu0 %v782_v6  ;;  %v830_v61 = vld [vmem:[#allocation7 + $0x4] ss:$8 sps:$4 sm:$0xff]   ;;  %v215_v1 = vld [vmem:[#allocation6] sm:$0x3] }
  0x4b   :  { %314 = vmatpush1.bf16.msra.mxu1 %v794_v15  ;;  %547 = vmatprep.subr.bf16.mxu0 %v809_v46 }
  0x4c   :  { %315 = vmatprep.subr.bf16.mxu1 %v795_v18 }
  0x4d   :  { %756 = vmatmul.mubr.msk.bf16.vlgmr.msra.gmra.mxu0 %vm129_vm1, %v94_v12 }
  0x4e   :  { %759 = vmatprep.mubr.msk.bf16.mxu0 %vm995_vm0, %v994_v0  ;;  %548 = vmatpush1.bf16.msra.mxu0 %v807_v47 }
  0x4f   :  { %316 = vmatpush1.bf16.msra.mxu1 %v797_v20  ;;  %549 = vmatprep.subr.bf16.mxu0 %v812_v48 }
  0x50   :  { %317 = vmatprep.subr.bf16.mxu1 %v798_v21 }
  0x52   :  { %550 = vmatpush1.bf16.msra.mxu0 %v810_v49 }
  0x53   :  { %318 = vmatpush1.bf16.msra.mxu1 %v800_v22  ;;  %551 = vmatprep.subr.bf16.mxu0 %v815_v50 }
  0x54   :  { %319 = vmatprep.subr.bf16.mxu1 %v801_v25 }
  0x55   :  { %760 = vmatmul.mubr.msk.bf16.gmra.mxu0 %vm129_vm1, %v95_v19 }
  0x56   :  { %763 = vmatprep.mubr.msk.bf16.mxu0 %vm995_vm0, %v994_v0  ;;  %552 = vmatpush1.bf16.msra.mxu0 %v813_v51  ;;  %v223_v0 = vsub.s32 1, %v1093_v63 }
  0x57   :  { %320 = vmatpush1.bf16.msra.mxu1 %v803_v27  ;;  %553 = vmatprep.subr.bf16.mxu0 %v818_v52 }
  0x58   :  { %321 = vmatprep.subr.bf16.mxu1 %v804_v28  ;;  %v224_v2 = vrot.slane %v215_v1, %v223_v0 }
  0x5a   :  { %554 = vmatpush1.bf16.msra.mxu0 %v816_v53 }
  0x5b   :  { %322 = vmatpush1.bf16.msra.mxu1 %v806_v29  ;;  %555 = vmatprep.subr.bf16.mxu0 %v821_v54 }
  0x5d   :  { %764 = vmatmul.mubr.msk.bf16.gmra.mxu0 %vm129_vm1, %v96_v26 }
  0x5e   :  { %579 = vmatprep.mubr.bf16.mxu0 %v996_v30  ;;  %556 = vmatpush1.bf16.msra.mxu0 %v819_v55 }
  0x5f   :  { %557 = vmatprep.subr.bf16.mxu0 %v824_v56 }
  0x62   :  { %558 = vmatpush1.bf16.msra.mxu0 %v822_v57 }
  0x63   :  { %559 = vmatprep.subr.bf16.mxu0 %v827_v58 }
  0x66   :  { %560 = vmatpush1.bf16.msra.mxu0 %v825_v59 }
  0x67   :  { %561 = vmatprep.subr.bf16.mxu0 %v830_v61 }
  0x6a   :  { %562 = vmatpush1.bf16.msra.mxu0 %v828_v60 }
 0x10d   :  { %v1073_v31 = vpop.f32.mrf.mxu0 }
 0x10f   :  { %v757_v32 = vpop.f32.mrf.mxu0 }
 0x111   :  { %v1075_v33 = vpop.f32.mrf.mxu0 }
 0x112   :  { %v196_v34 = vpack.c.bf16 %v1075_v33, %v1073_v31 }
 0x113   :  { %v758_v35 = vpop.f32.mrf.mxu0 }
 0x114   :  { %340 = vmatmul.mubr.bf16.vlgmr.msra.gmra.mxu1 %v196_v34  ;;  %v219_v35 = vsub.s32 0, %v1093_v63 }
 0x115   :  { %v1079_v36 = vpop.f32.mrf.mxu0  ;;  %349 = vmatprep.mubr.bf16.mxu1 %v996_v30 }
 0x117   :  { %v761_v37 = vpop.f32.mrf.mxu0 }
 0x119   :  { %v1082_v38 = vpop.f32.mrf.mxu0 }
 0x11a   :  { %v197_v39 = vpack.c.bf16 %v1082_v38, %v1079_v36 }
 0x11b   :  { %v762_v40 = vpop.f32.mrf.mxu0 }
 0x11c   :  { %350 = vmatmul.mubr.bf16.gmra.mxu1 %v197_v39  ;;  %v220_v40 = vrot.slane %v215_v1, %v219_v35 }
 0x11d   :  { %v1086_v41 = vpop.f32.mrf.mxu0  ;;  %359 = vmatprep.mubr.bf16.mxu1 %v996_v30 }
 0x11f   :  { %v765_v42 = vpop.f32.mrf.mxu0 }
 0x121   :  { %v1089_v43 = vpop.f32.mrf.mxu0 }
 0x122   :  { %v198_v44 = vpack.c.bf16 %v1089_v43, %v1086_v41 }
 0x123   :  { %v766_v45 = vpop.f32.mrf.mxu0 }
 0x124   :  { %360 = vmatmul.mubr.bf16.gmra.mxu1 %v198_v44 }
 0x1d4   :  { %v341_v3 = vpop.f32.mrf.mxu1 }
 0x1d5   :  { %v342_v46 = vadd.f32 %v341_v3, %v220_v40 }
 0x1d6   :  { %v343_v4 = vpop.f32.mrf.mxu1 }
 0x1d7   :  { %v344_v5 = vadd.f32 %v343_v4, %v224_v2  ;;  %v370_v52 = vmax.f32 %v342_v46, 0.0 }
 0x1d8   :  { %v345_v6 = vpop.f32.mrf.mxu1 }
 0x1d9   :  { %v712_v7 = vmul.f32 -1.442695, %v344_v5  ;;  %v346_v47 = vadd.f32 %v345_v6, %v220_v40 }
 0x1da   :  { %v347_v8 = vpop.f32.mrf.mxu1 }
 0x1db   :  { %831 = vpow2.f32 %v712_v7  ;;  %v348_v9 = vadd.f32 %v347_v8, %v224_v2  ;;  %v371_v53 = vmax.f32 %v346_v47, 0.0 }
 0x1dc   :  { %v351_v10 = vpop.f32.mrf.mxu1 }
 0x1dd   :  { %v713_v11 = vmul.f32 -1.442695, %v348_v9  ;;  %v352_v61 = vadd.f32 %v351_v10, %v220_v40 }
 0x1de   :  { %v353_v12 = vpop.f32.mrf.mxu1 }
 0x1df   :  { %833 = vpow2.f32 %v713_v11  ;;  %v354_v13 = vadd.f32 %v353_v12, %v224_v2  ;;  %v372_v6 = vmax.f32 %v352_v61, 0.0 }
 0x1e0   :  { %v355_v14 = vpop.f32.mrf.mxu1 }
 0x1e1   :  { %v714_v15 = vmul.f32 -1.442695, %v354_v13  ;;  %v356_v62 = vadd.f32 %v355_v14, %v220_v40 }
 0x1e2   :  { %v357_v16 = vpop.f32.mrf.mxu1 }
 0x1e3   :  { %835 = vpow2.f32 %v714_v15  ;;  %v358_v17 = vadd.f32 %v357_v16, %v224_v2 }
 0x1e4   :  { %v1098_v18 = vpop.f32.mrf.mxu1 }
 0x1e5   :  { %v715_v19 = vmul.f32 -1.442695, %v358_v17  ;;  %v362_v14 = vadd.f32 %v1098_v18, %v220_v40 }
 0x1e6   :  { %v363_v20 = vpop.f32.mrf.mxu1 }
 0x1e7   :  { %837 = vpow2.f32 %v715_v19  ;;  %v364_v21 = vadd.f32 %v363_v20, %v224_v2 }
 0x1e8   :  { %v832_v22 = vpop.eup %831  ;;  %v365_v23 = vpop.f32.mrf.mxu1 }
 0x1e9   :  { %v394_v24 = vadd.f32 1.0, %v832_v22  ;;  %v716_v25 = vmul.f32 -1.442695, %v364_v21  ;;  %v366_v15 = vadd.f32 %v365_v23, %v220_v40 }
 0x1ea   :  { %v367_v26 = vpop.f32.mrf.mxu1 }
 0x1eb   :  { %839 = vrcp.f32 %v394_v24  ;;  %v368_v27 = vadd.f32 %v367_v26, %v224_v2  ;;  %v375_v20 = vmax.f32 %v366_v15, 0.0 }
 0x1ec   :  { %v834_v28 = vpop.eup %833  ;;  %841 = vpow2.f32 %v716_v25 }
 0x1ed   :  { %v395_v29 = vadd.f32 1.0, %v834_v28  ;;  %v717_v32 = vmul.f32 -1.442695, %v368_v27  ;;  %v455_v27 = vld [vmem:[#allocation9] sm:$0x3] }
 0x1ee   :  { %v464_v28 = vrot.slane %v455_v27, %v223_v0 }
 0x1ef   :  { %843 = vrcp.f32 %v395_v29 }
 0x1f0   :  { %v836_v34 = vpop.eup %835  ;;  %845 = vpow2.f32 %v717_v32 }
 0x1f1   :  { %v396_v37 = vadd.f32 1.0, %v836_v34 }
 0x1f3   :  { %847 = vrcp.f32 %v396_v37 }
 0x1f4   :  { %v838_v39 = vpop.eup %837 }
 0x1f5   :  { %v397_v42 = vadd.f32 1.0, %v838_v39 }
 0x1f7   :  { %849 = vrcp.f32 %v397_v42 }
 0x1f8   :  { %v840_v44 = vpop.eup %839 }
 0x1f9   :  { %v842_v45 = vpop.eup %841  ;;  %v418_v48 = vsub.f32 1.0, %v840_v44  ;;  %v412_v57 = vmul.f32 %v840_v44, %v370_v52 }
 0x1fa   :  { %v398_v49 = vadd.f32 1.0, %v842_v45 }
 0x1fb   :  { %v424_v55 = vmul.f32 %v418_v48, %v1073_v31  ;;  %v373_v31 = vmax.f32 %v356_v62, 0.0  ;;  %v460_v62 = vrot.slane %v455_v27, %v219_v35 }
 0x1fc   :  { %v844_v50 = vpop.eup %843  ;;  %851 = vrcp.f32 %v398_v49 }
 0x1fd   :  { %v846_v51 = vpop.eup %845  ;;  %v419_v54 = vsub.f32 1.0, %v844_v50  ;;  %v413_v58 = vmul.f32 %v844_v50, %v371_v53  ;;  %v1105_v1 = vadd.f32 %v424_v55, %v412_v57 }
 0x1fe   :  { %v399_v56 = vadd.f32 1.0, %v846_v51 }
 0x1ff   :  { %v425_v59 = vmul.f32 %v419_v54, %v1075_v33 }
 0x200   :  { %v848_v60 = vpop.eup %847  ;;  %853 = vrcp.f32 %v399_v56 }
 0x201   :  { %v1107_v2 = vadd.f32 %v425_v59, %v413_v58  ;;  %v420_v3 = vsub.f32 1.0, %v848_v60  ;;  %v414_v33 = vmul.f32 %v848_v60, %v372_v6 }
 0x203   :  { %v436_v4 = vpack.c.bf16 %v1107_v2, %v1105_v1  ;;  %v426_v8 = vmul.f32 %v420_v3, %v1079_v36  ;;  %v374_v36 = vmax.f32 %v362_v14, 0.0 }
 0x204   :  { %v850_v5 = vpop.eup %849 }
 0x205   :  { %580 = vmatmul.mubr.bf16.vlgmr.msra.gmra.mxu0 %v436_v4  ;;  %v421_v7 = vsub.f32 1.0, %v850_v5  ;;  %v415_v9 = vmul.f32 %v850_v5, %v373_v31  ;;  %v1114_v12 = vadd.f32 %v426_v8, %v414_v33 }
 0x206   :  { %589 = vmatprep.mubr.bf16.mxu0 %v996_v30 }
 0x207   :  { %v427_v10 = vmul.f32 %v421_v7, %v1082_v38 }
 0x209   :  { %v852_v11 = vpop.eup %851  ;;  %v1116_v13 = vadd.f32 %v427_v10, %v415_v9 }
 0x20a   :  { %v422_v16 = vsub.f32 1.0, %v852_v11  ;;  %v416_v22 = vmul.f32 %v852_v11, %v374_v36 }
 0x20b   :  { %v437_v17 = vpack.c.bf16 %v1116_v13, %v1114_v12 }
 0x20c   :  { %v428_v38 = vmul.f32 %v422_v16, %v1086_v41 }
 0x20d   :  { %v854_v19 = vpop.eup %853  ;;  %590 = vmatmul.mubr.bf16.gmra.mxu0 %v437_v17 }
 0x20e   :  { %599 = vmatprep.mubr.bf16.mxu0 %v996_v30  ;;  %v423_v21 = vsub.f32 1.0, %v854_v19  ;;  %v417_v24 = vmul.f32 %v854_v19, %v375_v20  ;;  %v1124_v26 = vadd.f32 %v428_v38, %v416_v22 }
 0x210   :  { %v429_v25 = vmul.f32 %v423_v21, %v1089_v43 }
 0x212   :  { %v1126_v18 = vadd.f32 %v429_v25, %v417_v24 }
 0x214   :  { %v438_v23 = vpack.c.bf16 %v1126_v18, %v1124_v26 }
 0x216   :  { %600 = vmatmul.mubr.bf16.gmra.mxu0 %v438_v23 }
 0x2c5   :  { %v581_v30 = vpop.f32.mrf.mxu0 }
 0x2c6   :  { %v582_v5 = vadd.f32 %v581_v30, %v460_v62 }
 0x2c7   :  { %v583_v29 = vpop.f32.mrf.mxu0 }
 0x2c8   :  { %v584_v32 = vadd.f32 %v583_v29, %v464_v28  ;;  %v610_v8 = vmax.f32 %v582_v5, 0.0 }
 0x2c9   :  { %v585_v41 = vpop.f32.mrf.mxu0 }
 0x2ca   :  { %v734_v34 = vmul.f32 -1.442695, %v584_v32  ;;  %v586_v9 = vadd.f32 %v585_v41, %v460_v62 }
 0x2cb   :  { %v587_v37 = vpop.f32.mrf.mxu0 }
 0x2cc   :  { %855 = vpow2.f32 %v734_v34  ;;  %v588_v43 = vadd.f32 %v587_v37, %v464_v28  ;;  %v611_v35 = vmax.f32 %v586_v9, 0.0 }
 0x2cd   :  { %v591_v39 = vpop.f32.mrf.mxu0 }
 0x2ce   :  { %v735_v40 = vmul.f32 -1.442695, %v588_v43  ;;  %v592_v19 = vadd.f32 %v591_v39, %v460_v62 }
 0x2cf   :  { %v593_v42 = vpop.f32.mrf.mxu0 }
 0x2d0   :  { %857 = vpow2.f32 %v735_v40  ;;  %v594_v44 = vadd.f32 %v593_v42, %v464_v28  ;;  %v612_v24 = vmax.f32 %v592_v19, 0.0 }
 0x2d1   :  { %v595_v45 = vpop.f32.mrf.mxu0 }
 0x2d2   :  { %v736_v46 = vmul.f32 -1.442695, %v594_v44  ;;  %v596_v25 = vadd.f32 %v595_v45, %v460_v62 }
 0x2d3   :  { %v597_v47 = vpop.f32.mrf.mxu0 }
 0x2d4   :  { %859 = vpow2.f32 %v736_v46  ;;  %v598_v48 = vadd.f32 %v597_v47, %v464_v28  ;;  %v613_v29 = vmax.f32 %v596_v25, 0.0 }
 0x2d6   :  { %v737_v49 = vmul.f32 -1.442695, %v598_v48  ;;  %v601_v0 = vpop.f32.mrf.mxu0 }
 0x2d7   :  { %v602_v41 = vadd.f32 %v601_v0, %v460_v62 }
 0x2d8   :  { %861 = vpow2.f32 %v737_v49  ;;  %v603_v50 = vpop.f32.mrf.mxu0 }
 0x2d9   :  { %v856_v51 = vpop.eup %855  ;;  %v604_v52 = vadd.f32 %v603_v50, %v464_v28  ;;  %v614_v39 = vmax.f32 %v602_v41, 0.0 }
 0x2da   :  { %v634_v53 = vadd.f32 1.0, %v856_v51  ;;  %v605_v54 = vpop.f32.mrf.mxu0 }
 0x2db   :  { %v738_v55 = vmul.f32 -1.442695, %v604_v52  ;;  %v606_v42 = vadd.f32 %v605_v54, %v460_v62 }
 0x2dc   :  { %863 = vrcp.f32 %v634_v53  ;;  %v607_v56 = vpop.f32.mrf.mxu0 }
 0x2dd   :  { %v858_v57 = vpop.eup %857  ;;  %865 = vpow2.f32 %v738_v55  ;;  %v608_v58 = vadd.f32 %v607_v56, %v464_v28  ;;  %v615_v47 = vmax.f32 %v606_v42, 0.0 }
 0x2de   :  { %v635_v59 = vadd.f32 1.0, %v858_v57 }
 0x2df   :  { %v739_v60 = vmul.f32 -1.442695, %v608_v58 }
 0x2e0   :  { %867 = vrcp.f32 %v635_v59 }
 0x2e1   :  { %v860_v61 = vpop.eup %859  ;;  %869 = vpow2.f32 %v739_v60 }
 0x2e2   :  { %v636_v3 = vadd.f32 1.0, %v860_v61 }
 0x2e4   :  { %871 = vrcp.f32 %v636_v3 }
 0x2e5   :  { %v862_v4 = vpop.eup %861 }
 0x2e6   :  { %v637_v6 = vadd.f32 1.0, %v862_v4 }
 0x2e8   :  { %873 = vrcp.f32 %v637_v6 }
 0x2e9   :  { %v864_v31 = vpop.eup %863 }
 0x2ea   :  { %v866_v7 = vpop.eup %865  ;;  %v658_v33 = vsub.f32 1.0, %v864_v31  ;;  %v652_v11 = vmul.f32 %v864_v31, %v610_v8 }
 0x2eb   :  { %v638_v10 = vadd.f32 1.0, %v866_v7 }
 0x2ec   :  { %v664_v14 = vmul.f32 %v658_v33, %v1105_v1 }
 0x2ed   :  { %v868_v15 = vpop.eup %867  ;;  %875 = vrcp.f32 %v638_v10 }
 0x2ee   :  { %v870_v16 = vpop.eup %869  ;;  %v670_v63 = vadd.f32 %v664_v14, %v652_v11  ;;  %v659_v17 = vsub.f32 1.0, %v868_v15  ;;  %v653_v20 = vmul.f32 %v868_v15, %v611_v35 }
 0x2ef   :  { %v639_v36 = vadd.f32 1.0, %v870_v16 }
 0x2f0   :  { %676 = vst [vmem:[%s1164_s6] sm:$0xff] %v670_v63  ;;  %v665_v21 = vmul.f32 %v659_v17, %v1107_v2 }
 0x2f1   :  { %v872_v38 = vpop.eup %871  ;;  %877 = vrcp.f32 %v639_v36 }
 0x2f2   :  { %v671_v22 = vadd.f32 %v665_v21, %v653_v20  ;;  %v660_v1 = vsub.f32 1.0, %v872_v38  ;;  %v654_v23 = vmul.f32 %v872_v38, %v612_v24 }
 0x2f4   :  { %677 = vst [vmem:[%s1164_s6 + $0x8] sm:$0xff] %v671_v22  ;;  %v666_v27 = vmul.f32 %v660_v1, %v1114_v12 }
 0x2f5   :  { %v874_v28 = vpop.eup %873 }
 0x2f6   :  { %v672_v30 = vadd.f32 %v666_v27, %v654_v23  ;;  %v661_v32 = vsub.f32 1.0, %v874_v28  ;;  %v655_v2 = vmul.f32 %v874_v28, %v613_v29 }
 0x2f8   :  { %678 = vst [vmem:[%s1164_s6 + $0x10] sm:$0xff] %v672_v30  ;;  %v667_v34 = vmul.f32 %v661_v32, %v1116_v13 }
 0x2fa   :  { %v876_v37 = vpop.eup %875  ;;  %v673_v43 = vadd.f32 %v667_v34, %v655_v2 }
 0x2fb   :  { %v662_v40 = vsub.f32 1.0, %v876_v37  ;;  %v656_v12 = vmul.f32 %v876_v37, %v614_v39 }
 0x2fc   :  { %679 = vst [vmem:[%s1164_s6 + $0x18] sm:$0xff] %v673_v43 }
 0x2fd   :  { %v668_v44 = vmul.f32 %v662_v40, %v1124_v26 }
 0x2fe   :  { %v878_v45 = vpop.eup %877 }
 0x2ff   :  { %v674_v46 = vadd.f32 %v668_v44, %v656_v12  ;;  %v663_v48 = vsub.f32 1.0, %v878_v45  ;;  %v657_v13 = vmul.f32 %v878_v45, %v615_v47 }
 0x301   :  { %680 = vst [vmem:[%s1164_s6 + $0x20] sm:$0xff] %v674_v46  ;;  %v669_v49 = vmul.f32 %v663_v48, %v1126_v18 }
 0x303   :  { %v675_v0 = vadd.f32 %v669_v49, %v657_v13 }
 0x305   :  { %681 = vst [vmem:[%s1164_s6 + $0x28] sm:$0xff] %v675_v0 }
 0x306   :  { %686 = vsyncpa [#allocation3], 1 }
 0x307   :  { %687 = vsyncpa [#allocation5], 1 }
 0x308   :  { %688 = vsyncpa [#allocation8], 1 }

// kernel: bidaf_forward.12
= control target key start
LH: loop header
LB: loop body
LE: loop exit
PB: predicated region body
PF: predicated region fallthrough
CT: control target
= control target key end

     0   :  { %8 = vsyncpa [#allocation3], 0  ;;  %s1457_s0 = inlined_call_operand.vmem [shape: f32[64,128], index: 0, kind: input, shape index: {}]   ;;  %s1458_s1 = inlined_call_operand.hbm [shape: bf16[128,1024], index: 1, kind: input, shape index: {}]   ;;  %s1459_s2 = inlined_call_operand.hbm [shape: f32[1,1024], index: 2, kind: input, shape index: {}]   ;;  %s1460_s3 = inlined_call_operand.vmem [shape: bf16[64,1024], index: 3, kind: output, shape index: {}]  }
   0x1   :  { %9 = vsyncpa [#allocation5], 0  ;;  %s1178_s12 = smov [#allocation2]  }
   0x2   :  { %s17_s13 = sshll.u32 %s1178_s12, 4  ;;  %s18_s13 = int_to_ptr.vmem [resolvable:$true] %s17_s13 }
   0x3   :  { %s1142_s14 = scalar_lea.vmem %s18_s13, 8192  ;;  %p1147_p1 = scmp.lt.s32.totalorder %s18_s13, %s18_s13 }
   0x4   :  { %p1143_p0 = scmp.ne.s32.totalorder %s18_s13, %s1142_s14  ;;  %p1148_p2 = scmp.lt.s32.totalorder %s1142_s14, %s1142_s14 }
   0x6   :  { %p1149_p3 = por %p1148_p2, %p1147_p1 }
   0x8   :  { %p1150_p4 = pnand %p1149_p3, %p1143_p0 }
   0xa   :  { %1153 = shalt.err (!%p1150_p4)
}
   0xb   :  { %s1179_s15 = smov 512   ;;  %s1180_s16 = smov 32  }
   0xc   :  { %23 = dma.hbm_to_vmem [thread:$0]  %s1458_s1, 8192, %s18_s13, [#allocation3], %s1179_s15, %s1179_s15, %s1180_s16  }
   0xd   :  { %s1181_s19 = smov [#allocation4]  }
   0xe   :  { %s30_s20 = sshll.u32 %s1181_s19, 4  ;;  %s31_s20 = int_to_ptr.vmem [resolvable:$true] %s30_s20 }
   0xf   :  { %s1162_s21 = scalar_lea.vmem %s31_s20, 128  ;;  %p1167_p6 = scmp.lt.s32.totalorder %s31_s20, %s31_s20 }
  0x10   :  { %p1163_p5 = scmp.ne.s32.totalorder %s31_s20, %s1162_s21  ;;  %p1168_p7 = scmp.lt.s32.totalorder %s1162_s21, %s1162_s21 }
  0x12   :  { %p1169_p8 = por %p1168_p7, %p1167_p6 }
  0x14   :  { %p1170_p9 = pnand %p1169_p8, %p1163_p5 }
  0x16   :  { %1173 = shalt.err (!%p1170_p9)
}
  0x17   :  { %33 = dma.hbm_to_vmem [thread:$0]  %s1459_s2, 128, %s31_s20, [#allocation5]  }
  0x18   :  { %1174 = dma.done.wait [#allocation3], 8192  }
  0x19   :  { %1175 = vsyncadd [#allocation3], 4294959104 }
  0x1a   :  { %1176 = dma.done.wait [#allocation5], 128  }
  0x1b   :  { %1177 = vsyncadd [#allocation5], 4294967168  ;;  %v1182_v0 = vmov 0   ;;  %v109_v1 = vld [vmem:[#allocation2 + $0x1c0] sm:$0xff]  ;;  %v110_v3 = vld [vmem:[#allocation2 + $0x1c8] sm:$0xff] }
  0x1c   :  { %511 = vmatprep.mubr.bf16.mxu0 %v1182_v0  ;;  %584 = vmatprep.mubr.bf16.mxu1 %v1182_v0  ;;  %v113_v2 = vld [vmem:[#allocation2 + $0x1e0] sm:$0xff]  ;;  %v114_v5 = vld [vmem:[#allocation2 + $0x1e8] sm:$0xff]  ;;  %v111_v63 = vld [vmem:[#allocation2 + $0x1d0] sm:$0xff] }
  0x1d   :  { %v1058_v4 = vcombine.high %v109_v1, %v113_v2  ;;  %v1057_v6 = vcombine.low %v109_v1, %v113_v2  ;;  %v101_v7 = vld [vmem:[#allocation2 + $0x180] sm:$0xff]  ;;  %v1060_v9 = vcombine.high %v110_v3, %v114_v5  ;;  %v1059_v10 = vcombine.low %v110_v3, %v114_v5  ;;  %v102_v12 = vld [vmem:[#allocation2 + $0x188] sm:$0xff]  ;;  %v115_v1 = vld [vmem:[#allocation2 + $0x1f0] sm:$0xff] }
  0x1e   :  { %v105_v8 = vld [vmem:[#allocation2 + $0x1a0] sm:$0xff]  ;;  %v106_v13 = vld [vmem:[#allocation2 + $0x1a8] sm:$0xff]  ;;  %v112_v2 = vld [vmem:[#allocation2 + $0x1d8] sm:$0xff] }
  0x1f   :  { %v1050_v11 = vcombine.high %v101_v7, %v105_v8  ;;  %v93_v14 = vld [vmem:[#allocation2 + $0x140] sm:$0xff]  ;;  %479 = vmatprep.subr.bf16.mxu0 %v1058_v4  ;;  %v1052_v15 = vcombine.high %v102_v12, %v106_v13  ;;  %v94_v17 = vld [vmem:[#allocation2 + $0x148] sm:$0xff]  ;;  %552 = vmatprep.subr.bf16.mxu1 %v1060_v9  ;;  %v1049_v19 = vcombine.low %v101_v7, %v105_v8  ;;  %v116_v3 = vld [vmem:[#allocation2 + $0x1f8] sm:$0xff] }
  0x20   :  { %v97_v16 = vld [vmem:[#allocation2 + $0x160] sm:$0xff]  ;;  %v98_v18 = vld [vmem:[#allocation2 + $0x168] sm:$0xff]  ;;  %480 = vmatpush1.bf16.msra.mxu0 %v1057_v6  ;;  %553 = vmatpush1.bf16.msra.mxu1 %v1059_v10  ;;  %v1051_v20 = vcombine.low %v102_v12, %v106_v13  ;;  %v1062_v8 = vcombine.high %v111_v63, %v115_v1  ;;  %v1064_v9 = vcombine.high %v112_v2, %v116_v3  ;;  %v103_v10 = vld [vmem:[#allocation2 + $0x190] sm:$0xff] }
  0x21   :  { %481 = vmatprep.subr.bf16.mxu0 %v1050_v11  ;;  %v1042_v21 = vcombine.high %v93_v14, %v97_v16  ;;  %554 = vmatprep.subr.bf16.mxu1 %v1052_v15  ;;  %v1044_v22 = vcombine.high %v94_v17, %v98_v18  ;;  %v85_v23 = vld [vmem:[#allocation2 + $0x100] sm:$0xff]  ;;  %v86_v25 = vld [vmem:[#allocation2 + $0x108] sm:$0xff]  ;;  %v1041_v27 = vcombine.low %v93_v14, %v97_v16  ;;  %v107_v11 = vld [vmem:[#allocation2 + $0x1b0] sm:$0xff] }
  0x22   :  { %v89_v24 = vld [vmem:[#allocation2 + $0x120] sm:$0xff]  ;;  %v90_v26 = vld [vmem:[#allocation2 + $0x128] sm:$0xff]  ;;  %v1043_v28 = vcombine.low %v94_v17, %v98_v18  ;;  %v104_v13 = vld [vmem:[#allocation2 + $0x198] sm:$0xff]  ;;  %v1061_v15 = vcombine.low %v111_v63, %v115_v1  ;;  %v1063_v16 = vcombine.low %v112_v2, %v116_v3  ;;  %v1054_v17 = vcombine.high %v103_v10, %v107_v11 }
  0x23   :  { %v1034_v29 = vcombine.high %v85_v23, %v89_v24  ;;  %v1036_v30 = vcombine.high %v86_v25, %v90_v26  ;;  %v77_v31 = vld [vmem:[#allocation2 + $0xc0] sm:$0xff]  ;;  %v78_v33 = vld [vmem:[#allocation2 + $0xc8] sm:$0xff]  ;;  %v1033_v35 = vcombine.low %v85_v23, %v89_v24  ;;  %v1035_v36 = vcombine.low %v86_v25, %v90_v26  ;;  %v108_v14 = vld [vmem:[#allocation2 + $0x1b8] sm:$0xff] }
  0x24   :  { %482 = vmatpush1.bf16.msra.mxu0 %v1049_v19  ;;  %555 = vmatpush1.bf16.msra.mxu1 %v1051_v20  ;;  %v81_v32 = vld [vmem:[#allocation2 + $0xe0] sm:$0xff]  ;;  %v82_v34 = vld [vmem:[#allocation2 + $0xe8] sm:$0xff]  ;;  %v1056_v18 = vcombine.high %v104_v13, %v108_v14  ;;  %v95_v19 = vld [vmem:[#allocation2 + $0x150] sm:$0xff]  ;;  %v1053_v23 = vcombine.low %v103_v10, %v107_v11  ;;  %v1055_v26 = vcombine.low %v104_v13, %v108_v14 }
  0x25   :  { %483 = vmatprep.subr.bf16.mxu0 %v1042_v21  ;;  %556 = vmatprep.subr.bf16.mxu1 %v1044_v22  ;;  %v1026_v37 = vcombine.high %v77_v31, %v81_v32  ;;  %v1028_v38 = vcombine.high %v78_v33, %v82_v34  ;;  %v69_v39 = vld [vmem:[#allocation2 + $0x80] sm:$0xff]  ;;  %v70_v41 = vld [vmem:[#allocation2 + $0x88] sm:$0xff]  ;;  %v1025_v43 = vcombine.low %v77_v31, %v81_v32  ;;  %v99_v20 = vld [vmem:[#allocation2 + $0x170] sm:$0xff] }
  0x26   :  { %v73_v40 = vld [vmem:[#allocation2 + $0xa0] sm:$0xff]  ;;  %v74_v42 = vld [vmem:[#allocation2 + $0xa8] sm:$0xff]  ;;  %v1027_v44 = vcombine.low %v78_v33, %v82_v34  ;;  %v96_v21 = vld [vmem:[#allocation2 + $0x158] sm:$0xff]  ;;  %v1045_v34 = vcombine.low %v95_v19, %v99_v20 }
  0x27   :  { %v1018_v45 = vcombine.high %v69_v39, %v73_v40  ;;  %v1020_v46 = vcombine.high %v70_v41, %v74_v42  ;;  %v61_v47 = vld [vmem:[#allocation2 + $0x40] sm:$0xff]  ;;  %v62_v49 = vld [vmem:[#allocation2 + $0x48] sm:$0xff]  ;;  %v1017_v51 = vcombine.low %v69_v39, %v73_v40  ;;  %v1019_v52 = vcombine.low %v70_v41, %v74_v42  ;;  %v100_v22 = vld [vmem:[#allocation2 + $0x178] sm:$0xff] }
  0x28   :  { %484 = vmatpush1.bf16.msra.mxu0 %v1041_v27  ;;  %557 = vmatpush1.bf16.msra.mxu1 %v1043_v28  ;;  %v65_v48 = vld [vmem:[#allocation2 + $0x60] sm:$0xff]  ;;  %v66_v50 = vld [vmem:[#allocation2 + $0x68] sm:$0xff]  ;;  %v43_v24 = vld [vmem:[%s1457_s0 + $0x10] sm:$0xff]  ;;  %v1046_v27 = vcombine.high %v95_v19, %v99_v20  ;;  %v1048_v28 = vcombine.high %v96_v21, %v100_v22 }
  0x29   :  { %485 = vmatprep.subr.bf16.mxu0 %v1034_v29  ;;  %558 = vmatprep.subr.bf16.mxu1 %v1036_v30  ;;  %v1010_v53 = vcombine.high %v61_v47, %v65_v48  ;;  %v1012_v54 = vcombine.high %v62_v49, %v66_v50  ;;  %v53_v55 = vld [vmem:[#allocation2] sm:$0xff]  ;;  %v54_v57 = vld [vmem:[#allocation2 + $0x8] sm:$0xff]  ;;  %v1009_v59 = vcombine.low %v61_v47, %v65_v48  ;;  %v44_v25 = vld [vmem:[%s1457_s0 + $0x18] sm:$0xff] }
  0x2a   :  { %v57_v56 = vld [vmem:[#allocation2 + $0x20] sm:$0xff]  ;;  %v58_v58 = vld [vmem:[#allocation2 + $0x28] sm:$0xff]  ;;  %v1011_v60 = vcombine.low %v62_v49, %v66_v50  ;;  %v87_v29 = vld [vmem:[#allocation2 + $0x110] sm:$0xff]  ;;  %v1229_v31 = vpack.c.bf16 %v44_v25, %v43_v24 }
  0x2b   :  { %v1002_v61 = vcombine.high %v53_v55, %v57_v56  ;;  %v1004_v62 = vcombine.high %v54_v57, %v58_v58  ;;  %v1001_v4 = vcombine.low %v53_v55, %v57_v56  ;;  %v41_v5 = vld [vmem:[%s1457_s0] sm:$0xff]  ;;  %v42_v6 = vld [vmem:[%s1457_s0 + $0x8] sm:$0xff]  ;;  %v1003_v7 = vcombine.low %v54_v57, %v58_v58  ;;  %v91_v30 = vld [vmem:[#allocation2 + $0x130] sm:$0xff] }
  0x2c   :  { %486 = vmatpush1.bf16.msra.mxu0 %v1033_v35  ;;  %559 = vmatpush1.bf16.msra.mxu1 %v1035_v36  ;;  %v1217_v12 = vpack.c.bf16 %v42_v6, %v41_v5  ;;  %v88_v32 = vld [vmem:[#allocation2 + $0x118] sm:$0xff]  ;;  %v1047_v35 = vcombine.low %v96_v21, %v100_v22  ;;  %v1038_v36 = vcombine.high %v87_v29, %v91_v30  ;;  %v83_v39 = vld [vmem:[#allocation2 + $0xf0] sm:$0xff]  ;;  %v1265_v19 = vld [vmem:[#allocation4] sm:$0xff] }
  0x2d   :  { %487 = vmatprep.subr.bf16.mxu0 %v1026_v37  ;;  %560 = vmatprep.subr.bf16.mxu1 %v1028_v38  ;;  %v92_v33 = vld [vmem:[#allocation2 + $0x138] sm:$0xff]  ;;  %v79_v38 = vld [vmem:[#allocation2 + $0xd0] sm:$0xff]  ;;  %v1037_v42 = vcombine.low %v87_v29, %v91_v30 }
  0x2e   :  { %v1040_v37 = vcombine.high %v88_v32, %v92_v33  ;;  %v80_v40 = vld [vmem:[#allocation2 + $0xd8] sm:$0xff]  ;;  %v71_v48 = vld [vmem:[#allocation2 + $0x90] sm:$0xff] }
  0x2f   :  { %v84_v41 = vld [vmem:[#allocation2 + $0xf8] sm:$0xff]  ;;  %v75_v49 = vld [vmem:[#allocation2 + $0xb0] sm:$0xff] }
  0x30   :  { %488 = vmatpush1.bf16.msra.mxu0 %v1025_v43  ;;  %561 = vmatpush1.bf16.msra.mxu1 %v1027_v44  ;;  %v45_v43 = vld [vmem:[%s1457_s0 + $0x20] sm:$0xff]  ;;  %v46_v44 = vld [vmem:[%s1457_s0 + $0x28] sm:$0xff]  ;;  %v1032_v47 = vcombine.high %v80_v40, %v84_v41  ;;  %v1022_v55 = vcombine.high %v71_v48, %v75_v49  ;;  %v63_v57 = vld [vmem:[#allocation2 + $0x50] sm:$0xff] }
  0x31   :  { %489 = vmatprep.subr.bf16.mxu0 %v1018_v45  ;;  %562 = vmatprep.subr.bf16.mxu1 %v1020_v46  ;;  %v1039_v45 = vcombine.low %v88_v32, %v92_v33  ;;  %v1030_v46 = vcombine.high %v79_v38, %v83_v39  ;;  %v51_v50 = vpack.c.bf16 %v46_v44, %v45_v43  ;;  %v67_v58 = vld [vmem:[#allocation2 + $0x70] sm:$0xff]  ;;  %v48_v63 = vld [vmem:[%s1457_s0 + $0x38] sm:$0xff] }
  0x32   :  { %v1014_v2 = vcombine.high %v63_v57, %v67_v58  ;;  %v59_v5 = vld [vmem:[#allocation2 + $0x30] sm:$0xff] }
  0x34   :  { %490 = vmatpush1.bf16.msra.mxu0 %v1017_v51  ;;  %563 = vmatpush1.bf16.msra.mxu1 %v1019_v52  ;;  %v72_v51 = vld [vmem:[#allocation2 + $0x98] sm:$0xff] }
  0x35   :  { %491 = vmatprep.subr.bf16.mxu0 %v1010_v53  ;;  %564 = vmatprep.subr.bf16.mxu1 %v1012_v54  ;;  %v76_v52 = vld [vmem:[#allocation2 + $0xb8] sm:$0xff]  ;;  %v1029_v53 = vcombine.low %v79_v38, %v83_v39  ;;  %v1031_v54 = vcombine.low %v80_v40, %v84_v41 }
  0x36   :  { %v1024_v56 = vcombine.high %v72_v51, %v76_v52  ;;  %v1023_v1 = vcombine.low %v72_v51, %v76_v52 }
  0x38   :  { %492 = vmatpush1.bf16.msra.mxu0 %v1009_v59  ;;  %565 = vmatpush1.bf16.msra.mxu1 %v1011_v60  ;;  %v64_v59 = vld [vmem:[#allocation2 + $0x58] sm:$0xff] }
  0x39   :  { %493 = vmatprep.subr.bf16.mxu0 %v1002_v61  ;;  %566 = vmatprep.subr.bf16.mxu1 %v1004_v62  ;;  %v68_v60 = vld [vmem:[#allocation2 + $0x78] sm:$0xff]  ;;  %v1021_v61 = vcombine.low %v71_v48, %v75_v49  ;;  %v47_v62 = vld [vmem:[%s1457_s0 + $0x30] sm:$0xff] }
  0x3a   :  { %v1016_v3 = vcombine.high %v64_v59, %v68_v60  ;;  %v52_v6 = vpack.c.bf16 %v48_v63, %v47_v62  ;;  %v1015_v10 = vcombine.low %v64_v59, %v68_v60 }
  0x3c   :  { %494 = vmatpush1.bf16.msra.mxu0 %v1001_v4  ;;  %567 = vmatpush1.bf16.msra.mxu1 %v1003_v7  ;;  %v55_v4 = vld [vmem:[#allocation2 + $0x10] sm:$0xff]  ;;  %v56_v7 = vld [vmem:[#allocation2 + $0x18] sm:$0xff] }
  0x3d   :  { %625 = vmatprep.subr.bf16.mxu0 %v1062_v8  ;;  %698 = vmatprep.subr.bf16.mxu1 %v1064_v9  ;;  %v60_v8 = vld [vmem:[#allocation2 + $0x38] sm:$0xff]  ;;  %v1013_v9 = vcombine.low %v63_v57, %v67_v58  ;;  %v1006_v11 = vcombine.high %v55_v4, %v59_v5  ;;  %v1005_v14 = vcombine.low %v55_v4, %v59_v5 }
  0x3e   :  { %v1008_v13 = vcombine.high %v56_v7, %v60_v8 }
  0x3f   :  { %512 = vmatmul.mubr.bf16.vlgmr.msra.gmra.mxu0 %v1217_v12  ;;  %585 = vmatmul.mubr.bf16.vlgmr.msra.gmra.mxu1 %v1217_v12 }
  0x40   :  { %626 = vmatpush1.bf16.msra.mxu0 %v1061_v15  ;;  %699 = vmatpush1.bf16.msra.mxu1 %v1063_v16  ;;  %v1007_v15 = vcombine.low %v56_v7, %v60_v8 }
  0x41   :  { %627 = vmatprep.subr.bf16.mxu0 %v1054_v17  ;;  %700 = vmatprep.subr.bf16.mxu1 %v1056_v18 }
  0x42   :  { %521 = vmatprep.mubr.bf16.mxu0 %v1182_v0  ;;  %594 = vmatprep.mubr.bf16.mxu1 %v1182_v0 }
  0x44   :  { %628 = vmatpush1.bf16.msra.mxu0 %v1053_v23  ;;  %701 = vmatpush1.bf16.msra.mxu1 %v1055_v26 }
  0x45   :  { %629 = vmatprep.subr.bf16.mxu0 %v1046_v27  ;;  %702 = vmatprep.subr.bf16.mxu1 %v1048_v28 }
  0x47   :  { %522 = vmatmul.mubr.bf16.gmra.mxu0 %v1229_v31  ;;  %595 = vmatmul.mubr.bf16.gmra.mxu1 %v1229_v31 }
  0x48   :  { %630 = vmatpush1.bf16.msra.mxu0 %v1045_v34  ;;  %703 = vmatpush1.bf16.msra.mxu1 %v1047_v35 }
  0x49   :  { %631 = vmatprep.subr.bf16.mxu0 %v1038_v36  ;;  %704 = vmatprep.subr.bf16.mxu1 %v1040_v37 }
  0x4a   :  { %531 = vmatprep.mubr.bf16.mxu0 %v1182_v0  ;;  %604 = vmatprep.mubr.bf16.mxu1 %v1182_v0 }
  0x4c   :  { %632 = vmatpush1.bf16.msra.mxu0 %v1037_v42  ;;  %705 = vmatpush1.bf16.msra.mxu1 %v1039_v45 }
  0x4d   :  { %633 = vmatprep.subr.bf16.mxu0 %v1030_v46  ;;  %706 = vmatprep.subr.bf16.mxu1 %v1032_v47 }
  0x4f   :  { %532 = vmatmul.mubr.bf16.gmra.mxu0 %v51_v50  ;;  %605 = vmatmul.mubr.bf16.gmra.mxu1 %v51_v50 }
  0x50   :  { %634 = vmatpush1.bf16.msra.mxu0 %v1029_v53  ;;  %707 = vmatpush1.bf16.msra.mxu1 %v1031_v54 }
  0x51   :  { %635 = vmatprep.subr.bf16.mxu0 %v1022_v55  ;;  %708 = vmatprep.subr.bf16.mxu1 %v1024_v56 }
  0x52   :  { %541 = vmatprep.mubr.bf16.mxu0 %v1182_v0  ;;  %614 = vmatprep.mubr.bf16.mxu1 %v1182_v0 }
  0x54   :  { %636 = vmatpush1.bf16.msra.mxu0 %v1021_v61  ;;  %709 = vmatpush1.bf16.msra.mxu1 %v1023_v1 }
  0x55   :  { %637 = vmatprep.subr.bf16.mxu0 %v1014_v2  ;;  %710 = vmatprep.subr.bf16.mxu1 %v1016_v3 }
  0x57   :  { %542 = vmatmul.mubr.bf16.gmra.mxu0 %v52_v6  ;;  %615 = vmatmul.mubr.bf16.gmra.mxu1 %v52_v6 }
  0x58   :  { %638 = vmatpush1.bf16.msra.mxu0 %v1013_v9  ;;  %711 = vmatpush1.bf16.msra.mxu1 %v1015_v10 }
  0x59   :  { %639 = vmatprep.subr.bf16.mxu0 %v1006_v11  ;;  %712 = vmatprep.subr.bf16.mxu1 %v1008_v13 }
  0x5a   :  { %657 = vmatprep.mubr.bf16.mxu0 %v1182_v0  ;;  %730 = vmatprep.mubr.bf16.mxu1 %v1182_v0 }
  0x5c   :  { %640 = vmatpush1.bf16.msra.mxu0 %v1005_v14  ;;  %713 = vmatpush1.bf16.msra.mxu1 %v1007_v15 }
  0x5f   :  { %658 = vmatmul.mubr.bf16.vlgmr.msra.gmra.mxu0 %v1217_v12  ;;  %731 = vmatmul.mubr.bf16.vlgmr.msra.gmra.mxu1 %v1217_v12  ;;  %v119_v12 = vlaneseq }
  0x60   :  { %667 = vmatprep.mubr.bf16.mxu0 %v1182_v0  ;;  %740 = vmatprep.mubr.bf16.mxu1 %v1182_v0 }
  0x61   :  { %v1261_v16 = vshrl.u32 %v119_v12, 7 }
  0x63   :  { %v121_v17 = vsub.s32 0, %v1261_v16  ;;  %v125_v18 = vsub.s32 1, %v1261_v16  ;;  %v129_v20 = vsub.s32 2, %v1261_v16  ;;  %v133_v21 = vsub.s32 3, %v1261_v16 }
  0x65   :  { %v1270_v22 = vrot.slane %v1265_v19, %v121_v17  ;;  %v1276_v24 = vrot.slane %v1265_v19, %v129_v20  ;;  %v1279_v25 = vrot.slane %v1265_v19, %v133_v21 }
  0x67   :  { %668 = vmatmul.mubr.bf16.gmra.mxu0 %v1229_v31  ;;  %741 = vmatmul.mubr.bf16.gmra.mxu1 %v1229_v31 }
  0x68   :  { %677 = vmatprep.mubr.bf16.mxu0 %v1182_v0  ;;  %750 = vmatprep.mubr.bf16.mxu1 %v1182_v0 }
  0x6f   :  { %678 = vmatmul.mubr.bf16.gmra.mxu0 %v51_v50  ;;  %751 = vmatmul.mubr.bf16.gmra.mxu1 %v51_v50 }
  0x70   :  { %687 = vmatprep.mubr.bf16.mxu0 %v1182_v0  ;;  %760 = vmatprep.mubr.bf16.mxu1 %v1182_v0  ;;  %v1273_v0 = vrot.slane %v1265_v19, %v125_v18 }
  0x77   :  { %688 = vmatmul.mubr.bf16.gmra.mxu0 %v52_v6  ;;  %761 = vmatmul.mubr.bf16.gmra.mxu1 %v52_v6 }
  0xff   :  { %v513_v23 = vpop.f32.mrf.mxu0  ;;  %v586_v26 = vpop.f32.mrf.mxu1 }
 0x100   :  { %v514_v28 = vadd.f32 %v513_v23, %v1270_v22  ;;  %v587_v31 = vadd.f32 %v586_v26, %v1276_v24 }
 0x101   :  { %v515_v27 = vpop.f32.mrf.mxu0  ;;  %v588_v30 = vpop.f32.mrf.mxu1 }
 0x102   :  { %v516_v29 = vadd.f32 %v515_v27, %v1273_v0  ;;  %v589_v32 = vadd.f32 %v588_v30, %v1279_v25 }
 0x103   :  { %v517_v33 = vpop.f32.mrf.mxu0  ;;  %v590_v35 = vpop.f32.mrf.mxu1 }
 0x104   :  { %v1097_v34 = vpack.c.bf16 %v516_v29, %v514_v28  ;;  %v1098_v36 = vpack.c.bf16 %v589_v32, %v587_v31  ;;  %v518_v38 = vadd.f32 %v517_v33, %v1270_v22  ;;  %v591_v41 = vadd.f32 %v590_v35, %v1276_v24 }
 0x105   :  { %v519_v37 = vpop.f32.mrf.mxu0  ;;  %v592_v40 = vpop.f32.mrf.mxu1  ;;  %v137_v33 = vsub.s32 4, %v1261_v16 }
 0x106   :  { %963 = vst [vmem:[%s1460_s3] sm:$0xff] %v1097_v34  ;;  %v520_v39 = vadd.f32 %v519_v37, %v1273_v0  ;;  %964 = vst [vmem:[%s1460_s3 + $0x8] sm:$0xff] %v1098_v36  ;;  %v593_v42 = vadd.f32 %v592_v40, %v1279_v25  ;;  %v141_v34 = vsub.s32 5, %v1261_v16 }
 0x107   :  { %v523_v43 = vpop.f32.mrf.mxu0  ;;  %v596_v45 = vpop.f32.mrf.mxu1 }
 0x108   :  { %v1101_v44 = vpack.c.bf16 %v520_v39, %v518_v38  ;;  %v1102_v46 = vpack.c.bf16 %v593_v42, %v591_v41  ;;  %v524_v48 = vadd.f32 %v523_v43, %v1270_v22  ;;  %v597_v51 = vadd.f32 %v596_v45, %v1276_v24 }
 0x109   :  { %v525_v47 = vpop.f32.mrf.mxu0  ;;  %v598_v50 = vpop.f32.mrf.mxu1  ;;  %v145_v38 = vsub.s32 6, %v1261_v16  ;;  %v149_v39 = vsub.s32 7, %v1261_v16 }
 0x10a   :  { %967 = vst [vmem:[%s1460_s3 + $0x20] sm:$0xff] %v1101_v44  ;;  %v526_v49 = vadd.f32 %v525_v47, %v1273_v0  ;;  %968 = vst [vmem:[%s1460_s3 + $0x28] sm:$0xff] %v1102_v46  ;;  %v599_v52 = vadd.f32 %v598_v50, %v1279_v25  ;;  %v1355_v47 = vrot.slane %v1265_v19, %v137_v33 }
 0x10b   :  { %v527_v53 = vpop.f32.mrf.mxu0  ;;  %v600_v55 = vpop.f32.mrf.mxu1 }
 0x10c   :  { %v1105_v54 = vpack.c.bf16 %v526_v49, %v524_v48  ;;  %v1106_v56 = vpack.c.bf16 %v599_v52, %v597_v51  ;;  %v528_v58 = vadd.f32 %v527_v53, %v1270_v22  ;;  %v601_v61 = vadd.f32 %v600_v55, %v1276_v24 }
 0x10d   :  { %v529_v57 = vpop.f32.mrf.mxu0  ;;  %v602_v60 = vpop.f32.mrf.mxu1  ;;  %v1358_v48 = vrot.slane %v1265_v19, %v141_v34 }
 0x10e   :  { %971 = vst [vmem:[%s1460_s3 + $0x40] sm:$0xff] %v1105_v54  ;;  %v530_v59 = vadd.f32 %v529_v57, %v1273_v0  ;;  %972 = vst [vmem:[%s1460_s3 + $0x48] sm:$0xff] %v1106_v56  ;;  %v603_v62 = vadd.f32 %v602_v60, %v1279_v25 }
 0x10f   :  { %v533_v63 = vpop.f32.mrf.mxu0  ;;  %v606_v2 = vpop.f32.mrf.mxu1 }
 0x110   :  { %v1109_v1 = vpack.c.bf16 %v530_v59, %v528_v58  ;;  %v1110_v3 = vpack.c.bf16 %v603_v62, %v601_v61  ;;  %v534_v5 = vadd.f32 %v533_v63, %v1270_v22  ;;  %v607_v8 = vadd.f32 %v606_v2, %v1276_v24 }
 0x111   :  { %v535_v4 = vpop.f32.mrf.mxu0  ;;  %v608_v7 = vpop.f32.mrf.mxu1 }
 0x112   :  { %975 = vst [vmem:[%s1460_s3 + $0x60] sm:$0xff] %v1109_v1  ;;  %v536_v6 = vadd.f32 %v535_v4, %v1273_v0  ;;  %976 = vst [vmem:[%s1460_s3 + $0x68] sm:$0xff] %v1110_v3  ;;  %v609_v9 = vadd.f32 %v608_v7, %v1279_v25 }
 0x113   :  { %v537_v10 = vpop.f32.mrf.mxu0  ;;  %v610_v13 = vpop.f32.mrf.mxu1 }
 0x114   :  { %v1113_v11 = vpack.c.bf16 %v536_v6, %v534_v5  ;;  %v1114_v14 = vpack.c.bf16 %v609_v9, %v607_v8  ;;  %v538_v12 = vadd.f32 %v537_v10, %v1270_v22  ;;  %v611_v20 = vadd.f32 %v610_v13, %v1276_v24 }
 0x115   :  { %v539_v15 = vpop.f32.mrf.mxu0  ;;  %v612_v18 = vpop.f32.mrf.mxu1 }
 0x116   :  { %979 = vst [vmem:[%s1460_s3 + $0x80] sm:$0xff] %v1113_v11  ;;  %v540_v17 = vadd.f32 %v539_v15, %v1273_v0  ;;  %980 = vst [vmem:[%s1460_s3 + $0x88] sm:$0xff] %v1114_v14  ;;  %v613_v21 = vadd.f32 %v612_v18, %v1279_v25 }
 0x117   :  { %v543_v23 = vpop.f32.mrf.mxu0  ;;  %v616_v27 = vpop.f32.mrf.mxu1 }
 0x118   :  { %v1117_v26 = vpack.c.bf16 %v540_v17, %v538_v12  ;;  %v1118_v28 = vpack.c.bf16 %v613_v21, %v611_v20  ;;  %v544_v30 = vadd.f32 %v543_v23, %v1270_v22  ;;  %v617_v35 = vadd.f32 %v616_v27, %v1276_v24 }
 0x119   :  { %v545_v29 = vpop.f32.mrf.mxu0  ;;  %v618_v32 = vpop.f32.mrf.mxu1 }
 0x11a   :  { %983 = vst [vmem:[%s1460_s3 + $0xa0] sm:$0xff] %v1117_v26  ;;  %v546_v31 = vadd.f32 %v545_v29, %v1273_v0  ;;  %984 = vst [vmem:[%s1460_s3 + $0xa8] sm:$0xff] %v1118_v28  ;;  %v619_v36 = vadd.f32 %v618_v32, %v1279_v25 }
 0x11b   :  { %v547_v37 = vpop.f32.mrf.mxu0  ;;  %v620_v41 = vpop.f32.mrf.mxu1 }
 0x11c   :  { %v1121_v40 = vpack.c.bf16 %v546_v31, %v544_v30  ;;  %v1122_v42 = vpack.c.bf16 %v619_v36, %v617_v35  ;;  %v548_v44 = vadd.f32 %v547_v37, %v1270_v22  ;;  %v621_v16 = vadd.f32 %v620_v41, %v1276_v24 }
 0x11d   :  { %v549_v43 = vpop.f32.mrf.mxu0  ;;  %v622_v46 = vpop.f32.mrf.mxu1  ;;  %v1366_v22 = vrot.slane %v1265_v19, %v145_v38 }
 0x11e   :  { %987 = vst [vmem:[%s1460_s3 + $0xc0] sm:$0xff] %v1121_v40  ;;  %v550_v45 = vadd.f32 %v549_v43, %v1273_v0  ;;  %988 = vst [vmem:[%s1460_s3 + $0xc8] sm:$0xff] %v1122_v42  ;;  %v623_v49 = vadd.f32 %v622_v46, %v1279_v25  ;;  %v1369_v0 = vrot.slane %v1265_v19, %v149_v39 }
 0x11f   :  { %v659_v50 = vpop.f32.mrf.mxu0  ;;  %v732_v52 = vpop.f32.mrf.mxu1 }
 0x120   :  { %v1125_v51 = vpack.c.bf16 %v550_v45, %v548_v44  ;;  %v1126_v53 = vpack.c.bf16 %v623_v49, %v621_v16  ;;  %v660_v55 = vadd.f32 %v659_v50, %v1355_v47  ;;  %v733_v19 = vadd.f32 %v732_v52, %v1366_v22 }
 0x121   :  { %v661_v54 = vpop.f32.mrf.mxu0  ;;  %v734_v25 = vpop.f32.mrf.mxu1 }
 0x122   :  { %991 = vst [vmem:[%s1460_s3 + $0xe0] sm:$0xff] %v1125_v51  ;;  %v662_v24 = vadd.f32 %v661_v54, %v1358_v48  ;;  %992 = vst [vmem:[%s1460_s3 + $0xe8] sm:$0xff] %v1126_v53  ;;  %v735_v56 = vadd.f32 %v734_v25, %v1369_v0 }
 0x123   :  { %v663_v57 = vpop.f32.mrf.mxu0  ;;  %v736_v59 = vpop.f32.mrf.mxu1 }
 0x124   :  { %v1099_v58 = vpack.c.bf16 %v662_v24, %v660_v55  ;;  %v1100_v60 = vpack.c.bf16 %v735_v56, %v733_v19  ;;  %v664_v62 = vadd.f32 %v663_v57, %v1355_v47  ;;  %v737_v2 = vadd.f32 %v736_v59, %v1366_v22 }
 0x125   :  { %v665_v61 = vpop.f32.mrf.mxu0  ;;  %v738_v1 = vpop.f32.mrf.mxu1 }
 0x126   :  { %965 = vst [vmem:[%s1460_s3 + $0x10] sm:$0xff] %v1099_v58  ;;  %v666_v63 = vadd.f32 %v665_v61, %v1358_v48  ;;  %966 = vst [vmem:[%s1460_s3 + $0x18] sm:$0xff] %v1100_v60  ;;  %v739_v3 = vadd.f32 %v738_v1, %v1369_v0 }
 0x127   :  { %v669_v4 = vpop.f32.mrf.mxu0  ;;  %v742_v6 = vpop.f32.mrf.mxu1 }
 0x128   :  { %v1103_v5 = vpack.c.bf16 %v666_v63, %v664_v62  ;;  %v1104_v7 = vpack.c.bf16 %v739_v3, %v737_v2  ;;  %v670_v9 = vadd.f32 %v669_v4, %v1355_v47  ;;  %v743_v13 = vadd.f32 %v742_v6, %v1366_v22 }
 0x129   :  { %v671_v8 = vpop.f32.mrf.mxu0  ;;  %v744_v11 = vpop.f32.mrf.mxu1 }
 0x12a   :  { %969 = vst [vmem:[%s1460_s3 + $0x30] sm:$0xff] %v1103_v5  ;;  %v672_v10 = vadd.f32 %v671_v8, %v1358_v48  ;;  %970 = vst [vmem:[%s1460_s3 + $0x38] sm:$0xff] %v1104_v7  ;;  %v745_v14 = vadd.f32 %v744_v11, %v1369_v0 }
 0x12b   :  { %v673_v15 = vpop.f32.mrf.mxu0  ;;  %v746_v17 = vpop.f32.mrf.mxu1 }
 0x12c   :  { %v1107_v12 = vpack.c.bf16 %v672_v10, %v670_v9  ;;  %v1108_v18 = vpack.c.bf16 %v745_v14, %v743_v13  ;;  %v674_v21 = vadd.f32 %v673_v15, %v1355_v47  ;;  %v747_v27 = vadd.f32 %v746_v17, %v1366_v22 }
 0x12d   :  { %v675_v20 = vpop.f32.mrf.mxu0  ;;  %v748_v26 = vpop.f32.mrf.mxu1 }
 0x12e   :  { %973 = vst [vmem:[%s1460_s3 + $0x50] sm:$0xff] %v1107_v12  ;;  %v676_v23 = vadd.f32 %v675_v20, %v1358_v48  ;;  %974 = vst [vmem:[%s1460_s3 + $0x58] sm:$0xff] %v1108_v18  ;;  %v749_v28 = vadd.f32 %v748_v26, %v1369_v0 }
 0x12f   :  { %v679_v29 = vpop.f32.mrf.mxu0  ;;  %v752_v31 = vpop.f32.mrf.mxu1 }
 0x130   :  { %v1111_v30 = vpack.c.bf16 %v676_v23, %v674_v21  ;;  %v1112_v32 = vpack.c.bf16 %v749_v28, %v747_v27  ;;  %v680_v34 = vadd.f32 %v679_v29, %v1355_v47  ;;  %v753_v37 = vadd.f32 %v752_v31, %v1366_v22 }
 0x131   :  { %v681_v33 = vpop.f32.mrf.mxu0  ;;  %v754_v36 = vpop.f32.mrf.mxu1 }
 0x132   :  { %977 = vst [vmem:[%s1460_s3 + $0x70] sm:$0xff] %v1111_v30  ;;  %v682_v35 = vadd.f32 %v681_v33, %v1358_v48  ;;  %978 = vst [vmem:[%s1460_s3 + $0x78] sm:$0xff] %v1112_v32  ;;  %v755_v38 = vadd.f32 %v754_v36, %v1369_v0 }
 0x133   :  { %v683_v39 = vpop.f32.mrf.mxu0  ;;  %v756_v41 = vpop.f32.mrf.mxu1 }
 0x134   :  { %v1115_v40 = vpack.c.bf16 %v682_v35, %v680_v34  ;;  %v1116_v42 = vpack.c.bf16 %v755_v38, %v753_v37  ;;  %v684_v44 = vadd.f32 %v683_v39, %v1355_v47  ;;  %v757_v16 = vadd.f32 %v756_v41, %v1366_v22 }
 0x135   :  { %v685_v43 = vpop.f32.mrf.mxu0  ;;  %v758_v46 = vpop.f32.mrf.mxu1 }
 0x136   :  { %981 = vst [vmem:[%s1460_s3 + $0x90] sm:$0xff] %v1115_v40  ;;  %v686_v45 = vadd.f32 %v685_v43, %v1358_v48  ;;  %982 = vst [vmem:[%s1460_s3 + $0x98] sm:$0xff] %v1116_v42  ;;  %v759_v49 = vadd.f32 %v758_v46, %v1369_v0 }
 0x137   :  { %v689_v50 = vpop.f32.mrf.mxu0  ;;  %v762_v52 = vpop.f32.mrf.mxu1 }
 0x138   :  { %v1119_v51 = vpack.c.bf16 %v686_v45, %v684_v44  ;;  %v1120_v53 = vpack.c.bf16 %v759_v49, %v757_v16  ;;  %v690_v55 = vadd.f32 %v689_v50, %v1355_v47  ;;  %v763_v19 = vadd.f32 %v762_v52, %v1366_v22 }
 0x139   :  { %v691_v54 = vpop.f32.mrf.mxu0  ;;  %v764_v25 = vpop.f32.mrf.mxu1 }
 0x13a   :  { %985 = vst [vmem:[%s1460_s3 + $0xb0] sm:$0xff] %v1119_v51  ;;  %v692_v24 = vadd.f32 %v691_v54, %v1358_v48  ;;  %986 = vst [vmem:[%s1460_s3 + $0xb8] sm:$0xff] %v1120_v53  ;;  %v765_v56 = vadd.f32 %v764_v25, %v1369_v0 }
 0x13b   :  { %v693_v57 = vpop.f32.mrf.mxu0  ;;  %v766_v59 = vpop.f32.mrf.mxu1 }
 0x13c   :  { %v1123_v58 = vpack.c.bf16 %v692_v24, %v690_v55  ;;  %v1124_v60 = vpack.c.bf16 %v765_v56, %v763_v19  ;;  %v694_v62 = vadd.f32 %v693_v57, %v1355_v47  ;;  %v767_v2 = vadd.f32 %v766_v59, %v1366_v22 }
 0x13d   :  { %v695_v61 = vpop.f32.mrf.mxu0  ;;  %v768_v1 = vpop.f32.mrf.mxu1 }
 0x13e   :  { %989 = vst [vmem:[%s1460_s3 + $0xd0] sm:$0xff] %v1123_v58  ;;  %v696_v63 = vadd.f32 %v695_v61, %v1358_v48  ;;  %990 = vst [vmem:[%s1460_s3 + $0xd8] sm:$0xff] %v1124_v60  ;;  %v769_v3 = vadd.f32 %v768_v1, %v1369_v0 }
 0x140   :  { %v1127_v4 = vpack.c.bf16 %v696_v63, %v694_v62  ;;  %v1128_v5 = vpack.c.bf16 %v769_v3, %v767_v2 }
 0x142   :  { %993 = vst [vmem:[%s1460_s3 + $0xf0] sm:$0xff] %v1127_v4  ;;  %994 = vst [vmem:[%s1460_s3 + $0xf8] sm:$0xff] %v1128_v5 }
 0x143   :  { %999 = vsyncpa [#allocation3], 1 }
 0x144   :  { %1000 = vsyncpa [#allocation5], 1 }

// kernel: bidaf_forward.13
= control target key start
LH: loop header
LB: loop body
LE: loop exit
PB: predicated region body
PF: predicated region fallthrough
CT: control target
= control target key end

     0   :  { %v877_v0 = vmov 0.0   ;;  %v879_v1 = vmov 0.0   ;;  %v881_v2 = vmov 0.0   ;;  %v883_v3 = vmov 0.0   ;;  %s885_s12 = smov 0   ;;  %s1722_s0 = inlined_call_operand.vmem [shape: bf16[16,4,1024], index: 0, kind: input, shape index: {}]   ;;  %s1723_s1 = inlined_call_operand.vmem [shape: f32[16,4,1], index: 1, kind: input, shape index: {}]   ;;  %s1724_s2 = inlined_call_operand.vmem [shape: f32[256,1024], index: 2, kind: input, shape index: {}]   ;;  %s1725_s3 = inlined_call_operand.vmem [shape: f32[16,4,256], index: 3, kind: output, shape index: {}]  }
   0x1 LB: > { %v146_v4 = vld [vmem:[%s1724_s2 + $0x3c8] sm:$0xff]  ;;  %v145_v5 = vld [vmem:[%s1724_s2 + $0x3c0] sm:$0xff]  ;;  %345 = vmatprep.mubr.f32.mxu0 %v842_v1  ;;  %416 = vmatprep.mubr.f32.mxu1 %v842_v1  ;;  %v148_v12 = vld [vmem:[%s1724_s2 + $0x3d8] sm:$0xff]  ;;  %s732_s8 = sshll.u32 %s854_s12, 2  ;;  %s1610_s14 = ssub.s32 15, %s854_s12  ;;  %s854_s12 = sphi %s885_s12, %s19_s12   ;;  %v850_v3 = vphi %v883_v3, %v685_v3   ;;  %v846_v2 = vphi %v881_v2, %v686_v2   ;;  %v842_v1 = vphi %v879_v1, %v687_v1   ;;  %v838_v0 = vphi %v877_v0, %v688_v0  }
   0x2   : > { %v138_v6 = vld [vmem:[%s1724_s2 + $0x388] sm:$0xff]  ;;  %281 = vmatprep.subr.mxu0 %v146_v4  ;;  %v137_v7 = vld [vmem:[%s1724_s2 + $0x380] sm:$0xff]  ;;  %352 = vmatprep.subr.mxu1 %v148_v12  ;;  %v147_v14 = vld [vmem:[%s1724_s2 + $0x3d0] sm:$0xff]  ;;  %s658_s25 = scalar_lea.vmem %s1723_s1, %s732_s8  ;;  %s733_s30 = sshll.u32 %s1610_s14, 2 }
   0x3   : > { %282 = vmatpush1.msra.mxu0 %v145_v5  ;;  %v130_v8 = vld [vmem:[%s1724_s2 + $0x348] sm:$0xff]  ;;  %v129_v9 = vld [vmem:[%s1724_s2 + $0x340] sm:$0xff]  ;;  %353 = vmatpush1.msra.mxu1 %v147_v14  ;;  %v140_v16 = vld [vmem:[%s1724_s2 + $0x398] sm:$0xff]  ;;  %s662_s20 = scalar_lea.vmem %s1723_s1, %s733_s30  ;;  %s738_s16 = sshll.u32 %s854_s12, 4 }
   0x4   : > { %283 = vmatprep.subr.mxu0 %v138_v6  ;;  %v122_v10 = vld [vmem:[%s1724_s2 + $0x308] sm:$0xff]  ;;  %v121_v11 = vld [vmem:[%s1724_s2 + $0x300] sm:$0xff]  ;;  %v139_v17 = vld [vmem:[%s1724_s2 + $0x390] sm:$0xff]  ;;  %354 = vmatprep.subr.mxu1 %v140_v16  ;;  %s567_s19 = scalar_lea.vmem %s1722_s0, %s738_s16  ;;  %s739_s21 = sshll.u32 %s1610_s14, 4 }
   0x5   : > { %284 = vmatpush1.msra.mxu0 %v137_v7  ;;  %v114_v13 = vld [vmem:[%s1724_s2 + $0x2c8] sm:$0xff]  ;;  %v113_v15 = vld [vmem:[%s1724_s2 + $0x2c0] sm:$0xff]  ;;  %v132_v19 = vld [vmem:[%s1724_s2 + $0x358] sm:$0xff]  ;;  %355 = vmatpush1.msra.mxu1 %v139_v17  ;;  %s583_s27 = scalar_lea.vmem %s1722_s0, %s739_s21  ;;  %s741_s28 = sshll.u32 %s1610_s14, 3 }
   0x6   : > { %285 = vmatprep.subr.mxu0 %v130_v8  ;;  %v106_v18 = vld [vmem:[%s1724_s2 + $0x288] sm:$0xff]  ;;  %v105_v20 = vld [vmem:[%s1724_s2 + $0x280] sm:$0xff]  ;;  %v131_v21 = vld [vmem:[%s1724_s2 + $0x350] sm:$0xff]  ;;  %356 = vmatprep.subr.mxu1 %v132_v19  ;;  %s683_s4 = scalar_lea.vmem %s1725_s3, %s741_s28 }
   0x7   : > { %286 = vmatpush1.msra.mxu0 %v129_v9  ;;  %v124_v22 = vld [vmem:[%s1724_s2 + $0x318] sm:$0xff]  ;;  %v98_v23 = vld [vmem:[%s1724_s2 + $0x248] sm:$0xff]  ;;  %v123_v24 = vld [vmem:[%s1724_s2 + $0x310] sm:$0xff]  ;;  %357 = vmatpush1.msra.mxu1 %v131_v21 }
   0x8   : > { %287 = vmatprep.subr.mxu0 %v122_v10  ;;  %v97_v25 = vld [vmem:[%s1724_s2 + $0x240] sm:$0xff]  ;;  %v116_v26 = vld [vmem:[%s1724_s2 + $0x2d8] sm:$0xff]  ;;  %v90_v27 = vld [vmem:[%s1724_s2 + $0x208] sm:$0xff]  ;;  %358 = vmatprep.subr.mxu1 %v124_v22 }
   0x9   : > { %288 = vmatpush1.msra.mxu0 %v121_v11  ;;  %v115_v28 = vld [vmem:[%s1724_s2 + $0x2d0] sm:$0xff]  ;;  %v89_v29 = vld [vmem:[%s1724_s2 + $0x200] sm:$0xff]  ;;  %359 = vmatpush1.msra.mxu1 %v123_v24  ;;  %v108_v30 = vld [vmem:[%s1724_s2 + $0x298] sm:$0xff] }
   0xa   : > { %289 = vmatprep.subr.mxu0 %v114_v13  ;;  %v82_v31 = vld [vmem:[%s1724_s2 + $0x1c8] sm:$0xff]  ;;  %360 = vmatprep.subr.mxu1 %v116_v26  ;;  %v107_v32 = vld [vmem:[%s1724_s2 + $0x290] sm:$0xff]  ;;  %v81_v33 = vld [vmem:[%s1724_s2 + $0x1c0] sm:$0xff] }
   0xb   : > { %290 = vmatpush1.msra.mxu0 %v113_v15  ;;  %361 = vmatpush1.msra.mxu1 %v115_v28  ;;  %v100_v34 = vld [vmem:[%s1724_s2 + $0x258] sm:$0xff]  ;;  %v74_v35 = vld [vmem:[%s1724_s2 + $0x188] sm:$0xff]  ;;  %v99_v36 = vld [vmem:[%s1724_s2 + $0x250] sm:$0xff] }
   0xc   : > { %291 = vmatprep.subr.mxu0 %v106_v18  ;;  %362 = vmatprep.subr.mxu1 %v108_v30  ;;  %v73_v37 = vld [vmem:[%s1724_s2 + $0x180] sm:$0xff]  ;;  %v92_v38 = vld [vmem:[%s1724_s2 + $0x218] sm:$0xff]  ;;  %v66_v39 = vld [vmem:[%s1724_s2 + $0x148] sm:$0xff] }
   0xd   : > { %292 = vmatpush1.msra.mxu0 %v105_v20  ;;  %363 = vmatpush1.msra.mxu1 %v107_v32  ;;  %v91_v40 = vld [vmem:[%s1724_s2 + $0x210] sm:$0xff]  ;;  %v65_v41 = vld [vmem:[%s1724_s2 + $0x140] sm:$0xff]  ;;  %v84_v42 = vld [vmem:[%s1724_s2 + $0x1d8] sm:$0xff] }
   0xe   : > { %293 = vmatprep.subr.mxu0 %v98_v23  ;;  %364 = vmatprep.subr.mxu1 %v100_v34  ;;  %v58_v43 = vld [vmem:[%s1724_s2 + $0x108] sm:$0xff]  ;;  %v83_v44 = vld [vmem:[%s1724_s2 + $0x1d0] sm:$0xff]  ;;  %v57_v45 = vld [vmem:[%s1724_s2 + $0x100] sm:$0xff] }
   0xf   : > { %294 = vmatpush1.msra.mxu0 %v97_v25  ;;  %365 = vmatpush1.msra.mxu1 %v99_v36  ;;  %v76_v46 = vld [vmem:[%s1724_s2 + $0x198] sm:$0xff]  ;;  %v50_v47 = vld [vmem:[%s1724_s2 + $0xc8] sm:$0xff]  ;;  %v75_v48 = vld [vmem:[%s1724_s2 + $0x190] sm:$0xff] }
  0x10   : > { %295 = vmatprep.subr.mxu0 %v90_v27  ;;  %366 = vmatprep.subr.mxu1 %v92_v38  ;;  %v49_v49 = vld [vmem:[%s1724_s2 + $0xc0] sm:$0xff]  ;;  %v68_v50 = vld [vmem:[%s1724_s2 + $0x158] sm:$0xff]  ;;  %v42_v51 = vld [vmem:[%s1724_s2 + $0x88] sm:$0xff] }
  0x11   : > { %296 = vmatpush1.msra.mxu0 %v89_v29  ;;  %367 = vmatpush1.msra.mxu1 %v91_v40  ;;  %v67_v52 = vld [vmem:[%s1724_s2 + $0x150] sm:$0xff]  ;;  %v41_v53 = vld [vmem:[%s1724_s2 + $0x80] sm:$0xff]  ;;  %v60_v54 = vld [vmem:[%s1724_s2 + $0x118] sm:$0xff] }
  0x12   : > { %297 = vmatprep.subr.mxu0 %v82_v31  ;;  %368 = vmatprep.subr.mxu1 %v84_v42  ;;  %v34_v55 = vld [vmem:[%s1724_s2 + $0x48] sm:$0xff]  ;;  %v59_v56 = vld [vmem:[%s1724_s2 + $0x110] sm:$0xff]  ;;  %v33_v57 = vld [vmem:[%s1724_s2 + $0x40] sm:$0xff] }
  0x13   : > { %298 = vmatpush1.msra.mxu0 %v81_v33  ;;  %369 = vmatpush1.msra.mxu1 %v83_v44  ;;  %v52_v58 = vld [vmem:[%s1724_s2 + $0xd8] sm:$0xff]  ;;  %v26_v59 = vld [vmem:[%s1724_s2 + $0x8] sm:$0xff]  ;;  %v51_v60 = vld [vmem:[%s1724_s2 + $0xd0] sm:$0xff] }
  0x14   : > { %299 = vmatprep.subr.mxu0 %v74_v35  ;;  %370 = vmatprep.subr.mxu1 %v76_v46  ;;  %v25_v61 = vld [vmem:[%s1724_s2] sm:$0xff]  ;;  %v44_v62 = vld [vmem:[%s1724_s2 + $0x98] sm:$0xff]  ;;  %v274_v63 = vld [vmem:[%s1724_s2 + $0x7c8] sm:$0xff] }
  0x15   : > { %300 = vmatpush1.msra.mxu0 %v73_v37  ;;  %371 = vmatpush1.msra.mxu1 %v75_v48  ;;  %v43_v4 = vld [vmem:[%s1724_s2 + $0x90] sm:$0xff]  ;;  %v273_v5 = vld [vmem:[%s1724_s2 + $0x7c0] sm:$0xff]  ;;  %v36_v6 = vld [vmem:[%s1724_s2 + $0x58] sm:$0xff] }
  0x16   : > { %301 = vmatprep.subr.mxu0 %v66_v39  ;;  %372 = vmatprep.subr.mxu1 %v68_v50  ;;  %v266_v7 = vld [vmem:[%s1724_s2 + $0x788] sm:$0xff]  ;;  %v35_v8 = vld [vmem:[%s1724_s2 + $0x50] sm:$0xff]  ;;  %v265_v9 = vld [vmem:[%s1724_s2 + $0x780] sm:$0xff] }
  0x17   : > { %302 = vmatpush1.msra.mxu0 %v65_v41  ;;  %373 = vmatpush1.msra.mxu1 %v67_v52  ;;  %v28_v10 = vld [vmem:[%s1724_s2 + $0x18] sm:$0xff]  ;;  %v258_v11 = vld [vmem:[%s1724_s2 + $0x748] sm:$0xff]  ;;  %v27_v12 = vld [vmem:[%s1724_s2 + $0x10] sm:$0xff] }
  0x18   : > { %303 = vmatprep.subr.mxu0 %v58_v43  ;;  %374 = vmatprep.subr.mxu1 %v60_v54  ;;  %v257_v13 = vld [vmem:[%s1724_s2 + $0x740] sm:$0xff]  ;;  %v276_v14 = vld [vmem:[%s1724_s2 + $0x7d8] sm:$0xff]  ;;  %v250_v15 = vld [vmem:[%s1724_s2 + $0x708] sm:$0xff] }
  0x19   : > { %304 = vmatpush1.msra.mxu0 %v57_v45  ;;  %375 = vmatpush1.msra.mxu1 %v59_v56  ;;  %v275_v16 = vld [vmem:[%s1724_s2 + $0x7d0] sm:$0xff]  ;;  %v249_v17 = vld [vmem:[%s1724_s2 + $0x700] sm:$0xff]  ;;  %v268_v18 = vld [vmem:[%s1724_s2 + $0x798] sm:$0xff] }
  0x1a   : > { %305 = vmatprep.subr.mxu0 %v50_v47  ;;  %376 = vmatprep.subr.mxu1 %v52_v58  ;;  %v242_v19 = vld [vmem:[%s1724_s2 + $0x6c8] sm:$0xff]  ;;  %v267_v20 = vld [vmem:[%s1724_s2 + $0x790] sm:$0xff]  ;;  %v241_v21 = vld [vmem:[%s1724_s2 + $0x6c0] sm:$0xff] }
  0x1b   : > { %306 = vmatpush1.msra.mxu0 %v49_v49  ;;  %377 = vmatpush1.msra.mxu1 %v51_v60  ;;  %v260_v22 = vld [vmem:[%s1724_s2 + $0x758] sm:$0xff]  ;;  %v234_v23 = vld [vmem:[%s1724_s2 + $0x688] sm:$0xff]  ;;  %v259_v24 = vld [vmem:[%s1724_s2 + $0x750] sm:$0xff] }
  0x1c   : > { %307 = vmatprep.subr.mxu0 %v42_v51  ;;  %378 = vmatprep.subr.mxu1 %v44_v62  ;;  %v233_v25 = vld [vmem:[%s1724_s2 + $0x680] sm:$0xff]  ;;  %v252_v26 = vld [vmem:[%s1724_s2 + $0x718] sm:$0xff]  ;;  %v226_v27 = vld [vmem:[%s1724_s2 + $0x648] sm:$0xff] }
  0x1d   : > { %308 = vmatpush1.msra.mxu0 %v41_v53  ;;  %379 = vmatpush1.msra.mxu1 %v43_v4  ;;  %v251_v28 = vld [vmem:[%s1724_s2 + $0x710] sm:$0xff]  ;;  %v225_v29 = vld [vmem:[%s1724_s2 + $0x640] sm:$0xff]  ;;  %v244_v30 = vld [vmem:[%s1724_s2 + $0x6d8] sm:$0xff] }
  0x1e   : > { %309 = vmatprep.subr.mxu0 %v34_v55  ;;  %380 = vmatprep.subr.mxu1 %v36_v6  ;;  %v218_v31 = vld [vmem:[%s1724_s2 + $0x608] sm:$0xff]  ;;  %v243_v32 = vld [vmem:[%s1724_s2 + $0x6d0] sm:$0xff]  ;;  %v217_v33 = vld [vmem:[%s1724_s2 + $0x600] sm:$0xff] }
  0x1f   : > { %310 = vmatpush1.msra.mxu0 %v33_v57  ;;  %381 = vmatpush1.msra.mxu1 %v35_v8  ;;  %v236_v34 = vld [vmem:[%s1724_s2 + $0x698] sm:$0xff]  ;;  %v210_v35 = vld [vmem:[%s1724_s2 + $0x5c8] sm:$0xff]  ;;  %v235_v36 = vld [vmem:[%s1724_s2 + $0x690] sm:$0xff] }
  0x20   : > { %311 = vmatprep.subr.mxu0 %v26_v59  ;;  %382 = vmatprep.subr.mxu1 %v28_v10  ;;  %v209_v37 = vld [vmem:[%s1724_s2 + $0x5c0] sm:$0xff]  ;;  %v228_v38 = vld [vmem:[%s1724_s2 + $0x658] sm:$0xff]  ;;  %v202_v39 = vld [vmem:[%s1724_s2 + $0x588] sm:$0xff] }
  0x21   : > { %312 = vmatpush1.msra.mxu0 %v25_v61  ;;  %383 = vmatpush1.msra.mxu1 %v27_v12  ;;  %v227_v40 = vld [vmem:[%s1724_s2 + $0x650] sm:$0xff]  ;;  %v201_v41 = vld [vmem:[%s1724_s2 + $0x580] sm:$0xff]  ;;  %v220_v42 = vld [vmem:[%s1724_s2 + $0x618] sm:$0xff] }
  0x22   : > { %313 = vmatprep.subr.mxu0 %v274_v63  ;;  %384 = vmatprep.subr.mxu1 %v276_v14  ;;  %v194_v43 = vld [vmem:[%s1724_s2 + $0x548] sm:$0xff]  ;;  %v219_v44 = vld [vmem:[%s1724_s2 + $0x610] sm:$0xff]  ;;  %v193_v45 = vld [vmem:[%s1724_s2 + $0x540] sm:$0xff] }
  0x23   : > { %314 = vmatpush2.msra.mxu0 %v273_v5  ;;  %385 = vmatpush2.msra.mxu1 %v275_v16  ;;  %v212_v46 = vld [vmem:[%s1724_s2 + $0x5d8] sm:$0xff]  ;;  %v186_v47 = vld [vmem:[%s1724_s2 + $0x508] sm:$0xff]  ;;  %v211_v48 = vld [vmem:[%s1724_s2 + $0x5d0] sm:$0xff] }
  0x24   : > { %315 = vmatprep.subr.mxu0 %v266_v7  ;;  %386 = vmatprep.subr.mxu1 %v268_v18  ;;  %v185_v49 = vld [vmem:[%s1724_s2 + $0x500] sm:$0xff]  ;;  %v204_v50 = vld [vmem:[%s1724_s2 + $0x598] sm:$0xff]  ;;  %v178_v51 = vld [vmem:[%s1724_s2 + $0x4c8] sm:$0xff] }
  0x25   : > { %316 = vmatpush2.msra.mxu0 %v265_v9  ;;  %387 = vmatpush2.msra.mxu1 %v267_v20  ;;  %v203_v52 = vld [vmem:[%s1724_s2 + $0x590] sm:$0xff]  ;;  %v177_v53 = vld [vmem:[%s1724_s2 + $0x4c0] sm:$0xff]  ;;  %v196_v54 = vld [vmem:[%s1724_s2 + $0x558] sm:$0xff] }
  0x26   : > { %317 = vmatprep.subr.mxu0 %v258_v11  ;;  %388 = vmatprep.subr.mxu1 %v260_v22  ;;  %v170_v55 = vld [vmem:[%s1724_s2 + $0x488] sm:$0xff]  ;;  %v195_v56 = vld [vmem:[%s1724_s2 + $0x550] sm:$0xff]  ;;  %v169_v57 = vld [vmem:[%s1724_s2 + $0x480] sm:$0xff] }
  0x27   : > { %318 = vmatpush2.msra.mxu0 %v257_v13  ;;  %389 = vmatpush2.msra.mxu1 %v259_v24  ;;  %v188_v58 = vld [vmem:[%s1724_s2 + $0x518] sm:$0xff]  ;;  %v162_v59 = vld [vmem:[%s1724_s2 + $0x448] sm:$0xff]  ;;  %v187_v60 = vld [vmem:[%s1724_s2 + $0x510] sm:$0xff] }
  0x28   : > { %319 = vmatprep.subr.mxu0 %v250_v15  ;;  %390 = vmatprep.subr.mxu1 %v252_v26  ;;  %v161_v61 = vld [vmem:[%s1724_s2 + $0x440] sm:$0xff]  ;;  %v180_v62 = vld [vmem:[%s1724_s2 + $0x4d8] sm:$0xff]  ;;  %v154_v63 = vld [vmem:[%s1724_s2 + $0x408] sm:$0xff] }
  0x29   : > { %320 = vmatpush2.msra.mxu0 %v249_v17  ;;  %391 = vmatpush2.msra.mxu1 %v251_v28  ;;  %v179_v4 = vld [vmem:[%s1724_s2 + $0x4d0] sm:$0xff]  ;;  %v153_v5 = vld [vmem:[%s1724_s2 + $0x400] sm:$0xff]  ;;  %v172_v6 = vld [vmem:[%s1724_s2 + $0x498] sm:$0xff] }
  0x2a   : > { %321 = vmatprep.subr.mxu0 %v242_v19  ;;  %392 = vmatprep.subr.mxu1 %v244_v30  ;;  %v150_v7 = vld [vmem:[%s1724_s2 + $0x3e8] sm:$0xff]  ;;  %v149_v8 = vld [vmem:[%s1724_s2 + $0x3e0] sm:$0xff]  ;;  %v171_v9 = vld [vmem:[%s1724_s2 + $0x490] sm:$0xff] }
  0x2b   : > { %322 = vmatpush2.msra.mxu0 %v241_v21  ;;  %393 = vmatpush2.msra.mxu1 %v243_v32  ;;  %v142_v10 = vld [vmem:[%s1724_s2 + $0x3a8] sm:$0xff]  ;;  %v164_v11 = vld [vmem:[%s1724_s2 + $0x458] sm:$0xff]  ;;  %v141_v12 = vld [vmem:[%s1724_s2 + $0x3a0] sm:$0xff] }
  0x2c   : > { %323 = vmatprep.subr.mxu0 %v234_v23  ;;  %394 = vmatprep.subr.mxu1 %v236_v34  ;;  %v163_v13 = vld [vmem:[%s1724_s2 + $0x450] sm:$0xff]  ;;  %v134_v14 = vld [vmem:[%s1724_s2 + $0x368] sm:$0xff]  ;;  %v156_v15 = vld [vmem:[%s1724_s2 + $0x418] sm:$0xff] }
  0x2d   : > { %324 = vmatpush2.msra.mxu0 %v233_v25  ;;  %395 = vmatpush2.msra.mxu1 %v235_v36  ;;  %v133_v16 = vld [vmem:[%s1724_s2 + $0x360] sm:$0xff]  ;;  %v155_v17 = vld [vmem:[%s1724_s2 + $0x410] sm:$0xff]  ;;  %v126_v18 = vld [vmem:[%s1724_s2 + $0x328] sm:$0xff] }
  0x2e   : > { %325 = vmatprep.subr.mxu0 %v226_v27  ;;  %396 = vmatprep.subr.mxu1 %v228_v38  ;;  %v152_v19 = vld [vmem:[%s1724_s2 + $0x3f8] sm:$0xff]  ;;  %v125_v20 = vld [vmem:[%s1724_s2 + $0x320] sm:$0xff]  ;;  %v118_v21 = vld [vmem:[%s1724_s2 + $0x2e8] sm:$0xff] }
  0x2f   : > { %326 = vmatpush2.msra.mxu0 %v225_v29  ;;  %397 = vmatpush2.msra.mxu1 %v227_v40  ;;  %v151_v22 = vld [vmem:[%s1724_s2 + $0x3f0] sm:$0xff]  ;;  %v117_v23 = vld [vmem:[%s1724_s2 + $0x2e0] sm:$0xff]  ;;  %v144_v24 = vld [vmem:[%s1724_s2 + $0x3b8] sm:$0xff] }
  0x30   : > { %327 = vmatprep.subr.mxu0 %v218_v31  ;;  %398 = vmatprep.subr.mxu1 %v220_v42  ;;  %v110_v25 = vld [vmem:[%s1724_s2 + $0x2a8] sm:$0xff]  ;;  %v143_v26 = vld [vmem:[%s1724_s2 + $0x3b0] sm:$0xff]  ;;  %v109_v27 = vld [vmem:[%s1724_s2 + $0x2a0] sm:$0xff] }
  0x31   : > { %328 = vmatpush2.msra.mxu0 %v217_v33  ;;  %399 = vmatpush2.msra.mxu1 %v219_v44  ;;  %v136_v28 = vld [vmem:[%s1724_s2 + $0x378] sm:$0xff]  ;;  %v102_v29 = vld [vmem:[%s1724_s2 + $0x268] sm:$0xff]  ;;  %v135_v30 = vld [vmem:[%s1724_s2 + $0x370] sm:$0xff] }
  0x32   : > { %329 = vmatprep.subr.mxu0 %v210_v35  ;;  %400 = vmatprep.subr.mxu1 %v212_v46  ;;  %v101_v31 = vld [vmem:[%s1724_s2 + $0x260] sm:$0xff]  ;;  %v128_v32 = vld [vmem:[%s1724_s2 + $0x338] sm:$0xff]  ;;  %v94_v33 = vld [vmem:[%s1724_s2 + $0x228] sm:$0xff] }
  0x33   : > { %330 = vmatpush2.msra.mxu0 %v209_v37  ;;  %401 = vmatpush2.msra.mxu1 %v211_v48  ;;  %v127_v34 = vld [vmem:[%s1724_s2 + $0x330] sm:$0xff]  ;;  %v93_v35 = vld [vmem:[%s1724_s2 + $0x220] sm:$0xff]  ;;  %v120_v36 = vld [vmem:[%s1724_s2 + $0x2f8] sm:$0xff] }
  0x34   : > { %331 = vmatprep.subr.mxu0 %v202_v39  ;;  %402 = vmatprep.subr.mxu1 %v204_v50  ;;  %v86_v37 = vld [vmem:[%s1724_s2 + $0x1e8] sm:$0xff]  ;;  %v119_v38 = vld [vmem:[%s1724_s2 + $0x2f0] sm:$0xff]  ;;  %v85_v39 = vld [vmem:[%s1724_s2 + $0x1e0] sm:$0xff] }
  0x35   : > { %332 = vmatpush2.msra.mxu0 %v201_v41  ;;  %403 = vmatpush2.msra.mxu1 %v203_v52  ;;  %v112_v40 = vld [vmem:[%s1724_s2 + $0x2b8] sm:$0xff]  ;;  %v78_v41 = vld [vmem:[%s1724_s2 + $0x1a8] sm:$0xff]  ;;  %v111_v42 = vld [vmem:[%s1724_s2 + $0x2b0] sm:$0xff] }
  0x36   : > { %333 = vmatprep.subr.mxu0 %v194_v43  ;;  %404 = vmatprep.subr.mxu1 %v196_v54  ;;  %v77_v43 = vld [vmem:[%s1724_s2 + $0x1a0] sm:$0xff]  ;;  %v104_v44 = vld [vmem:[%s1724_s2 + $0x278] sm:$0xff]  ;;  %v103_v46 = vld [vmem:[%s1724_s2 + $0x270] sm:$0xff] }
  0x37   : > { %334 = vmatpush2.msra.mxu0 %v193_v45  ;;  %405 = vmatpush2.msra.mxu1 %v195_v56  ;;  %v70_v45 = vld [vmem:[%s1724_s2 + $0x168] sm:$0xff]  ;;  %v96_v48 = vld [vmem:[%s1724_s2 + $0x238] sm:$0xff]  ;;  %v95_v50 = vld [vmem:[%s1724_s2 + $0x230] sm:$0xff] }
  0x38   : > { %335 = vmatprep.subr.mxu0 %v186_v47  ;;  %406 = vmatprep.subr.mxu1 %v188_v58  ;;  %v69_v47 = vld [vmem:[%s1724_s2 + $0x160] sm:$0xff]  ;;  %v88_v52 = vld [vmem:[%s1724_s2 + $0x1f8] sm:$0xff]  ;;  %v87_v54 = vld [vmem:[%s1724_s2 + $0x1f0] sm:$0xff] }
  0x39   : > { %336 = vmatpush2.msra.mxu0 %v185_v49  ;;  %407 = vmatpush2.msra.mxu1 %v187_v60  ;;  %v62_v49 = vld [vmem:[%s1724_s2 + $0x128] sm:$0xff]  ;;  %v80_v56 = vld [vmem:[%s1724_s2 + $0x1b8] sm:$0xff]  ;;  %v79_v58 = vld [vmem:[%s1724_s2 + $0x1b0] sm:$0xff] }
  0x3a   : > { %337 = vmatprep.subr.mxu0 %v178_v51  ;;  %408 = vmatprep.subr.mxu1 %v180_v62  ;;  %v61_v51 = vld [vmem:[%s1724_s2 + $0x120] sm:$0xff]  ;;  %v72_v60 = vld [vmem:[%s1724_s2 + $0x178] sm:$0xff]  ;;  %v71_v62 = vld [vmem:[%s1724_s2 + $0x170] sm:$0xff] }
  0x3b   : > { %338 = vmatpush2.msra.mxu0 %v177_v53  ;;  %409 = vmatpush2.msra.mxu1 %v179_v4  ;;  %v54_v53 = vld [vmem:[%s1724_s2 + $0xe8] sm:$0xff]  ;;  %v64_v4 = vld [vmem:[%s1724_s2 + $0x138] sm:$0xff] }
  0x3c   : > { %339 = vmatprep.subr.mxu0 %v170_v55  ;;  %410 = vmatprep.subr.mxu1 %v172_v6  ;;  %v53_v55 = vld [vmem:[%s1724_s2 + $0xe0] sm:$0xff]  ;;  %v63_v6 = vld [vmem:[%s1724_s2 + $0x130] sm:$0xff] }
  0x3d   : > { %340 = vmatpush2.msra.mxu0 %v169_v57  ;;  %411 = vmatpush2.msra.mxu1 %v171_v9  ;;  %v46_v57 = vld [vmem:[%s1724_s2 + $0xa8] sm:$0xff] }
  0x3e   : > { %341 = vmatprep.subr.mxu0 %v162_v59  ;;  %412 = vmatprep.subr.mxu1 %v164_v11  ;;  %v45_v59 = vld [vmem:[%s1724_s2 + $0xa0] sm:$0xff]  ;;  %v278_v9 = vld [vmem:[%s1724_s2 + $0x7e8] sm:$0xff] }
  0x3f   : > { %342 = vmatpush2.msra.mxu0 %v161_v61  ;;  %413 = vmatpush2.msra.mxu1 %v163_v13  ;;  %v38_v61 = vld [vmem:[%s1724_s2 + $0x68] sm:$0xff]  ;;  %v277_v11 = vld [vmem:[%s1724_s2 + $0x7e0] sm:$0xff] }
  0x40   : > { %343 = vmatprep.subr.mxu0 %v154_v63  ;;  %414 = vmatprep.subr.mxu1 %v156_v15  ;;  %v37_v63 = vld [vmem:[%s1724_s2 + $0x60] sm:$0xff]  ;;  %v270_v13 = vld [vmem:[%s1724_s2 + $0x7a8] sm:$0xff] }
  0x41   : > { %344 = vmatpush2.msra.mxu0 %v153_v5  ;;  %415 = vmatpush2.msra.mxu1 %v155_v17  ;;  %v30_v5 = vld [vmem:[%s1724_s2 + $0x28] sm:$0xff]  ;;  %v269_v15 = vld [vmem:[%s1724_s2 + $0x7a0] sm:$0xff] }
  0x42   : > { %346 = vmatmul.mubr.f32.vlgmr.msra.gmra.mxu0 %v850_v3  ;;  %423 = vmatprep.subr.mxu0 %v150_v7  ;;  %v29_v7 = vld [vmem:[%s1724_s2 + $0x20] sm:$0xff]  ;;  %v262_v17 = vld [vmem:[%s1724_s2 + $0x768] sm:$0xff] }
  0x43   : > { %424 = vmatpush1.msra.mxu0 %v149_v8  ;;  %494 = vmatprep.subr.mxu1 %v152_v19  ;;  %v56_v8 = vld [vmem:[%s1724_s2 + $0xf8] sm:$0xff]  ;;  %v261_v19 = vld [vmem:[%s1724_s2 + $0x760] sm:$0xff] }
  0x44   : > { %425 = vmatprep.subr.mxu0 %v142_v10  ;;  %417 = vmatmul.mubr.f32.vlgmr.msra.gmra.mxu1 %v850_v3  ;;  %v55_v10 = vld [vmem:[%s1724_s2 + $0xf0] sm:$0xff] }
  0x45   : > { %426 = vmatpush1.msra.mxu0 %v141_v12  ;;  %495 = vmatpush1.msra.mxu1 %v151_v22  ;;  %v48_v12 = vld [vmem:[%s1724_s2 + $0xb8] sm:$0xff]  ;;  %v31_v22 = vld [vmem:[%s1724_s2 + $0x30] sm:$0xff] }
  0x46   : > { %427 = vmatprep.subr.mxu0 %v134_v14  ;;  %496 = vmatprep.subr.mxu1 %v144_v24  ;;  %v47_v14 = vld [vmem:[%s1724_s2 + $0xb0] sm:$0xff]  ;;  %v280_v24 = vld [vmem:[%s1724_s2 + $0x7f8] sm:$0xff] }
  0x47   : > { %428 = vmatpush1.msra.mxu0 %v133_v16  ;;  %497 = vmatpush1.msra.mxu1 %v143_v26  ;;  %v40_v16 = vld [vmem:[%s1724_s2 + $0x78] sm:$0xff]  ;;  %v279_v26 = vld [vmem:[%s1724_s2 + $0x7f0] sm:$0xff] }
  0x48   : > { %429 = vmatprep.subr.mxu0 %v126_v18  ;;  %498 = vmatprep.subr.mxu1 %v136_v28  ;;  %v39_v18 = vld [vmem:[%s1724_s2 + $0x70] sm:$0xff]  ;;  %v272_v28 = vld [vmem:[%s1724_s2 + $0x7b8] sm:$0xff] }
  0x49   : > { %430 = vmatpush1.msra.mxu0 %v125_v20  ;;  %499 = vmatpush1.msra.mxu1 %v135_v30  ;;  %v32_v20 = vld [vmem:[%s1724_s2 + $0x38] sm:$0xff]  ;;  %v271_v30 = vld [vmem:[%s1724_s2 + $0x7b0] sm:$0xff] }
  0x4a   : > { %431 = vmatprep.subr.mxu0 %v118_v21  ;;  %500 = vmatprep.subr.mxu1 %v128_v32  ;;  %v254_v21 = vld [vmem:[%s1724_s2 + $0x728] sm:$0xff]  ;;  %v264_v32 = vld [vmem:[%s1724_s2 + $0x778] sm:$0xff] }
  0x4b   : > { %432 = vmatpush1.msra.mxu0 %v117_v23  ;;  %501 = vmatpush1.msra.mxu1 %v127_v34  ;;  %v253_v23 = vld [vmem:[%s1724_s2 + $0x720] sm:$0xff]  ;;  %v263_v34 = vld [vmem:[%s1724_s2 + $0x770] sm:$0xff] }
  0x4c   : > { %433 = vmatprep.subr.mxu0 %v110_v25  ;;  %502 = vmatprep.subr.mxu1 %v120_v36  ;;  %v246_v25 = vld [vmem:[%s1724_s2 + $0x6e8] sm:$0xff]  ;;  %v256_v36 = vld [vmem:[%s1724_s2 + $0x738] sm:$0xff] }
  0x4d   : > { %434 = vmatpush1.msra.mxu0 %v109_v27  ;;  %503 = vmatpush1.msra.mxu1 %v119_v38  ;;  %v245_v27 = vld [vmem:[%s1724_s2 + $0x6e0] sm:$0xff]  ;;  %v255_v38 = vld [vmem:[%s1724_s2 + $0x730] sm:$0xff] }
  0x4e   : > { %435 = vmatprep.subr.mxu0 %v102_v29  ;;  %504 = vmatprep.subr.mxu1 %v112_v40  ;;  %v238_v29 = vld [vmem:[%s1724_s2 + $0x6a8] sm:$0xff]  ;;  %v248_v40 = vld [vmem:[%s1724_s2 + $0x6f8] sm:$0xff] }
  0x4f   : > { %436 = vmatpush1.msra.mxu0 %v101_v31  ;;  %505 = vmatpush1.msra.mxu1 %v111_v42  ;;  %v237_v31 = vld [vmem:[%s1724_s2 + $0x6a0] sm:$0xff]  ;;  %v247_v42 = vld [vmem:[%s1724_s2 + $0x6f0] sm:$0xff] }
  0x50   : > { %437 = vmatprep.subr.mxu0 %v94_v33  ;;  %506 = vmatprep.subr.mxu1 %v104_v44  ;;  %v230_v33 = vld [vmem:[%s1724_s2 + $0x668] sm:$0xff]  ;;  %v240_v44 = vld [vmem:[%s1724_s2 + $0x6b8] sm:$0xff] }
  0x51   : > { %438 = vmatpush1.msra.mxu0 %v93_v35  ;;  %507 = vmatpush1.msra.mxu1 %v103_v46  ;;  %v229_v35 = vld [vmem:[%s1724_s2 + $0x660] sm:$0xff]  ;;  %v239_v46 = vld [vmem:[%s1724_s2 + $0x6b0] sm:$0xff] }
  0x52   : > { %439 = vmatprep.subr.mxu0 %v86_v37  ;;  %508 = vmatprep.subr.mxu1 %v96_v48  ;;  %v222_v37 = vld [vmem:[%s1724_s2 + $0x628] sm:$0xff]  ;;  %v232_v48 = vld [vmem:[%s1724_s2 + $0x678] sm:$0xff] }
  0x53   : > { %440 = vmatpush1.msra.mxu0 %v85_v39  ;;  %509 = vmatpush1.msra.mxu1 %v95_v50  ;;  %v221_v39 = vld [vmem:[%s1724_s2 + $0x620] sm:$0xff]  ;;  %v231_v50 = vld [vmem:[%s1724_s2 + $0x670] sm:$0xff] }
  0x54   : > { %441 = vmatprep.subr.mxu0 %v78_v41  ;;  %510 = vmatprep.subr.mxu1 %v88_v52  ;;  %v214_v41 = vld [vmem:[%s1724_s2 + $0x5e8] sm:$0xff]  ;;  %v224_v52 = vld [vmem:[%s1724_s2 + $0x638] sm:$0xff] }
  0x55   : > { %442 = vmatpush1.msra.mxu0 %v77_v43  ;;  %511 = vmatpush1.msra.mxu1 %v87_v54  ;;  %v213_v43 = vld [vmem:[%s1724_s2 + $0x5e0] sm:$0xff] }
  0x56   : > { %443 = vmatprep.subr.mxu0 %v70_v45  ;;  %512 = vmatprep.subr.mxu1 %v80_v56  ;;  %v206_v45 = vld [vmem:[%s1724_s2 + $0x5a8] sm:$0xff]  ;;  %v189_v54 = vld [vmem:[%s1724_s2 + $0x520] sm:$0xff] }
  0x57   : > { %444 = vmatpush1.msra.mxu0 %v69_v47  ;;  %513 = vmatpush1.msra.mxu1 %v79_v58  ;;  %v205_v47 = vld [vmem:[%s1724_s2 + $0x5a0] sm:$0xff]  ;;  %v182_v56 = vld [vmem:[%s1724_s2 + $0x4e8] sm:$0xff] }
  0x58   : > { %445 = vmatprep.subr.mxu0 %v62_v49  ;;  %514 = vmatprep.subr.mxu1 %v72_v60  ;;  %v198_v49 = vld [vmem:[%s1724_s2 + $0x568] sm:$0xff]  ;;  %v181_v58 = vld [vmem:[%s1724_s2 + $0x4e0] sm:$0xff] }
  0x59   : > { %446 = vmatpush1.msra.mxu0 %v61_v51  ;;  %515 = vmatpush1.msra.mxu1 %v71_v62  ;;  %v197_v51 = vld [vmem:[%s1724_s2 + $0x560] sm:$0xff]  ;;  %v174_v60 = vld [vmem:[%s1724_s2 + $0x4a8] sm:$0xff] }
  0x5a   : > { %447 = vmatprep.subr.mxu0 %v54_v53  ;;  %516 = vmatprep.subr.mxu1 %v64_v4  ;;  %v190_v53 = vld [vmem:[%s1724_s2 + $0x528] sm:$0xff]  ;;  %v173_v62 = vld [vmem:[%s1724_s2 + $0x4a0] sm:$0xff] }
  0x5b   : > { %448 = vmatpush1.msra.mxu0 %v53_v55  ;;  %517 = vmatpush1.msra.mxu1 %v63_v6  ;;  %v223_v55 = vld [vmem:[%s1724_s2 + $0x630] sm:$0xff]  ;;  %v166_v4 = vld [vmem:[%s1724_s2 + $0x468] sm:$0xff]  ;;  %v165_v6 = vld [vmem:[%s1724_s2 + $0x460] sm:$0xff] }
  0x5c   : > { %449 = vmatprep.subr.mxu0 %v46_v57  ;;  %518 = vmatprep.subr.mxu1 %v56_v8  ;;  %v216_v57 = vld [vmem:[%s1724_s2 + $0x5f8] sm:$0xff]  ;;  %v659_v8 = vld [vmem:[%s658_s25] sm:$0xf] }
  0x5d   : > { %450 = vmatpush1.msra.mxu0 %v45_v59  ;;  %519 = vmatpush1.msra.mxu1 %v55_v10  ;;  %v215_v59 = vld [vmem:[%s1724_s2 + $0x5f0] sm:$0xff]  ;;  %v192_v10 = vld [vmem:[%s1724_s2 + $0x538] sm:$0xff]  ;;  %vm660_vm0 = vcmp.gt.f32.partialorder %v659_v8, 0.0 }
  0x5e   : > { %451 = vmatprep.subr.mxu0 %v38_v61  ;;  %520 = vmatprep.subr.mxu1 %v48_v12  ;;  %v208_v61 = vld [vmem:[%s1724_s2 + $0x5b8] sm:$0xff]  ;;  %v191_v12 = vld [vmem:[%s1724_s2 + $0x530] sm:$0xff] }
  0x5f   : > { %452 = vmatpush1.msra.mxu0 %v37_v63  ;;  %521 = vmatpush1.msra.mxu1 %v47_v14  ;;  %v207_v63 = vld [vmem:[%s1724_s2 + $0x5b0] sm:$0xff] }
  0x60   : > { %453 = vmatprep.subr.mxu0 %v30_v5  ;;  %522 = vmatprep.subr.mxu1 %v40_v16  ;;  %v200_v5 = vld [vmem:[%s1724_s2 + $0x578] sm:$0xff]  ;;  %v183_v14 = vld [vmem:[%s1724_s2 + $0x4f0] sm:$0xff] }
  0x61   : > { %454 = vmatpush1.msra.mxu0 %v29_v7  ;;  %523 = vmatpush1.msra.mxu1 %v39_v18  ;;  %v199_v7 = vld [vmem:[%s1724_s2 + $0x570] sm:$0xff]  ;;  %v176_v16 = vld [vmem:[%s1724_s2 + $0x4b8] sm:$0xff]  ;;  %v856_v18 = vmov 0  }
  0x62   : > { %455 = vmatprep.subr.mxu0 %v278_v9  ;;  %524 = vmatprep.subr.mxu1 %v32_v20  ;;  %v158_v9 = vld [vmem:[%s1724_s2 + $0x428] sm:$0xff]  ;;  %v168_v20 = vld [vmem:[%s1724_s2 + $0x478] sm:$0xff] }
  0x63   : > { %456 = vmatpush2.msra.mxu0 %v277_v11  ;;  %525 = vmatpush1.msra.mxu1 %v31_v22  ;;  %v157_v11 = vld [vmem:[%s1724_s2 + $0x420] sm:$0xff]  ;;  %v160_v22 = vld [vmem:[%s1724_s2 + $0x438] sm:$0xff] }
  0x64   : > { %457 = vmatprep.subr.mxu0 %v270_v13  ;;  %526 = vmatprep.subr.mxu1 %v280_v24  ;;  %v184_v13 = vld [vmem:[%s1724_s2 + $0x4f8] sm:$0xff] }
  0x65   : > { %458 = vmatpush2.msra.mxu0 %v269_v15  ;;  %527 = vmatpush2.msra.mxu1 %v279_v26  ;;  %v663_v15 = vld [vmem:[%s662_s20] sm:$0xf]  ;;  %s740_s20 = sshll.u32 %s854_s12, 3  ;;  %s19_s12 = sadd.s32 1, %s854_s12  }
  0x66   : > { %459 = vmatprep.subr.mxu0 %v262_v17  ;;  %528 = vmatprep.subr.mxu1 %v272_v28  ;;  %v175_v17 = vld [vmem:[%s1724_s2 + $0x4b0] sm:$0xff]  ;;  %vm664_vm1 = vcmp.gt.f32.partialorder %v663_v15, 0.0  ;;  %s673_s24 = scalar_lea.vmem %s1725_s3, %s740_s20  ;;  %p16_p0 = scmp.ge.s32.totalorder %s19_s12, 16  }
  0x67   : > { %460 = vmatpush2.msra.mxu0 %v261_v19  ;;  %529 = vmatpush2.msra.mxu1 %v271_v30  ;;  %v665_v19 = vsel %vm660_vm0, 1, %v856_v18  ;;  %v675_v24 = vsel %vm664_vm1, 1, %v856_v18 }
  0x68   : > { %461 = vmatprep.subr.mxu0 %v254_v21  ;;  %530 = vmatprep.subr.mxu1 %v264_v32  ;;  %v167_v21 = vld [vmem:[%s1724_s2 + $0x470] sm:$0xff] }
  0x69   : > { %462 = vmatpush2.msra.mxu0 %v253_v23  ;;  %531 = vmatpush2.msra.mxu1 %v263_v34  ;;  %v159_v23 = vld [vmem:[%s1724_s2 + $0x430] sm:$0xff] }
  0x6a   : > { %463 = vmatprep.subr.mxu0 %v246_v25  ;;  %532 = vmatprep.subr.mxu1 %v256_v36  ;;  %v568_v25 = vld [vmem:[%s567_s19] sm:$0xff] }
  0x6b   : > { %464 = vmatpush2.msra.mxu0 %v245_v27  ;;  %533 = vmatpush2.msra.mxu1 %v255_v38  ;;  %v569_v27 = vunpack.c.l.bf16 %v568_v25  ;;  %v570_v34 = vunpack.c.h.bf16 %v568_v25 }
  0x6c   : > { %465 = vmatprep.subr.mxu0 %v238_v29  ;;  %534 = vmatprep.subr.mxu1 %v248_v40 }
  0x6d   : > { %466 = vmatpush2.msra.mxu0 %v237_v31  ;;  %535 = vmatpush2.msra.mxu1 %v247_v42 }
  0x6e   : > { %467 = vmatprep.subr.mxu0 %v230_v33  ;;  %536 = vmatprep.subr.mxu1 %v240_v44 }
  0x6f   : > { %468 = vmatpush2.msra.mxu0 %v229_v35  ;;  %537 = vmatpush2.msra.mxu1 %v239_v46 }
  0x70   : > { %469 = vmatprep.subr.mxu0 %v222_v37  ;;  %538 = vmatprep.subr.mxu1 %v232_v48 }
  0x71   : > { %470 = vmatpush2.msra.mxu0 %v221_v39  ;;  %539 = vmatpush2.msra.mxu1 %v231_v50 }
  0x72   : > { %471 = vmatprep.subr.mxu0 %v214_v41  ;;  %540 = vmatprep.subr.mxu1 %v224_v52 }
  0x73   : > { %472 = vmatpush2.msra.mxu0 %v213_v43  ;;  %487 = vmatprep.mubr.f32.mxu0 %v842_v1 }
  0x74   : > { %473 = vmatprep.subr.mxu0 %v206_v45  ;;  %541 = vmatpush2.msra.mxu1 %v223_v55 }
  0x75   : > { %474 = vmatpush2.msra.mxu0 %v205_v47  ;;  %542 = vmatprep.subr.mxu1 %v216_v57 }
  0x76   : > { %475 = vmatprep.subr.mxu0 %v198_v49  ;;  %543 = vmatpush2.msra.mxu1 %v215_v59 }
  0x77   : > { %476 = vmatpush2.msra.mxu0 %v197_v51  ;;  %544 = vmatprep.subr.mxu1 %v208_v61 }
  0x78   : > { %477 = vmatprep.subr.mxu0 %v190_v53  ;;  %545 = vmatpush2.msra.mxu1 %v207_v63 }
  0x79   : > { %478 = vmatpush2.msra.mxu0 %v189_v54  ;;  %546 = vmatprep.subr.mxu1 %v200_v5 }
  0x7a   : > { %479 = vmatprep.subr.mxu0 %v182_v56  ;;  %547 = vmatpush2.msra.mxu1 %v199_v7 }
  0x7b   : > { %480 = vmatpush2.msra.mxu0 %v181_v58  ;;  %548 = vmatprep.subr.mxu1 %v192_v10  ;;  %v584_v58 = vld [vmem:[%s583_s27 + $0x8] sm:$0xff] }
  0x7c   : > { %481 = vmatprep.subr.mxu0 %v174_v60  ;;  %549 = vmatpush2.msra.mxu1 %v191_v12  ;;  %v585_v60 = vunpack.c.l.bf16 %v584_v58  ;;  %v586_v8 = vunpack.c.h.bf16 %v584_v58 }
  0x7d   : > { %482 = vmatpush2.msra.mxu0 %v173_v62  ;;  %550 = vmatprep.subr.mxu1 %v184_v13 }
  0x7e   : > { %483 = vmatprep.subr.mxu0 %v166_v4  ;;  %551 = vmatpush2.msra.mxu1 %v183_v14 }
  0x7f   : > { %484 = vmatpush2.msra.mxu0 %v165_v6  ;;  %558 = vmatprep.mubr.f32.mxu1 %v842_v1 }
  0x80   : > { %485 = vmatprep.subr.mxu0 %v158_v9  ;;  %552 = vmatprep.subr.mxu1 %v176_v16 }
  0x81   : > { %486 = vmatpush2.msra.mxu0 %v157_v11  ;;  %783 = vset.pattern.permute.xlu0 %v856_v18 }
  0x82   : > { %488 = vmatmul.mubr.f32.vlgmr.msra.gmra.mxu0 %v850_v3  ;;  %553 = vmatpush2.msra.mxu1 %v175_v17 }
  0x83   : > { %667 = vperm.xlu0 %783, %v665_v19   ;;  %554 = vmatprep.subr.mxu1 %v168_v20 }
  0x84   : > { %555 = vmatpush2.msra.mxu1 %v167_v21 }
  0x85   : > { %556 = vmatprep.subr.mxu1 %v160_v22 }
  0x86   : > { %557 = vmatpush2.msra.mxu1 %v159_v23 }
  0x87   : > { %677 = vperm.xlu0 %783, %v675_v24   ;;  %559 = vmatmul.mubr.f32.vlgmr.msra.gmra.mxu1 %v850_v3 }
  0xfe   : > { %v668_v49 = vpop.permute.xlu0 %667 }
  0xff   : > { %vm669_vm2 = vcmp.eq.s32.totalorder %v668_v49, 1 }
 0x102   : > { %v347_v26 = vpop.f32.mrf.mxu0  ;;  %v678_v21 = vpop.permute.xlu0 %677 }
 0x103   : > { %vm679_vm3 = vcmp.eq.s32.totalorder %v678_v21, 1 }
 0x104   : > { %v349_v28 = vpop.f32.mrf.mxu0  ;;  %v418_v33 = vpop.f32.mrf.mxu1 }
 0x105   : > { %v575_v29 = vcombine.low %v347_v26, %v349_v28 }
 0x106   : > { %v420_v36 = vpop.f32.mrf.mxu1 }
 0x107   : > { %v579_v30 = vadd.f32 %v575_v29, %v569_v27  ;;  %v576_v37 = vcombine.low %v418_v33, %v420_v36 }
 0x109   : > { %v726_v31 = vmul.f32 -1.442695, %v579_v30  ;;  %v604_v32 = vrot.slane %v579_v30, 4  ;;  %v580_v38 = vadd.f32 %v576_v37, %v570_v34 }
 0x10b   : > { %784 = vpow2.f32 %v726_v31  ;;  %v727_v35 = vmul.f32 -1.442695, %v604_v32  ;;  %v614_v39 = vrot.slane %v580_v38, 4 }
 0x10d   : > { %786 = vpow2.f32 %v727_v35  ;;  %v728_v40 = vmul.f32 -1.442695, %v614_v39 }
 0x10f   : > { %788 = vpow2.f32 %v728_v40 }
 0x110   : > { %790 = vtanh.f32 %v580_v38 }
 0x118   : > { %v785_v41 = vpop.eup %784 }
 0x119   : > { %v600_v42 = vadd.f32 1.0, %v785_v41 }
 0x11a   : > { %v787_v43 = vpop.eup %786 }
 0x11b   : > { %792 = vrcp.f32 %v600_v42  ;;  %v609_v44 = vadd.f32 1.0, %v787_v43 }
 0x11c   : > { %v789_v45 = vpop.eup %788 }
 0x11d   : > { %794 = vrcp.f32 %v609_v44  ;;  %v791_v46 = vpop.eup %790  ;;  %v619_v48 = vadd.f32 1.0, %v789_v45 }
 0x11f   : > { %796 = vrcp.f32 %v619_v48 }
 0x128   : > { %v793_v47 = vpop.eup %792 }
 0x129   : > { %v623_v52 = vmul.f32 %v793_v47, %v791_v46 }
 0x12a   : > { %v795_v50 = vpop.eup %794 }
 0x12b   : > { %v622_v51 = vmul.f32 %v846_v2, %v795_v50 }
 0x12c   : > { %v797_v54 = vpop.eup %796 }
 0x12d   : > { %v624_v53 = vadd.f32 %v623_v52, %v622_v51 }
 0x12f   : > { %798 = vtanh.f32 %v624_v53  ;;  %v686_v2 = vsel %vm669_vm2, %v624_v53, %v846_v2  }
 0x13c   : > { %v799_v55 = vpop.eup %798 }
 0x13d   : > { %v626_v56 = vmul.f32 %v799_v55, %v797_v54 }
 0x13f   : > { %v670_v57 = vsel %vm669_vm2, %v626_v56, 0.0  ;;  %v685_v3 = vsel %vm669_vm2, %v626_v56, %v850_v3  }
 0x140   : > { %674 = vst [vmem:[%s673_s24] sm:$0xf] %v670_v57 }
 0x142   : > { %v489_v59 = vpop.f32.mrf.mxu0 }
 0x144   : > { %v491_v61 = vpop.f32.mrf.mxu0 }
 0x145   : > { %v591_v62 = vcombine.low %v489_v59, %v491_v61 }
 0x147   : > { %v595_v63 = vadd.f32 %v591_v62, %v585_v60  ;;  %v560_v6 = vpop.f32.mrf.mxu1 }
 0x149   : > { %v729_v4 = vmul.f32 -1.442695, %v595_v63  ;;  %v634_v5 = vrot.slane %v595_v63, 4  ;;  %v562_v9 = vpop.f32.mrf.mxu1 }
 0x14a   : > { %v592_v10 = vcombine.low %v560_v6, %v562_v9 }
 0x14b   : > { %800 = vpow2.f32 %v729_v4  ;;  %v730_v7 = vmul.f32 -1.442695, %v634_v5 }
 0x14c   : > { %v596_v11 = vadd.f32 %v592_v10, %v586_v8 }
 0x14d   : > { %802 = vpow2.f32 %v730_v7 }
 0x14e   : > { %v644_v12 = vrot.slane %v596_v11, 4 }
 0x150   : > { %v731_v13 = vmul.f32 -1.442695, %v644_v12 }
 0x152   : > { %804 = vpow2.f32 %v731_v13 }
 0x158   : > { %v801_v14 = vpop.eup %800 }
 0x159   : > { %v630_v15 = vadd.f32 1.0, %v801_v14 }
 0x15a   : > { %v803_v16 = vpop.eup %802 }
 0x15b   : > { %806 = vrcp.f32 %v630_v15  ;;  %v639_v17 = vadd.f32 1.0, %v803_v16 }
 0x15c   : > { %808 = vtanh.f32 %v596_v11 }
 0x15d   : > { %810 = vrcp.f32 %v639_v17 }
 0x15f   : > { %v805_v18 = vpop.eup %804 }
 0x160   : > { %v649_v23 = vadd.f32 1.0, %v805_v18 }
 0x162   : > { %812 = vrcp.f32 %v649_v23 }
 0x168   : > { %v807_v19 = vpop.eup %806 }
 0x169   : > { %v809_v20 = vpop.eup %808 }
 0x16a   : > { %v811_v22 = vpop.eup %810  ;;  %v653_v25 = vmul.f32 %v809_v20, %v807_v19 }
 0x16b   : > { %v652_v24 = vmul.f32 %v838_v0, %v811_v22 }
 0x16d   : > { %v654_v26 = vadd.f32 %v653_v25, %v652_v24 }
 0x16f   : > { %814 = vtanh.f32 %v654_v26  ;;  %v688_v0 = vsel %vm679_vm3, %v654_v26, %v838_v0   ;;  %v813_v27 = vpop.eup %812 }
 0x17c   : > { %v815_v28 = vpop.eup %814  ;;  %18 = sbr.rel (!%p16_p0) target bundleno = 1 (0x1), region = 45 }
 0x17d   : > { %v656_v29 = vmul.f32 %v815_v28, %v813_v27 }
 0x17f   : > { %v680_v30 = vsel %vm679_vm3, %v656_v29, 0.0  ;;  %v687_v1 = vsel %vm679_vm3, %v656_v29, %v842_v1  }
 0x180   : > { %684 = vst [vmem:[%s683_s4 + $0x4] sm:$0xf] %v680_v30 }

// kernel: bidaf_forward.14
= control target key start
LH: loop header
LB: loop body
LE: loop exit
PB: predicated region body
PF: predicated region fallthrough
CT: control target
= control target key end

     0   :  { %v66_v0 = vlaneseq  ;;  %v843_v4 = vmov 0   ;;  %vm294_vm6 = vcmask 64512   ;;  %vm422_vm13 = vcmask 1043456   ;;  %s1242_s1 = inlined_call_operand.vmem [shape: f32[2,8,256], index: 1, kind: input, shape index: {}]   ;;  %s1243_s0 = inlined_call_operand.vmem [shape: f32[2,16,256], index: 0, kind: input, shape index: {}]   ;;  %s1244_s6 = inlined_call_operand.vmem [shape: f32[1,256], index: 6, kind: input, shape index: {}]   ;;  %s1245_s7 = inlined_call_operand.<no memory space> [shape: f32[1,1], index: 7, kind: input, shape index: {}]   ;;  %s1246_s8 = inlined_call_operand.vmem [shape: f32[2,16,1024], index: 8, kind: output, shape index: {}]   ;;  %s1247_s4 = inlined_call_operand.vmem [shape: f32[1,256], index: 4, kind: input, shape index: {}]   ;;  %s1248_s5 = inlined_call_operand.vmem [shape: f32[1,256], index: 5, kind: input, shape index: {}]   ;;  %s1249_s2 = inlined_call_operand.vmem [shape: f32[2,16,1], index: 2, kind: input, shape index: {}]   ;;  %s1250_s3 = inlined_call_operand.vmem [shape: f32[2,1,8], index: 3, kind: input, shape index: {}]  }
   0x1   :  { %v892_v1 = vld [vmem:[%s1242_s1 + $0x8] sm:$0xff]  ;;  %v897_v2 = vld [vmem:[%s1242_s1 + $0x18] sm:$0xff]  ;;  %v40_v3 = vld [vmem:[%s1242_s1] sm:$0xff]  ;;  %814 = vset.pattern.permute.xlu1 %v843_v4  ;;  %813 = vset.pattern.permute.xlu0 %v843_v4  ;;  %v13_v5 = vstv %s1245_s7  ;;  %vm542_vm14 = vcmask 130048  }
   0x2   :  { %v909_v6 = vpack.c.bf16 %v892_v1, %v892_v1  ;;  %v913_v7 = vpack.c.bf16 %v897_v2, %v897_v2  ;;  %v915_v8 = vpack.c.bf16 %v40_v3, %v40_v3  ;;  %v42_v9 = vld [vmem:[%s1242_s1 + $0x10] sm:$0xff]  ;;  %v923_v10 = vld [vmem:[%s1243_s0 + $0x8] sm:$0xff]  ;;  %v928_v11 = vld [vmem:[%s1243_s0 + $0x18] sm:$0xff]  ;;  %v931_v12 = vshrl.u32 %v66_v0, 7  ;;  %14 = vst [vmem:[#allocation2] sm:$0x1] %v13_v5 }
   0x3   :  { %v933_v13 = vpack.c.bf16 %v42_v9, %v42_v9  ;;  %v118_v14 = vld [vmem:[%s1244_s6] sm:$0x3]  ;;  %750 = vst [vmem:[%s1246_s8 + $0x8] sm:$0xff] %v923_v10  ;;  %752 = vst [vmem:[%s1246_s8 + $0x48] sm:$0xff] %v928_v11  ;;  %v949_v15 = vld [vmem:[%s1243_s0 + $0x28] sm:$0xff]  ;;  %v227_v61 = vand.u32 127, %v66_v0 }
   0x4   :  { %v954_v16 = vld [vmem:[%s1243_s0 + $0x38] sm:$0xff]  ;;  %156 = vmatprep.subr.bf16.mxu0 %v909_v6  ;;  %197 = vmatprep.subr.bf16.mxu1 %v913_v7  ;;  %v959_v17 = vsub.s32 0, %v931_v12  ;;  %v72_v18 = vsub.s32 1, %v931_v12  ;;  %754 = vst [vmem:[%s1246_s8 + $0x88] sm:$0xff] %v949_v15  ;;  %v973_v19 = vld [vmem:[%s1243_s0] sm:$0xff]  ;;  %v978_v20 = vld [vmem:[%s1243_s0 + $0x10] sm:$0xff] }
   0x5   :  { %756 = vst [vmem:[%s1246_s8 + $0xc8] sm:$0xff] %v954_v16  ;;  %v983_v21 = vld [vmem:[%s1243_s0 + $0x20] sm:$0xff]  ;;  %157 = vmatpush1.bf16.xpose.msra.mxu0 %v915_v8  ;;  %198 = vmatpush1.bf16.xpose.msra.mxu1 %v933_v13  ;;  %749 = vst [vmem:[%s1246_s8] sm:$0xff] %v973_v19  ;;  %v998_v22 = vld [vmem:[%s1243_s0 + $0x30] sm:$0xff]  ;;  %v230_v62 = vsub.s32 %v227_v61, %v931_v12 }
   0x6   :  { %751 = vst [vmem:[%s1246_s8 + $0x40] sm:$0xff] %v978_v20  ;;  %753 = vst [vmem:[%s1246_s8 + $0x80] sm:$0xff] %v983_v21  ;;  %v64_v23 = vld [vmem:[%s1247_s4] sm:$0x3]  ;;  %v123_v25 = vrot.slane %v118_v14, %v959_v17  ;;  %v127_v26 = vrot.slane %v118_v14, %v72_v18  ;;  %802 = vmatprep.subr.msk.bf16.mxu0 %vm422_vm13, %v909_v6  ;;  %804 = vmatprep.subr.msk.bf16.mxu1 %vm422_vm13, %v913_v7 }
   0x7   :  { %v96_v24 = vld [vmem:[%s1248_s5] sm:$0x3]  ;;  %755 = vst [vmem:[%s1246_s8 + $0xc0] sm:$0xff] %v998_v22  ;;  %v69_v27 = vrot.slane %v64_v23, %v959_v17  ;;  %v73_v28 = vrot.slane %v64_v23, %v72_v18 }
   0x8   :  { %v101_v29 = vrot.slane %v96_v24, %v959_v17  ;;  %v105_v30 = vrot.slane %v96_v24, %v72_v18  ;;  %v131_v31 = vmul.f32 %v127_v26, %v923_v10  ;;  %v133_v32 = vmul.f32 %v127_v26, %v928_v11  ;;  %v44_v63 = vld [vmem:[%s1249_s2] sm:$0xff] }
   0x9   :  { %v135_v33 = vmul.f32 %v127_v26, %v949_v15  ;;  %v137_v34 = vmul.f32 %v127_v26, %v954_v16  ;;  %v130_v35 = vmul.f32 %v123_v25, %v973_v19  ;;  %v132_v36 = vmul.f32 %v123_v25, %v978_v20  ;;  %v801_v5 = vld [vmem:[#allocation2] ss:$0 sm:$0xff] }
   0xa   :  { %v134_v37 = vmul.f32 %v123_v25, %v983_v21  ;;  %v136_v38 = vmul.f32 %v123_v25, %v998_v22  ;;  %v139_v39 = vpack.c.bf16 %v133_v32, %v131_v31  ;;  %v76_v41 = vmul.f32 %v69_v27, %v973_v19  ;;  %v52_v24 = vld [vmem:[%s1250_s3] sm:$0x1]  ;;  %v53_v25 = vld [vmem:[%s1250_s3 + $0x1] sm:$0x1] }
   0xb   :  { %v141_v40 = vpack.c.bf16 %v137_v34, %v135_v33  ;;  %v77_v42 = vmul.f32 %v73_v28, %v923_v10  ;;  %v138_v43 = vpack.c.bf16 %v132_v36, %v130_v35  ;;  %v108_v45 = vmul.f32 %v101_v29, %v40_v3  ;;  %v46_v3 = vld [vmem:[%s1249_s2 + $0x10] sm:$0xff] }
   0xc   :  { %v140_v44 = vpack.c.bf16 %v136_v38, %v134_v37  ;;  %v109_v46 = vmul.f32 %v105_v30, %v892_v1  ;;  %174 = vmatprep.mubr.bf16.mxu0 %v139_v39  ;;  %v78_v48 = vmul.f32 %v69_v27, %v978_v20  ;;  %v79_v49 = vmul.f32 %v73_v28, %v928_v11  ;;  %v45_v1 = vld [vmem:[%s1249_s2 + $0x8] sm:$0xff] }
   0xd   :  { %215 = vmatprep.mubr.bf16.mxu1 %v141_v40  ;;  %v84_v47 = vadd.f32 %v77_v42, %v76_v41  ;;  %175 = vmatmul.mubr.bf16.vlgmr.msra.gmra.mxu0 %v138_v43  ;;  %v110_v51 = vmul.f32 %v101_v29, %v42_v9  ;;  %v111_v52 = vmul.f32 %v105_v30, %v897_v2  ;;  %vm48_vm0 = vcmp.gt.f32.partialorder %v44_v63, 0.0 }
   0xe   :  { %216 = vmatmul.mubr.bf16.vlgmr.msra.gmra.mxu1 %v140_v44  ;;  %v112_v50 = vadd.f32 %v109_v46, %v108_v45  ;;  %v87_v53 = vadd.f32 %v79_v49, %v78_v48  ;;  %v82_v54 = vmul.f32 %v69_v27, %v998_v22  ;;  %v83_v55 = vmul.f32 %v73_v28, %v954_v16 }
   0xf   :  { %85 = vadd.xlane.f32.xlu1 %v84_v47  ;;  %v115_v56 = vadd.f32 %v111_v52, %v110_v51  ;;  %v80_v57 = vmul.f32 %v69_v27, %v983_v21  ;;  %v81_v58 = vmul.f32 %v73_v28, %v949_v15  ;;  %461 = vmatprep.mubr.bf16.mxu0 %v843_v4  ;;  %v339_v2 = vsel %vm48_vm0, 1, %v843_v4 }
  0x10   :  { %113 = vadd.xlane.f32.xlu0 %v112_v50  ;;  %513 = vmatprep.mubr.bf16.mxu1 %v843_v4  ;;  %v93_v59 = vadd.f32 %v83_v55, %v82_v54  ;;  %vm49_vm1 = vcmp.gt.f32.partialorder %v45_v1, 0.0  ;;  %vm50_vm2 = vcmp.gt.f32.partialorder %v46_v3, 0.0  ;;  %vm54_vm3 = vcmp.gt.f32.partialorder %v52_v24, 0.0 }
  0x11   :  { %v90_v60 = vadd.f32 %v81_v58, %v80_v57  ;;  %v340_v0 = vsel %vm49_vm1, 1, %v843_v4  ;;  %v341_v9 = vsel %vm50_vm2, 1, %v843_v4  ;;  %vm55_vm4 = vcmp.gt.f32.partialorder %v53_v25, 0.0 }
  0x12   :  { %v278_v30 = vsel %vm54_vm3, 1, %v843_v4  ;;  %v279_v31 = vsel %vm55_vm4, 1, %v843_v4 }
  0x13   :  { %88 = vadd.xlane.f32.xlu1 %v87_v53  ;;  %v283_v32 = vrot.slane %v278_v30, %v959_v17  ;;  %v287_v39 = vrot.slane %v279_v31, %v959_v17  ;;  %v47_v31 = vld [vmem:[%s1249_s2 + $0x18] sm:$0xff] }
  0x14   :  { %116 = vadd.xlane.f32.xlu0 %v115_v56  ;;  %vm51_vm10 = vcmp.gt.f32.partialorder %v47_v31, 0.0 }
  0x15   :  { %vm1061_vm5 = vcmp.eq.s32.totalorder %v283_v32, 1  ;;  %vm1067_vm8 = vcmp.eq.s32.totalorder %v287_v39, 1  ;;  %v342_v32 = vsel %vm51_vm10, 1, %v843_v4 }
  0x17   :  { %94 = vadd.xlane.f32.xlu1 %v93_v59 }
  0x18   :  { %91 = vadd.xlane.f32.xlu0 %v90_v60 }
  0x28   :  { %344 = vperm.xlu1 %814, %v339_v2  }
  0x2c   :  { %347 = vperm.xlu1 %814, %v340_v0  }
  0x2e   :  { %271 = vperm.xlu0 %813, %v801_v5  }
  0x30   :  { %350 = vperm.xlu1 %814, %v341_v9  }
  0x98   :  { %v86_v12 = vpop.xlane.xlu1 %85 }
  0x99   :  { %v114_v14 = vpop.xlane.xlu0 %113 }
  0x9a   :  { %v231_v27 = vrot.slane %v114_v14, %v230_v62 }
  0x9c   :  { %v89_v18 = vpop.xlane.xlu1 %88  ;;  %v256_v35 = vadd.f32 %v231_v27, %v86_v12 }
  0x9d   :  { %v117_v23 = vpop.xlane.xlu0 %116  ;;  %v257_v45 = vadd.f32 %v231_v27, %v89_v18 }
  0x9e   :  { %v235_v28 = vrot.slane %v117_v23, %v230_v62 }
  0xa0   :  { %v95_v26 = vpop.xlane.xlu1 %94 }
  0xa1   :  { %v92_v29 = vpop.xlane.xlu0 %91  ;;  %v259_v17 = vadd.f32 %v235_v28, %v95_v26 }
  0xa2   :  { %v258_v33 = vadd.f32 %v235_v28, %v92_v29 }
  0xa4   :  { %v345_v34 = vpop.permute.xlu1 %344 }
  0xa5   :  { %vm355_vm7 = vcmp.eq.s32.totalorder %v345_v34, 1 }
  0xa8   :  { %v348_v51 = vpop.permute.xlu1 %347 }
  0xa9   :  { %v272_v36 = vpop.permute.xlu0 %271  ;;  %vm356_vm9 = vcmp.eq.s32.totalorder %v348_v51, 1 }
  0xcd   :  { %v176_v37 = vpop.f32.mrf.mxu0 }
  0xce   :  { %v217_v38 = vpop.f32.mrf.mxu1  ;;  %v260_v40 = vadd.f32 %v256_v35, %v176_v37 }
  0xcf   :  { %v262_v41 = vadd.f32 %v258_v33, %v217_v38  ;;  %v178_v43 = vpop.f32.mrf.mxu0 }
  0xd0   :  { %v219_v42 = vpop.f32.mrf.mxu1  ;;  %v274_v47 = vadd.f32 %v272_v36, %v260_v40 }
  0xd1   :  { %v1065_v46 = vadd.f32 %v272_v36, %v262_v41  ;;  %v179_v48 = vpop.f32.mrf.mxu0 }
  0xd2   :  { %v220_v49 = vpop.f32.mrf.mxu1  ;;  %v261_v52 = vadd.f32 %v257_v45, %v179_v48  ;;  %v290_v53 = vsel %vm1061_vm5, %v274_v47, -1e+30  ;;  %v359_v59 = vsel %vm355_vm7, %v274_v47, -1e+30 }
  0xd3   :  { %v181_v54 = vpop.f32.mrf.mxu0  ;;  %v295_v56 = vsel %vm294_vm6, %v290_v53, -inf  ;;  %v263_v58 = vadd.f32 %v259_v17, %v220_v49  ;;  %v292_v60 = vsel %vm1067_vm8, %v1065_v46, -1e+30  ;;  %v363_v63 = vsel %vm294_vm6, %v359_v59, -inf  ;;  %v351_v49 = vpop.permute.xlu1 %350 }
  0xd4   :  { %v222_v55 = vpop.f32.mrf.mxu1  ;;  %v275_v57 = vadd.f32 %v272_v36, %v261_v52  ;;  %296 = vmax.xlane.f32.xlu1 %v295_v56  ;;  %v301_v1 = vsel %vm294_vm6, %v292_v60, -inf  ;;  %vm357_vm11 = vcmp.eq.s32.totalorder %v351_v49, 1 }
  0xd5   :  { %v1080_v2 = vadd.f32 %v272_v36, %v263_v58 }
  0xd6   :  { %v360_v61 = vsel %vm356_vm9, %v275_v57, -1e+30  ;;  %v291_v0 = vsel %vm1061_vm5, %v275_v57, -1e+30 }
  0xd7   :  { %v364_v62 = vsel %vm294_vm6, %v360_v61, -inf  ;;  %v298_v9 = vsel %vm294_vm6, %v291_v0, -inf  ;;  %v293_v14 = vsel %vm1067_vm8, %v1080_v2, -1e+30 }
  0xd8   :  { %v365_v3 = vmax.f32 %v363_v63, %v364_v62  ;;  %302 = vmax.xlane.f32.xlu1 %v301_v1  ;;  %v304_v23 = vsel %vm294_vm6, %v293_v14, -inf  ;;  %v361_v63 = vsel %vm357_vm11, %v1065_v46, -1e+30 }
  0xda   :  { %v366_v5 = vrot.slane %v365_v3, 4 }
  0xdc   :  { %v367_v12 = vmax.f32 %v365_v3, %v366_v5  ;;  %299 = vmax.xlane.f32.xlu1 %v298_v9 }
  0xde   :  { %v368_v18 = vrot.slane %v367_v12, 2 }
  0xe0   :  { %v369_v24 = vmax.f32 %v367_v12, %v368_v18  ;;  %305 = vmax.xlane.f32.xlu1 %v304_v23 }
  0xe2   :  { %v370_v25 = vrot.slane %v369_v24, 1 }
  0xe4   :  { %v371_v26 = vmax.f32 %v369_v24, %v370_v25 }
  0xe6   :  { %v381_v27 = vsub.f32 %v359_v59, %v371_v26  ;;  %v382_v28 = vsub.f32 %v360_v61, %v371_v26 }
  0xe8   :  { %v385_v29 = vmul.f32 1.442695, %v381_v27  ;;  %v387_v30 = vmul.f32 1.442695, %v382_v28 }
  0xea   :  { %815 = vpow2.f32 %v385_v29 }
  0xeb   :  { %817 = vpow2.f32 %v387_v30 }
  0xf1   :  { %353 = vperm.xlu1 %814, %v342_v32  }
  0xf7   :  { %v816_v33 = vpop.eup %815 }
  0xf8   :  { %v818_v34 = vpop.eup %817  ;;  %v393_v35 = vsel %vm294_vm6, %v816_v33, 0.0 }
  0xf9   :  { %v394_v36 = vsel %vm294_vm6, %v818_v34, 0.0 }
  0xfa   :  { %v395_v37 = vadd.f32 %v394_v36, %v393_v35 }
  0xfc   :  { %v396_v38 = vrot.slane %v395_v37, 4 }
  0xfe   :  { %v397_v39 = vadd.f32 %v396_v38, %v395_v37 }
 0x100   :  { %v398_v40 = vrot.slane %v397_v39, 2 }
 0x102   :  { %v399_v41 = vadd.f32 %v398_v40, %v397_v39 }
 0x104   :  { %v400_v42 = vrot.slane %v399_v41, 1 }
 0x106   :  { %v401_v43 = vadd.f32 %v400_v42, %v399_v41  ;;  %v476_v41 = vsel %vm422_vm13, %v933_v13, 0 }
 0x107   :  { %496 = vmatpush1.bf16.msra.mxu1 %v476_v41 }
 0x108   :  { %819 = vrcp.f32 %v401_v43  ;;  %v59_v43 = vpack.c.bf16 %v954_v16, %v949_v15 }
 0x10a   :  { %620 = vmatprep.subr.bf16.mxu1 %v59_v43 }
 0x115   :  { %v820_v44 = vpop.eup %819 }
 0x116   :  { %v1095_v45 = vmul.f32 %v820_v44, %v816_v33  ;;  %v1097_v47 = vmul.f32 %v820_v44, %v818_v34  ;;  %v424_v34 = vsel %vm422_vm13, %v915_v8, 0  ;;  %v57_v8 = vpack.c.bf16 %v928_v11, %v923_v10 }
 0x117   :  { %444 = vmatpush1.bf16.msra.mxu0 %v424_v34 }
 0x118   :  { %v524_v48 = vpack.c.bf16 %v1097_v47, %v1095_v45  ;;  %560 = vmatprep.subr.bf16.mxu0 %v57_v8  ;;  %v56_v47 = vpack.c.bf16 %v978_v20, %v973_v19 }
 0x15d   :  { %v297_v50 = vpop.xlane.xlu1 %296 }
 0x15e   :  { %v307_v17 = vsub.f32 %v290_v53, %v297_v50 }
 0x160   :  { %v311_v51 = vmul.f32 1.442695, %v307_v17 }
 0x161   :  { %v303_v52 = vpop.xlane.xlu1 %302 }
 0x162   :  { %821 = vpow2.f32 %v311_v51  ;;  %v309_v54 = vsub.f32 %v292_v60, %v303_v52  ;;  %v372_v60 = vsel %vm294_vm6, %v361_v63, -inf }
 0x164   :  { %v315_v55 = vmul.f32 1.442695, %v309_v54 }
 0x165   :  { %v300_v56 = vpop.xlane.xlu1 %299 }
 0x166   :  { %823 = vpow2.f32 %v315_v55  ;;  %v308_v57 = vsub.f32 %v291_v0, %v300_v56 }
 0x168   :  { %v313_v58 = vmul.f32 1.442695, %v308_v57 }
 0x169   :  { %v306_v59 = vpop.xlane.xlu1 %305 }
 0x16a   :  { %825 = vpow2.f32 %v313_v58  ;;  %v310_v61 = vsub.f32 %v293_v14, %v306_v59 }
 0x16c   :  { %v317_v62 = vmul.f32 1.442695, %v310_v61 }
 0x16d   :  { %v354_v1 = vpop.permute.xlu1 %353 }
 0x16e   :  { %827 = vpow2.f32 %v317_v62  ;;  %vm358_vm12 = vcmp.eq.s32.totalorder %v354_v1, 1 }
 0x16f   :  { %v1102_v53 = vpop.eup %821  ;;  %v362_v3 = vsel %vm358_vm12, %v1080_v2, -1e+30 }
 0x170   :  { %v373_v5 = vsel %vm294_vm6, %v362_v3, -inf  ;;  %v319_v0 = vsel %vm294_vm6, %v1102_v53, 0.0 }
 0x171   :  { %v374_v9 = vmax.f32 %v372_v60, %v373_v5  ;;  %320 = vadd.xlane.f32.xlu0 %v319_v0 }
 0x173   :  { %v1109_v12 = vpop.eup %823  ;;  %v375_v14 = vrot.slane %v374_v9, 4 }
 0x174   :  { %v325_v46 = vsel %vm294_vm6, %v1109_v12, 0.0 }
 0x175   :  { %v376_v18 = vmax.f32 %v374_v9, %v375_v14  ;;  %326 = vadd.xlane.f32.xlu0 %v325_v46 }
 0x177   :  { %v826_v23 = vpop.eup %825  ;;  %v377_v24 = vrot.slane %v376_v18, 2 }
 0x178   :  { %v322_v2 = vsel %vm294_vm6, %v826_v23, 0.0 }
 0x179   :  { %v378_v25 = vmax.f32 %v376_v18, %v377_v24  ;;  %323 = vadd.xlane.f32.xlu1 %v322_v2 }
 0x17b   :  { %v828_v26 = vpop.eup %827  ;;  %v379_v27 = vrot.slane %v378_v25, 1 }
 0x17c   :  { %v328_v28 = vsel %vm294_vm6, %v828_v26, 0.0 }
 0x17d   :  { %v380_v29 = vmax.f32 %v378_v25, %v379_v27  ;;  %329 = vadd.xlane.f32.xlu0 %v328_v28 }
 0x17f   :  { %v383_v30 = vsub.f32 %v361_v63, %v380_v29  ;;  %v384_v31 = vsub.f32 %v362_v3, %v380_v29 }
 0x181   :  { %v389_v32 = vmul.f32 1.442695, %v383_v30  ;;  %v391_v33 = vmul.f32 1.442695, %v384_v31 }
 0x183   :  { %829 = vpow2.f32 %v389_v32 }
 0x184   :  { %831 = vpow2.f32 %v391_v33 }
 0x190   :  { %v830_v35 = vpop.eup %829 }
 0x191   :  { %v832_v36 = vpop.eup %831  ;;  %v402_v37 = vsel %vm294_vm6, %v830_v35, 0.0 }
 0x192   :  { %v403_v38 = vsel %vm294_vm6, %v832_v36, 0.0 }
 0x193   :  { %v404_v39 = vadd.f32 %v403_v38, %v402_v37 }
 0x195   :  { %v405_v40 = vrot.slane %v404_v39, 4 }
 0x197   :  { %v406_v6 = vadd.f32 %v405_v40, %v404_v39 }
 0x199   :  { %v407_v42 = vrot.slane %v406_v6, 2 }
 0x19b   :  { %v408_v7 = vadd.f32 %v407_v42, %v406_v6 }
 0x19d   :  { %v409_v44 = vrot.slane %v408_v7, 1 }
 0x19f   :  { %v410_v49 = vadd.f32 %v409_v44, %v408_v7 }
 0x1a1   :  { %833 = vrcp.f32 %v410_v49 }
 0x1a6   :  { %526 = vxpose.xlu1.c.b16.start.end [1/1] (short) (narrow) %v524_v48, 16 }
 0x1ae   :  { %v834_v13 = vpop.eup %833 }
 0x1af   :  { %v415_v50 = vmul.f32 %v834_v13, %v830_v35  ;;  %v416_v17 = vmul.f32 %v834_v13, %v832_v36 }
 0x1b1   :  { %v525_v51 = vpack.c.bf16 %v416_v17, %v415_v50 }
 0x1b3   :  { %587 = vxpose.xlu0.c.b16.start.end [1/1] (short) (narrow) %v525_v51, 16 }
 0x1fa   :  { %v321_v52 = vpop.xlane.xlu0 %320 }
 0x1fb   :  { %835 = vrcp.f32 %v321_v52 }
 0x1fe   :  { %v327_v54 = vpop.xlane.xlu0 %326 }
 0x202   :  { %v324_v55 = vpop.xlane.xlu1 %323 }
 0x203   :  { %837 = vrcp.f32 %v324_v55 }
 0x204   :  { %839 = vrcp.f32 %v327_v54 }
 0x206   :  { %v330_v56 = vpop.xlane.xlu0 %329 }
 0x207   :  { %841 = vrcp.f32 %v330_v56 }
 0x208   :  { %v836_v57 = vpop.eup %835  ;;  %v534_v60 = vpop.trf.xlu1 }
 0x209   :  { %v335_v59 = vmul.f32 %v836_v57, %v1102_v53  ;;  %v58_v53 = vpack.c.bf16 %v998_v22, %v983_v21 }
 0x210   :  { %v838_v58 = vpop.eup %837 }
 0x211   :  { %v336_v61 = vmul.f32 %v838_v58, %v826_v23  ;;  %v840_v45 = vpop.eup %839 }
 0x212   :  { %v337_v63 = vmul.f32 %v840_v45, %v1109_v12 }
 0x213   :  { %v1135_v48 = vpack.c.bf16 %v336_v61, %v335_v59 }
 0x214   :  { %v842_v62 = vpop.eup %841 }
 0x215   :  { %803 = vmatmul.mubr.msk.bf16.vlgmr.msra.gmra.mxu0 %vm294_vm6, %v1135_v48  ;;  %v338_v1 = vmul.f32 %v842_v62, %v828_v26  ;;  %v595_v5 = vpop.trf.xlu0 }
 0x216   :  { %561 = vmatpush1.bf16.msra.mxu0 %v56_v47  ;;  %578 = vmatprep.mubr.bf16.mxu0 %v843_v4 }
 0x217   :  { %v418_v3 = vpack.c.bf16 %v338_v1, %v337_v63 }
 0x219   :  { %805 = vmatmul.mubr.msk.bf16.vlgmr.msra.gmra.mxu1 %vm294_vm6, %v418_v3 }
 0x21a   :  { %621 = vmatpush1.bf16.msra.mxu1 %v58_v53  ;;  %638 = vmatprep.mubr.bf16.mxu1 %v843_v4 }
 0x21d   :  { %806 = vmatmul.mubr.msk.bf16.vlgmr.msra.gmra.mxu0 %vm542_vm14, %v534_v60 }
 0x21e   :  { %689 = vmatprep.mubr.bf16.mxu0 %v843_v4 }
 0x221   :  { %807 = vmatmul.mubr.msk.bf16.vlgmr.msra.gmra.mxu1 %vm542_vm14, %v595_v5 }
 0x222   :  { %738 = vmatprep.mubr.bf16.mxu1 %v843_v4 }
 0x2d5   :  { %v463_v0 = vpop.f32.mrf.mxu0 }
 0x2d6   :  { %757 = vst [vmem:[%s1246_s8 + $0x10] sm:$0xff] %v463_v0  ;;  %v765_v9 = vmul.f32 %v463_v0, %v973_v19 }
 0x2d7   :  { %v465_v12 = vpop.f32.mrf.mxu0 }
 0x2d8   :  { %773 = vst [vmem:[%s1246_s8 + $0x20] sm:$0xff] %v765_v9  ;;  %758 = vst [vmem:[%s1246_s8 + $0x18] sm:$0xff] %v465_v12  ;;  %v766_v14 = vmul.f32 %v465_v12, %v923_v10 }
 0x2d9   :  { %v467_v46 = vpop.f32.mrf.mxu0  ;;  %v515_v4 = vpop.f32.mrf.mxu1 }
 0x2da   :  { %774 = vst [vmem:[%s1246_s8 + $0x28] sm:$0xff] %v766_v14  ;;  %759 = vst [vmem:[%s1246_s8 + $0x50] sm:$0xff] %v467_v46  ;;  %v767_v18 = vmul.f32 %v467_v46, %v978_v20  ;;  %v769_v23 = vmul.f32 %v515_v4, %v983_v21 }
 0x2db   :  { %761 = vst [vmem:[%s1246_s8 + $0x90] sm:$0xff] %v515_v4  ;;  %v469_v24 = vpop.f32.mrf.mxu0  ;;  %v517_v2 = vpop.f32.mrf.mxu1 }
 0x2dc   :  { %775 = vst [vmem:[%s1246_s8 + $0x60] sm:$0xff] %v767_v18  ;;  %777 = vst [vmem:[%s1246_s8 + $0xa0] sm:$0xff] %v769_v23  ;;  %v768_v25 = vmul.f32 %v469_v24, %v928_v11  ;;  %v770_v26 = vmul.f32 %v517_v2, %v949_v15 }
 0x2dd   :  { %760 = vst [vmem:[%s1246_s8 + $0x58] sm:$0xff] %v469_v24  ;;  %762 = vst [vmem:[%s1246_s8 + $0x98] sm:$0xff] %v517_v2  ;;  %v519_v27 = vpop.f32.mrf.mxu1  ;;  %v580_v28 = vpop.f32.mrf.mxu0 }
 0x2de   :  { %776 = vst [vmem:[%s1246_s8 + $0x68] sm:$0xff] %v768_v25  ;;  %778 = vst [vmem:[%s1246_s8 + $0xa8] sm:$0xff] %v770_v26  ;;  %v771_v29 = vmul.f32 %v519_v27, %v998_v22  ;;  %v647_v30 = vpack.c.bf16 %v580_v28, %v580_v28 }
 0x2df   :  { %763 = vst [vmem:[%s1246_s8 + $0xd0] sm:$0xff] %v519_v27  ;;  %v521_v31 = vpop.f32.mrf.mxu1  ;;  %v582_v32 = vpop.f32.mrf.mxu0 }
 0x2e0   :  { %779 = vst [vmem:[%s1246_s8 + $0xe0] sm:$0xff] %v771_v29  ;;  %v652_v33 = vsel %vm422_vm13, %v647_v30, 0  ;;  %764 = vst [vmem:[%s1246_s8 + $0xd8] sm:$0xff] %v521_v31  ;;  %v772_v34 = vmul.f32 %v521_v31, %v954_v16  ;;  %v648_v35 = vpack.c.bf16 %v582_v32, %v582_v32 }
 0x2e1   :  { %v584_v36 = vpop.f32.mrf.mxu0  ;;  %v640_v37 = vpop.f32.mrf.mxu1 }
 0x2e2   :  { %780 = vst [vmem:[%s1246_s8 + $0xe8] sm:$0xff] %v772_v34  ;;  %v649_v38 = vpack.c.bf16 %v640_v37, %v640_v37  ;;  %808 = vmatprep.subr.msk.bf16.mxu0 %vm422_vm13, %v648_v35 }
 0x2e3   :  { %v585_v39 = vpop.f32.mrf.mxu0  ;;  %v642_v40 = vpop.f32.mrf.mxu1  ;;  %672 = vmatpush1.bf16.msra.mxu0 %v652_v33 }
 0x2e4   :  { %v650_v41 = vpack.c.bf16 %v642_v40, %v642_v40  ;;  %v701_v8 = vsel %vm422_vm13, %v649_v38, 0 }
 0x2e5   :  { %v644_v6 = vpop.f32.mrf.mxu1 }
 0x2e6   :  { %809 = vmatmul.mubr.msk.bf16.vlgmr.msra.gmra.mxu0 %vm294_vm6, %v1135_v48  ;;  %810 = vmatprep.subr.msk.bf16.mxu1 %vm422_vm13, %v650_v41 }
 0x2e7   :  { %v645_v42 = vpop.f32.mrf.mxu1  ;;  %721 = vmatpush1.bf16.msra.mxu1 %v701_v8 }
 0x2ea   :  { %811 = vmatmul.mubr.msk.bf16.vlgmr.msra.gmra.mxu1 %vm294_vm6, %v418_v3 }
 0x3a6   :  { %v691_v7 = vpop.f32.mrf.mxu0 }
 0x3a7   :  { %v781_v43 = vmul.f32 %v691_v7, %v973_v19 }
 0x3a8   :  { %v693_v44 = vpop.f32.mrf.mxu0 }
 0x3a9   :  { %789 = vst [vmem:[%s1246_s8 + $0x30] sm:$0xff] %v781_v43  ;;  %v782_v49 = vmul.f32 %v693_v44, %v923_v10 }
 0x3aa   :  { %v695_v13 = vpop.f32.mrf.mxu0  ;;  %v740_v50 = vpop.f32.mrf.mxu1 }
 0x3ab   :  { %790 = vst [vmem:[%s1246_s8 + $0x38] sm:$0xff] %v782_v49  ;;  %v783_v17 = vmul.f32 %v695_v13, %v978_v20  ;;  %v785_v51 = vmul.f32 %v740_v50, %v983_v21 }
 0x3ac   :  { %v697_v52 = vpop.f32.mrf.mxu0  ;;  %v742_v54 = vpop.f32.mrf.mxu1 }
 0x3ad   :  { %791 = vst [vmem:[%s1246_s8 + $0x70] sm:$0xff] %v783_v17  ;;  %793 = vst [vmem:[%s1246_s8 + $0xb0] sm:$0xff] %v785_v51  ;;  %v784_v10 = vmul.f32 %v697_v52, %v928_v11  ;;  %v786_v19 = vmul.f32 %v742_v54, %v949_v15 }
 0x3ae   :  { %v744_v55 = vpop.f32.mrf.mxu1 }
 0x3af   :  { %792 = vst [vmem:[%s1246_s8 + $0x78] sm:$0xff] %v784_v10  ;;  %794 = vst [vmem:[%s1246_s8 + $0xb8] sm:$0xff] %v786_v19  ;;  %v787_v20 = vmul.f32 %v744_v55, %v998_v22 }
 0x3b0   :  { %v746_v21 = vpop.f32.mrf.mxu1 }
 0x3b1   :  { %795 = vst [vmem:[%s1246_s8 + $0xf0] sm:$0xff] %v787_v20  ;;  %v788_v11 = vmul.f32 %v746_v21, %v954_v16 }
 0x3b3   :  { %796 = vst [vmem:[%s1246_s8 + $0xf8] sm:$0xff] %v788_v11 }

// kernel: bidaf_forward.16
= control target key start
LH: loop header
LB: loop body
LE: loop exit
PB: predicated region body
PF: predicated region fallthrough
CT: control target
= control target key end

     0   :  { %v895_v0 = vmov 0.0   ;;  %v897_v1 = vmov 0.0   ;;  %v899_v2 = vmov 0.0   ;;  %v901_v3 = vmov 0.0   ;;  %s903_s12 = smov 0   ;;  %s1743_s0 = inlined_call_operand.vmem [shape: bf16[16,2,1024], index: 0, kind: input, shape index: {}]   ;;  %s1744_s1 = inlined_call_operand.vmem [shape: f32[16,2,1], index: 1, kind: input, shape index: {}]   ;;  %s1745_s2 = inlined_call_operand.vmem [shape: f32[256,1024], index: 2, kind: input, shape index: {}]   ;;  %s1746_s3 = inlined_call_operand.vmem [shape: f32[16,2,256], index: 3, kind: output, shape index: {}]  }
   0x1 LB: > { %v146_v4 = vld [vmem:[%s1745_s2 + $0x3c8] sm:$0xff]  ;;  %v148_v5 = vld [vmem:[%s1745_s2 + $0x3d8] sm:$0xff]  ;;  %v145_v6 = vld [vmem:[%s1745_s2 + $0x3c0] sm:$0xff]  ;;  %345 = vmatprep.mubr.f32.mxu0 %v859_v1  ;;  %416 = vmatprep.mubr.f32.mxu1 %v859_v1  ;;  %s752_s25 = sshll.u32 %s871_s12, 1  ;;  %s1652_s30 = ssub.s32 15, %s871_s12  ;;  %s871_s12 = sphi %s903_s12, %s19_s12   ;;  %v867_v3 = vphi %v901_v3, %v707_v3   ;;  %v863_v2 = vphi %v899_v2, %v1713_v2   ;;  %v859_v1 = vphi %v897_v1, %v709_v1   ;;  %v855_v0 = vphi %v895_v0, %v710_v0  }
   0x2   : > { %281 = vmatprep.subr.mxu0 %v146_v4  ;;  %352 = vmatprep.subr.mxu1 %v148_v5  ;;  %v147_v7 = vld [vmem:[%s1745_s2 + $0x3d0] sm:$0xff]  ;;  %v138_v8 = vld [vmem:[%s1745_s2 + $0x388] sm:$0xff]  ;;  %v140_v9 = vld [vmem:[%s1745_s2 + $0x398] sm:$0xff]  ;;  %s682_s15 = scalar_lea.vmem %s1744_s1, %s752_s25  ;;  %s753_s20 = sshll.u32 %s1652_s30, 1 }
   0x3   : > { %282 = vmatpush1.msra.mxu0 %v145_v6  ;;  %353 = vmatpush1.msra.mxu1 %v147_v7  ;;  %v137_v10 = vld [vmem:[%s1745_s2 + $0x380] sm:$0xff]  ;;  %v139_v11 = vld [vmem:[%s1745_s2 + $0x390] sm:$0xff]  ;;  %v130_v12 = vld [vmem:[%s1745_s2 + $0x348] sm:$0xff]  ;;  %s686_s9 = scalar_lea.vmem %s1744_s1, %s753_s20  ;;  %s756_s19 = sshll.u32 %s871_s12, 2 }
   0x4   : > { %283 = vmatprep.subr.mxu0 %v138_v8  ;;  %354 = vmatprep.subr.mxu1 %v140_v9  ;;  %v132_v13 = vld [vmem:[%s1745_s2 + $0x358] sm:$0xff]  ;;  %v129_v14 = vld [vmem:[%s1745_s2 + $0x340] sm:$0xff]  ;;  %v131_v15 = vld [vmem:[%s1745_s2 + $0x350] sm:$0xff]  ;;  %s745_s20 = sshll.u32 %s1652_s30, 3  ;;  %s696_s23 = scalar_lea.vmem %s1746_s3, %s756_s19 }
   0x5   : > { %284 = vmatpush1.msra.mxu0 %v137_v10  ;;  %355 = vmatpush1.msra.mxu1 %v139_v11  ;;  %v122_v16 = vld [vmem:[%s1745_s2 + $0x308] sm:$0xff]  ;;  %v124_v17 = vld [vmem:[%s1745_s2 + $0x318] sm:$0xff]  ;;  %v121_v18 = vld [vmem:[%s1745_s2 + $0x300] sm:$0xff]  ;;  %s593_s26 = scalar_lea.vmem %s1743_s0, %s745_s20  ;;  %s757_s27 = sshll.u32 %s1652_s30, 2 }
   0x6   : > { %285 = vmatprep.subr.mxu0 %v130_v12  ;;  %356 = vmatprep.subr.mxu1 %v132_v13  ;;  %v123_v19 = vld [vmem:[%s1745_s2 + $0x310] sm:$0xff]  ;;  %v114_v20 = vld [vmem:[%s1745_s2 + $0x2c8] sm:$0xff]  ;;  %v116_v21 = vld [vmem:[%s1745_s2 + $0x2d8] sm:$0xff]  ;;  %s705_s4 = scalar_lea.vmem %s1746_s3, %s757_s27 }
   0x7   : > { %286 = vmatpush1.msra.mxu0 %v129_v14  ;;  %357 = vmatpush1.msra.mxu1 %v131_v15  ;;  %v113_v22 = vld [vmem:[%s1745_s2 + $0x2c0] sm:$0xff]  ;;  %v115_v23 = vld [vmem:[%s1745_s2 + $0x2d0] sm:$0xff]  ;;  %v106_v24 = vld [vmem:[%s1745_s2 + $0x288] sm:$0xff] }
   0x8   : > { %287 = vmatprep.subr.mxu0 %v122_v16  ;;  %358 = vmatprep.subr.mxu1 %v124_v17  ;;  %v108_v25 = vld [vmem:[%s1745_s2 + $0x298] sm:$0xff]  ;;  %v105_v26 = vld [vmem:[%s1745_s2 + $0x280] sm:$0xff]  ;;  %v107_v27 = vld [vmem:[%s1745_s2 + $0x290] sm:$0xff] }
   0x9   : > { %288 = vmatpush1.msra.mxu0 %v121_v18  ;;  %359 = vmatpush1.msra.mxu1 %v123_v19  ;;  %v98_v28 = vld [vmem:[%s1745_s2 + $0x248] sm:$0xff]  ;;  %v100_v29 = vld [vmem:[%s1745_s2 + $0x258] sm:$0xff]  ;;  %v97_v30 = vld [vmem:[%s1745_s2 + $0x240] sm:$0xff] }
   0xa   : > { %289 = vmatprep.subr.mxu0 %v114_v20  ;;  %360 = vmatprep.subr.mxu1 %v116_v21  ;;  %v99_v31 = vld [vmem:[%s1745_s2 + $0x250] sm:$0xff]  ;;  %v90_v32 = vld [vmem:[%s1745_s2 + $0x208] sm:$0xff]  ;;  %v92_v33 = vld [vmem:[%s1745_s2 + $0x218] sm:$0xff] }
   0xb   : > { %290 = vmatpush1.msra.mxu0 %v113_v22  ;;  %361 = vmatpush1.msra.mxu1 %v115_v23  ;;  %v89_v34 = vld [vmem:[%s1745_s2 + $0x200] sm:$0xff]  ;;  %v91_v35 = vld [vmem:[%s1745_s2 + $0x210] sm:$0xff]  ;;  %v82_v36 = vld [vmem:[%s1745_s2 + $0x1c8] sm:$0xff] }
   0xc   : > { %291 = vmatprep.subr.mxu0 %v106_v24  ;;  %362 = vmatprep.subr.mxu1 %v108_v25  ;;  %v84_v37 = vld [vmem:[%s1745_s2 + $0x1d8] sm:$0xff]  ;;  %v81_v38 = vld [vmem:[%s1745_s2 + $0x1c0] sm:$0xff]  ;;  %v83_v39 = vld [vmem:[%s1745_s2 + $0x1d0] sm:$0xff] }
   0xd   : > { %292 = vmatpush1.msra.mxu0 %v105_v26  ;;  %363 = vmatpush1.msra.mxu1 %v107_v27  ;;  %v74_v40 = vld [vmem:[%s1745_s2 + $0x188] sm:$0xff]  ;;  %v76_v41 = vld [vmem:[%s1745_s2 + $0x198] sm:$0xff]  ;;  %v73_v42 = vld [vmem:[%s1745_s2 + $0x180] sm:$0xff] }
   0xe   : > { %293 = vmatprep.subr.mxu0 %v98_v28  ;;  %364 = vmatprep.subr.mxu1 %v100_v29  ;;  %v75_v43 = vld [vmem:[%s1745_s2 + $0x190] sm:$0xff]  ;;  %v66_v44 = vld [vmem:[%s1745_s2 + $0x148] sm:$0xff]  ;;  %v68_v45 = vld [vmem:[%s1745_s2 + $0x158] sm:$0xff] }
   0xf   : > { %294 = vmatpush1.msra.mxu0 %v97_v30  ;;  %365 = vmatpush1.msra.mxu1 %v99_v31  ;;  %v65_v46 = vld [vmem:[%s1745_s2 + $0x140] sm:$0xff]  ;;  %v67_v47 = vld [vmem:[%s1745_s2 + $0x150] sm:$0xff]  ;;  %v58_v48 = vld [vmem:[%s1745_s2 + $0x108] sm:$0xff] }
  0x10   : > { %295 = vmatprep.subr.mxu0 %v90_v32  ;;  %366 = vmatprep.subr.mxu1 %v92_v33  ;;  %v60_v49 = vld [vmem:[%s1745_s2 + $0x118] sm:$0xff]  ;;  %v57_v50 = vld [vmem:[%s1745_s2 + $0x100] sm:$0xff]  ;;  %v59_v51 = vld [vmem:[%s1745_s2 + $0x110] sm:$0xff] }
  0x11   : > { %296 = vmatpush1.msra.mxu0 %v89_v34  ;;  %367 = vmatpush1.msra.mxu1 %v91_v35  ;;  %v50_v52 = vld [vmem:[%s1745_s2 + $0xc8] sm:$0xff]  ;;  %v52_v53 = vld [vmem:[%s1745_s2 + $0xd8] sm:$0xff]  ;;  %v49_v54 = vld [vmem:[%s1745_s2 + $0xc0] sm:$0xff] }
  0x12   : > { %297 = vmatprep.subr.mxu0 %v82_v36  ;;  %368 = vmatprep.subr.mxu1 %v84_v37  ;;  %v51_v55 = vld [vmem:[%s1745_s2 + $0xd0] sm:$0xff]  ;;  %v42_v56 = vld [vmem:[%s1745_s2 + $0x88] sm:$0xff]  ;;  %v44_v57 = vld [vmem:[%s1745_s2 + $0x98] sm:$0xff] }
  0x13   : > { %298 = vmatpush1.msra.mxu0 %v81_v38  ;;  %369 = vmatpush1.msra.mxu1 %v83_v39  ;;  %v41_v58 = vld [vmem:[%s1745_s2 + $0x80] sm:$0xff]  ;;  %v43_v59 = vld [vmem:[%s1745_s2 + $0x90] sm:$0xff]  ;;  %v34_v60 = vld [vmem:[%s1745_s2 + $0x48] sm:$0xff] }
  0x14   : > { %299 = vmatprep.subr.mxu0 %v74_v40  ;;  %370 = vmatprep.subr.mxu1 %v76_v41  ;;  %v36_v61 = vld [vmem:[%s1745_s2 + $0x58] sm:$0xff]  ;;  %v33_v62 = vld [vmem:[%s1745_s2 + $0x40] sm:$0xff]  ;;  %v35_v63 = vld [vmem:[%s1745_s2 + $0x50] sm:$0xff] }
  0x15   : > { %300 = vmatpush1.msra.mxu0 %v73_v42  ;;  %371 = vmatpush1.msra.mxu1 %v75_v43  ;;  %v26_v4 = vld [vmem:[%s1745_s2 + $0x8] sm:$0xff]  ;;  %v28_v5 = vld [vmem:[%s1745_s2 + $0x18] sm:$0xff]  ;;  %v25_v6 = vld [vmem:[%s1745_s2] sm:$0xff] }
  0x16   : > { %301 = vmatprep.subr.mxu0 %v66_v44  ;;  %372 = vmatprep.subr.mxu1 %v68_v45  ;;  %v27_v7 = vld [vmem:[%s1745_s2 + $0x10] sm:$0xff]  ;;  %v274_v8 = vld [vmem:[%s1745_s2 + $0x7c8] sm:$0xff]  ;;  %v276_v9 = vld [vmem:[%s1745_s2 + $0x7d8] sm:$0xff] }
  0x17   : > { %302 = vmatpush1.msra.mxu0 %v65_v46  ;;  %373 = vmatpush1.msra.mxu1 %v67_v47  ;;  %v273_v10 = vld [vmem:[%s1745_s2 + $0x7c0] sm:$0xff]  ;;  %v275_v11 = vld [vmem:[%s1745_s2 + $0x7d0] sm:$0xff]  ;;  %v266_v12 = vld [vmem:[%s1745_s2 + $0x788] sm:$0xff] }
  0x18   : > { %303 = vmatprep.subr.mxu0 %v58_v48  ;;  %374 = vmatprep.subr.mxu1 %v60_v49  ;;  %v268_v13 = vld [vmem:[%s1745_s2 + $0x798] sm:$0xff]  ;;  %v265_v14 = vld [vmem:[%s1745_s2 + $0x780] sm:$0xff]  ;;  %v267_v15 = vld [vmem:[%s1745_s2 + $0x790] sm:$0xff] }
  0x19   : > { %304 = vmatpush1.msra.mxu0 %v57_v50  ;;  %375 = vmatpush1.msra.mxu1 %v59_v51  ;;  %v258_v16 = vld [vmem:[%s1745_s2 + $0x748] sm:$0xff]  ;;  %v260_v17 = vld [vmem:[%s1745_s2 + $0x758] sm:$0xff]  ;;  %v257_v18 = vld [vmem:[%s1745_s2 + $0x740] sm:$0xff] }
  0x1a   : > { %305 = vmatprep.subr.mxu0 %v50_v52  ;;  %376 = vmatprep.subr.mxu1 %v52_v53  ;;  %v259_v19 = vld [vmem:[%s1745_s2 + $0x750] sm:$0xff]  ;;  %v250_v20 = vld [vmem:[%s1745_s2 + $0x708] sm:$0xff]  ;;  %v252_v21 = vld [vmem:[%s1745_s2 + $0x718] sm:$0xff] }
  0x1b   : > { %306 = vmatpush1.msra.mxu0 %v49_v54  ;;  %377 = vmatpush1.msra.mxu1 %v51_v55  ;;  %v249_v22 = vld [vmem:[%s1745_s2 + $0x700] sm:$0xff]  ;;  %v251_v23 = vld [vmem:[%s1745_s2 + $0x710] sm:$0xff]  ;;  %v242_v24 = vld [vmem:[%s1745_s2 + $0x6c8] sm:$0xff] }
  0x1c   : > { %307 = vmatprep.subr.mxu0 %v42_v56  ;;  %378 = vmatprep.subr.mxu1 %v44_v57  ;;  %v244_v25 = vld [vmem:[%s1745_s2 + $0x6d8] sm:$0xff]  ;;  %v241_v26 = vld [vmem:[%s1745_s2 + $0x6c0] sm:$0xff]  ;;  %v243_v27 = vld [vmem:[%s1745_s2 + $0x6d0] sm:$0xff] }
  0x1d   : > { %308 = vmatpush1.msra.mxu0 %v41_v58  ;;  %379 = vmatpush1.msra.mxu1 %v43_v59  ;;  %v234_v28 = vld [vmem:[%s1745_s2 + $0x688] sm:$0xff]  ;;  %v236_v29 = vld [vmem:[%s1745_s2 + $0x698] sm:$0xff]  ;;  %v233_v30 = vld [vmem:[%s1745_s2 + $0x680] sm:$0xff] }
  0x1e   : > { %309 = vmatprep.subr.mxu0 %v34_v60  ;;  %380 = vmatprep.subr.mxu1 %v36_v61  ;;  %v235_v31 = vld [vmem:[%s1745_s2 + $0x690] sm:$0xff]  ;;  %v226_v32 = vld [vmem:[%s1745_s2 + $0x648] sm:$0xff]  ;;  %v228_v33 = vld [vmem:[%s1745_s2 + $0x658] sm:$0xff] }
  0x1f   : > { %310 = vmatpush1.msra.mxu0 %v33_v62  ;;  %381 = vmatpush1.msra.mxu1 %v35_v63  ;;  %v225_v34 = vld [vmem:[%s1745_s2 + $0x640] sm:$0xff]  ;;  %v227_v35 = vld [vmem:[%s1745_s2 + $0x650] sm:$0xff]  ;;  %v218_v36 = vld [vmem:[%s1745_s2 + $0x608] sm:$0xff] }
  0x20   : > { %311 = vmatprep.subr.mxu0 %v26_v4  ;;  %382 = vmatprep.subr.mxu1 %v28_v5  ;;  %v220_v37 = vld [vmem:[%s1745_s2 + $0x618] sm:$0xff]  ;;  %v217_v38 = vld [vmem:[%s1745_s2 + $0x600] sm:$0xff]  ;;  %v219_v39 = vld [vmem:[%s1745_s2 + $0x610] sm:$0xff] }
  0x21   : > { %312 = vmatpush1.msra.mxu0 %v25_v6  ;;  %383 = vmatpush1.msra.mxu1 %v27_v7  ;;  %v210_v40 = vld [vmem:[%s1745_s2 + $0x5c8] sm:$0xff]  ;;  %v212_v41 = vld [vmem:[%s1745_s2 + $0x5d8] sm:$0xff]  ;;  %v209_v42 = vld [vmem:[%s1745_s2 + $0x5c0] sm:$0xff] }
  0x22   : > { %313 = vmatprep.subr.mxu0 %v274_v8  ;;  %384 = vmatprep.subr.mxu1 %v276_v9  ;;  %v211_v43 = vld [vmem:[%s1745_s2 + $0x5d0] sm:$0xff]  ;;  %v202_v44 = vld [vmem:[%s1745_s2 + $0x588] sm:$0xff]  ;;  %v204_v45 = vld [vmem:[%s1745_s2 + $0x598] sm:$0xff] }
  0x23   : > { %314 = vmatpush2.msra.mxu0 %v273_v10  ;;  %385 = vmatpush2.msra.mxu1 %v275_v11  ;;  %v201_v46 = vld [vmem:[%s1745_s2 + $0x580] sm:$0xff]  ;;  %v203_v47 = vld [vmem:[%s1745_s2 + $0x590] sm:$0xff]  ;;  %v194_v48 = vld [vmem:[%s1745_s2 + $0x548] sm:$0xff] }
  0x24   : > { %315 = vmatprep.subr.mxu0 %v266_v12  ;;  %386 = vmatprep.subr.mxu1 %v268_v13  ;;  %v196_v49 = vld [vmem:[%s1745_s2 + $0x558] sm:$0xff]  ;;  %v193_v50 = vld [vmem:[%s1745_s2 + $0x540] sm:$0xff]  ;;  %v195_v51 = vld [vmem:[%s1745_s2 + $0x550] sm:$0xff] }
  0x25   : > { %316 = vmatpush2.msra.mxu0 %v265_v14  ;;  %387 = vmatpush2.msra.mxu1 %v267_v15  ;;  %v186_v52 = vld [vmem:[%s1745_s2 + $0x508] sm:$0xff]  ;;  %v188_v53 = vld [vmem:[%s1745_s2 + $0x518] sm:$0xff]  ;;  %v185_v54 = vld [vmem:[%s1745_s2 + $0x500] sm:$0xff] }
  0x26   : > { %317 = vmatprep.subr.mxu0 %v258_v16  ;;  %388 = vmatprep.subr.mxu1 %v260_v17  ;;  %v187_v55 = vld [vmem:[%s1745_s2 + $0x510] sm:$0xff]  ;;  %v178_v56 = vld [vmem:[%s1745_s2 + $0x4c8] sm:$0xff]  ;;  %v180_v57 = vld [vmem:[%s1745_s2 + $0x4d8] sm:$0xff] }
  0x27   : > { %318 = vmatpush2.msra.mxu0 %v257_v18  ;;  %389 = vmatpush2.msra.mxu1 %v259_v19  ;;  %v177_v58 = vld [vmem:[%s1745_s2 + $0x4c0] sm:$0xff]  ;;  %v179_v59 = vld [vmem:[%s1745_s2 + $0x4d0] sm:$0xff]  ;;  %v170_v60 = vld [vmem:[%s1745_s2 + $0x488] sm:$0xff] }
  0x28   : > { %319 = vmatprep.subr.mxu0 %v250_v20  ;;  %390 = vmatprep.subr.mxu1 %v252_v21  ;;  %v172_v61 = vld [vmem:[%s1745_s2 + $0x498] sm:$0xff]  ;;  %v169_v62 = vld [vmem:[%s1745_s2 + $0x480] sm:$0xff]  ;;  %v171_v63 = vld [vmem:[%s1745_s2 + $0x490] sm:$0xff] }
  0x29   : > { %320 = vmatpush2.msra.mxu0 %v249_v22  ;;  %391 = vmatpush2.msra.mxu1 %v251_v23  ;;  %v162_v4 = vld [vmem:[%s1745_s2 + $0x448] sm:$0xff]  ;;  %v164_v5 = vld [vmem:[%s1745_s2 + $0x458] sm:$0xff]  ;;  %v161_v6 = vld [vmem:[%s1745_s2 + $0x440] sm:$0xff] }
  0x2a   : > { %321 = vmatprep.subr.mxu0 %v242_v24  ;;  %392 = vmatprep.subr.mxu1 %v244_v25  ;;  %v163_v7 = vld [vmem:[%s1745_s2 + $0x450] sm:$0xff]  ;;  %v154_v8 = vld [vmem:[%s1745_s2 + $0x408] sm:$0xff]  ;;  %v156_v9 = vld [vmem:[%s1745_s2 + $0x418] sm:$0xff] }
  0x2b   : > { %322 = vmatpush2.msra.mxu0 %v241_v26  ;;  %393 = vmatpush2.msra.mxu1 %v243_v27  ;;  %v153_v10 = vld [vmem:[%s1745_s2 + $0x400] sm:$0xff]  ;;  %v155_v11 = vld [vmem:[%s1745_s2 + $0x410] sm:$0xff]  ;;  %v150_v12 = vld [vmem:[%s1745_s2 + $0x3e8] sm:$0xff] }
  0x2c   : > { %323 = vmatprep.subr.mxu0 %v234_v28  ;;  %394 = vmatprep.subr.mxu1 %v236_v29  ;;  %v152_v13 = vld [vmem:[%s1745_s2 + $0x3f8] sm:$0xff]  ;;  %v149_v14 = vld [vmem:[%s1745_s2 + $0x3e0] sm:$0xff]  ;;  %v151_v15 = vld [vmem:[%s1745_s2 + $0x3f0] sm:$0xff] }
  0x2d   : > { %324 = vmatpush2.msra.mxu0 %v233_v30  ;;  %395 = vmatpush2.msra.mxu1 %v235_v31  ;;  %v142_v16 = vld [vmem:[%s1745_s2 + $0x3a8] sm:$0xff]  ;;  %v144_v17 = vld [vmem:[%s1745_s2 + $0x3b8] sm:$0xff]  ;;  %v141_v18 = vld [vmem:[%s1745_s2 + $0x3a0] sm:$0xff] }
  0x2e   : > { %325 = vmatprep.subr.mxu0 %v226_v32  ;;  %396 = vmatprep.subr.mxu1 %v228_v33  ;;  %v143_v19 = vld [vmem:[%s1745_s2 + $0x3b0] sm:$0xff]  ;;  %v134_v20 = vld [vmem:[%s1745_s2 + $0x368] sm:$0xff]  ;;  %v136_v21 = vld [vmem:[%s1745_s2 + $0x378] sm:$0xff] }
  0x2f   : > { %326 = vmatpush2.msra.mxu0 %v225_v34  ;;  %397 = vmatpush2.msra.mxu1 %v227_v35  ;;  %v133_v22 = vld [vmem:[%s1745_s2 + $0x360] sm:$0xff]  ;;  %v135_v23 = vld [vmem:[%s1745_s2 + $0x370] sm:$0xff]  ;;  %v126_v24 = vld [vmem:[%s1745_s2 + $0x328] sm:$0xff] }
  0x30   : > { %327 = vmatprep.subr.mxu0 %v218_v36  ;;  %398 = vmatprep.subr.mxu1 %v220_v37  ;;  %v128_v25 = vld [vmem:[%s1745_s2 + $0x338] sm:$0xff]  ;;  %v125_v26 = vld [vmem:[%s1745_s2 + $0x320] sm:$0xff]  ;;  %v127_v27 = vld [vmem:[%s1745_s2 + $0x330] sm:$0xff] }
  0x31   : > { %328 = vmatpush2.msra.mxu0 %v217_v38  ;;  %399 = vmatpush2.msra.mxu1 %v219_v39  ;;  %v118_v28 = vld [vmem:[%s1745_s2 + $0x2e8] sm:$0xff]  ;;  %v120_v29 = vld [vmem:[%s1745_s2 + $0x2f8] sm:$0xff]  ;;  %v117_v30 = vld [vmem:[%s1745_s2 + $0x2e0] sm:$0xff] }
  0x32   : > { %329 = vmatprep.subr.mxu0 %v210_v40  ;;  %400 = vmatprep.subr.mxu1 %v212_v41  ;;  %v119_v31 = vld [vmem:[%s1745_s2 + $0x2f0] sm:$0xff]  ;;  %v110_v32 = vld [vmem:[%s1745_s2 + $0x2a8] sm:$0xff]  ;;  %v112_v33 = vld [vmem:[%s1745_s2 + $0x2b8] sm:$0xff] }
  0x33   : > { %330 = vmatpush2.msra.mxu0 %v209_v42  ;;  %401 = vmatpush2.msra.mxu1 %v211_v43  ;;  %v109_v34 = vld [vmem:[%s1745_s2 + $0x2a0] sm:$0xff]  ;;  %v111_v35 = vld [vmem:[%s1745_s2 + $0x2b0] sm:$0xff]  ;;  %v102_v36 = vld [vmem:[%s1745_s2 + $0x268] sm:$0xff] }
  0x34   : > { %331 = vmatprep.subr.mxu0 %v202_v44  ;;  %402 = vmatprep.subr.mxu1 %v204_v45  ;;  %v104_v37 = vld [vmem:[%s1745_s2 + $0x278] sm:$0xff]  ;;  %v101_v38 = vld [vmem:[%s1745_s2 + $0x260] sm:$0xff]  ;;  %v103_v39 = vld [vmem:[%s1745_s2 + $0x270] sm:$0xff] }
  0x35   : > { %332 = vmatpush2.msra.mxu0 %v201_v46  ;;  %403 = vmatpush2.msra.mxu1 %v203_v47  ;;  %v94_v40 = vld [vmem:[%s1745_s2 + $0x228] sm:$0xff]  ;;  %v96_v41 = vld [vmem:[%s1745_s2 + $0x238] sm:$0xff]  ;;  %v93_v42 = vld [vmem:[%s1745_s2 + $0x220] sm:$0xff] }
  0x36   : > { %333 = vmatprep.subr.mxu0 %v194_v48  ;;  %404 = vmatprep.subr.mxu1 %v196_v49  ;;  %v95_v43 = vld [vmem:[%s1745_s2 + $0x230] sm:$0xff]  ;;  %v86_v44 = vld [vmem:[%s1745_s2 + $0x1e8] sm:$0xff]  ;;  %v88_v45 = vld [vmem:[%s1745_s2 + $0x1f8] sm:$0xff] }
  0x37   : > { %334 = vmatpush2.msra.mxu0 %v193_v50  ;;  %405 = vmatpush2.msra.mxu1 %v195_v51  ;;  %v85_v46 = vld [vmem:[%s1745_s2 + $0x1e0] sm:$0xff]  ;;  %v87_v47 = vld [vmem:[%s1745_s2 + $0x1f0] sm:$0xff]  ;;  %v78_v48 = vld [vmem:[%s1745_s2 + $0x1a8] sm:$0xff] }
  0x38   : > { %335 = vmatprep.subr.mxu0 %v186_v52  ;;  %406 = vmatprep.subr.mxu1 %v188_v53  ;;  %v80_v49 = vld [vmem:[%s1745_s2 + $0x1b8] sm:$0xff]  ;;  %v77_v50 = vld [vmem:[%s1745_s2 + $0x1a0] sm:$0xff]  ;;  %v79_v51 = vld [vmem:[%s1745_s2 + $0x1b0] sm:$0xff] }
  0x39   : > { %336 = vmatpush2.msra.mxu0 %v185_v54  ;;  %407 = vmatpush2.msra.mxu1 %v187_v55  ;;  %v70_v52 = vld [vmem:[%s1745_s2 + $0x168] sm:$0xff]  ;;  %v72_v53 = vld [vmem:[%s1745_s2 + $0x178] sm:$0xff]  ;;  %v69_v54 = vld [vmem:[%s1745_s2 + $0x160] sm:$0xff] }
  0x3a   : > { %337 = vmatprep.subr.mxu0 %v178_v56  ;;  %408 = vmatprep.subr.mxu1 %v180_v57  ;;  %v71_v55 = vld [vmem:[%s1745_s2 + $0x170] sm:$0xff]  ;;  %v62_v56 = vld [vmem:[%s1745_s2 + $0x128] sm:$0xff]  ;;  %v64_v57 = vld [vmem:[%s1745_s2 + $0x138] sm:$0xff] }
  0x3b   : > { %338 = vmatpush2.msra.mxu0 %v177_v58  ;;  %409 = vmatpush2.msra.mxu1 %v179_v59  ;;  %v61_v58 = vld [vmem:[%s1745_s2 + $0x120] sm:$0xff]  ;;  %v63_v59 = vld [vmem:[%s1745_s2 + $0x130] sm:$0xff] }
  0x3c   : > { %339 = vmatprep.subr.mxu0 %v170_v60  ;;  %410 = vmatprep.subr.mxu1 %v172_v61  ;;  %v54_v60 = vld [vmem:[%s1745_s2 + $0xe8] sm:$0xff]  ;;  %v56_v61 = vld [vmem:[%s1745_s2 + $0xf8] sm:$0xff] }
  0x3d   : > { %340 = vmatpush2.msra.mxu0 %v169_v62  ;;  %411 = vmatpush2.msra.mxu1 %v171_v63  ;;  %v53_v62 = vld [vmem:[%s1745_s2 + $0xe0] sm:$0xff]  ;;  %v55_v63 = vld [vmem:[%s1745_s2 + $0xf0] sm:$0xff] }
  0x3e   : > { %341 = vmatprep.subr.mxu0 %v162_v4  ;;  %412 = vmatprep.subr.mxu1 %v164_v5  ;;  %v46_v4 = vld [vmem:[%s1745_s2 + $0xa8] sm:$0xff]  ;;  %v48_v5 = vld [vmem:[%s1745_s2 + $0xb8] sm:$0xff] }
  0x3f   : > { %342 = vmatpush2.msra.mxu0 %v161_v6  ;;  %413 = vmatpush2.msra.mxu1 %v163_v7  ;;  %v45_v6 = vld [vmem:[%s1745_s2 + $0xa0] sm:$0xff]  ;;  %v47_v7 = vld [vmem:[%s1745_s2 + $0xb0] sm:$0xff] }
  0x40   : > { %343 = vmatprep.subr.mxu0 %v154_v8  ;;  %414 = vmatprep.subr.mxu1 %v156_v9  ;;  %v38_v8 = vld [vmem:[%s1745_s2 + $0x68] sm:$0xff]  ;;  %v40_v9 = vld [vmem:[%s1745_s2 + $0x78] sm:$0xff] }
  0x41   : > { %344 = vmatpush2.msra.mxu0 %v153_v10  ;;  %415 = vmatpush2.msra.mxu1 %v155_v11  ;;  %v37_v10 = vld [vmem:[%s1745_s2 + $0x60] sm:$0xff]  ;;  %v39_v11 = vld [vmem:[%s1745_s2 + $0x70] sm:$0xff] }
  0x42   : > { %346 = vmatmul.mubr.f32.vlgmr.msra.gmra.mxu0 %v867_v3  ;;  %417 = vmatmul.mubr.f32.vlgmr.msra.gmra.mxu1 %v867_v3 }
  0x43   : > { %423 = vmatprep.subr.mxu0 %v150_v12  ;;  %494 = vmatprep.subr.mxu1 %v152_v13  ;;  %v30_v12 = vld [vmem:[%s1745_s2 + $0x28] sm:$0xff]  ;;  %v32_v13 = vld [vmem:[%s1745_s2 + $0x38] sm:$0xff] }
  0x44   : > { %424 = vmatpush1.msra.mxu0 %v149_v14  ;;  %495 = vmatpush1.msra.mxu1 %v151_v15  ;;  %v29_v14 = vld [vmem:[%s1745_s2 + $0x20] sm:$0xff]  ;;  %v31_v15 = vld [vmem:[%s1745_s2 + $0x30] sm:$0xff] }
  0x45   : > { %425 = vmatprep.subr.mxu0 %v142_v16  ;;  %496 = vmatprep.subr.mxu1 %v144_v17  ;;  %v278_v16 = vld [vmem:[%s1745_s2 + $0x7e8] sm:$0xff]  ;;  %v280_v17 = vld [vmem:[%s1745_s2 + $0x7f8] sm:$0xff] }
  0x46   : > { %426 = vmatpush1.msra.mxu0 %v141_v18  ;;  %497 = vmatpush1.msra.mxu1 %v143_v19  ;;  %v277_v18 = vld [vmem:[%s1745_s2 + $0x7e0] sm:$0xff]  ;;  %v279_v19 = vld [vmem:[%s1745_s2 + $0x7f0] sm:$0xff] }
  0x47   : > { %427 = vmatprep.subr.mxu0 %v134_v20  ;;  %498 = vmatprep.subr.mxu1 %v136_v21  ;;  %v270_v20 = vld [vmem:[%s1745_s2 + $0x7a8] sm:$0xff]  ;;  %v272_v21 = vld [vmem:[%s1745_s2 + $0x7b8] sm:$0xff] }
  0x48   : > { %428 = vmatpush1.msra.mxu0 %v133_v22  ;;  %499 = vmatpush1.msra.mxu1 %v135_v23  ;;  %v269_v22 = vld [vmem:[%s1745_s2 + $0x7a0] sm:$0xff]  ;;  %v271_v23 = vld [vmem:[%s1745_s2 + $0x7b0] sm:$0xff] }
  0x49   : > { %429 = vmatprep.subr.mxu0 %v126_v24  ;;  %500 = vmatprep.subr.mxu1 %v128_v25  ;;  %v262_v24 = vld [vmem:[%s1745_s2 + $0x768] sm:$0xff]  ;;  %v264_v25 = vld [vmem:[%s1745_s2 + $0x778] sm:$0xff] }
  0x4a   : > { %430 = vmatpush1.msra.mxu0 %v125_v26  ;;  %501 = vmatpush1.msra.mxu1 %v127_v27  ;;  %v261_v26 = vld [vmem:[%s1745_s2 + $0x760] sm:$0xff]  ;;  %v263_v27 = vld [vmem:[%s1745_s2 + $0x770] sm:$0xff] }
  0x4b   : > { %431 = vmatprep.subr.mxu0 %v118_v28  ;;  %502 = vmatprep.subr.mxu1 %v120_v29  ;;  %v254_v28 = vld [vmem:[%s1745_s2 + $0x728] sm:$0xff]  ;;  %v256_v29 = vld [vmem:[%s1745_s2 + $0x738] sm:$0xff] }
  0x4c   : > { %432 = vmatpush1.msra.mxu0 %v117_v30  ;;  %503 = vmatpush1.msra.mxu1 %v119_v31  ;;  %v253_v30 = vld [vmem:[%s1745_s2 + $0x720] sm:$0xff]  ;;  %v255_v31 = vld [vmem:[%s1745_s2 + $0x730] sm:$0xff] }
  0x4d   : > { %433 = vmatprep.subr.mxu0 %v110_v32  ;;  %504 = vmatprep.subr.mxu1 %v112_v33  ;;  %v246_v32 = vld [vmem:[%s1745_s2 + $0x6e8] sm:$0xff]  ;;  %v248_v33 = vld [vmem:[%s1745_s2 + $0x6f8] sm:$0xff] }
  0x4e   : > { %434 = vmatpush1.msra.mxu0 %v109_v34  ;;  %505 = vmatpush1.msra.mxu1 %v111_v35  ;;  %v245_v34 = vld [vmem:[%s1745_s2 + $0x6e0] sm:$0xff]  ;;  %v247_v35 = vld [vmem:[%s1745_s2 + $0x6f0] sm:$0xff] }
  0x4f   : > { %435 = vmatprep.subr.mxu0 %v102_v36  ;;  %506 = vmatprep.subr.mxu1 %v104_v37  ;;  %v238_v36 = vld [vmem:[%s1745_s2 + $0x6a8] sm:$0xff]  ;;  %v240_v37 = vld [vmem:[%s1745_s2 + $0x6b8] sm:$0xff] }
  0x50   : > { %436 = vmatpush1.msra.mxu0 %v101_v38  ;;  %507 = vmatpush1.msra.mxu1 %v103_v39  ;;  %v237_v38 = vld [vmem:[%s1745_s2 + $0x6a0] sm:$0xff]  ;;  %v239_v39 = vld [vmem:[%s1745_s2 + $0x6b0] sm:$0xff] }
  0x51   : > { %437 = vmatprep.subr.mxu0 %v94_v40  ;;  %508 = vmatprep.subr.mxu1 %v96_v41  ;;  %v230_v40 = vld [vmem:[%s1745_s2 + $0x668] sm:$0xff]  ;;  %v232_v41 = vld [vmem:[%s1745_s2 + $0x678] sm:$0xff] }
  0x52   : > { %438 = vmatpush1.msra.mxu0 %v93_v42  ;;  %509 = vmatpush1.msra.mxu1 %v95_v43  ;;  %v229_v42 = vld [vmem:[%s1745_s2 + $0x660] sm:$0xff]  ;;  %v231_v43 = vld [vmem:[%s1745_s2 + $0x670] sm:$0xff] }
  0x53   : > { %439 = vmatprep.subr.mxu0 %v86_v44  ;;  %510 = vmatprep.subr.mxu1 %v88_v45  ;;  %v222_v44 = vld [vmem:[%s1745_s2 + $0x628] sm:$0xff]  ;;  %v224_v45 = vld [vmem:[%s1745_s2 + $0x638] sm:$0xff] }
  0x54   : > { %440 = vmatpush1.msra.mxu0 %v85_v46  ;;  %511 = vmatpush1.msra.mxu1 %v87_v47  ;;  %v221_v46 = vld [vmem:[%s1745_s2 + $0x620] sm:$0xff]  ;;  %v223_v47 = vld [vmem:[%s1745_s2 + $0x630] sm:$0xff] }
  0x55   : > { %441 = vmatprep.subr.mxu0 %v78_v48  ;;  %512 = vmatprep.subr.mxu1 %v80_v49  ;;  %v214_v48 = vld [vmem:[%s1745_s2 + $0x5e8] sm:$0xff]  ;;  %v216_v49 = vld [vmem:[%s1745_s2 + $0x5f8] sm:$0xff] }
  0x56   : > { %442 = vmatpush1.msra.mxu0 %v77_v50  ;;  %513 = vmatpush1.msra.mxu1 %v79_v51  ;;  %v213_v50 = vld [vmem:[%s1745_s2 + $0x5e0] sm:$0xff]  ;;  %v215_v51 = vld [vmem:[%s1745_s2 + $0x5f0] sm:$0xff] }
  0x57   : > { %443 = vmatprep.subr.mxu0 %v70_v52  ;;  %514 = vmatprep.subr.mxu1 %v72_v53  ;;  %v206_v52 = vld [vmem:[%s1745_s2 + $0x5a8] sm:$0xff]  ;;  %v208_v53 = vld [vmem:[%s1745_s2 + $0x5b8] sm:$0xff] }
  0x58   : > { %444 = vmatpush1.msra.mxu0 %v69_v54  ;;  %515 = vmatpush1.msra.mxu1 %v71_v55  ;;  %v205_v54 = vld [vmem:[%s1745_s2 + $0x5a0] sm:$0xff]  ;;  %v207_v55 = vld [vmem:[%s1745_s2 + $0x5b0] sm:$0xff] }
  0x59   : > { %445 = vmatprep.subr.mxu0 %v62_v56  ;;  %516 = vmatprep.subr.mxu1 %v64_v57  ;;  %v198_v56 = vld [vmem:[%s1745_s2 + $0x568] sm:$0xff]  ;;  %v200_v57 = vld [vmem:[%s1745_s2 + $0x578] sm:$0xff] }
  0x5a   : > { %446 = vmatpush1.msra.mxu0 %v61_v58  ;;  %517 = vmatpush1.msra.mxu1 %v63_v59  ;;  %v197_v58 = vld [vmem:[%s1745_s2 + $0x560] sm:$0xff]  ;;  %v199_v59 = vld [vmem:[%s1745_s2 + $0x570] sm:$0xff] }
  0x5b   : > { %447 = vmatprep.subr.mxu0 %v54_v60  ;;  %518 = vmatprep.subr.mxu1 %v56_v61  ;;  %v190_v60 = vld [vmem:[%s1745_s2 + $0x528] sm:$0xff]  ;;  %v192_v61 = vld [vmem:[%s1745_s2 + $0x538] sm:$0xff] }
  0x5c   : > { %448 = vmatpush1.msra.mxu0 %v53_v62  ;;  %519 = vmatpush1.msra.mxu1 %v55_v63  ;;  %v189_v62 = vld [vmem:[%s1745_s2 + $0x520] sm:$0xff]  ;;  %v191_v63 = vld [vmem:[%s1745_s2 + $0x530] sm:$0xff] }
  0x5d   : > { %449 = vmatprep.subr.mxu0 %v46_v4  ;;  %520 = vmatprep.subr.mxu1 %v48_v5  ;;  %v182_v4 = vld [vmem:[%s1745_s2 + $0x4e8] sm:$0xff]  ;;  %v184_v5 = vld [vmem:[%s1745_s2 + $0x4f8] sm:$0xff] }
  0x5e   : > { %450 = vmatpush1.msra.mxu0 %v45_v6  ;;  %521 = vmatpush1.msra.mxu1 %v47_v7  ;;  %v181_v6 = vld [vmem:[%s1745_s2 + $0x4e0] sm:$0xff]  ;;  %v183_v7 = vld [vmem:[%s1745_s2 + $0x4f0] sm:$0xff] }
  0x5f   : > { %451 = vmatprep.subr.mxu0 %v38_v8  ;;  %522 = vmatprep.subr.mxu1 %v40_v9  ;;  %v174_v8 = vld [vmem:[%s1745_s2 + $0x4a8] sm:$0xff]  ;;  %v176_v9 = vld [vmem:[%s1745_s2 + $0x4b8] sm:$0xff] }
  0x60   : > { %452 = vmatpush1.msra.mxu0 %v37_v10  ;;  %523 = vmatpush1.msra.mxu1 %v39_v11  ;;  %v173_v10 = vld [vmem:[%s1745_s2 + $0x4a0] sm:$0xff]  ;;  %v175_v11 = vld [vmem:[%s1745_s2 + $0x4b0] sm:$0xff] }
  0x61   : > { %453 = vmatprep.subr.mxu0 %v30_v12  ;;  %524 = vmatprep.subr.mxu1 %v32_v13  ;;  %v166_v12 = vld [vmem:[%s1745_s2 + $0x468] sm:$0xff]  ;;  %v168_v13 = vld [vmem:[%s1745_s2 + $0x478] sm:$0xff] }
  0x62   : > { %454 = vmatpush1.msra.mxu0 %v29_v14  ;;  %525 = vmatpush1.msra.mxu1 %v31_v15  ;;  %v165_v14 = vld [vmem:[%s1745_s2 + $0x460] sm:$0xff]  ;;  %v167_v15 = vld [vmem:[%s1745_s2 + $0x470] sm:$0xff] }
  0x63   : > { %455 = vmatprep.subr.mxu0 %v278_v16  ;;  %526 = vmatprep.subr.mxu1 %v280_v17  ;;  %v683_v16 = vld [vmem:[%s682_s15] sm:$0x3]  ;;  %v158_v17 = vld [vmem:[%s1745_s2 + $0x428] sm:$0xff]  ;;  %s744_s15 = sshll.u32 %s871_s12, 3  ;;  %s19_s12 = sadd.s32 1, %s871_s12  }
  0x64   : > { %456 = vmatpush2.msra.mxu0 %v277_v18  ;;  %527 = vmatpush2.msra.mxu1 %v279_v19  ;;  %v160_v18 = vld [vmem:[%s1745_s2 + $0x438] sm:$0xff]  ;;  %v157_v19 = vld [vmem:[%s1745_s2 + $0x420] sm:$0xff]  ;;  %vm684_vm0 = vcmp.gt.f32.partialorder %v683_v16, 0.0  ;;  %s566_s18 = scalar_lea.vmem %s1743_s0, %s744_s15  ;;  %p16_p0 = scmp.ge.s32.totalorder %s19_s12, 16  }
  0x65   : > { %457 = vmatprep.subr.mxu0 %v270_v20  ;;  %528 = vmatprep.subr.mxu1 %v272_v21  ;;  %v159_v20 = vld [vmem:[%s1745_s2 + $0x430] sm:$0xff]  ;;  %v687_v21 = vld [vmem:[%s686_s9] sm:$0x3] }
  0x66   : > { %458 = vmatpush2.msra.mxu0 %v269_v22  ;;  %529 = vmatpush2.msra.mxu1 %v271_v23  ;;  %v873_v22 = vmov 0   ;;  %vm688_vm1 = vcmp.gt.f32.partialorder %v687_v21, 0.0 }
  0x67   : > { %459 = vmatprep.subr.mxu0 %v262_v24  ;;  %530 = vmatprep.subr.mxu1 %v264_v25  ;;  %v689_v23 = vsel %vm684_vm0, 1, %v873_v22  ;;  %v698_v24 = vsel %vm688_vm1, 1, %v873_v22  ;;  %v874_v25 = vmov 1983009808  }
  0x68   : > { %460 = vmatpush2.msra.mxu0 %v261_v26  ;;  %531 = vmatpush2.msra.mxu1 %v263_v27  ;;  %v576_v26 = vunpack.c.l.s4 %v874_v25  ;;  %v578_v27 = vlaneseq }
  0x69   : > { %461 = vmatprep.subr.mxu0 %v254_v28  ;;  %532 = vmatprep.subr.mxu1 %v256_v29 }
  0x6a   : > { %462 = vmatpush2.msra.mxu0 %v253_v30  ;;  %533 = vmatpush2.msra.mxu1 %v255_v31  ;;  %v577_v28 = vunpack.c.0.s8 %v576_v26  ;;  %v579_v29 = vshrl.u32 %v578_v27, 7 }
  0x6b   : > { %463 = vmatprep.subr.mxu0 %v246_v32  ;;  %534 = vmatprep.subr.mxu1 %v248_v33 }
  0x6c   : > { %464 = vmatpush2.msra.mxu0 %v245_v34  ;;  %535 = vmatpush2.msra.mxu1 %v247_v35  ;;  %v580_v32 = vsub.s32 %v577_v28, %v579_v29  ;;  %v567_v35 = vld [vmem:[%s566_s18] sm:$0xf] }
  0x6d   : > { %465 = vmatprep.subr.mxu0 %v238_v36  ;;  %536 = vmatprep.subr.mxu1 %v240_v37 }
  0x6e   : > { %466 = vmatpush2.msra.mxu0 %v237_v38  ;;  %537 = vmatpush2.msra.mxu1 %v239_v39  ;;  %v568_v39 = vunpack.c.l.bf16 %v567_v35 }
  0x6f   : > { %467 = vmatprep.subr.mxu0 %v230_v40  ;;  %538 = vmatprep.subr.mxu1 %v232_v41 }
  0x70   : > { %468 = vmatpush2.msra.mxu0 %v229_v42  ;;  %539 = vmatpush2.msra.mxu1 %v231_v43 }
  0x71   : > { %469 = vmatprep.subr.mxu0 %v222_v44  ;;  %540 = vmatprep.subr.mxu1 %v224_v45 }
  0x72   : > { %470 = vmatpush2.msra.mxu0 %v221_v46  ;;  %541 = vmatpush2.msra.mxu1 %v223_v47 }
  0x73   : > { %471 = vmatprep.subr.mxu0 %v214_v48  ;;  %542 = vmatprep.subr.mxu1 %v216_v49 }
  0x74   : > { %472 = vmatpush2.msra.mxu0 %v213_v50  ;;  %543 = vmatpush2.msra.mxu1 %v215_v51 }
  0x75   : > { %473 = vmatprep.subr.mxu0 %v206_v52  ;;  %544 = vmatprep.subr.mxu1 %v208_v53 }
  0x76   : > { %474 = vmatpush2.msra.mxu0 %v205_v54  ;;  %545 = vmatpush2.msra.mxu1 %v207_v55 }
  0x77   : > { %475 = vmatprep.subr.mxu0 %v198_v56  ;;  %546 = vmatprep.subr.mxu1 %v200_v57 }
  0x78   : > { %476 = vmatpush2.msra.mxu0 %v197_v58  ;;  %547 = vmatpush2.msra.mxu1 %v199_v59 }
  0x79   : > { %477 = vmatprep.subr.mxu0 %v190_v60  ;;  %548 = vmatprep.subr.mxu1 %v192_v61 }
  0x7a   : > { %478 = vmatpush2.msra.mxu0 %v189_v62  ;;  %549 = vmatpush2.msra.mxu1 %v191_v63 }
  0x7b   : > { %479 = vmatprep.subr.mxu0 %v182_v4  ;;  %550 = vmatprep.subr.mxu1 %v184_v5 }
  0x7c   : > { %480 = vmatpush2.msra.mxu0 %v181_v6  ;;  %551 = vmatpush2.msra.mxu1 %v183_v7 }
  0x7d   : > { %481 = vmatprep.subr.mxu0 %v174_v8  ;;  %552 = vmatprep.subr.mxu1 %v176_v9  ;;  %v594_v8 = vld [vmem:[%s593_s26 + $0x4] sm:$0xf] }
  0x7e   : > { %482 = vmatpush2.msra.mxu0 %v173_v10  ;;  %553 = vmatpush2.msra.mxu1 %v175_v11 }
  0x7f   : > { %483 = vmatprep.subr.mxu0 %v166_v12  ;;  %554 = vmatprep.subr.mxu1 %v168_v13 }
  0x80   : > { %484 = vmatpush2.msra.mxu0 %v165_v14  ;;  %555 = vmatpush2.msra.mxu1 %v167_v15  ;;  %v595_v14 = vunpack.c.l.bf16 %v594_v8 }
  0x81   : > { %485 = vmatprep.subr.mxu0 %v158_v17  ;;  %556 = vmatprep.subr.mxu1 %v160_v18 }
  0x82   : > { %486 = vmatpush2.msra.mxu0 %v157_v19  ;;  %487 = vmatprep.mubr.f32.mxu0 %v859_v1 }
  0x83   : > { %557 = vmatpush2.msra.mxu1 %v159_v20  ;;  %558 = vmatprep.mubr.f32.mxu1 %v859_v1 }
  0x84   : > { %488 = vmatmul.mubr.f32.vlgmr.msra.gmra.mxu0 %v867_v3  ;;  %559 = vmatmul.mubr.f32.vlgmr.msra.gmra.mxu1 %v867_v3 }
  0x85   : > { %800 = vset.pattern.permute.xlu0 %v873_v22 }
  0x86   : > { %691 = vperm.xlu0 %800, %v689_v23  }
  0x8a   : > { %700 = vperm.xlu0 %800, %v698_v24  }
 0x101   : > { %v692_v56 = vpop.permute.xlu0 %691 }
 0x102   : > { %v347_v30 = vpop.f32.mrf.mxu0  ;;  %v418_v31 = vpop.f32.mrf.mxu1  ;;  %vm693_vm2 = vcmp.eq.s32.totalorder %v692_v56, 1 }
 0x104   : > { %v349_v33 = vpop.f32.mrf.mxu0  ;;  %v420_v34 = vpop.f32.mrf.mxu1 }
 0x105   : > { %v573_v36 = vcombine.low %v347_v30, %v349_v33  ;;  %v574_v37 = vcombine.low %v418_v31, %v420_v34  ;;  %v701_v31 = vpop.permute.xlu0 %700 }
 0x106   : > { %vm702_vm3 = vcmp.eq.s32.totalorder %v701_v31, 1 }
 0x107   : > { %v581_v38 = vrot.slane %v573_v36, %v580_v32  ;;  %v588_v40 = vrot.slane %v574_v37, %v580_v32 }
 0x109   : > { %v589_v41 = vcombine.low %v581_v38, %v588_v40 }
 0x10b   : > { %v591_v42 = vadd.f32 %v589_v41, %v568_v39 }
 0x10d   : > { %v746_v43 = vmul.f32 -1.442695, %v591_v42  ;;  %v626_v44 = vrot.slane %v591_v42, 2  ;;  %v637_v46 = vrot.slane %v591_v42, 6  ;;  %v634_v49 = vrot.slane %v591_v42, 4 }
 0x10f   : > { %801 = vpow2.f32 %v746_v43  ;;  %v747_v45 = vmul.f32 -1.442695, %v626_v44  ;;  %v748_v47 = vmul.f32 -1.442695, %v637_v46 }
 0x111   : > { %803 = vpow2.f32 %v747_v45 }
 0x112   : > { %805 = vpow2.f32 %v748_v47 }
 0x11c   : > { %v802_v48 = vpop.eup %801 }
 0x11d   : > { %v622_v50 = vadd.f32 1.0, %v802_v48 }
 0x11e   : > { %v804_v51 = vpop.eup %803 }
 0x11f   : > { %807 = vrcp.f32 %v622_v50  ;;  %v631_v52 = vadd.f32 1.0, %v804_v51  ;;  %v806_v53 = vpop.eup %805 }
 0x120   : > { %809 = vtanh.f32 %v634_v49  ;;  %v642_v58 = vadd.f32 1.0, %v806_v53 }
 0x121   : > { %811 = vrcp.f32 %v631_v52 }
 0x122   : > { %813 = vrcp.f32 %v642_v58 }
 0x12c   : > { %v808_v54 = vpop.eup %807 }
 0x12d   : > { %v810_v55 = vpop.eup %809 }
 0x12e   : > { %v812_v57 = vpop.eup %811  ;;  %v646_v60 = vmul.f32 %v810_v55, %v808_v54 }
 0x12f   : > { %v645_v59 = vmul.f32 %v863_v2, %v812_v57  ;;  %v814_v62 = vpop.eup %813 }
 0x131   : > { %v647_v61 = vadd.f32 %v646_v60, %v645_v59 }
 0x133   : > { %815 = vtanh.f32 %v647_v61  ;;  %v1713_v2 = vsel %vm693_vm2, %v647_v61, %v863_v2  }
 0x140   : > { %v816_v63 = vpop.eup %815 }
 0x141   : > { %v649_v4 = vmul.f32 %v816_v63, %v814_v62 }
 0x143   : > { %v694_v5 = vsel %vm693_vm2, %v649_v4, 0.0  ;;  %v707_v3 = vsel %vm693_vm2, %v649_v4, %v867_v3  }
 0x144   : > { %697 = vst [vmem:[%s696_s23] sm:$0x3] %v694_v5  ;;  %v489_v6 = vpop.f32.mrf.mxu0  ;;  %v560_v7 = vpop.f32.mrf.mxu1 }
 0x146   : > { %v491_v9 = vpop.f32.mrf.mxu0  ;;  %v562_v10 = vpop.f32.mrf.mxu1 }
 0x147   : > { %v600_v11 = vcombine.low %v489_v6, %v491_v9  ;;  %v601_v12 = vcombine.low %v560_v7, %v562_v10 }
 0x149   : > { %v608_v13 = vrot.slane %v600_v11, %v580_v32  ;;  %v615_v15 = vrot.slane %v601_v12, %v580_v32 }
 0x14b   : > { %v616_v16 = vcombine.low %v608_v13, %v615_v15 }
 0x14d   : > { %v618_v17 = vadd.f32 %v616_v16, %v595_v14 }
 0x14f   : > { %v749_v18 = vmul.f32 -1.442695, %v618_v17  ;;  %v657_v19 = vrot.slane %v618_v17, 2  ;;  %v668_v21 = vrot.slane %v618_v17, 6  ;;  %v665_v24 = vrot.slane %v618_v17, 4 }
 0x151   : > { %817 = vpow2.f32 %v749_v18  ;;  %v750_v20 = vmul.f32 -1.442695, %v657_v19  ;;  %v751_v22 = vmul.f32 -1.442695, %v668_v21 }
 0x153   : > { %819 = vpow2.f32 %v750_v20 }
 0x154   : > { %821 = vpow2.f32 %v751_v22 }
 0x15e   : > { %v818_v23 = vpop.eup %817 }
 0x15f   : > { %v653_v25 = vadd.f32 1.0, %v818_v23 }
 0x160   : > { %v820_v26 = vpop.eup %819 }
 0x161   : > { %823 = vrcp.f32 %v653_v25  ;;  %v662_v27 = vadd.f32 1.0, %v820_v26  ;;  %v822_v28 = vpop.eup %821 }
 0x162   : > { %825 = vtanh.f32 %v665_v24  ;;  %v673_v33 = vadd.f32 1.0, %v822_v28 }
 0x163   : > { %827 = vrcp.f32 %v662_v27 }
 0x164   : > { %829 = vrcp.f32 %v673_v33 }
 0x16e   : > { %v824_v29 = vpop.eup %823 }
 0x16f   : > { %v826_v30 = vpop.eup %825 }
 0x170   : > { %v828_v32 = vpop.eup %827  ;;  %v677_v35 = vmul.f32 %v826_v30, %v824_v29 }
 0x171   : > { %v676_v34 = vmul.f32 %v855_v0, %v828_v32  ;;  %v830_v37 = vpop.eup %829 }
 0x173   : > { %v678_v36 = vadd.f32 %v677_v35, %v676_v34 }
 0x175   : > { %831 = vtanh.f32 %v678_v36  ;;  %v710_v0 = vsel %vm702_vm3, %v678_v36, %v855_v0  }
 0x182   : > { %v832_v38 = vpop.eup %831  ;;  %18 = sbr.rel (!%p16_p0) target bundleno = 1 (0x1), region = 45 }
 0x183   : > { %v680_v39 = vmul.f32 %v832_v38, %v830_v37 }
 0x185   : > { %v703_v40 = vsel %vm702_vm3, %v680_v39, 0.0  ;;  %v709_v1 = vsel %vm702_vm3, %v680_v39, %v859_v1  }
 0x186   : > { %706 = vst [vmem:[%s705_s4 + $0x2] sm:$0x3] %v703_v40 }

// kernel: bidaf_forward.21
= control target key start
LH: loop header
LB: loop body
LE: loop exit
PB: predicated region body
PF: predicated region fallthrough
CT: control target
= control target key end

     0   :  { %v34_v0 = vlaneseq  ;;  %v757_v4 = vmov 1983009808   ;;  %v758_v6 = vmov 0   ;;  %vm396_vm2 = vcmask 123904   ;;  %s1015_s0 = inlined_call_operand.vmem [shape: f32[2,16,1024], index: 0, kind: input, shape index: {}]   ;;  %s1016_s4 = inlined_call_operand.vmem [shape: f32[2,1536], index: 4, kind: input, shape index: {}]   ;;  %s1017_s1 = inlined_call_operand.vmem [shape: f32[2,16,256], index: 1, kind: input, shape index: {}]   ;;  %s1018_s2 = inlined_call_operand.vmem [shape: f32[2,16,256], index: 2, kind: input, shape index: {}]   ;;  %s1019_s5 = inlined_call_operand.vmem [shape: f32[2,1], index: 5, kind: input, shape index: {}]   ;;  %s1020_s3 = inlined_call_operand.vmem [shape: f32[2,1,16], index: 3, kind: input, shape index: {}]   ;;  %s1021_s6 = inlined_call_operand.vmem [shape: f32[2,2,16], index: 6, kind: output, shape index: {}]  }
   0x1   :  { %v107_v1 = vld [vmem:[%s1015_s0 + $0x8] sm:$0xff]  ;;  %v106_v3 = vld [vmem:[%s1015_s0] sm:$0xff]  ;;  %v32_v5 = vunpack.c.l.s4 %v757_v4  ;;  %745 = vset.pattern.permute.xlu0 %v758_v6  ;;  %v109_v9 = vld [vmem:[%s1015_s0 + $0x18] sm:$0xff] }
   0x2   :  { %v115_v2 = vld [vmem:[%s1015_s0 + $0x48] sm:$0xff]  ;;  %v114_v8 = vld [vmem:[%s1015_s0 + $0x40] sm:$0xff]  ;;  %v117_v10 = vld [vmem:[%s1015_s0 + $0x58] sm:$0xff]  ;;  %v813_v11 = vshrl.u32 %v34_v0, 7 }
   0x3   :  { %v131_v7 = vpack.c.bf16 %v115_v2, %v107_v1  ;;  %v130_v12 = vpack.c.bf16 %v114_v8, %v106_v3  ;;  %v133_v13 = vpack.c.bf16 %v117_v10, %v109_v9  ;;  %v108_v14 = vld [vmem:[%s1015_s0 + $0x10] sm:$0xff]  ;;  %v24_v16 = vld [vmem:[%s1016_s4] sm:$0xff]  ;;  %v33_v17 = vunpack.c.0.s8 %v32_v5  ;;  %v111_v20 = vld [vmem:[%s1015_s0 + $0x28] sm:$0xff] }
   0x4   :  { %v116_v15 = vld [vmem:[%s1015_s0 + $0x50] sm:$0xff]  ;;  %v30_v19 = vcombine.high %v24_v16, %v24_v16  ;;  %v119_v21 = vld [vmem:[%s1015_s0 + $0x68] sm:$0xff]  ;;  %v113_v24 = vld [vmem:[%s1015_s0 + $0x38] sm:$0xff] }
   0x5   :  { %161 = vmatprep.subr.bf16.mxu0 %v131_v7  ;;  %v132_v18 = vpack.c.bf16 %v116_v15, %v108_v14  ;;  %201 = vmatprep.subr.bf16.mxu1 %v133_v13  ;;  %v36_v22 = vsub.s32 %v33_v17, %v813_v11  ;;  %v135_v23 = vpack.c.bf16 %v119_v21, %v111_v20  ;;  %v121_v25 = vld [vmem:[%s1015_s0 + $0x78] sm:$0xff]  ;;  %v25_v27 = vld [vmem:[%s1016_s4 + $0x8] sm:$0xff]  ;;  %v110_v30 = vld [vmem:[%s1015_s0 + $0x20] sm:$0xff] }
   0x6   :  { %162 = vmatpush1.bf16.xpose.msra.mxu0 %v130_v12  ;;  %v137_v26 = vpack.c.bf16 %v121_v25, %v113_v24  ;;  %v118_v32 = vld [vmem:[%s1015_s0 + $0x60] sm:$0xff]  ;;  %v112_v33 = vld [vmem:[%s1015_s0 + $0x30] sm:$0xff]  ;;  %v47_v35 = vcombine.high %v25_v27, %v25_v27  ;;  %v123_v38 = vld [vmem:[%s1017_s1 + $0x8] sm:$0xff] }
   0x7   :  { %202 = vmatpush1.bf16.xpose.msra.mxu1 %v132_v18  ;;  %v37_v28 = vrot.slane %v24_v16, %v36_v22  ;;  %v44_v29 = vrot.slane %v30_v19, %v36_v22  ;;  %241 = vmatprep.subr.bf16.mxu0 %v135_v23  ;;  %v54_v31 = vrot.slane %v25_v27, %v36_v22  ;;  %v120_v34 = vld [vmem:[%s1015_s0 + $0x70] sm:$0xff]  ;;  %v125_v39 = vld [vmem:[%s1017_s1 + $0x18] sm:$0xff]  ;;  %v127_v44 = vld [vmem:[%s1018_s2 + $0x8] sm:$0xff] }
   0x8   :  { %281 = vmatprep.subr.bf16.mxu1 %v137_v26  ;;  %v61_v43 = vrot.slane %v47_v35, %v36_v22  ;;  %v129_v45 = vld [vmem:[%s1018_s2 + $0x18] sm:$0xff]  ;;  %v26_v46 = vld [vmem:[%s1016_s4 + $0x10] sm:$0xff]  ;;  %v134_v49 = vpack.c.bf16 %v118_v32, %v110_v30  ;;  %v136_v50 = vpack.c.bf16 %v120_v34, %v112_v33  ;;  %v139_v54 = vpack.c.bf16 %v125_v39, %v123_v38  ;;  %v122_v58 = vld [vmem:[%s1017_s1] sm:$0xff] }
   0x9   :  { %v45_v36 = vcombine.high %v37_v28, %v37_v28  ;;  %v46_v37 = vcombine.high %v44_v29, %v44_v29  ;;  %v858_v40 = vpack.c.bf16 %v37_v28, %v37_v28  ;;  %v860_v41 = vpack.c.bf16 %v44_v29, %v44_v29  ;;  %v124_v60 = vld [vmem:[%s1017_s1 + $0x10] sm:$0xff]  ;;  %v126_v61 = vld [vmem:[%s1018_s2] sm:$0xff]  ;;  %v718_v1 = vld [vmem:[%s1015_s0 + $0x88] sm:$0xff] }
   0xa   :  { %v62_v42 = vcombine.high %v54_v31, %v54_v31  ;;  %v63_v52 = vcombine.high %v61_v43, %v61_v43  ;;  %v71_v53 = vrot.slane %v26_v46, %v36_v22  ;;  %v141_v55 = vpack.c.bf16 %v129_v45, %v127_v44  ;;  %v128_v62 = vld [vmem:[%s1018_s2 + $0x10] sm:$0xff]  ;;  %v726_v2 = vld [vmem:[%s1015_s0 + $0xc8] sm:$0xff]  ;;  %v720_v5 = vld [vmem:[%s1015_s0 + $0x98] sm:$0xff] }
   0xb   :  { %v871_v47 = vpack.c.bf16 %v45_v36, %v45_v36  ;;  %v873_v48 = vpack.c.bf16 %v46_v37, %v46_v37  ;;  %v64_v56 = vcombine.high %v26_v46, %v26_v46  ;;  %v903_v3 = vpack.c.bf16 %v54_v31, %v54_v31  ;;  %v728_v7 = vld [vmem:[%s1015_s0 + $0xd8] sm:$0xff]  ;;  %v105_v8 = vld [vmem:[%s1019_s5] sm:$0x3]  ;;  %v719_v18 = vld [vmem:[%s1015_s0 + $0x90] sm:$0xff] }
   0xc   :  { %v875_v51 = vpack.c.bf16 %v62_v42, %v62_v42  ;;  %v881_v57 = vpack.c.bf16 %v63_v52, %v63_v52  ;;  %v79_v63 = vcombine.high %v71_v53, %v71_v53  ;;  %v905_v4 = vpack.c.bf16 %v61_v43, %v61_v43  ;;  %144 = vperm.xlu0 %745, %v105_v8   ;;  %v717_v16 = vld [vmem:[%s1015_s0 + $0x80] sm:$0xff]  ;;  %v727_v19 = vld [vmem:[%s1015_s0 + $0xd0] sm:$0xff]  ;;  %v722_v20 = vld [vmem:[%s1015_s0 + $0xa8] sm:$0xff] }
   0xd   :  { %179 = vmatprep.mubr.bf16.mxu0 %v871_v47  ;;  %219 = vmatprep.mubr.bf16.mxu1 %v873_v48  ;;  %v78_v59 = vrot.slane %v64_v56, %v36_v22  ;;  %v138_v9 = vpack.c.bf16 %v124_v60, %v122_v58  ;;  %v140_v10 = vpack.c.bf16 %v128_v62, %v126_v61  ;;  %v725_v17 = vld [vmem:[%s1015_s0 + $0xc0] sm:$0xff]  ;;  %v730_v23 = vld [vmem:[%s1015_s0 + $0xe8] sm:$0xff]  ;;  %v724_v24 = vld [vmem:[%s1015_s0 + $0xb8] sm:$0xff] }
   0xe   :  { %180 = vmatmul.mubr.bf16.vlgmr.msra.gmra.mxu0 %v858_v40  ;;  %220 = vmatmul.mubr.bf16.vlgmr.msra.gmra.mxu1 %v860_v41  ;;  %v916_v12 = vpack.c.bf16 %v79_v63, %v79_v63  ;;  %v438_v14 = vpack.c.bf16 %v726_v2, %v718_v1  ;;  %v440_v15 = vpack.c.bf16 %v728_v7, %v720_v5  ;;  %v732_v25 = vld [vmem:[%s1015_s0 + $0xf8] sm:$0xff]  ;;  %v721_v30 = vld [vmem:[%s1015_s0 + $0xa0] sm:$0xff]  ;;  %v723_v32 = vld [vmem:[%s1015_s0 + $0xb0] sm:$0xff] }
   0xf   :  { %242 = vmatpush1.bf16.xpose.msra.mxu0 %v134_v49  ;;  %282 = vmatpush1.bf16.xpose.msra.mxu1 %v136_v50  ;;  %v80_v0 = vcombine.high %v78_v59, %v78_v59  ;;  %v101_v21 = vpack.c.bf16 %v71_v53, %v71_v53  ;;  %v103_v22 = vpack.c.bf16 %v78_v59, %v78_v59  ;;  %v729_v31 = vld [vmem:[%s1015_s0 + $0xe0] sm:$0xff]  ;;  %v731_v33 = vld [vmem:[%s1015_s0 + $0xf0] sm:$0xff]  ;;  %v734_v34 = vld [vmem:[%s1017_s1 + $0x28] sm:$0xff] }
  0x10   :  { %259 = vmatprep.mubr.bf16.mxu0 %v875_v51  ;;  %299 = vmatprep.mubr.bf16.mxu1 %v881_v57  ;;  %v437_v26 = vpack.c.bf16 %v725_v17, %v717_v16  ;;  %v439_v27 = vpack.c.bf16 %v727_v19, %v719_v18  ;;  %v442_v28 = vpack.c.bf16 %v730_v23, %v722_v20  ;;  %v736_v35 = vld [vmem:[%s1017_s1 + $0x38] sm:$0xff]  ;;  %v738_v36 = vld [vmem:[%s1018_s2 + $0x28] sm:$0xff]  ;;  %v733_v44 = vld [vmem:[%s1017_s1 + $0x20] sm:$0xff] }
  0x11   :  { %321 = vmatprep.subr.bf16.mxu0 %v139_v54  ;;  %361 = vmatprep.subr.bf16.mxu1 %v141_v55  ;;  %v918_v13 = vpack.c.bf16 %v80_v0, %v80_v0  ;;  %v444_v29 = vpack.c.bf16 %v732_v25, %v724_v24  ;;  %v740_v37 = vld [vmem:[%s1018_s2 + $0x38] sm:$0xff]  ;;  %v441_v38 = vpack.c.bf16 %v729_v31, %v721_v30  ;;  %v735_v45 = vld [vmem:[%s1017_s1 + $0x30] sm:$0xff]  ;;  %v387_v56 = vld [vmem:[%s1020_s3] sm:$0x1]  ;;  %v392_v0 = vsub.s32 0, %v813_v11 }
  0x12   :  { %v443_v39 = vpack.c.bf16 %v731_v33, %v723_v32  ;;  %v446_v42 = vpack.c.bf16 %v736_v35, %v734_v34  ;;  %v448_v43 = vpack.c.bf16 %v740_v37, %v738_v36  ;;  %v445_v46 = vpack.c.bf16 %v735_v45, %v733_v44 }
  0x13   :  { %vm388_vm0 = vcmp.gt.f32.partialorder %v387_v56, 0.0 }
  0x14   :  { %v389_v2 = vsel %vm388_vm0, 1, %v758_v6 }
  0x15   :  { %v393_v8 = vrot.slane %v389_v2, %v392_v0 }
  0x16   :  { %260 = vmatmul.mubr.bf16.vlgmr.msra.gmra.mxu0 %v903_v3  ;;  %300 = vmatmul.mubr.bf16.vlgmr.msra.gmra.mxu1 %v905_v4 }
  0x17   :  { %322 = vmatpush1.bf16.xpose.msra.mxu0 %v138_v9  ;;  %362 = vmatpush1.bf16.xpose.msra.mxu1 %v140_v10  ;;  %vm394_vm1 = vcmp.eq.s32.totalorder %v393_v8, 1 }
  0x18   :  { %339 = vmatprep.mubr.bf16.mxu0 %v916_v12  ;;  %379 = vmatprep.mubr.bf16.mxu1 %v918_v13 }
  0x19   :  { %463 = vmatprep.subr.bf16.mxu0 %v438_v14  ;;  %503 = vmatprep.subr.bf16.mxu1 %v440_v15 }
  0x1e   :  { %340 = vmatmul.mubr.bf16.vlgmr.msra.gmra.mxu0 %v101_v21  ;;  %380 = vmatmul.mubr.bf16.vlgmr.msra.gmra.mxu1 %v103_v22 }
  0x1f   :  { %464 = vmatpush1.bf16.xpose.msra.mxu0 %v437_v26  ;;  %504 = vmatpush1.bf16.xpose.msra.mxu1 %v439_v27 }
  0x20   :  { %481 = vmatprep.mubr.bf16.mxu0 %v871_v47  ;;  %521 = vmatprep.mubr.bf16.mxu1 %v873_v48 }
  0x21   :  { %543 = vmatprep.subr.bf16.mxu0 %v442_v28  ;;  %583 = vmatprep.subr.bf16.mxu1 %v444_v29  ;;  %v741_v29 = vld [vmem:[%s1020_s3 + $0x1] sm:$0x1] }
  0x22   :  { %vm691_vm3 = vcmp.gt.f32.partialorder %v741_v29, 0.0 }
  0x26   :  { %482 = vmatmul.mubr.bf16.vlgmr.msra.gmra.mxu0 %v858_v40  ;;  %522 = vmatmul.mubr.bf16.vlgmr.msra.gmra.mxu1 %v860_v41  ;;  %v737_v40 = vld [vmem:[%s1018_s2 + $0x20] sm:$0xff]  ;;  %v739_v41 = vld [vmem:[%s1018_s2 + $0x30] sm:$0xff] }
  0x27   :  { %544 = vmatpush1.bf16.xpose.msra.mxu0 %v441_v38  ;;  %584 = vmatpush1.bf16.xpose.msra.mxu1 %v443_v39  ;;  %v447_v47 = vpack.c.bf16 %v739_v41, %v737_v40  ;;  %v692_v38 = vsel %vm691_vm3, 1, %v758_v6 }
  0x28   :  { %561 = vmatprep.mubr.bf16.mxu0 %v875_v51  ;;  %601 = vmatprep.mubr.bf16.mxu1 %v881_v57  ;;  %v696_v45 = vrot.slane %v692_v38, %v392_v0 }
  0x29   :  { %623 = vmatprep.subr.bf16.mxu0 %v446_v42  ;;  %663 = vmatprep.subr.bf16.mxu1 %v448_v43 }
  0x2a   :  { %vm697_vm4 = vcmp.eq.s32.totalorder %v696_v45, 1 }
  0x2e   :  { %562 = vmatmul.mubr.bf16.vlgmr.msra.gmra.mxu0 %v903_v3  ;;  %602 = vmatmul.mubr.bf16.vlgmr.msra.gmra.mxu1 %v905_v4 }
  0x2f   :  { %624 = vmatpush1.bf16.xpose.msra.mxu0 %v445_v46  ;;  %664 = vmatpush1.bf16.xpose.msra.mxu1 %v447_v47 }
  0x30   :  { %641 = vmatprep.mubr.bf16.mxu0 %v916_v12  ;;  %681 = vmatprep.mubr.bf16.mxu1 %v918_v13 }
  0x36   :  { %642 = vmatmul.mubr.bf16.vlgmr.msra.gmra.mxu0 %v101_v21  ;;  %682 = vmatmul.mubr.bf16.vlgmr.msra.gmra.mxu1 %v103_v22 }
  0x87   :  { %v145_v50 = vpop.permute.xlu0 %144 }
  0xce   :  { %v181_v48 = vpop.f32.mrf.mxu0  ;;  %v221_v49 = vpop.f32.mrf.mxu1 }
  0xcf   :  { %v182_v55 = vadd.f32 %v181_v48, %v145_v50 }
  0xd0   :  { %v183_v51 = vpop.f32.mrf.mxu0  ;;  %v223_v52 = vpop.f32.mrf.mxu1 }
  0xd1   :  { %v222_v61 = vadd.f32 %v221_v49, %v182_v55 }
  0xd2   :  { %v184_v53 = vpop.f32.mrf.mxu0  ;;  %v224_v54 = vpop.f32.mrf.mxu1 }
  0xd4   :  { %v185_v57 = vpop.f32.mrf.mxu0  ;;  %v225_v58 = vpop.f32.mrf.mxu1 }
  0xd6   :  { %v261_v59 = vpop.f32.mrf.mxu0  ;;  %v301_v60 = vpop.f32.mrf.mxu1 }
  0xd7   :  { %v262_v1 = vadd.f32 %v261_v59, %v222_v61 }
  0xd8   :  { %v263_v62 = vpop.f32.mrf.mxu0  ;;  %v303_v63 = vpop.f32.mrf.mxu1 }
  0xd9   :  { %v302_v9 = vadd.f32 %v301_v60, %v262_v1 }
  0xda   :  { %v264_v3 = vpop.f32.mrf.mxu0  ;;  %v304_v4 = vpop.f32.mrf.mxu1 }
  0xdc   :  { %v265_v5 = vpop.f32.mrf.mxu0  ;;  %v305_v7 = vpop.f32.mrf.mxu1 }
  0xde   :  { %v341_v10 = vpop.f32.mrf.mxu0  ;;  %v381_v12 = vpop.f32.mrf.mxu1 }
  0xdf   :  { %v342_v13 = vadd.f32 %v341_v10, %v302_v9 }
  0xe0   :  { %v343_v14 = vpop.f32.mrf.mxu0  ;;  %v383_v15 = vpop.f32.mrf.mxu1 }
  0xe1   :  { %v382_v16 = vadd.f32 %v381_v12, %v342_v13 }
  0xe2   :  { %v344_v17 = vpop.f32.mrf.mxu0  ;;  %v384_v18 = vpop.f32.mrf.mxu1 }
  0xe3   :  { %v395_v11 = vsel %vm394_vm1, %v382_v16, -1e+30 }
  0xe4   :  { %v345_v19 = vpop.f32.mrf.mxu0  ;;  %v385_v20 = vpop.f32.mrf.mxu1  ;;  %v397_v21 = vsel %vm396_vm2, %v395_v11, -inf }
  0xe5   :  { %398 = vmax.xlane.f32.xlu0 %v397_v21 }
  0xe6   :  { %v483_v22 = vpop.f32.mrf.mxu0  ;;  %v523_v23 = vpop.f32.mrf.mxu1 }
  0xe7   :  { %v484_v28 = vadd.f32 %v483_v22, %v145_v50 }
  0xe8   :  { %v485_v24 = vpop.f32.mrf.mxu0  ;;  %v525_v25 = vpop.f32.mrf.mxu1 }
  0xe9   :  { %v524_v34 = vadd.f32 %v523_v23, %v484_v28 }
  0xea   :  { %v486_v26 = vpop.f32.mrf.mxu0  ;;  %v526_v27 = vpop.f32.mrf.mxu1 }
  0xec   :  { %v487_v30 = vpop.f32.mrf.mxu0  ;;  %v527_v31 = vpop.f32.mrf.mxu1 }
  0xee   :  { %v563_v32 = vpop.f32.mrf.mxu0  ;;  %v603_v33 = vpop.f32.mrf.mxu1 }
  0xef   :  { %v564_v37 = vadd.f32 %v563_v32, %v524_v34 }
  0xf0   :  { %v565_v35 = vpop.f32.mrf.mxu0  ;;  %v605_v36 = vpop.f32.mrf.mxu1 }
  0xf1   :  { %v604_v40 = vadd.f32 %v603_v33, %v564_v37 }
  0xf2   :  { %v566_v39 = vpop.f32.mrf.mxu0  ;;  %v606_v42 = vpop.f32.mrf.mxu1 }
  0xf4   :  { %v567_v43 = vpop.f32.mrf.mxu0  ;;  %v607_v44 = vpop.f32.mrf.mxu1 }
  0xf6   :  { %v643_v41 = vpop.f32.mrf.mxu0  ;;  %v683_v46 = vpop.f32.mrf.mxu1 }
  0xf7   :  { %v644_v47 = vadd.f32 %v643_v41, %v604_v40 }
  0xf8   :  { %v645_v48 = vpop.f32.mrf.mxu0  ;;  %v685_v49 = vpop.f32.mrf.mxu1 }
  0xf9   :  { %v684_v50 = vadd.f32 %v683_v46, %v644_v47 }
  0xfa   :  { %v646_v51 = vpop.f32.mrf.mxu0  ;;  %v686_v52 = vpop.f32.mrf.mxu1 }
  0xfb   :  { %v698_v53 = vsel %vm697_vm4, %v684_v50, -1e+30 }
  0xfc   :  { %v647_v54 = vpop.f32.mrf.mxu0  ;;  %v687_v55 = vpop.f32.mrf.mxu1  ;;  %v699_v6 = vsel %vm396_vm2, %v698_v53, -inf }
  0xfd   :  { %700 = vmax.xlane.f32.xlu1 %v699_v6 }
 0x16e   :  { %v399_v56 = vpop.xlane.xlu0 %398 }
 0x16f   :  { %v400_v57 = vsub.f32 %v395_v11, %v399_v56 }
 0x171   :  { %v401_v58 = vmul.f32 1.442695, %v400_v57 }
 0x173   :  { %749 = vpow2.f32 %v401_v58 }
 0x180   :  { %v750_v59 = vpop.eup %749 }
 0x181   :  { %v403_v60 = vsel %vm396_vm2, %v750_v59, 0.0 }
 0x182   :  { %404 = vadd.xlane.f32.xlu1 %v403_v60 }
 0x186   :  { %v701_v61 = vpop.xlane.xlu1 %700 }
 0x187   :  { %v702_v62 = vsub.f32 %v698_v53, %v701_v61 }
 0x189   :  { %v703_v63 = vmul.f32 1.442695, %v702_v62 }
 0x18b   :  { %751 = vpow2.f32 %v703_v63 }
 0x198   :  { %v752_v0 = vpop.eup %751 }
 0x199   :  { %v705_v1 = vsel %vm396_vm2, %v752_v0, 0.0 }
 0x19a   :  { %706 = vadd.xlane.f32.xlu1 %v705_v1 }
 0x20b   :  { %v405_v2 = vpop.xlane.xlu1 %404 }
 0x20c   :  { %753 = vlog2.f32 %v405_v2 }
 0x219   :  { %v754_v3 = vpop.eup %753 }
 0x21a   :  { %v407_v4 = vmul.f32 0.6931472, %v754_v3 }
 0x21c   :  { %v408_v5 = vsub.f32 %v400_v57, %v407_v4 }
 0x21e   :  { %409 = vst.msk [vmem:[%s1021_s6] sm:$0x3] %vm396_vm2, %v408_v5 }
 0x223   :  { %v707_v7 = vpop.xlane.xlu1 %706 }
 0x224   :  { %755 = vlog2.f32 %v707_v7 }
 0x231   :  { %v756_v8 = vpop.eup %755 }
 0x232   :  { %v709_v9 = vmul.f32 0.6931472, %v756_v8 }
 0x234   :  { %v710_v10 = vsub.f32 %v702_v62, %v709_v9 }
 0x236   :  { %742 = vst.msk [vmem:[%s1021_s6 + $0x2] sm:$0x3] %vm396_vm2, %v710_v10 }

// kernel: bidaf_forward.17
= control target key start
LH: loop header
LB: loop body
LE: loop exit
PB: predicated region body
PF: predicated region fallthrough
CT: control target
= control target key end

     0   :  { %s1847_s1 = inlined_call_operand.vmem [shape: bf16[256,1024], index: 1, kind: input, shape index: {}]   ;;  %s1848_s0 = inlined_call_operand.vmem [shape: f32[32,256], index: 0, kind: input, shape index: {}]   ;;  %s1849_s2 = inlined_call_operand.vmem [shape: f32[1,1024], index: 2, kind: input, shape index: {}]   ;;  %s1850_s3 = inlined_call_operand.vmem [shape: bf16[32,1024], index: 3, kind: output, shape index: {}]  }
   0x1   :  { %v82_v0 = vld [vmem:[%s1847_s1 + $0x1c0] sm:$0xff]  ;;  %v83_v2 = vld [vmem:[%s1847_s1 + $0x1c8] sm:$0xff]  ;;  %v17_v54 = vld [vmem:[%s1848_s0 + $0x18] sm:$0xff] }
   0x2   :  { %v86_v1 = vld [vmem:[%s1847_s1 + $0x1e0] sm:$0xff]  ;;  %v87_v4 = vld [vmem:[%s1847_s1 + $0x1e8] sm:$0xff] }
   0x3   :  { %v1221_v3 = vcombine.high %v82_v0, %v86_v1  ;;  %v1220_v5 = vcombine.low %v82_v0, %v86_v1  ;;  %v74_v6 = vld [vmem:[%s1847_s1 + $0x180] sm:$0xff]  ;;  %v1223_v8 = vcombine.high %v83_v2, %v87_v4  ;;  %v1222_v9 = vcombine.low %v83_v2, %v87_v4  ;;  %v75_v11 = vld [vmem:[%s1847_s1 + $0x188] sm:$0xff] }
   0x4   :  { %v78_v7 = vld [vmem:[%s1847_s1 + $0x1a0] sm:$0xff]  ;;  %v79_v12 = vld [vmem:[%s1847_s1 + $0x1a8] sm:$0xff] }
   0x5   :  { %v1213_v10 = vcombine.high %v74_v6, %v78_v7  ;;  %v66_v13 = vld [vmem:[%s1847_s1 + $0x140] sm:$0xff]  ;;  %836 = vmatprep.subr.bf16.mxu0 %v1221_v3  ;;  %v1215_v14 = vcombine.high %v75_v11, %v79_v12  ;;  %v67_v16 = vld [vmem:[%s1847_s1 + $0x148] sm:$0xff]  ;;  %889 = vmatprep.subr.bf16.mxu1 %v1223_v8  ;;  %v1212_v18 = vcombine.low %v74_v6, %v78_v7 }
   0x6   :  { %v70_v15 = vld [vmem:[%s1847_s1 + $0x160] sm:$0xff]  ;;  %v71_v17 = vld [vmem:[%s1847_s1 + $0x168] sm:$0xff]  ;;  %837 = vmatpush1.bf16.msra.mxu0 %v1220_v5  ;;  %890 = vmatpush1.bf16.msra.mxu1 %v1222_v9  ;;  %v1214_v19 = vcombine.low %v75_v11, %v79_v12 }
   0x7   :  { %838 = vmatprep.subr.bf16.mxu0 %v1213_v10  ;;  %v1205_v20 = vcombine.high %v66_v13, %v70_v15  ;;  %891 = vmatprep.subr.bf16.mxu1 %v1215_v14  ;;  %v1207_v21 = vcombine.high %v67_v16, %v71_v17  ;;  %v58_v22 = vld [vmem:[%s1847_s1 + $0x100] sm:$0xff]  ;;  %v59_v24 = vld [vmem:[%s1847_s1 + $0x108] sm:$0xff]  ;;  %v1204_v26 = vcombine.low %v66_v13, %v70_v15 }
   0x8   :  { %v62_v23 = vld [vmem:[%s1847_s1 + $0x120] sm:$0xff]  ;;  %v63_v25 = vld [vmem:[%s1847_s1 + $0x128] sm:$0xff]  ;;  %v1206_v27 = vcombine.low %v67_v16, %v71_v17 }
   0x9   :  { %v1197_v28 = vcombine.high %v58_v22, %v62_v23  ;;  %v1199_v29 = vcombine.high %v59_v24, %v63_v25  ;;  %v50_v30 = vld [vmem:[%s1847_s1 + $0xc0] sm:$0xff]  ;;  %v51_v32 = vld [vmem:[%s1847_s1 + $0xc8] sm:$0xff]  ;;  %v1196_v34 = vcombine.low %v58_v22, %v62_v23  ;;  %v1198_v35 = vcombine.low %v59_v24, %v63_v25 }
   0xa   :  { %839 = vmatpush1.bf16.msra.mxu0 %v1212_v18  ;;  %892 = vmatpush1.bf16.msra.mxu1 %v1214_v19  ;;  %v54_v31 = vld [vmem:[%s1847_s1 + $0xe0] sm:$0xff]  ;;  %v55_v33 = vld [vmem:[%s1847_s1 + $0xe8] sm:$0xff] }
   0xb   :  { %840 = vmatprep.subr.bf16.mxu0 %v1205_v20  ;;  %893 = vmatprep.subr.bf16.mxu1 %v1207_v21  ;;  %v1189_v36 = vcombine.high %v50_v30, %v54_v31  ;;  %v1191_v37 = vcombine.high %v51_v32, %v55_v33  ;;  %v42_v38 = vld [vmem:[%s1847_s1 + $0x80] sm:$0xff]  ;;  %v43_v40 = vld [vmem:[%s1847_s1 + $0x88] sm:$0xff]  ;;  %v1188_v42 = vcombine.low %v50_v30, %v54_v31 }
   0xc   :  { %v46_v39 = vld [vmem:[%s1847_s1 + $0xa0] sm:$0xff]  ;;  %v47_v41 = vld [vmem:[%s1847_s1 + $0xa8] sm:$0xff]  ;;  %v1190_v43 = vcombine.low %v51_v32, %v55_v33 }
   0xd   :  { %v1181_v44 = vcombine.high %v42_v38, %v46_v39  ;;  %v1183_v45 = vcombine.high %v43_v40, %v47_v41  ;;  %v34_v46 = vld [vmem:[%s1847_s1 + $0x40] sm:$0xff]  ;;  %v35_v48 = vld [vmem:[%s1847_s1 + $0x48] sm:$0xff]  ;;  %v1180_v50 = vcombine.low %v42_v38, %v46_v39  ;;  %v1182_v51 = vcombine.low %v43_v40, %v47_v41 }
   0xe   :  { %841 = vmatpush1.bf16.msra.mxu0 %v1204_v26  ;;  %894 = vmatpush1.bf16.msra.mxu1 %v1206_v27  ;;  %v38_v47 = vld [vmem:[%s1847_s1 + $0x60] sm:$0xff]  ;;  %v39_v49 = vld [vmem:[%s1847_s1 + $0x68] sm:$0xff] }
   0xf   :  { %842 = vmatprep.subr.bf16.mxu0 %v1197_v28  ;;  %895 = vmatprep.subr.bf16.mxu1 %v1199_v29  ;;  %v1173_v52 = vcombine.high %v34_v46, %v38_v47  ;;  %v15_v53 = vld [vmem:[%s1848_s0 + $0x8] sm:$0xff]  ;;  %v1175_v55 = vcombine.high %v35_v48, %v39_v49  ;;  %v26_v56 = vld [vmem:[%s1847_s1] sm:$0xff]  ;;  %v1172_v61 = vcombine.low %v34_v46, %v38_v47 }
  0x10   :  { %v30_v57 = vld [vmem:[%s1847_s1 + $0x20] sm:$0xff]  ;;  %v1440_v58 = vpack.c.bf16 %v17_v54, %v15_v53  ;;  %v27_v59 = vld [vmem:[%s1847_s1 + $0x8] sm:$0xff]  ;;  %v1174_v62 = vcombine.low %v35_v48, %v39_v49 }
  0x11   :  { %v31_v60 = vld [vmem:[%s1847_s1 + $0x28] sm:$0xff]  ;;  %v1165_v63 = vcombine.high %v26_v56, %v30_v57  ;;  %v146_v1 = vld [vmem:[%s1847_s1 + $0x3c0] sm:$0xff]  ;;  %v1164_v5 = vcombine.low %v26_v56, %v30_v57 }
  0x12   :  { %843 = vmatpush1.bf16.msra.mxu0 %v1196_v34  ;;  %896 = vmatpush1.bf16.msra.mxu1 %v1198_v35  ;;  %v1167_v0 = vcombine.high %v27_v59, %v31_v60  ;;  %v150_v2 = vld [vmem:[%s1847_s1 + $0x3e0] sm:$0xff]  ;;  %v147_v3 = vld [vmem:[%s1847_s1 + $0x3c8] sm:$0xff]  ;;  %v1166_v6 = vcombine.low %v27_v59, %v31_v60 }
  0x13   :  { %844 = vmatprep.subr.bf16.mxu0 %v1189_v36  ;;  %897 = vmatprep.subr.bf16.mxu1 %v1191_v37  ;;  %v151_v4 = vld [vmem:[%s1847_s1 + $0x3e8] sm:$0xff]  ;;  %v1285_v7 = vcombine.high %v146_v1, %v150_v2  ;;  %v138_v9 = vld [vmem:[%s1847_s1 + $0x380] sm:$0xff]  ;;  %v1284_v13 = vcombine.low %v146_v1, %v150_v2  ;;  %v84_v2 = vld [vmem:[%s1847_s1 + $0x1d0] sm:$0xff] }
  0x14   :  { %868 = vmatprep.mubr.bf16.mxu0 %v1440_v58  ;;  %921 = vmatprep.mubr.bf16.mxu1 %v1440_v58  ;;  %v1287_v8 = vcombine.high %v147_v3, %v151_v4  ;;  %v142_v10 = vld [vmem:[%s1847_s1 + $0x3a0] sm:$0xff]  ;;  %v139_v11 = vld [vmem:[%s1847_s1 + $0x388] sm:$0xff]  ;;  %v1286_v14 = vcombine.low %v147_v3, %v151_v4  ;;  %v88_v3 = vld [vmem:[%s1847_s1 + $0x1f0] sm:$0xff] }
  0x15   :  { %v143_v12 = vld [vmem:[%s1847_s1 + $0x3a8] sm:$0xff]  ;;  %v1277_v15 = vcombine.high %v138_v9, %v142_v10  ;;  %v130_v17 = vld [vmem:[%s1847_s1 + $0x340] sm:$0xff]  ;;  %v1276_v21 = vcombine.low %v138_v9, %v142_v10  ;;  %v85_v4 = vld [vmem:[%s1847_s1 + $0x1d8] sm:$0xff]  ;;  %v1225_v10 = vcombine.high %v84_v2, %v88_v3 }
  0x16   :  { %845 = vmatpush1.bf16.msra.mxu0 %v1188_v42  ;;  %898 = vmatpush1.bf16.msra.mxu1 %v1190_v43  ;;  %v1279_v16 = vcombine.high %v139_v11, %v143_v12  ;;  %v134_v18 = vld [vmem:[%s1847_s1 + $0x360] sm:$0xff]  ;;  %v131_v19 = vld [vmem:[%s1847_s1 + $0x348] sm:$0xff]  ;;  %v1278_v22 = vcombine.low %v139_v11, %v143_v12  ;;  %v76_v12 = vld [vmem:[%s1847_s1 + $0x190] sm:$0xff] }
  0x17   :  { %846 = vmatprep.subr.bf16.mxu0 %v1181_v44  ;;  %899 = vmatprep.subr.bf16.mxu1 %v1183_v45  ;;  %v135_v20 = vld [vmem:[%s1847_s1 + $0x368] sm:$0xff]  ;;  %v1269_v23 = vcombine.high %v130_v17, %v134_v18  ;;  %v122_v25 = vld [vmem:[%s1847_s1 + $0x300] sm:$0xff]  ;;  %v1268_v29 = vcombine.low %v130_v17, %v134_v18  ;;  %v21_v18 = vld [vmem:[%s1848_s0 + $0x38] sm:$0xff] }
  0x18   :  { %v1271_v24 = vcombine.high %v131_v19, %v135_v20  ;;  %v126_v26 = vld [vmem:[%s1847_s1 + $0x320] sm:$0xff]  ;;  %v123_v27 = vld [vmem:[%s1847_s1 + $0x308] sm:$0xff]  ;;  %v1270_v30 = vcombine.low %v131_v19, %v135_v20  ;;  %v1224_v19 = vcombine.low %v84_v2, %v88_v3  ;;  %v28_v3 = vld [vmem:[%s1847_s1 + $0x10] sm:$0xff] }
  0x19   :  { %v127_v28 = vld [vmem:[%s1847_s1 + $0x328] sm:$0xff]  ;;  %v1261_v31 = vcombine.high %v122_v25, %v126_v26  ;;  %v114_v33 = vld [vmem:[%s1847_s1 + $0x2c0] sm:$0xff]  ;;  %v1260_v37 = vcombine.low %v122_v25, %v126_v26  ;;  %v69_v26 = vld [vmem:[%s1847_s1 + $0x158] sm:$0xff] }
  0x1a   :  { %847 = vmatpush1.bf16.msra.mxu0 %v1180_v50  ;;  %900 = vmatpush1.bf16.msra.mxu1 %v1182_v51  ;;  %v1263_v32 = vcombine.high %v123_v27, %v127_v28  ;;  %v118_v34 = vld [vmem:[%s1847_s1 + $0x2e0] sm:$0xff]  ;;  %v115_v35 = vld [vmem:[%s1847_s1 + $0x2c8] sm:$0xff]  ;;  %v1262_v38 = vcombine.low %v123_v27, %v127_v28  ;;  %v73_v27 = vld [vmem:[%s1847_s1 + $0x178] sm:$0xff] }
  0x1b   :  { %848 = vmatprep.subr.bf16.mxu0 %v1173_v52  ;;  %901 = vmatprep.subr.bf16.mxu1 %v1175_v55  ;;  %v119_v36 = vld [vmem:[%s1847_s1 + $0x2e8] sm:$0xff]  ;;  %v1253_v39 = vcombine.high %v114_v33, %v118_v34  ;;  %v106_v41 = vld [vmem:[%s1847_s1 + $0x280] sm:$0xff]  ;;  %v1252_v45 = vcombine.low %v114_v33, %v118_v34  ;;  %v1211_v33 = vcombine.high %v69_v26, %v73_v27  ;;  %v60_v34 = vld [vmem:[%s1847_s1 + $0x110] sm:$0xff] }
  0x1c   :  { %v1255_v40 = vcombine.high %v115_v35, %v119_v36  ;;  %v110_v42 = vld [vmem:[%s1847_s1 + $0x2a0] sm:$0xff]  ;;  %v107_v43 = vld [vmem:[%s1847_s1 + $0x288] sm:$0xff]  ;;  %v1254_v46 = vcombine.low %v115_v35, %v119_v36  ;;  %v64_v35 = vld [vmem:[%s1847_s1 + $0x130] sm:$0xff] }
  0x1d   :  { %v111_v44 = vld [vmem:[%s1847_s1 + $0x2a8] sm:$0xff]  ;;  %v1245_v47 = vcombine.high %v106_v41, %v110_v42  ;;  %v98_v49 = vld [vmem:[%s1847_s1 + $0x240] sm:$0xff]  ;;  %v1244_v53 = vcombine.low %v106_v41, %v110_v42  ;;  %v61_v36 = vld [vmem:[%s1847_s1 + $0x118] sm:$0xff]  ;;  %v1201_v41 = vcombine.high %v60_v34, %v64_v35 }
  0x1e   :  { %849 = vmatpush1.bf16.msra.mxu0 %v1172_v61  ;;  %902 = vmatpush1.bf16.msra.mxu1 %v1174_v62  ;;  %v1247_v48 = vcombine.high %v107_v43, %v111_v44  ;;  %v102_v50 = vld [vmem:[%s1847_s1 + $0x260] sm:$0xff]  ;;  %v99_v51 = vld [vmem:[%s1847_s1 + $0x248] sm:$0xff]  ;;  %v1246_v54 = vcombine.low %v107_v43, %v111_v44  ;;  %v52_v43 = vld [vmem:[%s1847_s1 + $0xd0] sm:$0xff] }
  0x1f   :  { %850 = vmatprep.subr.bf16.mxu0 %v1165_v63  ;;  %903 = vmatprep.subr.bf16.mxu1 %v1167_v0  ;;  %v103_v52 = vld [vmem:[%s1847_s1 + $0x268] sm:$0xff]  ;;  %v1237_v55 = vcombine.high %v98_v49, %v102_v50  ;;  %v90_v57 = vld [vmem:[%s1847_s1 + $0x200] sm:$0xff]  ;;  %v1236_v62 = vcombine.low %v98_v49, %v102_v50  ;;  %v56_v44 = vld [vmem:[%s1847_s1 + $0xf0] sm:$0xff] }
  0x20   :  { %v1239_v56 = vcombine.high %v99_v51, %v103_v52  ;;  %v94_v59 = vld [vmem:[%s1847_s1 + $0x220] sm:$0xff]  ;;  %v91_v60 = vld [vmem:[%s1847_s1 + $0x208] sm:$0xff]  ;;  %v1238_v63 = vcombine.low %v99_v51, %v103_v52  ;;  %v1193_v49 = vcombine.high %v52_v43, %v56_v44  ;;  %v44_v51 = vld [vmem:[%s1847_s1 + $0x90] sm:$0xff] }
  0x21   :  { %v95_v61 = vld [vmem:[%s1847_s1 + $0x228] sm:$0xff]  ;;  %v1229_v0 = vcombine.high %v90_v57, %v94_v59  ;;  %v48_v52 = vld [vmem:[%s1847_s1 + $0xb0] sm:$0xff] }
  0x22   :  { %851 = vmatpush1.bf16.msra.mxu0 %v1164_v5  ;;  %904 = vmatpush1.bf16.msra.mxu1 %v1166_v6  ;;  %v1231_v1 = vcombine.high %v91_v60, %v95_v61  ;;  %v89_v5 = vld [vmem:[%s1847_s1 + $0x1f8] sm:$0xff]  ;;  %v1228_v6 = vcombine.low %v90_v57, %v94_v59  ;;  %v1230_v9 = vcombine.low %v91_v60, %v95_v61  ;;  %v19_v17 = vld [vmem:[%s1848_s0 + $0x28] sm:$0xff]  ;;  %v36_v60 = vld [vmem:[%s1847_s1 + $0x50] sm:$0xff] }
  0x23   :  { %852 = vmatprep.subr.bf16.mxu0 %v1285_v7  ;;  %905 = vmatprep.subr.bf16.mxu1 %v1287_v8  ;;  %v14_v7 = vld [vmem:[%s1848_s0] sm:$0xff]  ;;  %v16_v8 = vld [vmem:[%s1848_s0 + $0x10] sm:$0xff]  ;;  %v1227_v11 = vcombine.high %v85_v4, %v89_v5  ;;  %v1226_v20 = vcombine.low %v85_v4, %v89_v5  ;;  %v1590_v25 = vpack.c.bf16 %v21_v18, %v19_v17  ;;  %v29_v5 = vld [vmem:[%s1847_s1 + $0x18] sm:$0xff] }
  0x24   :  { %v1185_v57 = vcombine.high %v44_v51, %v48_v52  ;;  %v40_v61 = vld [vmem:[%s1847_s1 + $0x70] sm:$0xff] }
  0x25   :  { %v32_v4 = vld [vmem:[%s1847_s1 + $0x30] sm:$0xff] }
  0x26   :  { %853 = vmatpush2.bf16.msra.mxu0 %v1284_v13  ;;  %906 = vmatpush2.bf16.msra.mxu1 %v1286_v14  ;;  %v80_v13 = vld [vmem:[%s1847_s1 + $0x1b0] sm:$0xff]  ;;  %v77_v14 = vld [vmem:[%s1847_s1 + $0x198] sm:$0xff] }
  0x27   :  { %854 = vmatprep.subr.bf16.mxu0 %v1277_v15  ;;  %907 = vmatprep.subr.bf16.mxu1 %v1279_v16  ;;  %v1573_v15 = vpack.c.bf16 %v16_v8, %v14_v7  ;;  %v81_v16 = vld [vmem:[%s1847_s1 + $0x1b8] sm:$0xff]  ;;  %v1216_v28 = vcombine.low %v76_v12, %v80_v13  ;;  %v1176_v7 = vcombine.low %v36_v60, %v40_v61 }
  0x2a   :  { %855 = vmatpush2.bf16.msra.mxu0 %v1276_v21  ;;  %908 = vmatpush2.bf16.msra.mxu1 %v1278_v22  ;;  %v1217_v21 = vcombine.high %v76_v12, %v80_v13  ;;  %v1219_v22 = vcombine.high %v77_v14, %v81_v16  ;;  %v152_v12 = vld [vmem:[%s1847_s1 + $0x3f0] sm:$0xff]  ;;  %v149_v13 = vld [vmem:[%s1847_s1 + $0x3d8] sm:$0xff] }
  0x2b   :  { %856 = vmatprep.subr.bf16.mxu0 %v1269_v23  ;;  %909 = vmatprep.subr.bf16.mxu1 %v1271_v24  ;;  %v68_v23 = vld [vmem:[%s1847_s1 + $0x150] sm:$0xff] }
  0x2c   :  { %v72_v24 = vld [vmem:[%s1847_s1 + $0x170] sm:$0xff] }
  0x2e   :  { %857 = vmatpush2.bf16.msra.mxu0 %v1268_v29  ;;  %910 = vmatpush2.bf16.msra.mxu1 %v1270_v30  ;;  %v18_v29 = vld [vmem:[%s1848_s0 + $0x20] sm:$0xff]  ;;  %v20_v30 = vld [vmem:[%s1848_s0 + $0x30] sm:$0xff] }
  0x2f   :  { %858 = vmatprep.subr.bf16.mxu0 %v1261_v31  ;;  %911 = vmatprep.subr.bf16.mxu1 %v1263_v32  ;;  %v1218_v31 = vcombine.low %v77_v14, %v81_v16  ;;  %v1209_v32 = vcombine.high %v68_v23, %v72_v24  ;;  %v153_v14 = vld [vmem:[%s1847_s1 + $0x3f8] sm:$0xff]  ;;  %v1168_v16 = vcombine.low %v28_v3, %v32_v4 }
  0x32   :  { %859 = vmatpush2.bf16.msra.mxu0 %v1260_v37  ;;  %912 = vmatpush2.bf16.msra.mxu1 %v1262_v38  ;;  %v65_v37 = vld [vmem:[%s1847_s1 + $0x138] sm:$0xff]  ;;  %v1620_v38 = vpack.c.bf16 %v20_v30, %v18_v29  ;;  %v132_v29 = vld [vmem:[%s1847_s1 + $0x350] sm:$0xff] }
  0x33   :  { %860 = vmatprep.subr.bf16.mxu0 %v1253_v39  ;;  %913 = vmatprep.subr.bf16.mxu1 %v1255_v40  ;;  %v1208_v39 = vcombine.low %v68_v23, %v72_v24  ;;  %v1210_v40 = vcombine.low %v69_v26, %v73_v27  ;;  %v1203_v42 = vcombine.high %v61_v36, %v65_v37  ;;  %v145_v23 = vld [vmem:[%s1847_s1 + $0x3b8] sm:$0xff]  ;;  %v136_v30 = vld [vmem:[%s1847_s1 + $0x370] sm:$0xff] }
  0x34   :  { %v1290_v26 = vcombine.low %v149_v13, %v153_v14 }
  0x36   :  { %861 = vmatpush2.bf16.msra.mxu0 %v1252_v45  ;;  %914 = vmatpush2.bf16.msra.mxu1 %v1254_v46  ;;  %v53_v45 = vld [vmem:[%s1847_s1 + $0xd8] sm:$0xff] }
  0x37   :  { %862 = vmatprep.subr.bf16.mxu0 %v1245_v47  ;;  %915 = vmatprep.subr.bf16.mxu1 %v1247_v48  ;;  %v57_v46 = vld [vmem:[%s1847_s1 + $0xf8] sm:$0xff]  ;;  %v1200_v47 = vcombine.low %v60_v34, %v64_v35  ;;  %v1202_v48 = vcombine.low %v61_v36, %v65_v37  ;;  %v1273_v35 = vcombine.high %v132_v29, %v136_v30  ;;  %v124_v37 = vld [vmem:[%s1847_s1 + $0x310] sm:$0xff] }
  0x38   :  { %v1195_v50 = vcombine.high %v53_v45, %v57_v46 }
  0x3a   :  { %863 = vmatpush2.bf16.msra.mxu0 %v1244_v53  ;;  %916 = vmatpush2.bf16.msra.mxu1 %v1246_v54  ;;  %v45_v53 = vld [vmem:[%s1847_s1 + $0x98] sm:$0xff] }
  0x3b   :  { %864 = vmatprep.subr.bf16.mxu0 %v1237_v55  ;;  %917 = vmatprep.subr.bf16.mxu1 %v1239_v56  ;;  %v49_v54 = vld [vmem:[%s1847_s1 + $0xb8] sm:$0xff]  ;;  %v1192_v55 = vcombine.low %v52_v43, %v56_v44  ;;  %v1194_v56 = vcombine.low %v53_v45, %v57_v46  ;;  %v116_v46 = vld [vmem:[%s1847_s1 + $0x2d0] sm:$0xff] }
  0x3c   :  { %v1187_v59 = vcombine.high %v45_v53, %v49_v54 }
  0x3e   :  { %865 = vmatpush2.bf16.msra.mxu0 %v1236_v62  ;;  %918 = vmatpush2.bf16.msra.mxu1 %v1238_v63  ;;  %v41_v62 = vld [vmem:[%s1847_s1 + $0x78] sm:$0xff]  ;;  %v1184_v63 = vcombine.low %v44_v51, %v48_v52 }
  0x3f   :  { %866 = vmatprep.subr.bf16.mxu0 %v1229_v0  ;;  %919 = vmatprep.subr.bf16.mxu1 %v1231_v1  ;;  %v1186_v0 = vcombine.low %v45_v53, %v49_v54  ;;  %v1177_v1 = vcombine.high %v36_v60, %v40_v61  ;;  %v108_v54 = vld [vmem:[%s1847_s1 + $0x290] sm:$0xff] }
  0x42   :  { %867 = vmatpush2.bf16.msra.mxu0 %v1228_v6  ;;  %920 = vmatpush2.bf16.msra.mxu1 %v1230_v9  ;;  %v33_v6 = vld [vmem:[%s1847_s1 + $0x38] sm:$0xff]  ;;  %v1169_v9 = vcombine.high %v28_v3, %v32_v4 }
  0x43   :  { %942 = vmatprep.subr.bf16.mxu0 %v1225_v10  ;;  %995 = vmatprep.subr.bf16.mxu1 %v1227_v11  ;;  %v1171_v10 = vcombine.high %v29_v5, %v33_v6  ;;  %v148_v11 = vld [vmem:[%s1847_s1 + $0x3d0] sm:$0xff]  ;;  %v1170_v17 = vcombine.low %v29_v5, %v33_v6 }
  0x44   :  { %v1289_v18 = vcombine.high %v148_v11, %v152_v12  ;;  %v1288_v24 = vcombine.low %v148_v11, %v152_v12  ;;  %v92_v6 = vld [vmem:[%s1847_s1 + $0x210] sm:$0xff] }
  0x45   :  { %869 = vmatmul.mubr.bf16.vlgmr.msra.gmra.mxu0 %v1573_v15  ;;  %922 = vmatmul.mubr.bf16.vlgmr.msra.gmra.mxu1 %v1573_v15 }
  0x46   :  { %943 = vmatpush1.bf16.msra.mxu0 %v1224_v19  ;;  %996 = vmatpush1.bf16.msra.mxu1 %v1226_v20  ;;  %v1291_v19 = vcombine.high %v149_v13, %v153_v14  ;;  %v140_v20 = vld [vmem:[%s1847_s1 + $0x390] sm:$0xff] }
  0x47   :  { %944 = vmatprep.subr.bf16.mxu0 %v1217_v21  ;;  %997 = vmatprep.subr.bf16.mxu1 %v1219_v22  ;;  %v144_v21 = vld [vmem:[%s1847_s1 + $0x3b0] sm:$0xff]  ;;  %v141_v22 = vld [vmem:[%s1847_s1 + $0x398] sm:$0xff] }
  0x48   :  { %878 = vmatprep.mubr.bf16.mxu0 %v1590_v25  ;;  %931 = vmatprep.mubr.bf16.mxu1 %v1590_v25  ;;  %v1281_v27 = vcombine.high %v140_v20, %v144_v21  ;;  %v1282_v34 = vcombine.low %v141_v22, %v145_v23 }
  0x4a   :  { %945 = vmatpush1.bf16.msra.mxu0 %v1216_v28  ;;  %998 = vmatpush1.bf16.msra.mxu1 %v1218_v31  ;;  %v1283_v28 = vcombine.high %v141_v22, %v145_v23  ;;  %v133_v31 = vld [vmem:[%s1847_s1 + $0x358] sm:$0xff] }
  0x4b   :  { %946 = vmatprep.subr.bf16.mxu0 %v1209_v32  ;;  %999 = vmatprep.subr.bf16.mxu1 %v1211_v33  ;;  %v137_v32 = vld [vmem:[%s1847_s1 + $0x378] sm:$0xff]  ;;  %v1280_v33 = vcombine.low %v140_v20, %v144_v21  ;;  %v1782_v20 = vld [vmem:[%s1849_s2] sm:$0xff] }
  0x4c   :  { %v1275_v36 = vcombine.high %v133_v31, %v137_v32  ;;  %v1274_v43 = vcombine.low %v133_v31, %v137_v32 }
  0x4d   :  { %879 = vmatmul.mubr.bf16.gmra.mxu0 %v1620_v38  ;;  %932 = vmatmul.mubr.bf16.gmra.mxu1 %v1620_v38 }
  0x4e   :  { %947 = vmatpush1.bf16.msra.mxu0 %v1208_v39  ;;  %1000 = vmatpush1.bf16.msra.mxu1 %v1210_v40  ;;  %v128_v39 = vld [vmem:[%s1847_s1 + $0x330] sm:$0xff]  ;;  %v125_v40 = vld [vmem:[%s1847_s1 + $0x318] sm:$0xff] }
  0x4f   :  { %948 = vmatprep.subr.bf16.mxu0 %v1201_v41  ;;  %1001 = vmatprep.subr.bf16.mxu1 %v1203_v42  ;;  %v129_v41 = vld [vmem:[%s1847_s1 + $0x338] sm:$0xff]  ;;  %v1272_v42 = vcombine.low %v132_v29, %v136_v30  ;;  %v1265_v44 = vcombine.high %v124_v37, %v128_v39 }
  0x50   :  { %974 = vmatprep.mubr.bf16.mxu0 %v1440_v58  ;;  %1027 = vmatprep.mubr.bf16.mxu1 %v1440_v58  ;;  %v37_v58 = vld [vmem:[%s1847_s1 + $0x58] sm:$0xff]  ;;  %v1267_v45 = vcombine.high %v125_v40, %v129_v41  ;;  %v1266_v51 = vcombine.low %v125_v40, %v129_v41 }
  0x51   :  { %v1179_v2 = vcombine.high %v37_v58, %v41_v62  ;;  %v1178_v8 = vcombine.low %v37_v58, %v41_v62  ;;  %v100_v62 = vld [vmem:[%s1847_s1 + $0x250] sm:$0xff] }
  0x52   :  { %949 = vmatpush1.bf16.msra.mxu0 %v1200_v47  ;;  %1002 = vmatpush1.bf16.msra.mxu1 %v1202_v48  ;;  %v120_v47 = vld [vmem:[%s1847_s1 + $0x2f0] sm:$0xff]  ;;  %v117_v48 = vld [vmem:[%s1847_s1 + $0x2d8] sm:$0xff] }
  0x53   :  { %950 = vmatprep.subr.bf16.mxu0 %v1193_v49  ;;  %1003 = vmatprep.subr.bf16.mxu1 %v1195_v50  ;;  %v121_v49 = vld [vmem:[%s1847_s1 + $0x2f8] sm:$0xff]  ;;  %v1264_v50 = vcombine.low %v124_v37, %v128_v39  ;;  %v1257_v52 = vcombine.high %v116_v46, %v120_v47 }
  0x54   :  { %v1259_v53 = vcombine.high %v117_v48, %v121_v49  ;;  %v1258_v60 = vcombine.low %v117_v48, %v121_v49 }
  0x56   :  { %951 = vmatpush1.bf16.msra.mxu0 %v1192_v55  ;;  %1004 = vmatpush1.bf16.msra.mxu1 %v1194_v56  ;;  %v112_v55 = vld [vmem:[%s1847_s1 + $0x2b0] sm:$0xff]  ;;  %v109_v56 = vld [vmem:[%s1847_s1 + $0x298] sm:$0xff] }
  0x57   :  { %952 = vmatprep.subr.bf16.mxu0 %v1185_v57  ;;  %1005 = vmatprep.subr.bf16.mxu1 %v1187_v59  ;;  %v113_v57 = vld [vmem:[%s1847_s1 + $0x2b8] sm:$0xff]  ;;  %v1256_v59 = vcombine.low %v116_v46, %v120_v47  ;;  %v1249_v61 = vcombine.high %v108_v54, %v112_v55 }
  0x58   :  { %v1251_v58 = vcombine.high %v109_v56, %v113_v57  ;;  %v1250_v3 = vcombine.low %v109_v56, %v113_v57 }
  0x5a   :  { %953 = vmatpush1.bf16.msra.mxu0 %v1184_v63  ;;  %1006 = vmatpush1.bf16.msra.mxu1 %v1186_v0  ;;  %v104_v63 = vld [vmem:[%s1847_s1 + $0x270] sm:$0xff]  ;;  %v101_v0 = vld [vmem:[%s1847_s1 + $0x258] sm:$0xff] }
  0x5b   :  { %954 = vmatprep.subr.bf16.mxu0 %v1177_v1  ;;  %1007 = vmatprep.subr.bf16.mxu1 %v1179_v2  ;;  %v105_v1 = vld [vmem:[%s1847_s1 + $0x278] sm:$0xff]  ;;  %v1248_v2 = vcombine.low %v108_v54, %v112_v55  ;;  %v1241_v4 = vcombine.high %v100_v62, %v104_v63 }
  0x5c   :  { %v1243_v5 = vcombine.high %v101_v0, %v105_v1  ;;  %v1242_v11 = vcombine.low %v101_v0, %v105_v1 }
  0x5e   :  { %955 = vmatpush1.bf16.msra.mxu0 %v1176_v7  ;;  %1008 = vmatpush1.bf16.msra.mxu1 %v1178_v8  ;;  %v96_v7 = vld [vmem:[%s1847_s1 + $0x230] sm:$0xff]  ;;  %v93_v8 = vld [vmem:[%s1847_s1 + $0x218] sm:$0xff] }
  0x5f   :  { %956 = vmatprep.subr.bf16.mxu0 %v1169_v9  ;;  %1009 = vmatprep.subr.bf16.mxu1 %v1171_v10  ;;  %v97_v9 = vld [vmem:[%s1847_s1 + $0x238] sm:$0xff]  ;;  %v1240_v10 = vcombine.low %v100_v62, %v104_v63  ;;  %v1233_v12 = vcombine.high %v92_v6, %v96_v7  ;;  %v1232_v14 = vcombine.low %v92_v6, %v96_v7 }
  0x60   :  { %v1235_v13 = vcombine.high %v93_v8, %v97_v9 }
  0x62   :  { %957 = vmatpush1.bf16.msra.mxu0 %v1168_v16  ;;  %1010 = vmatpush1.bf16.msra.mxu1 %v1170_v17  ;;  %v1234_v16 = vcombine.low %v93_v8, %v97_v9  ;;  %v156_v17 = vlaneseq }
  0x63   :  { %958 = vmatprep.subr.bf16.mxu0 %v1289_v18  ;;  %1011 = vmatprep.subr.bf16.mxu1 %v1291_v19 }
  0x64   :  { %v1776_v18 = vshrl.u32 %v156_v17, 7 }
  0x66   :  { %959 = vmatpush2.bf16.msra.mxu0 %v1288_v24  ;;  %1012 = vmatpush2.bf16.msra.mxu1 %v1290_v26  ;;  %v158_v19 = vsub.s32 0, %v1776_v18  ;;  %v162_v21 = vsub.s32 1, %v1776_v18  ;;  %v186_v6 = vsub.s32 7, %v1776_v18 }
  0x67   :  { %960 = vmatprep.subr.bf16.mxu0 %v1281_v27  ;;  %1013 = vmatprep.subr.bf16.mxu1 %v1283_v28 }
  0x68   :  { %v159_v22 = vrot.slane %v1782_v20, %v158_v19  ;;  %v163_v23 = vrot.slane %v1782_v20, %v162_v21 }
  0x6a   :  { %961 = vmatpush2.bf16.msra.mxu0 %v1280_v33  ;;  %1014 = vmatpush2.bf16.msra.mxu1 %v1282_v34 }
  0x6b   :  { %962 = vmatprep.subr.bf16.mxu0 %v1273_v35  ;;  %1015 = vmatprep.subr.bf16.mxu1 %v1275_v36 }
  0x6e   :  { %963 = vmatpush2.bf16.msra.mxu0 %v1272_v42  ;;  %1016 = vmatpush2.bf16.msra.mxu1 %v1274_v43 }
  0x6f   :  { %964 = vmatprep.subr.bf16.mxu0 %v1265_v44  ;;  %1017 = vmatprep.subr.bf16.mxu1 %v1267_v45 }
  0x72   :  { %965 = vmatpush2.bf16.msra.mxu0 %v1264_v50  ;;  %1018 = vmatpush2.bf16.msra.mxu1 %v1266_v51 }
  0x73   :  { %966 = vmatprep.subr.bf16.mxu0 %v1257_v52  ;;  %1019 = vmatprep.subr.bf16.mxu1 %v1259_v53 }
  0x76   :  { %967 = vmatpush2.bf16.msra.mxu0 %v1256_v59  ;;  %1020 = vmatpush2.bf16.msra.mxu1 %v1258_v60 }
  0x77   :  { %968 = vmatprep.subr.bf16.mxu0 %v1249_v61  ;;  %1021 = vmatprep.subr.bf16.mxu1 %v1251_v58 }
  0x7a   :  { %969 = vmatpush2.bf16.msra.mxu0 %v1248_v2  ;;  %1022 = vmatpush2.bf16.msra.mxu1 %v1250_v3  ;;  %v174_v3 = vsub.s32 4, %v1776_v18 }
  0x7b   :  { %970 = vmatprep.subr.bf16.mxu0 %v1241_v4  ;;  %1023 = vmatprep.subr.bf16.mxu1 %v1243_v5  ;;  %v178_v4 = vsub.s32 5, %v1776_v18  ;;  %v182_v5 = vsub.s32 6, %v1776_v18 }
  0x7c   :  { %v175_v7 = vrot.slane %v1782_v20, %v174_v3 }
  0x7d   :  { %v179_v8 = vrot.slane %v1782_v20, %v178_v4 }
  0x7e   :  { %971 = vmatpush2.bf16.msra.mxu0 %v1240_v10  ;;  %1024 = vmatpush2.bf16.msra.mxu1 %v1242_v11  ;;  %v183_v10 = vrot.slane %v1782_v20, %v182_v5  ;;  %v187_v11 = vrot.slane %v1782_v20, %v186_v6 }
  0x7f   :  { %972 = vmatprep.subr.bf16.mxu0 %v1233_v12  ;;  %1025 = vmatprep.subr.bf16.mxu1 %v1235_v13 }
  0x82   :  { %973 = vmatpush2.bf16.msra.mxu0 %v1232_v14  ;;  %1026 = vmatpush2.bf16.msra.mxu1 %v1234_v16 }
  0x85   :  { %975 = vmatmul.mubr.bf16.vlgmr.msra.gmra.mxu0 %v1573_v15  ;;  %1028 = vmatmul.mubr.bf16.vlgmr.msra.gmra.mxu1 %v1573_v15  ;;  %v166_v15 = vsub.s32 2, %v1776_v18 }
  0x86   :  { %984 = vmatprep.mubr.bf16.mxu0 %v1590_v25  ;;  %1037 = vmatprep.mubr.bf16.mxu1 %v1590_v25  ;;  %v170_v25 = vsub.s32 3, %v1776_v18 }
  0x88   :  { %v171_v26 = vrot.slane %v1782_v20, %v170_v25 }
  0x8d   :  { %985 = vmatmul.mubr.bf16.gmra.mxu0 %v1620_v38  ;;  %1038 = vmatmul.mubr.bf16.gmra.mxu1 %v1620_v38  ;;  %v167_v38 = vrot.slane %v1782_v20, %v166_v15 }
 0x105   :  { %v870_v24 = vpop.f32.mrf.mxu0  ;;  %v923_v28 = vpop.f32.mrf.mxu1 }
 0x106   :  { %v871_v27 = vadd.f32 %v870_v24, %v159_v22  ;;  %v924_v29 = vadd.f32 %v923_v28, %v167_v38 }
 0x107   :  { %v872_v30 = vpop.f32.mrf.mxu0  ;;  %v925_v32 = vpop.f32.mrf.mxu1 }
 0x108   :  { %v873_v31 = vadd.f32 %v872_v30, %v163_v23  ;;  %v926_v33 = vadd.f32 %v925_v32, %v171_v26 }
 0x109   :  { %v874_v34 = vpop.f32.mrf.mxu0  ;;  %v927_v36 = vpop.f32.mrf.mxu1 }
 0x10a   :  { %v1308_v35 = vpack.c.bf16 %v873_v31, %v871_v27  ;;  %v1309_v37 = vpack.c.bf16 %v926_v33, %v924_v29  ;;  %v875_v40 = vadd.f32 %v874_v34, %v159_v22  ;;  %v928_v43 = vadd.f32 %v927_v36, %v167_v38 }
 0x10b   :  { %v876_v39 = vpop.f32.mrf.mxu0  ;;  %v929_v42 = vpop.f32.mrf.mxu1 }
 0x10c   :  { %1144 = vst [vmem:[%s1850_s3] sm:$0xff] %v1308_v35  ;;  %v877_v41 = vadd.f32 %v876_v39, %v163_v23  ;;  %1145 = vst [vmem:[%s1850_s3 + $0x8] sm:$0xff] %v1309_v37  ;;  %v930_v44 = vadd.f32 %v929_v42, %v171_v26 }
 0x10d   :  { %v880_v45 = vpop.f32.mrf.mxu0  ;;  %v933_v48 = vpop.f32.mrf.mxu1 }
 0x10e   :  { %v1312_v46 = vpack.c.bf16 %v877_v41, %v875_v40  ;;  %v881_v47 = vadd.f32 %v880_v45, %v159_v22  ;;  %v1313_v49 = vpack.c.bf16 %v930_v44, %v928_v43  ;;  %v934_v50 = vadd.f32 %v933_v48, %v167_v38 }
 0x10f   :  { %v882_v51 = vpop.f32.mrf.mxu0  ;;  %v935_v53 = vpop.f32.mrf.mxu1 }
 0x110   :  { %1148 = vst [vmem:[%s1850_s3 + $0x20] sm:$0xff] %v1312_v46  ;;  %v883_v52 = vadd.f32 %v882_v51, %v163_v23  ;;  %1149 = vst [vmem:[%s1850_s3 + $0x28] sm:$0xff] %v1313_v49  ;;  %v936_v54 = vadd.f32 %v935_v53, %v171_v26 }
 0x111   :  { %v884_v55 = vpop.f32.mrf.mxu0  ;;  %v937_v59 = vpop.f32.mrf.mxu1 }
 0x112   :  { %v1316_v56 = vpack.c.bf16 %v883_v52, %v881_v47  ;;  %v885_v57 = vadd.f32 %v884_v55, %v159_v22  ;;  %v1317_v60 = vpack.c.bf16 %v936_v54, %v934_v50  ;;  %v938_v61 = vadd.f32 %v937_v59, %v167_v38 }
 0x113   :  { %v886_v58 = vpop.f32.mrf.mxu0  ;;  %v939_v63 = vpop.f32.mrf.mxu1 }
 0x114   :  { %1152 = vst [vmem:[%s1850_s3 + $0x40] sm:$0xff] %v1316_v56  ;;  %v887_v62 = vadd.f32 %v886_v58, %v163_v23  ;;  %1153 = vst [vmem:[%s1850_s3 + $0x48] sm:$0xff] %v1317_v60  ;;  %v940_v0 = vadd.f32 %v939_v63, %v171_v26 }
 0x116   :  { %v1320_v1 = vpack.c.bf16 %v887_v62, %v885_v57  ;;  %v1321_v2 = vpack.c.bf16 %v940_v0, %v938_v61 }
 0x118   :  { %1156 = vst [vmem:[%s1850_s3 + $0x60] sm:$0xff] %v1320_v1  ;;  %1157 = vst [vmem:[%s1850_s3 + $0x68] sm:$0xff] %v1321_v2 }
 0x145   :  { %v976_v9 = vpop.f32.mrf.mxu0  ;;  %v1029_v12 = vpop.f32.mrf.mxu1 }
 0x146   :  { %v977_v14 = vadd.f32 %v976_v9, %v175_v7  ;;  %v1030_v19 = vadd.f32 %v1029_v12, %v183_v10 }
 0x147   :  { %v978_v13 = vpop.f32.mrf.mxu0  ;;  %v1031_v17 = vpop.f32.mrf.mxu1 }
 0x148   :  { %v979_v16 = vadd.f32 %v978_v13, %v179_v8  ;;  %v1032_v15 = vadd.f32 %v1031_v17, %v187_v11 }
 0x149   :  { %v980_v21 = vpop.f32.mrf.mxu0  ;;  %v1033_v22 = vpop.f32.mrf.mxu1 }
 0x14a   :  { %v1310_v25 = vpack.c.bf16 %v979_v16, %v977_v14  ;;  %v1311_v18 = vpack.c.bf16 %v1032_v15, %v1030_v19  ;;  %v981_v23 = vadd.f32 %v980_v21, %v175_v7  ;;  %v1034_v20 = vadd.f32 %v1033_v22, %v183_v10 }
 0x14b   :  { %v982_v38 = vpop.f32.mrf.mxu0  ;;  %v1035_v26 = vpop.f32.mrf.mxu1 }
 0x14c   :  { %1146 = vst [vmem:[%s1850_s3 + $0x10] sm:$0xff] %v1310_v25  ;;  %v983_v24 = vadd.f32 %v982_v38, %v179_v8  ;;  %1147 = vst [vmem:[%s1850_s3 + $0x18] sm:$0xff] %v1311_v18  ;;  %v1036_v27 = vadd.f32 %v1035_v26, %v187_v11 }
 0x14d   :  { %v986_v28 = vpop.f32.mrf.mxu0  ;;  %v1039_v30 = vpop.f32.mrf.mxu1 }
 0x14e   :  { %v1314_v29 = vpack.c.bf16 %v983_v24, %v981_v23  ;;  %v1315_v31 = vpack.c.bf16 %v1036_v27, %v1034_v20  ;;  %v987_v33 = vadd.f32 %v986_v28, %v175_v7  ;;  %v1040_v36 = vadd.f32 %v1039_v30, %v183_v10 }
 0x14f   :  { %v988_v32 = vpop.f32.mrf.mxu0  ;;  %v1041_v35 = vpop.f32.mrf.mxu1 }
 0x150   :  { %1150 = vst [vmem:[%s1850_s3 + $0x30] sm:$0xff] %v1314_v29  ;;  %v989_v34 = vadd.f32 %v988_v32, %v179_v8  ;;  %1151 = vst [vmem:[%s1850_s3 + $0x38] sm:$0xff] %v1315_v31  ;;  %v1042_v37 = vadd.f32 %v1041_v35, %v187_v11 }
 0x151   :  { %v990_v39 = vpop.f32.mrf.mxu0  ;;  %v1043_v41 = vpop.f32.mrf.mxu1 }
 0x152   :  { %v1318_v40 = vpack.c.bf16 %v989_v34, %v987_v33  ;;  %v1319_v42 = vpack.c.bf16 %v1042_v37, %v1040_v36  ;;  %v991_v44 = vadd.f32 %v990_v39, %v175_v7  ;;  %v1044_v47 = vadd.f32 %v1043_v41, %v183_v10 }
 0x153   :  { %v992_v43 = vpop.f32.mrf.mxu0  ;;  %v1045_v46 = vpop.f32.mrf.mxu1 }
 0x154   :  { %1154 = vst [vmem:[%s1850_s3 + $0x50] sm:$0xff] %v1318_v40  ;;  %v993_v45 = vadd.f32 %v992_v43, %v179_v8  ;;  %1155 = vst [vmem:[%s1850_s3 + $0x58] sm:$0xff] %v1319_v42  ;;  %v1046_v48 = vadd.f32 %v1045_v46, %v187_v11 }
 0x156   :  { %v1322_v49 = vpack.c.bf16 %v993_v45, %v991_v44  ;;  %v1323_v50 = vpack.c.bf16 %v1046_v48, %v1044_v47 }
 0x158   :  { %1158 = vst [vmem:[%s1850_s3 + $0x70] sm:$0xff] %v1322_v49  ;;  %1159 = vst [vmem:[%s1850_s3 + $0x78] sm:$0xff] %v1323_v50 }

// kernel: bidaf_forward.15
= control target key start
LH: loop header
LB: loop body
LE: loop exit
PB: predicated region body
PF: predicated region fallthrough
CT: control target
= control target key end

     0   :  { %s6701_s1 = inlined_call_operand.vmem [shape: bf16[1024,1024], index: 1, kind: input, shape index: {}]   ;;  %s6702_s0 = inlined_call_operand.vmem [shape: f32[32,1024], index: 0, kind: input, shape index: {}]   ;;  %s6703_s2 = inlined_call_operand.vmem [shape: f32[1,1024], index: 2, kind: input, shape index: {}]   ;;  %s6704_s3 = inlined_call_operand.vmem [shape: bf16[32,1024], index: 3, kind: output, shape index: {}]  }
   0x1   :  { %v118_v0 = vld [vmem:[%s6701_s1 + $0x1c0] sm:$0xff]  ;;  %v15_v54 = vld [vmem:[%s6702_s0 + $0x8] sm:$0xff]  ;;  %v17_v59 = vld [vmem:[%s6702_s0 + $0x18] sm:$0xff] }
   0x2   :  { %v122_v1 = vld [vmem:[%s6701_s1 + $0x1e0] sm:$0xff]  ;;  %v23_v55 = vld [vmem:[%s6702_s0 + $0x48] sm:$0xff]  ;;  %v25_v60 = vld [vmem:[%s6702_s0 + $0x58] sm:$0xff] }
   0x3   :  { %v246_v2 = vld [vmem:[%s6701_s1 + $0x5c0] sm:$0xff]  ;;  %v4197_v3 = vcombine.high %v118_v0, %v122_v1  ;;  %v4196_v5 = vcombine.low %v118_v0, %v122_v1  ;;  %v4801_v58 = vpack.c.bf16 %v23_v55, %v15_v54  ;;  %v4815_v63 = vpack.c.bf16 %v25_v60, %v17_v59 }
   0x4   :  { %v250_v4 = vld [vmem:[%s6701_s1 + $0x5e0] sm:$0xff] }
   0x5   :  { %v110_v6 = vld [vmem:[%s6701_s1 + $0x180] sm:$0xff]  ;;  %v4325_v8 = vcombine.high %v246_v2, %v250_v4  ;;  %v4324_v9 = vcombine.low %v246_v2, %v250_v4  ;;  %3176 = vmatprep.subr.bf16.mxu0 %v4197_v3  ;;  %3208 = vmatprep.mubr.bf16.mxu0 %v4801_v58 }
   0x6   :  { %v114_v7 = vld [vmem:[%s6701_s1 + $0x1a0] sm:$0xff]  ;;  %3177 = vmatpush1.bf16.msra.mxu0 %v4196_v5  ;;  %3261 = vmatprep.mubr.bf16.mxu1 %v4815_v63 }
   0x7   :  { %v4189_v10 = vcombine.high %v110_v6, %v114_v7  ;;  %v238_v11 = vld [vmem:[%s6701_s1 + $0x580] sm:$0xff]  ;;  %3229 = vmatprep.subr.bf16.mxu1 %v4325_v8  ;;  %v4188_v18 = vcombine.low %v110_v6, %v114_v7 }
   0x8   :  { %v242_v12 = vld [vmem:[%s6701_s1 + $0x5a0] sm:$0xff]  ;;  %3230 = vmatpush1.bf16.msra.mxu1 %v4324_v9 }
   0x9   :  { %v102_v13 = vld [vmem:[%s6701_s1 + $0x140] sm:$0xff]  ;;  %v4317_v14 = vcombine.high %v238_v11, %v242_v12  ;;  %3178 = vmatprep.subr.bf16.mxu0 %v4189_v10  ;;  %v4316_v19 = vcombine.low %v238_v11, %v242_v12 }
   0xa   :  { %v106_v15 = vld [vmem:[%s6701_s1 + $0x160] sm:$0xff]  ;;  %3179 = vmatpush1.bf16.msra.mxu0 %v4188_v18 }
   0xb   :  { %v230_v16 = vld [vmem:[%s6701_s1 + $0x540] sm:$0xff]  ;;  %v4181_v20 = vcombine.high %v102_v13, %v106_v15  ;;  %3231 = vmatprep.subr.bf16.mxu1 %v4317_v14  ;;  %v4180_v26 = vcombine.low %v102_v13, %v106_v15 }
   0xc   :  { %v234_v17 = vld [vmem:[%s6701_s1 + $0x560] sm:$0xff]  ;;  %3232 = vmatpush1.bf16.msra.mxu1 %v4316_v19 }
   0xd   :  { %v4309_v21 = vcombine.high %v230_v16, %v234_v17  ;;  %v94_v22 = vld [vmem:[%s6701_s1 + $0x100] sm:$0xff]  ;;  %3180 = vmatprep.subr.bf16.mxu0 %v4181_v20  ;;  %v4308_v27 = vcombine.low %v230_v16, %v234_v17 }
   0xe   :  { %v98_v23 = vld [vmem:[%s6701_s1 + $0x120] sm:$0xff]  ;;  %3181 = vmatpush1.bf16.msra.mxu0 %v4180_v26 }
   0xf   :  { %v222_v24 = vld [vmem:[%s6701_s1 + $0x500] sm:$0xff]  ;;  %v4173_v28 = vcombine.high %v94_v22, %v98_v23  ;;  %3233 = vmatprep.subr.bf16.mxu1 %v4309_v21  ;;  %v4172_v34 = vcombine.low %v94_v22, %v98_v23 }
  0x10   :  { %v226_v25 = vld [vmem:[%s6701_s1 + $0x520] sm:$0xff]  ;;  %3234 = vmatpush1.bf16.msra.mxu1 %v4308_v27 }
  0x11   :  { %v4301_v29 = vcombine.high %v222_v24, %v226_v25  ;;  %v86_v30 = vld [vmem:[%s6701_s1 + $0xc0] sm:$0xff]  ;;  %3182 = vmatprep.subr.bf16.mxu0 %v4173_v28  ;;  %v4300_v35 = vcombine.low %v222_v24, %v226_v25 }
  0x12   :  { %v90_v31 = vld [vmem:[%s6701_s1 + $0xe0] sm:$0xff]  ;;  %3183 = vmatpush1.bf16.msra.mxu0 %v4172_v34 }
  0x13   :  { %v214_v32 = vld [vmem:[%s6701_s1 + $0x4c0] sm:$0xff]  ;;  %v4165_v36 = vcombine.high %v86_v30, %v90_v31  ;;  %3235 = vmatprep.subr.bf16.mxu1 %v4301_v29  ;;  %v4164_v42 = vcombine.low %v86_v30, %v90_v31 }
  0x14   :  { %v218_v33 = vld [vmem:[%s6701_s1 + $0x4e0] sm:$0xff]  ;;  %3236 = vmatpush1.bf16.msra.mxu1 %v4300_v35 }
  0x15   :  { %v4293_v37 = vcombine.high %v214_v32, %v218_v33  ;;  %v78_v38 = vld [vmem:[%s6701_s1 + $0x80] sm:$0xff]  ;;  %3184 = vmatprep.subr.bf16.mxu0 %v4165_v36  ;;  %v4292_v43 = vcombine.low %v214_v32, %v218_v33 }
  0x16   :  { %v82_v39 = vld [vmem:[%s6701_s1 + $0xa0] sm:$0xff]  ;;  %3185 = vmatpush1.bf16.msra.mxu0 %v4164_v42 }
  0x17   :  { %v206_v40 = vld [vmem:[%s6701_s1 + $0x480] sm:$0xff]  ;;  %v4157_v44 = vcombine.high %v78_v38, %v82_v39  ;;  %3237 = vmatprep.subr.bf16.mxu1 %v4293_v37  ;;  %v4156_v50 = vcombine.low %v78_v38, %v82_v39 }
  0x18   :  { %v210_v41 = vld [vmem:[%s6701_s1 + $0x4a0] sm:$0xff]  ;;  %3238 = vmatpush1.bf16.msra.mxu1 %v4292_v43 }
  0x19   :  { %v4285_v45 = vcombine.high %v206_v40, %v210_v41  ;;  %v70_v46 = vld [vmem:[%s6701_s1 + $0x40] sm:$0xff]  ;;  %3186 = vmatprep.subr.bf16.mxu0 %v4157_v44  ;;  %v4284_v51 = vcombine.low %v206_v40, %v210_v41 }
  0x1a   :  { %v74_v47 = vld [vmem:[%s6701_s1 + $0x60] sm:$0xff]  ;;  %3187 = vmatpush1.bf16.msra.mxu0 %v4156_v50 }
  0x1b   :  { %v198_v48 = vld [vmem:[%s6701_s1 + $0x440] sm:$0xff]  ;;  %v4149_v52 = vcombine.high %v70_v46, %v74_v47  ;;  %3239 = vmatprep.subr.bf16.mxu1 %v4285_v45  ;;  %v4148_v0 = vcombine.low %v70_v46, %v74_v47 }
  0x1c   :  { %v202_v49 = vld [vmem:[%s6701_s1 + $0x460] sm:$0xff]  ;;  %3240 = vmatpush1.bf16.msra.mxu1 %v4284_v51 }
  0x1d   :  { %v62_v53 = vld [vmem:[%s6701_s1] sm:$0xff]  ;;  %v4277_v56 = vcombine.high %v198_v48, %v202_v49  ;;  %3188 = vmatprep.subr.bf16.mxu0 %v4149_v52  ;;  %v4276_v1 = vcombine.low %v198_v48, %v202_v49 }
  0x1e   :  { %v66_v57 = vld [vmem:[%s6701_s1 + $0x20] sm:$0xff]  ;;  %3189 = vmatpush1.bf16.msra.mxu0 %v4148_v0 }
  0x1f   :  { %v190_v61 = vld [vmem:[%s6701_s1 + $0x400] sm:$0xff]  ;;  %v4141_v2 = vcombine.high %v62_v53, %v66_v57  ;;  %3241 = vmatprep.subr.bf16.mxu1 %v4277_v56  ;;  %v4140_v8 = vcombine.low %v62_v53, %v66_v57 }
  0x20   :  { %v194_v62 = vld [vmem:[%s6701_s1 + $0x420] sm:$0xff]  ;;  %3242 = vmatpush1.bf16.msra.mxu1 %v4276_v1 }
  0x21   :  { %v4269_v3 = vcombine.high %v190_v61, %v194_v62  ;;  %v182_v4 = vld [vmem:[%s6701_s1 + $0x3c0] sm:$0xff]  ;;  %3190 = vmatprep.subr.bf16.mxu0 %v4141_v2  ;;  %v4268_v9 = vcombine.low %v190_v61, %v194_v62 }
  0x22   :  { %v186_v5 = vld [vmem:[%s6701_s1 + $0x3e0] sm:$0xff]  ;;  %3191 = vmatpush1.bf16.msra.mxu0 %v4140_v8 }
  0x23   :  { %v310_v6 = vld [vmem:[%s6701_s1 + $0x7c0] sm:$0xff]  ;;  %v4261_v10 = vcombine.high %v182_v4, %v186_v5  ;;  %3243 = vmatprep.subr.bf16.mxu1 %v4269_v3  ;;  %v4260_v16 = vcombine.low %v182_v4, %v186_v5 }
  0x24   :  { %v314_v7 = vld [vmem:[%s6701_s1 + $0x7e0] sm:$0xff]  ;;  %3244 = vmatpush1.bf16.msra.mxu1 %v4268_v9 }
  0x25   :  { %v4389_v11 = vcombine.high %v310_v6, %v314_v7  ;;  %v174_v12 = vld [vmem:[%s6701_s1 + $0x380] sm:$0xff]  ;;  %3192 = vmatprep.subr.bf16.mxu0 %v4261_v10  ;;  %v4388_v17 = vcombine.low %v310_v6, %v314_v7 }
  0x26   :  { %v178_v13 = vld [vmem:[%s6701_s1 + $0x3a0] sm:$0xff]  ;;  %3193 = vmatpush2.bf16.msra.mxu0 %v4260_v16 }
  0x27   :  { %v302_v14 = vld [vmem:[%s6701_s1 + $0x780] sm:$0xff]  ;;  %v4253_v18 = vcombine.high %v174_v12, %v178_v13  ;;  %3245 = vmatprep.subr.bf16.mxu1 %v4389_v11  ;;  %v4252_v24 = vcombine.low %v174_v12, %v178_v13 }
  0x28   :  { %v306_v15 = vld [vmem:[%s6701_s1 + $0x7a0] sm:$0xff]  ;;  %3246 = vmatpush2.bf16.msra.mxu1 %v4388_v17 }
  0x29   :  { %v4381_v19 = vcombine.high %v302_v14, %v306_v15  ;;  %v166_v20 = vld [vmem:[%s6701_s1 + $0x340] sm:$0xff]  ;;  %3194 = vmatprep.subr.bf16.mxu0 %v4253_v18  ;;  %v4380_v25 = vcombine.low %v302_v14, %v306_v15  ;;  %v16_v14 = vld [vmem:[%s6702_s0 + $0x10] sm:$0xff] }
  0x2a   :  { %v170_v21 = vld [vmem:[%s6701_s1 + $0x360] sm:$0xff]  ;;  %3195 = vmatpush2.bf16.msra.mxu0 %v4252_v24  ;;  %v24_v15 = vld [vmem:[%s6702_s0 + $0x50] sm:$0xff]  ;;  %v39_v24 = vld [vmem:[%s6702_s0 + $0xc8] sm:$0xff] }
  0x2b   :  { %v294_v22 = vld [vmem:[%s6701_s1 + $0x740] sm:$0xff]  ;;  %v4245_v26 = vcombine.high %v166_v20, %v170_v21  ;;  %3247 = vmatprep.subr.bf16.mxu1 %v4381_v19  ;;  %v4244_v32 = vcombine.low %v166_v20, %v170_v21 }
  0x2c   :  { %v298_v23 = vld [vmem:[%s6701_s1 + $0x760] sm:$0xff]  ;;  %3248 = vmatpush2.bf16.msra.mxu1 %v4380_v25  ;;  %v4959_v25 = vpack.c.bf16 %v24_v15, %v16_v14 }
  0x2d   :  { %v4373_v27 = vcombine.high %v294_v22, %v298_v23  ;;  %v158_v28 = vld [vmem:[%s6701_s1 + $0x300] sm:$0xff]  ;;  %3196 = vmatprep.subr.bf16.mxu0 %v4245_v26  ;;  %v4372_v33 = vcombine.low %v294_v22, %v298_v23  ;;  %v31_v23 = vld [vmem:[%s6702_s0 + $0x88] sm:$0xff] }
  0x2e   :  { %v162_v29 = vld [vmem:[%s6701_s1 + $0x320] sm:$0xff]  ;;  %3197 = vmatpush2.bf16.msra.mxu0 %v4244_v32 }
  0x2f   :  { %v286_v30 = vld [vmem:[%s6701_s1 + $0x700] sm:$0xff]  ;;  %v4237_v34 = vcombine.high %v158_v28, %v162_v29  ;;  %3249 = vmatprep.subr.bf16.mxu1 %v4373_v27  ;;  %v4236_v40 = vcombine.low %v158_v28, %v162_v29  ;;  %v33_v27 = vld [vmem:[%s6702_s0 + $0x98] sm:$0xff] }
  0x30   :  { %v290_v31 = vld [vmem:[%s6701_s1 + $0x720] sm:$0xff]  ;;  %3250 = vmatpush2.bf16.msra.mxu1 %v4372_v33  ;;  %v41_v28 = vld [vmem:[%s6702_s0 + $0xd8] sm:$0xff] }
  0x31   :  { %v4365_v35 = vcombine.high %v286_v30, %v290_v31  ;;  %v150_v36 = vld [vmem:[%s6701_s1 + $0x2c0] sm:$0xff]  ;;  %3198 = vmatprep.subr.bf16.mxu0 %v4237_v34  ;;  %v4364_v41 = vcombine.low %v286_v30, %v290_v31  ;;  %v4973_v34 = vpack.c.bf16 %v39_v24, %v31_v23 }
  0x32   :  { %v154_v37 = vld [vmem:[%s6701_s1 + $0x2e0] sm:$0xff]  ;;  %3199 = vmatpush2.bf16.msra.mxu0 %v4236_v40 }
  0x33   :  { %v278_v38 = vld [vmem:[%s6701_s1 + $0x6c0] sm:$0xff]  ;;  %v4229_v42 = vcombine.high %v150_v36, %v154_v37  ;;  %3251 = vmatprep.subr.bf16.mxu1 %v4365_v35  ;;  %v4228_v48 = vcombine.low %v150_v36, %v154_v37  ;;  %v4982_v37 = vpack.c.bf16 %v41_v28, %v33_v27 }
  0x34   :  { %v282_v39 = vld [vmem:[%s6701_s1 + $0x6e0] sm:$0xff]  ;;  %3252 = vmatpush2.bf16.msra.mxu1 %v4364_v41 }
  0x35   :  { %v4357_v43 = vcombine.high %v278_v38, %v282_v39  ;;  %v142_v44 = vld [vmem:[%s6701_s1 + $0x280] sm:$0xff]  ;;  %3200 = vmatprep.subr.bf16.mxu0 %v4229_v42  ;;  %v4356_v49 = vcombine.low %v278_v38, %v282_v39 }
  0x36   :  { %v146_v45 = vld [vmem:[%s6701_s1 + $0x2a0] sm:$0xff]  ;;  %3201 = vmatpush2.bf16.msra.mxu0 %v4228_v48 }
  0x37   :  { %v270_v46 = vld [vmem:[%s6701_s1 + $0x680] sm:$0xff]  ;;  %v4221_v50 = vcombine.high %v142_v44, %v146_v45  ;;  %3253 = vmatprep.subr.bf16.mxu1 %v4357_v43  ;;  %v4220_v56 = vcombine.low %v142_v44, %v146_v45  ;;  %v32_v43 = vld [vmem:[%s6702_s0 + $0x90] sm:$0xff] }
  0x38   :  { %v274_v47 = vld [vmem:[%s6701_s1 + $0x6a0] sm:$0xff]  ;;  %3254 = vmatpush2.bf16.msra.mxu1 %v4356_v49  ;;  %v40_v44 = vld [vmem:[%s6702_s0 + $0xd0] sm:$0xff] }
  0x39   :  { %v4349_v51 = vcombine.high %v270_v46, %v274_v47  ;;  %v134_v52 = vld [vmem:[%s6701_s1 + $0x240] sm:$0xff]  ;;  %3202 = vmatprep.subr.bf16.mxu0 %v4221_v50  ;;  %v4348_v57 = vcombine.low %v270_v46, %v274_v47 }
  0x3a   :  { %v138_v53 = vld [vmem:[%s6701_s1 + $0x260] sm:$0xff]  ;;  %3203 = vmatpush2.bf16.msra.mxu0 %v4220_v56  ;;  %v29_v56 = vld [vmem:[%s6702_s0 + $0x78] sm:$0xff] }
  0x3b   :  { %v262_v54 = vld [vmem:[%s6701_s1 + $0x640] sm:$0xff]  ;;  %v4213_v59 = vcombine.high %v134_v52, %v138_v53  ;;  %3255 = vmatprep.subr.bf16.mxu1 %v4349_v51  ;;  %v4212_v2 = vcombine.low %v134_v52, %v138_v53  ;;  %v19_v51 = vld [vmem:[%s6702_s0 + $0x28] sm:$0xff] }
  0x3c   :  { %v266_v55 = vld [vmem:[%s6701_s1 + $0x660] sm:$0xff]  ;;  %3256 = vmatpush2.bf16.msra.mxu1 %v4348_v57  ;;  %v27_v52 = vld [vmem:[%s6702_s0 + $0x68] sm:$0xff] }
  0x3d   :  { %v4341_v60 = vcombine.high %v262_v54, %v266_v55  ;;  %v126_v61 = vld [vmem:[%s6701_s1 + $0x200] sm:$0xff]  ;;  %3204 = vmatprep.subr.bf16.mxu0 %v4213_v59  ;;  %v4340_v3 = vcombine.low %v262_v54, %v266_v55  ;;  %v5019_v54 = vpack.c.bf16 %v40_v44, %v32_v43  ;;  %v21_v55 = vld [vmem:[%s6702_s0 + $0x38] sm:$0xff] }
  0x3e   :  { %v130_v62 = vld [vmem:[%s6701_s1 + $0x220] sm:$0xff]  ;;  %3205 = vmatpush2.bf16.msra.mxu0 %v4212_v2 }
  0x3f   :  { %v254_v0 = vld [vmem:[%s6701_s1 + $0x600] sm:$0xff]  ;;  %v4205_v4 = vcombine.high %v126_v61, %v130_v62  ;;  %3257 = vmatprep.subr.bf16.mxu1 %v4341_v60  ;;  %v4204_v10 = vcombine.low %v126_v61, %v130_v62 }
  0x40   :  { %v258_v1 = vld [vmem:[%s6701_s1 + $0x620] sm:$0xff]  ;;  %3258 = vmatpush2.bf16.msra.mxu1 %v4340_v3  ;;  %v5042_v3 = vpack.c.bf16 %v29_v56, %v21_v55 }
  0x41   :  { %v4333_v5 = vcombine.high %v254_v0, %v258_v1  ;;  %v374_v6 = vld [vmem:[%s6701_s1 + $0x9c0] sm:$0xff]  ;;  %3206 = vmatprep.subr.bf16.mxu0 %v4205_v4  ;;  %v4332_v13 = vcombine.low %v254_v0, %v258_v1  ;;  %v5033_v0 = vpack.c.bf16 %v27_v52, %v19_v51 }
  0x42   :  { %v378_v7 = vld [vmem:[%s6701_s1 + $0x9e0] sm:$0xff]  ;;  %3207 = vmatpush2.bf16.msra.mxu0 %v4204_v10 }
  0x43   :  { %v502_v8 = vld [vmem:[%s6701_s1 + $0xdc0] sm:$0xff]  ;;  %v4453_v16 = vcombine.high %v374_v6, %v378_v7  ;;  %3259 = vmatprep.subr.bf16.mxu1 %v4333_v5  ;;  %v4452_v26 = vcombine.low %v374_v6, %v378_v7 }
  0x44   :  { %v506_v9 = vld [vmem:[%s6701_s1 + $0xde0] sm:$0xff]  ;;  %3260 = vmatpush2.bf16.msra.mxu1 %v4332_v13 }
  0x45   :  { %v14_v11 = vld [vmem:[%s6702_s0] sm:$0xff]  ;;  %v4581_v17 = vcombine.high %v502_v8, %v506_v9  ;;  %3282 = vmatprep.subr.bf16.mxu0 %v4453_v16  ;;  %v4580_v29 = vcombine.low %v502_v8, %v506_v9 }
  0x46   :  { %v22_v12 = vld [vmem:[%s6702_s0 + $0x40] sm:$0xff] }
  0x47   :  { %v366_v18 = vld [vmem:[%s6701_s1 + $0x980] sm:$0xff]  ;;  %v4948_v21 = vpack.c.bf16 %v22_v12, %v14_v11  ;;  %3335 = vmatprep.subr.bf16.mxu1 %v4581_v17  ;;  %3262 = vmatmul.mubr.bf16.vlgmr.msra.gmra.mxu1 %v4959_v25 }
  0x48   :  { %v370_v19 = vld [vmem:[%s6701_s1 + $0x9a0] sm:$0xff]  ;;  %3336 = vmatpush1.bf16.msra.mxu1 %v4580_v29  ;;  %3271 = vmatprep.mubr.bf16.mxu1 %v4982_v37 }
  0x49   :  { %v494_v20 = vld [vmem:[%s6701_s1 + $0xd80] sm:$0xff]  ;;  %v4445_v30 = vcombine.high %v366_v18, %v370_v19  ;;  %3209 = vmatmul.mubr.bf16.vlgmr.msra.gmra.mxu0 %v4948_v21  ;;  %v4444_v38 = vcombine.low %v366_v18, %v370_v19 }
  0x4a   :  { %v498_v22 = vld [vmem:[%s6701_s1 + $0xda0] sm:$0xff]  ;;  %3283 = vmatpush1.bf16.msra.mxu0 %v4452_v26  ;;  %3218 = vmatprep.mubr.bf16.mxu0 %v4973_v34 }
  0x4b   :  { %v4573_v31 = vcombine.high %v494_v20, %v498_v22  ;;  %v358_v32 = vld [vmem:[%s6701_s1 + $0x940] sm:$0xff]  ;;  %3284 = vmatprep.subr.bf16.mxu0 %v4445_v30  ;;  %v4572_v41 = vcombine.low %v494_v20, %v498_v22 }
  0x4c   :  { %v362_v33 = vld [vmem:[%s6701_s1 + $0x960] sm:$0xff] }
  0x4d   :  { %v486_v35 = vld [vmem:[%s6701_s1 + $0xd40] sm:$0xff]  ;;  %v4437_v42 = vcombine.high %v358_v32, %v362_v33  ;;  %3337 = vmatprep.subr.bf16.mxu1 %v4573_v31  ;;  %v4436_v53 = vcombine.low %v358_v32, %v362_v33 }
  0x4e   :  { %v490_v36 = vld [vmem:[%s6701_s1 + $0xd60] sm:$0xff]  ;;  %3285 = vmatpush1.bf16.msra.mxu0 %v4444_v38  ;;  %3338 = vmatpush1.bf16.msra.mxu1 %v4572_v41 }
  0x4f   :  { %v30_v39 = vld [vmem:[%s6702_s0 + $0x80] sm:$0xff]  ;;  %v4565_v45 = vcombine.high %v486_v35, %v490_v36  ;;  %3286 = vmatprep.subr.bf16.mxu0 %v4437_v42  ;;  %v4564_v57 = vcombine.low %v486_v35, %v490_v36  ;;  %3272 = vmatmul.mubr.bf16.gmra.mxu1 %v5019_v54 }
  0x50   :  { %v38_v40 = vld [vmem:[%s6702_s0 + $0xc0] sm:$0xff]  ;;  %3367 = vmatprep.mubr.bf16.mxu1 %v5042_v3 }
  0x51   :  { %v350_v46 = vld [vmem:[%s6701_s1 + $0x900] sm:$0xff]  ;;  %v5010_v50 = vpack.c.bf16 %v38_v40, %v30_v39  ;;  %3339 = vmatprep.subr.bf16.mxu1 %v4565_v45 }
  0x52   :  { %v354_v47 = vld [vmem:[%s6701_s1 + $0x920] sm:$0xff]  ;;  %3287 = vmatpush1.bf16.msra.mxu0 %v4436_v53  ;;  %3340 = vmatpush1.bf16.msra.mxu1 %v4564_v57 }
  0x53   :  { %v478_v48 = vld [vmem:[%s6701_s1 + $0xd00] sm:$0xff]  ;;  %v4429_v59 = vcombine.high %v350_v46, %v354_v47  ;;  %3219 = vmatmul.mubr.bf16.gmra.mxu0 %v5010_v50  ;;  %v4428_v4 = vcombine.low %v350_v46, %v354_v47 }
  0x54   :  { %v482_v49 = vld [vmem:[%s6701_s1 + $0xd20] sm:$0xff]  ;;  %3314 = vmatprep.mubr.bf16.mxu0 %v5033_v0 }
  0x55   :  { %v4557_v60 = vcombine.high %v478_v48, %v482_v49  ;;  %v342_v61 = vld [vmem:[%s6701_s1 + $0x8c0] sm:$0xff]  ;;  %3288 = vmatprep.subr.bf16.mxu0 %v4429_v59  ;;  %v4556_v5 = vcombine.low %v478_v48, %v482_v49 }
  0x56   :  { %v346_v62 = vld [vmem:[%s6701_s1 + $0x8e0] sm:$0xff]  ;;  %3289 = vmatpush1.bf16.msra.mxu0 %v4428_v4 }
  0x57   :  { %v470_v1 = vld [vmem:[%s6701_s1 + $0xcc0] sm:$0xff]  ;;  %v4421_v6 = vcombine.high %v342_v61, %v346_v62  ;;  %3341 = vmatprep.subr.bf16.mxu1 %v4557_v60  ;;  %v4420_v12 = vcombine.low %v342_v61, %v346_v62 }
  0x58   :  { %v474_v2 = vld [vmem:[%s6701_s1 + $0xce0] sm:$0xff]  ;;  %3342 = vmatpush1.bf16.msra.mxu1 %v4556_v5 }
  0x59   :  { %v4549_v7 = vcombine.high %v470_v1, %v474_v2  ;;  %v334_v8 = vld [vmem:[%s6701_s1 + $0x880] sm:$0xff]  ;;  %3290 = vmatprep.subr.bf16.mxu0 %v4421_v6  ;;  %v4548_v13 = vcombine.low %v470_v1, %v474_v2 }
  0x5a   :  { %v338_v9 = vld [vmem:[%s6701_s1 + $0x8a0] sm:$0xff]  ;;  %3291 = vmatpush1.bf16.msra.mxu0 %v4420_v12 }
  0x5b   :  { %v462_v10 = vld [vmem:[%s6701_s1 + $0xc80] sm:$0xff]  ;;  %v4413_v14 = vcombine.high %v334_v8, %v338_v9  ;;  %3343 = vmatprep.subr.bf16.mxu1 %v4549_v7  ;;  %v4412_v20 = vcombine.low %v334_v8, %v338_v9 }
  0x5c   :  { %v466_v11 = vld [vmem:[%s6701_s1 + $0xca0] sm:$0xff]  ;;  %3344 = vmatpush1.bf16.msra.mxu1 %v4548_v13 }
  0x5d   :  { %v4541_v15 = vcombine.high %v462_v10, %v466_v11  ;;  %v326_v16 = vld [vmem:[%s6701_s1 + $0x840] sm:$0xff]  ;;  %3292 = vmatprep.subr.bf16.mxu0 %v4413_v14  ;;  %v4540_v22 = vcombine.low %v462_v10, %v466_v11 }
  0x5e   :  { %v330_v17 = vld [vmem:[%s6701_s1 + $0x860] sm:$0xff]  ;;  %3293 = vmatpush1.bf16.msra.mxu0 %v4412_v20 }
  0x5f   :  { %v454_v18 = vld [vmem:[%s6701_s1 + $0xc40] sm:$0xff]  ;;  %v4405_v23 = vcombine.high %v326_v16, %v330_v17  ;;  %3345 = vmatprep.subr.bf16.mxu1 %v4541_v15  ;;  %v4404_v30 = vcombine.low %v326_v16, %v330_v17 }
  0x60   :  { %v458_v19 = vld [vmem:[%s6701_s1 + $0xc60] sm:$0xff]  ;;  %3346 = vmatpush1.bf16.msra.mxu1 %v4540_v22 }
  0x61   :  { %v4533_v24 = vcombine.high %v454_v18, %v458_v19  ;;  %v318_v26 = vld [vmem:[%s6701_s1 + $0x800] sm:$0xff]  ;;  %3294 = vmatprep.subr.bf16.mxu0 %v4405_v23  ;;  %v4532_v31 = vcombine.low %v454_v18, %v458_v19 }
  0x62   :  { %v322_v27 = vld [vmem:[%s6701_s1 + $0x820] sm:$0xff]  ;;  %3295 = vmatpush1.bf16.msra.mxu0 %v4404_v30 }
  0x63   :  { %v446_v28 = vld [vmem:[%s6701_s1 + $0xc00] sm:$0xff]  ;;  %v4397_v32 = vcombine.high %v318_v26, %v322_v27  ;;  %3347 = vmatprep.subr.bf16.mxu1 %v4533_v24  ;;  %v4396_v40 = vcombine.low %v318_v26, %v322_v27 }
  0x64   :  { %v450_v29 = vld [vmem:[%s6701_s1 + $0xc20] sm:$0xff]  ;;  %3348 = vmatpush1.bf16.msra.mxu1 %v4532_v31 }
  0x65   :  { %v4525_v33 = vcombine.high %v446_v28, %v450_v29  ;;  %v438_v35 = vld [vmem:[%s6701_s1 + $0xbc0] sm:$0xff]  ;;  %3296 = vmatprep.subr.bf16.mxu0 %v4397_v32  ;;  %v4524_v41 = vcombine.low %v446_v28, %v450_v29 }
  0x66   :  { %v442_v36 = vld [vmem:[%s6701_s1 + $0xbe0] sm:$0xff]  ;;  %3297 = vmatpush1.bf16.msra.mxu0 %v4396_v40 }
  0x67   :  { %v566_v38 = vld [vmem:[%s6701_s1 + $0xfc0] sm:$0xff]  ;;  %v4517_v42 = vcombine.high %v438_v35, %v442_v36  ;;  %3349 = vmatprep.subr.bf16.mxu1 %v4525_v33  ;;  %v4516_v48 = vcombine.low %v438_v35, %v442_v36 }
  0x68   :  { %v570_v39 = vld [vmem:[%s6701_s1 + $0xfe0] sm:$0xff]  ;;  %3350 = vmatpush1.bf16.msra.mxu1 %v4524_v41 }
  0x69   :  { %v4645_v43 = vcombine.high %v566_v38, %v570_v39  ;;  %v430_v44 = vld [vmem:[%s6701_s1 + $0xb80] sm:$0xff]  ;;  %3298 = vmatprep.subr.bf16.mxu0 %v4517_v42  ;;  %v4644_v49 = vcombine.low %v566_v38, %v570_v39 }
  0x6a   :  { %v434_v45 = vld [vmem:[%s6701_s1 + $0xba0] sm:$0xff]  ;;  %3299 = vmatpush2.bf16.msra.mxu0 %v4516_v48  ;;  %v247_v48 = vld [vmem:[%s6701_s1 + $0x5c8] sm:$0xff] }
  0x6b   :  { %v558_v46 = vld [vmem:[%s6701_s1 + $0xf80] sm:$0xff]  ;;  %v4509_v51 = vcombine.high %v430_v44, %v434_v45  ;;  %3351 = vmatprep.subr.bf16.mxu1 %v4645_v43  ;;  %v4508_v59 = vcombine.low %v430_v44, %v434_v45 }
  0x6c   :  { %v562_v47 = vld [vmem:[%s6701_s1 + $0xfa0] sm:$0xff]  ;;  %3352 = vmatpush2.bf16.msra.mxu1 %v4644_v49  ;;  %v251_v49 = vld [vmem:[%s6701_s1 + $0x5e8] sm:$0xff] }
  0x6d   :  { %v4637_v52 = vcombine.high %v558_v46, %v562_v47  ;;  %v422_v53 = vld [vmem:[%s6701_s1 + $0xb40] sm:$0xff]  ;;  %3300 = vmatprep.subr.bf16.mxu0 %v4509_v51  ;;  %v4636_v60 = vcombine.low %v558_v46, %v562_v47  ;;  %v119_v46 = vld [vmem:[%s6701_s1 + $0x1c8] sm:$0xff] }
  0x6e   :  { %v426_v55 = vld [vmem:[%s6701_s1 + $0xb60] sm:$0xff]  ;;  %3301 = vmatpush2.bf16.msra.mxu0 %v4508_v59  ;;  %v123_v47 = vld [vmem:[%s6701_s1 + $0x1e8] sm:$0xff] }
  0x6f   :  { %v550_v56 = vld [vmem:[%s6701_s1 + $0xf40] sm:$0xff]  ;;  %v4501_v61 = vcombine.high %v422_v53, %v426_v55  ;;  %3353 = vmatprep.subr.bf16.mxu1 %v4637_v52  ;;  %v4500_v6 = vcombine.low %v422_v53, %v426_v55  ;;  %v4199_v59 = vcombine.high %v119_v46, %v123_v47 }
  0x70   :  { %v554_v57 = vld [vmem:[%s6701_s1 + $0xf60] sm:$0xff]  ;;  %3354 = vmatpush2.bf16.msra.mxu1 %v4636_v60  ;;  %v4327_v60 = vcombine.high %v247_v48, %v251_v49 }
  0x71   :  { %v4629_v62 = vcombine.high %v550_v56, %v554_v57  ;;  %v414_v1 = vld [vmem:[%s6701_s1 + $0xb00] sm:$0xff]  ;;  %3302 = vmatprep.subr.bf16.mxu0 %v4501_v61  ;;  %v4628_v7 = vcombine.low %v550_v56, %v554_v57  ;;  %v20_v56 = vld [vmem:[%s6702_s0 + $0x30] sm:$0xff]  ;;  %v111_v61 = vld [vmem:[%s6701_s1 + $0x188] sm:$0xff] }
  0x72   :  { %v418_v2 = vld [vmem:[%s6701_s1 + $0xb20] sm:$0xff]  ;;  %3303 = vmatpush2.bf16.msra.mxu0 %v4500_v6  ;;  %v28_v57 = vld [vmem:[%s6702_s0 + $0x70] sm:$0xff]  ;;  %v43_v6 = vld [vmem:[%s6702_s0 + $0xe8] sm:$0xff] }
  0x73   :  { %v542_v4 = vld [vmem:[%s6701_s1 + $0xf00] sm:$0xff]  ;;  %v4493_v8 = vcombine.high %v414_v1, %v418_v2  ;;  %3355 = vmatprep.subr.bf16.mxu1 %v4629_v62  ;;  %v4492_v14 = vcombine.low %v414_v1, %v418_v2  ;;  %v115_v62 = vld [vmem:[%s6701_s1 + $0x1a8] sm:$0xff] }
  0x74   :  { %v546_v5 = vld [vmem:[%s6701_s1 + $0xf20] sm:$0xff]  ;;  %3356 = vmatpush2.bf16.msra.mxu1 %v4628_v7  ;;  %v239_v1 = vld [vmem:[%s6701_s1 + $0x588] sm:$0xff]  ;;  %v5223_v7 = vpack.c.bf16 %v28_v57, %v20_v56 }
  0x75   :  { %v4621_v9 = vcombine.high %v542_v4, %v546_v5  ;;  %v406_v10 = vld [vmem:[%s6701_s1 + $0xac0] sm:$0xff]  ;;  %3304 = vmatprep.subr.bf16.mxu0 %v4493_v8  ;;  %v4620_v15 = vcombine.low %v542_v4, %v546_v5  ;;  %v243_v4 = vld [vmem:[%s6701_s1 + $0x5a8] sm:$0xff]  ;;  %v4198_v8 = vcombine.low %v119_v46, %v123_v47 }
  0x76   :  { %v410_v11 = vld [vmem:[%s6701_s1 + $0xae0] sm:$0xff]  ;;  %3305 = vmatpush2.bf16.msra.mxu0 %v4492_v14  ;;  %v35_v5 = vld [vmem:[%s6702_s0 + $0xa8] sm:$0xff] }
  0x77   :  { %v534_v12 = vld [vmem:[%s6701_s1 + $0xec0] sm:$0xff]  ;;  %v4485_v16 = vcombine.high %v406_v10, %v410_v11  ;;  %3357 = vmatprep.subr.bf16.mxu1 %v4621_v9  ;;  %v4484_v23 = vcombine.low %v406_v10, %v410_v11  ;;  %v37_v9 = vld [vmem:[%s6702_s0 + $0xb8] sm:$0xff]  ;;  %v4326_v11 = vcombine.low %v247_v48, %v251_v49  ;;  %v5231_v14 = vpack.c.bf16 %v43_v6, %v35_v5 }
  0x78   :  { %v538_v13 = vld [vmem:[%s6701_s1 + $0xee0] sm:$0xff]  ;;  %3358 = vmatpush2.bf16.msra.mxu1 %v4620_v15  ;;  %v45_v10 = vld [vmem:[%s6702_s0 + $0xf8] sm:$0xff]  ;;  %v103_v15 = vld [vmem:[%s6701_s1 + $0x148] sm:$0xff] }
  0x79   :  { %v4613_v17 = vcombine.high %v534_v12, %v538_v13  ;;  %v398_v18 = vld [vmem:[%s6701_s1 + $0xa80] sm:$0xff]  ;;  %3306 = vmatprep.subr.bf16.mxu0 %v4485_v16  ;;  %v4612_v24 = vcombine.low %v534_v12, %v538_v13  ;;  %v4191_v12 = vcombine.high %v111_v61, %v115_v62  ;;  %v4319_v13 = vcombine.high %v239_v1, %v243_v4  ;;  %v107_v16 = vld [vmem:[%s6701_s1 + $0x168] sm:$0xff] }
  0x7a   :  { %v402_v19 = vld [vmem:[%s6701_s1 + $0xaa0] sm:$0xff]  ;;  %3307 = vmatpush2.bf16.msra.mxu0 %v4484_v23 }
  0x7b   :  { %v526_v20 = vld [vmem:[%s6701_s1 + $0xe80] sm:$0xff]  ;;  %v4477_v26 = vcombine.high %v398_v18, %v402_v19  ;;  %3359 = vmatprep.subr.bf16.mxu1 %v4613_v17  ;;  %v4476_v32 = vcombine.low %v398_v18, %v402_v19  ;;  %v231_v17 = vld [vmem:[%s6701_s1 + $0x548] sm:$0xff]  ;;  %v5246_v19 = vpack.c.bf16 %v45_v10, %v37_v9 }
  0x7c   :  { %v530_v22 = vld [vmem:[%s6701_s1 + $0xea0] sm:$0xff]  ;;  %3360 = vmatpush2.bf16.msra.mxu1 %v4612_v24  ;;  %v235_v18 = vld [vmem:[%s6701_s1 + $0x568] sm:$0xff]  ;;  %v4318_v24 = vcombine.low %v239_v1, %v243_v4 }
  0x7d   :  { %v4605_v27 = vcombine.high %v526_v20, %v530_v22  ;;  %v390_v28 = vld [vmem:[%s6701_s1 + $0xa40] sm:$0xff]  ;;  %3308 = vmatprep.subr.bf16.mxu0 %v4477_v26  ;;  %v4604_v33 = vcombine.low %v526_v20, %v530_v22  ;;  %v4190_v20 = vcombine.low %v111_v61, %v115_v62  ;;  %v4183_v26 = vcombine.high %v103_v15, %v107_v16  ;;  %v71_v61 = vld [vmem:[%s6701_s1 + $0x48] sm:$0xff] }
  0x7e   :  { %v394_v29 = vld [vmem:[%s6701_s1 + $0xa60] sm:$0xff]  ;;  %3309 = vmatpush2.bf16.msra.mxu0 %v4476_v32  ;;  %v75_v62 = vld [vmem:[%s6701_s1 + $0x68] sm:$0xff] }
  0x7f   :  { %v518_v30 = vld [vmem:[%s6701_s1 + $0xe40] sm:$0xff]  ;;  %v4469_v35 = vcombine.high %v390_v28, %v394_v29  ;;  %3361 = vmatprep.subr.bf16.mxu1 %v4605_v27  ;;  %v4468_v42 = vcombine.low %v390_v28, %v394_v29  ;;  %v36_v27 = vld [vmem:[%s6702_s0 + $0xb0] sm:$0xff]  ;;  %v4311_v29 = vcombine.high %v231_v17, %v235_v18  ;;  %v199_v1 = vld [vmem:[%s6701_s1 + $0x448] sm:$0xff] }
  0x80   :  { %v522_v31 = vld [vmem:[%s6701_s1 + $0xe60] sm:$0xff]  ;;  %3362 = vmatpush2.bf16.msra.mxu1 %v4604_v33  ;;  %v44_v28 = vld [vmem:[%s6702_s0 + $0xf0] sm:$0xff]  ;;  %v223_v33 = vld [vmem:[%s6701_s1 + $0x508] sm:$0xff] }
  0x81   :  { %v4597_v36 = vcombine.high %v518_v30, %v522_v31  ;;  %v382_v38 = vld [vmem:[%s6701_s1 + $0xa00] sm:$0xff]  ;;  %3310 = vmatprep.subr.bf16.mxu0 %v4469_v35  ;;  %v4596_v43 = vcombine.low %v518_v30, %v522_v31  ;;  %v95_v30 = vld [vmem:[%s6701_s1 + $0x108] sm:$0xff] }
  0x82   :  { %v386_v39 = vld [vmem:[%s6701_s1 + $0xa20] sm:$0xff]  ;;  %3311 = vmatpush2.bf16.msra.mxu0 %v4468_v42  ;;  %v99_v31 = vld [vmem:[%s6701_s1 + $0x128] sm:$0xff] }
  0x83   :  { %v510_v40 = vld [vmem:[%s6701_s1 + $0xe00] sm:$0xff]  ;;  %v4461_v44 = vcombine.high %v382_v38, %v386_v39  ;;  %3363 = vmatprep.subr.bf16.mxu1 %v4597_v36  ;;  %v4460_v51 = vcombine.low %v382_v38, %v386_v39  ;;  %v227_v35 = vld [vmem:[%s6701_s1 + $0x528] sm:$0xff]  ;;  %v4182_v36 = vcombine.low %v103_v15, %v107_v16  ;;  %v5277_v38 = vpack.c.bf16 %v44_v28, %v36_v27 }
  0x84   :  { %v514_v41 = vld [vmem:[%s6701_s1 + $0xe20] sm:$0xff]  ;;  %3364 = vmatpush2.bf16.msra.mxu1 %v4596_v43  ;;  %v4310_v39 = vcombine.low %v231_v17, %v235_v18  ;;  %v87_v42 = vld [vmem:[%s6701_s1 + $0xc8] sm:$0xff]  ;;  %v4174_v46 = vcombine.low %v95_v30, %v99_v31  ;;  %v4302_v47 = vcombine.low %v223_v33, %v227_v35  ;;  %v4150_v15 = vcombine.low %v71_v61, %v75_v62 }
  0x85   :  { %v4589_v45 = vcombine.high %v510_v40, %v514_v41  ;;  %v18_v52 = vld [vmem:[%s6702_s0 + $0x20] sm:$0xff]  ;;  %3312 = vmatprep.subr.bf16.mxu0 %v4461_v44  ;;  %v4588_v55 = vcombine.low %v510_v40, %v514_v41  ;;  %v4175_v40 = vcombine.high %v95_v30, %v99_v31  ;;  %v4303_v41 = vcombine.high %v223_v33, %v227_v35  ;;  %v91_v43 = vld [vmem:[%s6701_s1 + $0xe8] sm:$0xff] }
  0x86   :  { %v26_v53 = vld [vmem:[%s6702_s0 + $0x60] sm:$0xff]  ;;  %3313 = vmatpush2.bf16.msra.mxu0 %v4460_v51  ;;  %v215_v44 = vld [vmem:[%s6701_s1 + $0x4c8] sm:$0xff]  ;;  %v4167_v48 = vcombine.high %v87_v42, %v91_v43  ;;  %v4166_v56 = vcombine.low %v87_v42, %v91_v43 }
  0x87   :  { %3365 = vmatprep.subr.bf16.mxu1 %v4589_v45  ;;  %v5212_v2 = vpack.c.bf16 %v26_v53, %v18_v52  ;;  %3388 = vmatprep.subr.bf16.mxu0 %v4199_v59  ;;  %v34_v22 = vld [vmem:[%s6702_s0 + $0xa0] sm:$0xff]  ;;  %v219_v45 = vld [vmem:[%s6701_s1 + $0x4e8] sm:$0xff] }
  0x88   :  { %3366 = vmatpush2.bf16.msra.mxu1 %v4588_v55  ;;  %v42_v23 = vld [vmem:[%s6702_s0 + $0xe0] sm:$0xff]  ;;  %v4295_v49 = vcombine.high %v215_v44, %v219_v45  ;;  %v79_v51 = vld [vmem:[%s6701_s1 + $0x88] sm:$0xff]  ;;  %v4294_v57 = vcombine.low %v215_v44, %v219_v45 }
  0x89   :  { %3441 = vmatprep.subr.bf16.mxu1 %v4327_v60  ;;  %3315 = vmatmul.mubr.bf16.vlgmr.msra.gmra.mxu0 %v5212_v2  ;;  %v5268_v32 = vpack.c.bf16 %v42_v23, %v34_v22  ;;  %v83_v52 = vld [vmem:[%s6701_s1 + $0xa8] sm:$0xff] }
  0x8a   :  { %3389 = vmatpush1.bf16.msra.mxu0 %v4198_v8  ;;  %3324 = vmatprep.mubr.bf16.mxu0 %v5231_v14  ;;  %v207_v53 = vld [vmem:[%s6701_s1 + $0x488] sm:$0xff]  ;;  %v4159_v59 = vcombine.high %v79_v51, %v83_v52  ;;  %v4158_v5 = vcombine.low %v79_v51, %v83_v52  ;;  %v4151_v8 = vcombine.high %v71_v61, %v75_v62 }
  0x8b   :  { %3368 = vmatmul.mubr.bf16.vlgmr.msra.gmra.mxu1 %v5223_v7  ;;  %3390 = vmatprep.subr.bf16.mxu0 %v4191_v12  ;;  %v211_v55 = vld [vmem:[%s6701_s1 + $0x4a8] sm:$0xff] }
  0x8c   :  { %3442 = vmatpush1.bf16.msra.mxu1 %v4326_v11  ;;  %3377 = vmatprep.mubr.bf16.mxu1 %v5246_v19  ;;  %v4287_v60 = vcombine.high %v207_v53, %v211_v55  ;;  %v203_v4 = vld [vmem:[%s6701_s1 + $0x468] sm:$0xff]  ;;  %v4286_v6 = vcombine.low %v207_v53, %v211_v55 }
  0x8d   :  { %3443 = vmatprep.subr.bf16.mxu1 %v4319_v13  ;;  %v4279_v9 = vcombine.high %v199_v1, %v203_v4  ;;  %v63_v10 = vld [vmem:[%s6701_s1 + $0x8] sm:$0xff]  ;;  %v4278_v16 = vcombine.low %v199_v1, %v203_v4 }
  0x8e   :  { %3391 = vmatpush1.bf16.msra.mxu0 %v4190_v20  ;;  %v67_v11 = vld [vmem:[%s6701_s1 + $0x28] sm:$0xff] }
  0x8f   :  { %3392 = vmatprep.subr.bf16.mxu0 %v4183_v26  ;;  %v191_v12 = vld [vmem:[%s6701_s1 + $0x408] sm:$0xff]  ;;  %v4143_v17 = vcombine.high %v63_v10, %v67_v11  ;;  %v4142_v26 = vcombine.low %v63_v10, %v67_v11 }
  0x90   :  { %3444 = vmatpush1.bf16.msra.mxu1 %v4318_v24  ;;  %v195_v13 = vld [vmem:[%s6701_s1 + $0x428] sm:$0xff] }
  0x91   :  { %3445 = vmatprep.subr.bf16.mxu1 %v4311_v29  ;;  %3325 = vmatmul.mubr.bf16.gmra.mxu0 %v5268_v32  ;;  %v4271_v18 = vcombine.high %v191_v12, %v195_v13  ;;  %v183_v20 = vld [vmem:[%s6701_s1 + $0x3c8] sm:$0xff]  ;;  %v4270_v27 = vcombine.low %v191_v12, %v195_v13 }
  0x92   :  { %3393 = vmatpush1.bf16.msra.mxu0 %v4182_v36  ;;  %3420 = vmatprep.mubr.bf16.mxu0 %v4801_v58  ;;  %v187_v22 = vld [vmem:[%s6701_s1 + $0x3e8] sm:$0xff] }
  0x93   :  { %3378 = vmatmul.mubr.bf16.gmra.mxu1 %v5277_v38  ;;  %3394 = vmatprep.subr.bf16.mxu0 %v4175_v40  ;;  %v311_v23 = vld [vmem:[%s6701_s1 + $0x7c8] sm:$0xff]  ;;  %v4263_v28 = vcombine.high %v183_v20, %v187_v22  ;;  %v4262_v36 = vcombine.low %v183_v20, %v187_v22 }
  0x94   :  { %3446 = vmatpush1.bf16.msra.mxu1 %v4310_v39  ;;  %3473 = vmatprep.mubr.bf16.mxu1 %v4815_v63  ;;  %v315_v24 = vld [vmem:[%s6701_s1 + $0x7e8] sm:$0xff] }
  0x95   :  { %3447 = vmatprep.subr.bf16.mxu1 %v4303_v41  ;;  %v4391_v29 = vcombine.high %v311_v23, %v315_v24  ;;  %v175_v30 = vld [vmem:[%s6701_s1 + $0x388] sm:$0xff]  ;;  %v4390_v39 = vcombine.low %v311_v23, %v315_v24 }
  0x96   :  { %3395 = vmatpush1.bf16.msra.mxu0 %v4174_v46  ;;  %v179_v31 = vld [vmem:[%s6701_s1 + $0x3a8] sm:$0xff] }
  0x97   :  { %3396 = vmatprep.subr.bf16.mxu0 %v4167_v48  ;;  %v303_v33 = vld [vmem:[%s6701_s1 + $0x788] sm:$0xff]  ;;  %v4255_v40 = vcombine.high %v175_v30, %v179_v31  ;;  %v4254_v46 = vcombine.low %v175_v30, %v179_v31 }
  0x98   :  { %3448 = vmatpush1.bf16.msra.mxu1 %v4302_v47  ;;  %v307_v35 = vld [vmem:[%s6701_s1 + $0x7a8] sm:$0xff] }
  0x99   :  { %3449 = vmatprep.subr.bf16.mxu1 %v4295_v49  ;;  %v4383_v41 = vcombine.high %v303_v33, %v307_v35  ;;  %v167_v42 = vld [vmem:[%s6701_s1 + $0x348] sm:$0xff]  ;;  %v4382_v47 = vcombine.low %v303_v33, %v307_v35 }
  0x9a   :  { %3397 = vmatpush1.bf16.msra.mxu0 %v4166_v56  ;;  %v171_v43 = vld [vmem:[%s6701_s1 + $0x368] sm:$0xff] }
  0x9b   :  { %3398 = vmatprep.subr.bf16.mxu0 %v4159_v59  ;;  %v295_v44 = vld [vmem:[%s6701_s1 + $0x748] sm:$0xff]  ;;  %v4247_v48 = vcombine.high %v167_v42, %v171_v43  ;;  %v4246_v56 = vcombine.low %v167_v42, %v171_v43 }
  0x9c   :  { %3450 = vmatpush1.bf16.msra.mxu1 %v4294_v57  ;;  %v299_v45 = vld [vmem:[%s6701_s1 + $0x768] sm:$0xff] }
  0x9d   :  { %3451 = vmatprep.subr.bf16.mxu1 %v4287_v60  ;;  %v4375_v49 = vcombine.high %v295_v44, %v299_v45  ;;  %v159_v51 = vld [vmem:[%s6701_s1 + $0x308] sm:$0xff]  ;;  %v4374_v57 = vcombine.low %v295_v44, %v299_v45 }
  0x9e   :  { %3399 = vmatpush1.bf16.msra.mxu0 %v4158_v5  ;;  %v163_v52 = vld [vmem:[%s6701_s1 + $0x328] sm:$0xff] }
  0x9f   :  { %3400 = vmatprep.subr.bf16.mxu0 %v4151_v8  ;;  %v287_v53 = vld [vmem:[%s6701_s1 + $0x708] sm:$0xff]  ;;  %v4239_v59 = vcombine.high %v159_v51, %v163_v52  ;;  %v4238_v5 = vcombine.low %v159_v51, %v163_v52 }
  0xa0   :  { %3452 = vmatpush1.bf16.msra.mxu1 %v4286_v6  ;;  %v291_v55 = vld [vmem:[%s6701_s1 + $0x728] sm:$0xff] }
  0xa1   :  { %3453 = vmatprep.subr.bf16.mxu1 %v4279_v9  ;;  %v4367_v60 = vcombine.high %v287_v53, %v291_v55  ;;  %v151_v61 = vld [vmem:[%s6701_s1 + $0x2c8] sm:$0xff]  ;;  %v4366_v6 = vcombine.low %v287_v53, %v291_v55 }
  0xa2   :  { %3401 = vmatpush1.bf16.msra.mxu0 %v4150_v15  ;;  %v155_v62 = vld [vmem:[%s6701_s1 + $0x2e8] sm:$0xff] }
  0xa3   :  { %3402 = vmatprep.subr.bf16.mxu0 %v4143_v17  ;;  %v279_v1 = vld [vmem:[%s6701_s1 + $0x6c8] sm:$0xff]  ;;  %v4231_v8 = vcombine.high %v151_v61, %v155_v62  ;;  %v4230_v15 = vcombine.low %v151_v61, %v155_v62 }
  0xa4   :  { %3454 = vmatpush1.bf16.msra.mxu1 %v4278_v16  ;;  %v283_v4 = vld [vmem:[%s6701_s1 + $0x6e8] sm:$0xff] }
  0xa5   :  { %3455 = vmatprep.subr.bf16.mxu1 %v4271_v18  ;;  %v4359_v9 = vcombine.high %v279_v1, %v283_v4  ;;  %v143_v10 = vld [vmem:[%s6701_s1 + $0x288] sm:$0xff]  ;;  %v4358_v16 = vcombine.low %v279_v1, %v283_v4 }
  0xa6   :  { %3403 = vmatpush1.bf16.msra.mxu0 %v4142_v26  ;;  %v147_v11 = vld [vmem:[%s6701_s1 + $0x2a8] sm:$0xff] }
  0xa7   :  { %3404 = vmatprep.subr.bf16.mxu0 %v4263_v28  ;;  %v271_v12 = vld [vmem:[%s6701_s1 + $0x688] sm:$0xff]  ;;  %v4223_v17 = vcombine.high %v143_v10, %v147_v11  ;;  %v4222_v26 = vcombine.low %v143_v10, %v147_v11 }
  0xa8   :  { %3456 = vmatpush1.bf16.msra.mxu1 %v4270_v27  ;;  %v275_v13 = vld [vmem:[%s6701_s1 + $0x6a8] sm:$0xff] }
  0xa9   :  { %3457 = vmatprep.subr.bf16.mxu1 %v4391_v29  ;;  %v4351_v18 = vcombine.high %v271_v12, %v275_v13  ;;  %v135_v20 = vld [vmem:[%s6701_s1 + $0x248] sm:$0xff]  ;;  %v4350_v27 = vcombine.low %v271_v12, %v275_v13 }
  0xaa   :  { %3405 = vmatpush2.bf16.msra.mxu0 %v4262_v36  ;;  %v139_v22 = vld [vmem:[%s6701_s1 + $0x268] sm:$0xff] }
  0xab   :  { %3406 = vmatprep.subr.bf16.mxu0 %v4255_v40  ;;  %v263_v23 = vld [vmem:[%s6701_s1 + $0x648] sm:$0xff]  ;;  %v4215_v28 = vcombine.high %v135_v20, %v139_v22  ;;  %v4214_v36 = vcombine.low %v135_v20, %v139_v22 }
  0xac   :  { %3458 = vmatpush2.bf16.msra.mxu1 %v4390_v39  ;;  %v267_v24 = vld [vmem:[%s6701_s1 + $0x668] sm:$0xff] }
  0xad   :  { %3459 = vmatprep.subr.bf16.mxu1 %v4383_v41  ;;  %v4343_v29 = vcombine.high %v263_v23, %v267_v24  ;;  %v127_v30 = vld [vmem:[%s6701_s1 + $0x208] sm:$0xff]  ;;  %v4342_v39 = vcombine.low %v263_v23, %v267_v24 }
  0xae   :  { %3407 = vmatpush2.bf16.msra.mxu0 %v4254_v46  ;;  %v131_v31 = vld [vmem:[%s6701_s1 + $0x228] sm:$0xff] }
  0xaf   :  { %3408 = vmatprep.subr.bf16.mxu0 %v4247_v48  ;;  %v255_v33 = vld [vmem:[%s6701_s1 + $0x608] sm:$0xff]  ;;  %v4207_v40 = vcombine.high %v127_v30, %v131_v31  ;;  %v4206_v46 = vcombine.low %v127_v30, %v131_v31 }
  0xb0   :  { %3460 = vmatpush2.bf16.msra.mxu1 %v4382_v47  ;;  %v259_v35 = vld [vmem:[%s6701_s1 + $0x628] sm:$0xff] }
  0xb1   :  { %3461 = vmatprep.subr.bf16.mxu1 %v4375_v49  ;;  %v4335_v41 = vcombine.high %v255_v33, %v259_v35  ;;  %v375_v42 = vld [vmem:[%s6701_s1 + $0x9c8] sm:$0xff]  ;;  %v4334_v47 = vcombine.low %v255_v33, %v259_v35 }
  0xb2   :  { %3409 = vmatpush2.bf16.msra.mxu0 %v4246_v56  ;;  %v379_v43 = vld [vmem:[%s6701_s1 + $0x9e8] sm:$0xff] }
  0xb3   :  { %3410 = vmatprep.subr.bf16.mxu0 %v4239_v59  ;;  %v503_v44 = vld [vmem:[%s6701_s1 + $0xdc8] sm:$0xff]  ;;  %v4455_v48 = vcombine.high %v375_v42, %v379_v43  ;;  %v4454_v56 = vcombine.low %v375_v42, %v379_v43 }
  0xb4   :  { %3462 = vmatpush2.bf16.msra.mxu1 %v4374_v57  ;;  %v507_v45 = vld [vmem:[%s6701_s1 + $0xde8] sm:$0xff] }
  0xb5   :  { %3463 = vmatprep.subr.bf16.mxu1 %v4367_v60  ;;  %v4583_v49 = vcombine.high %v503_v44, %v507_v45  ;;  %v367_v51 = vld [vmem:[%s6701_s1 + $0x988] sm:$0xff]  ;;  %v4582_v57 = vcombine.low %v503_v44, %v507_v45 }
  0xb6   :  { %3411 = vmatpush2.bf16.msra.mxu0 %v4238_v5  ;;  %v371_v52 = vld [vmem:[%s6701_s1 + $0x9a8] sm:$0xff] }
  0xb7   :  { %3412 = vmatprep.subr.bf16.mxu0 %v4231_v8  ;;  %v495_v53 = vld [vmem:[%s6701_s1 + $0xd88] sm:$0xff]  ;;  %v4447_v59 = vcombine.high %v367_v51, %v371_v52  ;;  %v4446_v5 = vcombine.low %v367_v51, %v371_v52 }
  0xb8   :  { %3464 = vmatpush2.bf16.msra.mxu1 %v4366_v6  ;;  %v499_v55 = vld [vmem:[%s6701_s1 + $0xda8] sm:$0xff] }
  0xb9   :  { %3465 = vmatprep.subr.bf16.mxu1 %v4359_v9  ;;  %v4575_v60 = vcombine.high %v495_v53, %v499_v55  ;;  %v359_v61 = vld [vmem:[%s6701_s1 + $0x948] sm:$0xff]  ;;  %v4574_v6 = vcombine.low %v495_v53, %v499_v55 }
  0xba   :  { %3413 = vmatpush2.bf16.msra.mxu0 %v4230_v15  ;;  %v363_v62 = vld [vmem:[%s6701_s1 + $0x968] sm:$0xff] }
  0xbb   :  { %3414 = vmatprep.subr.bf16.mxu0 %v4223_v17  ;;  %v487_v1 = vld [vmem:[%s6701_s1 + $0xd48] sm:$0xff]  ;;  %v4439_v8 = vcombine.high %v359_v61, %v363_v62  ;;  %v4438_v15 = vcombine.low %v359_v61, %v363_v62 }
  0xbc   :  { %3466 = vmatpush2.bf16.msra.mxu1 %v4358_v16  ;;  %v491_v4 = vld [vmem:[%s6701_s1 + $0xd68] sm:$0xff] }
  0xbd   :  { %3467 = vmatprep.subr.bf16.mxu1 %v4351_v18  ;;  %v4567_v9 = vcombine.high %v487_v1, %v491_v4  ;;  %v351_v10 = vld [vmem:[%s6701_s1 + $0x908] sm:$0xff]  ;;  %v4566_v16 = vcombine.low %v487_v1, %v491_v4 }
  0xbe   :  { %3415 = vmatpush2.bf16.msra.mxu0 %v4222_v26  ;;  %v355_v11 = vld [vmem:[%s6701_s1 + $0x928] sm:$0xff] }
  0xbf   :  { %3416 = vmatprep.subr.bf16.mxu0 %v4215_v28  ;;  %v479_v12 = vld [vmem:[%s6701_s1 + $0xd08] sm:$0xff]  ;;  %v4431_v17 = vcombine.high %v351_v10, %v355_v11  ;;  %v4430_v26 = vcombine.low %v351_v10, %v355_v11 }
  0xc0   :  { %3468 = vmatpush2.bf16.msra.mxu1 %v4350_v27  ;;  %v483_v13 = vld [vmem:[%s6701_s1 + $0xd28] sm:$0xff] }
  0xc1   :  { %3469 = vmatprep.subr.bf16.mxu1 %v4343_v29  ;;  %v4559_v18 = vcombine.high %v479_v12, %v483_v13  ;;  %v343_v20 = vld [vmem:[%s6701_s1 + $0x8c8] sm:$0xff]  ;;  %v4558_v27 = vcombine.low %v479_v12, %v483_v13 }
  0xc2   :  { %3417 = vmatpush2.bf16.msra.mxu0 %v4214_v36  ;;  %v347_v22 = vld [vmem:[%s6701_s1 + $0x8e8] sm:$0xff] }
  0xc3   :  { %3418 = vmatprep.subr.bf16.mxu0 %v4207_v40  ;;  %v471_v23 = vld [vmem:[%s6701_s1 + $0xcc8] sm:$0xff]  ;;  %v4423_v28 = vcombine.high %v343_v20, %v347_v22  ;;  %v4422_v36 = vcombine.low %v343_v20, %v347_v22 }
  0xc4   :  { %3470 = vmatpush2.bf16.msra.mxu1 %v4342_v39  ;;  %v475_v24 = vld [vmem:[%s6701_s1 + $0xce8] sm:$0xff] }
  0xc5   :  { %3471 = vmatprep.subr.bf16.mxu1 %v4335_v41  ;;  %v4551_v29 = vcombine.high %v471_v23, %v475_v24  ;;  %v335_v30 = vld [vmem:[%s6701_s1 + $0x888] sm:$0xff]  ;;  %v4550_v39 = vcombine.low %v471_v23, %v475_v24 }
  0xc6   :  { %3419 = vmatpush2.bf16.msra.mxu0 %v4206_v46  ;;  %v339_v31 = vld [vmem:[%s6701_s1 + $0x8a8] sm:$0xff] }
  0xc7   :  { %3494 = vmatprep.subr.bf16.mxu0 %v4455_v48  ;;  %v463_v33 = vld [vmem:[%s6701_s1 + $0xc88] sm:$0xff]  ;;  %v4415_v40 = vcombine.high %v335_v30, %v339_v31  ;;  %v4414_v46 = vcombine.low %v335_v30, %v339_v31 }
  0xc8   :  { %3472 = vmatpush2.bf16.msra.mxu1 %v4334_v47  ;;  %v467_v35 = vld [vmem:[%s6701_s1 + $0xca8] sm:$0xff] }
  0xc9   :  { %3547 = vmatprep.subr.bf16.mxu1 %v4583_v49  ;;  %3421 = vmatmul.mubr.bf16.vlgmr.msra.gmra.mxu0 %v4948_v21  ;;  %v4543_v41 = vcombine.high %v463_v33, %v467_v35  ;;  %v327_v42 = vld [vmem:[%s6701_s1 + $0x848] sm:$0xff]  ;;  %v4542_v47 = vcombine.low %v463_v33, %v467_v35 }
  0xca   :  { %3495 = vmatpush1.bf16.msra.mxu0 %v4454_v56  ;;  %3430 = vmatprep.mubr.bf16.mxu0 %v4973_v34  ;;  %v331_v43 = vld [vmem:[%s6701_s1 + $0x868] sm:$0xff] }
  0xcb   :  { %3474 = vmatmul.mubr.bf16.vlgmr.msra.gmra.mxu1 %v4959_v25  ;;  %3496 = vmatprep.subr.bf16.mxu0 %v4447_v59  ;;  %v455_v44 = vld [vmem:[%s6701_s1 + $0xc48] sm:$0xff]  ;;  %v4407_v48 = vcombine.high %v327_v42, %v331_v43  ;;  %v4406_v56 = vcombine.low %v327_v42, %v331_v43 }
  0xcc   :  { %3548 = vmatpush1.bf16.msra.mxu1 %v4582_v57  ;;  %3483 = vmatprep.mubr.bf16.mxu1 %v4982_v37  ;;  %v459_v45 = vld [vmem:[%s6701_s1 + $0xc68] sm:$0xff] }
  0xcd   :  { %3549 = vmatprep.subr.bf16.mxu1 %v4575_v60  ;;  %v4535_v49 = vcombine.high %v455_v44, %v459_v45  ;;  %v319_v51 = vld [vmem:[%s6701_s1 + $0x808] sm:$0xff]  ;;  %v4534_v57 = vcombine.low %v455_v44, %v459_v45 }
  0xce   :  { %3497 = vmatpush1.bf16.msra.mxu0 %v4446_v5  ;;  %v323_v52 = vld [vmem:[%s6701_s1 + $0x828] sm:$0xff] }
  0xcf   :  { %3498 = vmatprep.subr.bf16.mxu0 %v4439_v8  ;;  %v447_v53 = vld [vmem:[%s6701_s1 + $0xc08] sm:$0xff]  ;;  %v4399_v59 = vcombine.high %v319_v51, %v323_v52  ;;  %v4398_v5 = vcombine.low %v319_v51, %v323_v52 }
  0xd0   :  { %3550 = vmatpush1.bf16.msra.mxu1 %v4574_v6  ;;  %v451_v55 = vld [vmem:[%s6701_s1 + $0xc28] sm:$0xff] }
  0xd1   :  { %3551 = vmatprep.subr.bf16.mxu1 %v4567_v9  ;;  %3431 = vmatmul.mubr.bf16.gmra.mxu0 %v5010_v50  ;;  %v4527_v60 = vcombine.high %v447_v53, %v451_v55  ;;  %v439_v61 = vld [vmem:[%s6701_s1 + $0xbc8] sm:$0xff]  ;;  %v4526_v6 = vcombine.low %v447_v53, %v451_v55 }
  0xd2   :  { %3499 = vmatpush1.bf16.msra.mxu0 %v4438_v15  ;;  %3526 = vmatprep.mubr.bf16.mxu0 %v5033_v0  ;;  %v443_v62 = vld [vmem:[%s6701_s1 + $0xbe8] sm:$0xff] }
  0xd3   :  { %3484 = vmatmul.mubr.bf16.gmra.mxu1 %v5019_v54  ;;  %3500 = vmatprep.subr.bf16.mxu0 %v4431_v17  ;;  %v567_v1 = vld [vmem:[%s6701_s1 + $0xfc8] sm:$0xff]  ;;  %v4519_v8 = vcombine.high %v439_v61, %v443_v62  ;;  %v4518_v15 = vcombine.low %v439_v61, %v443_v62 }
  0xd4   :  { %3552 = vmatpush1.bf16.msra.mxu1 %v4566_v16  ;;  %3579 = vmatprep.mubr.bf16.mxu1 %v5042_v3  ;;  %v571_v4 = vld [vmem:[%s6701_s1 + $0xfe8] sm:$0xff] }
  0xd5   :  { %3553 = vmatprep.subr.bf16.mxu1 %v4559_v18  ;;  %v4647_v9 = vcombine.high %v567_v1, %v571_v4  ;;  %v431_v10 = vld [vmem:[%s6701_s1 + $0xb88] sm:$0xff]  ;;  %v4646_v16 = vcombine.low %v567_v1, %v571_v4 }
  0xd6   :  { %3501 = vmatpush1.bf16.msra.mxu0 %v4430_v26  ;;  %v435_v11 = vld [vmem:[%s6701_s1 + $0xba8] sm:$0xff] }
  0xd7   :  { %3502 = vmatprep.subr.bf16.mxu0 %v4423_v28  ;;  %v559_v12 = vld [vmem:[%s6701_s1 + $0xf88] sm:$0xff]  ;;  %v4511_v17 = vcombine.high %v431_v10, %v435_v11  ;;  %v4510_v26 = vcombine.low %v431_v10, %v435_v11 }
  0xd8   :  { %3554 = vmatpush1.bf16.msra.mxu1 %v4558_v27  ;;  %v563_v13 = vld [vmem:[%s6701_s1 + $0xfa8] sm:$0xff] }
  0xd9   :  { %3555 = vmatprep.subr.bf16.mxu1 %v4551_v29  ;;  %v4639_v18 = vcombine.high %v559_v12, %v563_v13  ;;  %v423_v20 = vld [vmem:[%s6701_s1 + $0xb48] sm:$0xff]  ;;  %v4638_v27 = vcombine.low %v559_v12, %v563_v13 }
  0xda   :  { %3503 = vmatpush1.bf16.msra.mxu0 %v4422_v36  ;;  %v427_v22 = vld [vmem:[%s6701_s1 + $0xb68] sm:$0xff] }
  0xdb   :  { %3504 = vmatprep.subr.bf16.mxu0 %v4415_v40  ;;  %v551_v23 = vld [vmem:[%s6701_s1 + $0xf48] sm:$0xff]  ;;  %v4503_v28 = vcombine.high %v423_v20, %v427_v22  ;;  %v4502_v36 = vcombine.low %v423_v20, %v427_v22  ;;  %v120_v20 = vld [vmem:[%s6701_s1 + $0x1d0] sm:$0xff] }
  0xdc   :  { %3556 = vmatpush1.bf16.msra.mxu1 %v4550_v39  ;;  %v555_v24 = vld [vmem:[%s6701_s1 + $0xf68] sm:$0xff]  ;;  %v124_v22 = vld [vmem:[%s6701_s1 + $0x1f0] sm:$0xff] }
  0xdd   :  { %3557 = vmatprep.subr.bf16.mxu1 %v4543_v41  ;;  %v4631_v29 = vcombine.high %v551_v23, %v555_v24  ;;  %v415_v30 = vld [vmem:[%s6701_s1 + $0xb08] sm:$0xff]  ;;  %v4630_v39 = vcombine.low %v551_v23, %v555_v24  ;;  %v248_v23 = vld [vmem:[%s6701_s1 + $0x5d0] sm:$0xff] }
  0xde   :  { %3505 = vmatpush1.bf16.msra.mxu0 %v4414_v46  ;;  %v419_v31 = vld [vmem:[%s6701_s1 + $0xb28] sm:$0xff]  ;;  %v252_v24 = vld [vmem:[%s6701_s1 + $0x5f0] sm:$0xff] }
  0xdf   :  { %3506 = vmatprep.subr.bf16.mxu0 %v4407_v48  ;;  %v543_v33 = vld [vmem:[%s6701_s1 + $0xf08] sm:$0xff]  ;;  %v4495_v40 = vcombine.high %v415_v30, %v419_v31  ;;  %v4494_v46 = vcombine.low %v415_v30, %v419_v31  ;;  %v112_v30 = vld [vmem:[%s6701_s1 + $0x190] sm:$0xff] }
  0xe0   :  { %3558 = vmatpush1.bf16.msra.mxu1 %v4542_v47  ;;  %v547_v35 = vld [vmem:[%s6701_s1 + $0xf28] sm:$0xff]  ;;  %v116_v31 = vld [vmem:[%s6701_s1 + $0x1b0] sm:$0xff] }
  0xe1   :  { %3559 = vmatprep.subr.bf16.mxu1 %v4535_v49  ;;  %v4623_v41 = vcombine.high %v543_v33, %v547_v35  ;;  %v407_v42 = vld [vmem:[%s6701_s1 + $0xac8] sm:$0xff]  ;;  %v4622_v47 = vcombine.low %v543_v33, %v547_v35  ;;  %v240_v33 = vld [vmem:[%s6701_s1 + $0x590] sm:$0xff] }
  0xe2   :  { %3507 = vmatpush1.bf16.msra.mxu0 %v4406_v56  ;;  %v411_v43 = vld [vmem:[%s6701_s1 + $0xae8] sm:$0xff]  ;;  %v244_v35 = vld [vmem:[%s6701_s1 + $0x5b0] sm:$0xff] }
  0xe3   :  { %3508 = vmatprep.subr.bf16.mxu0 %v4399_v59  ;;  %v535_v44 = vld [vmem:[%s6701_s1 + $0xec8] sm:$0xff]  ;;  %v4487_v48 = vcombine.high %v407_v42, %v411_v43  ;;  %v4486_v56 = vcombine.low %v407_v42, %v411_v43  ;;  %v104_v42 = vld [vmem:[%s6701_s1 + $0x150] sm:$0xff] }
  0xe4   :  { %3560 = vmatpush1.bf16.msra.mxu1 %v4534_v57  ;;  %v539_v45 = vld [vmem:[%s6701_s1 + $0xee8] sm:$0xff]  ;;  %v108_v43 = vld [vmem:[%s6701_s1 + $0x170] sm:$0xff] }
  0xe5   :  { %3561 = vmatprep.subr.bf16.mxu1 %v4527_v60  ;;  %v4615_v49 = vcombine.high %v535_v44, %v539_v45  ;;  %v399_v51 = vld [vmem:[%s6701_s1 + $0xa88] sm:$0xff]  ;;  %v4614_v57 = vcombine.low %v535_v44, %v539_v45  ;;  %v232_v44 = vld [vmem:[%s6701_s1 + $0x550] sm:$0xff] }
  0xe6   :  { %3509 = vmatpush1.bf16.msra.mxu0 %v4398_v5  ;;  %v403_v52 = vld [vmem:[%s6701_s1 + $0xaa8] sm:$0xff]  ;;  %v236_v45 = vld [vmem:[%s6701_s1 + $0x570] sm:$0xff] }
  0xe7   :  { %3510 = vmatprep.subr.bf16.mxu0 %v4519_v8  ;;  %v527_v53 = vld [vmem:[%s6701_s1 + $0xe88] sm:$0xff]  ;;  %v4479_v59 = vcombine.high %v399_v51, %v403_v52  ;;  %v4478_v5 = vcombine.low %v399_v51, %v403_v52  ;;  %v96_v51 = vld [vmem:[%s6701_s1 + $0x110] sm:$0xff] }
  0xe8   :  { %3562 = vmatpush1.bf16.msra.mxu1 %v4526_v6  ;;  %v531_v55 = vld [vmem:[%s6701_s1 + $0xea8] sm:$0xff]  ;;  %v100_v52 = vld [vmem:[%s6701_s1 + $0x130] sm:$0xff] }
  0xe9   :  { %3563 = vmatprep.subr.bf16.mxu1 %v4647_v9  ;;  %v4607_v60 = vcombine.high %v527_v53, %v531_v55  ;;  %v391_v61 = vld [vmem:[%s6701_s1 + $0xa48] sm:$0xff]  ;;  %v4606_v6 = vcombine.low %v527_v53, %v531_v55  ;;  %v224_v53 = vld [vmem:[%s6701_s1 + $0x510] sm:$0xff] }
  0xea   :  { %3511 = vmatpush2.bf16.msra.mxu0 %v4518_v15  ;;  %v395_v62 = vld [vmem:[%s6701_s1 + $0xa68] sm:$0xff]  ;;  %v228_v55 = vld [vmem:[%s6701_s1 + $0x530] sm:$0xff] }
  0xeb   :  { %3512 = vmatprep.subr.bf16.mxu0 %v4511_v17  ;;  %v519_v1 = vld [vmem:[%s6701_s1 + $0xe48] sm:$0xff]  ;;  %v4471_v8 = vcombine.high %v391_v61, %v395_v62  ;;  %v4470_v15 = vcombine.low %v391_v61, %v395_v62  ;;  %v88_v61 = vld [vmem:[%s6701_s1 + $0xd0] sm:$0xff] }
  0xec   :  { %3564 = vmatpush2.bf16.msra.mxu1 %v4646_v16  ;;  %v523_v4 = vld [vmem:[%s6701_s1 + $0xe68] sm:$0xff]  ;;  %v92_v62 = vld [vmem:[%s6701_s1 + $0xf0] sm:$0xff] }
  0xed   :  { %3565 = vmatprep.subr.bf16.mxu1 %v4639_v18  ;;  %v4599_v9 = vcombine.high %v519_v1, %v523_v4  ;;  %v383_v10 = vld [vmem:[%s6701_s1 + $0xa08] sm:$0xff]  ;;  %v4598_v16 = vcombine.low %v519_v1, %v523_v4  ;;  %v216_v1 = vld [vmem:[%s6701_s1 + $0x4d0] sm:$0xff] }
  0xee   :  { %3513 = vmatpush2.bf16.msra.mxu0 %v4510_v26  ;;  %v387_v11 = vld [vmem:[%s6701_s1 + $0xa28] sm:$0xff]  ;;  %v220_v4 = vld [vmem:[%s6701_s1 + $0x4f0] sm:$0xff] }
  0xef   :  { %3514 = vmatprep.subr.bf16.mxu0 %v4503_v28  ;;  %v511_v12 = vld [vmem:[%s6701_s1 + $0xe08] sm:$0xff]  ;;  %v4463_v17 = vcombine.high %v383_v10, %v387_v11  ;;  %v4462_v26 = vcombine.low %v383_v10, %v387_v11  ;;  %v4201_v28 = vcombine.high %v120_v20, %v124_v22  ;;  %v80_v10 = vld [vmem:[%s6701_s1 + $0x90] sm:$0xff] }
  0xf0   :  { %3566 = vmatpush2.bf16.msra.mxu1 %v4638_v27  ;;  %v515_v13 = vld [vmem:[%s6701_s1 + $0xe28] sm:$0xff]  ;;  %v84_v11 = vld [vmem:[%s6701_s1 + $0xb0] sm:$0xff] }
  0xf1   :  { %3567 = vmatprep.subr.bf16.mxu1 %v4631_v29  ;;  %v4591_v18 = vcombine.high %v511_v12, %v515_v13  ;;  %v4590_v27 = vcombine.low %v511_v12, %v515_v13  ;;  %v4329_v29 = vcombine.high %v248_v23, %v252_v24  ;;  %v208_v12 = vld [vmem:[%s6701_s1 + $0x490] sm:$0xff] }
  0xf2   :  { %3515 = vmatpush2.bf16.msra.mxu0 %v4502_v36  ;;  %v4200_v36 = vcombine.low %v120_v20, %v124_v22  ;;  %v212_v13 = vld [vmem:[%s6701_s1 + $0x4b0] sm:$0xff] }
  0xf3   :  { %3516 = vmatprep.subr.bf16.mxu0 %v4495_v40  ;;  %v4193_v40 = vcombine.high %v112_v30, %v116_v31  ;;  %v72_v20 = vld [vmem:[%s6701_s1 + $0x50] sm:$0xff] }
  0xf4   :  { %3568 = vmatpush2.bf16.msra.mxu1 %v4630_v39  ;;  %v4328_v39 = vcombine.low %v248_v23, %v252_v24  ;;  %v76_v22 = vld [vmem:[%s6701_s1 + $0x70] sm:$0xff] }
  0xf5   :  { %3569 = vmatprep.subr.bf16.mxu1 %v4623_v41  ;;  %v4321_v41 = vcombine.high %v240_v33, %v244_v35  ;;  %v200_v23 = vld [vmem:[%s6701_s1 + $0x450] sm:$0xff] }
  0xf6   :  { %3517 = vmatpush2.bf16.msra.mxu0 %v4494_v46  ;;  %v4192_v46 = vcombine.low %v112_v30, %v116_v31  ;;  %v204_v24 = vld [vmem:[%s6701_s1 + $0x470] sm:$0xff] }
  0xf7   :  { %3518 = vmatprep.subr.bf16.mxu0 %v4487_v48  ;;  %v4185_v48 = vcombine.high %v104_v42, %v108_v43  ;;  %v64_v30 = vld [vmem:[%s6701_s1 + $0x10] sm:$0xff] }
  0xf8   :  { %3570 = vmatpush2.bf16.msra.mxu1 %v4622_v47  ;;  %v4320_v47 = vcombine.low %v240_v33, %v244_v35  ;;  %v68_v31 = vld [vmem:[%s6701_s1 + $0x30] sm:$0xff] }
  0xf9   :  { %3571 = vmatprep.subr.bf16.mxu1 %v4615_v49  ;;  %v4313_v49 = vcombine.high %v232_v44, %v236_v45  ;;  %v192_v33 = vld [vmem:[%s6701_s1 + $0x410] sm:$0xff] }
  0xfa   :  { %3519 = vmatpush2.bf16.msra.mxu0 %v4486_v56  ;;  %v4184_v56 = vcombine.low %v104_v42, %v108_v43  ;;  %v196_v35 = vld [vmem:[%s6701_s1 + $0x430] sm:$0xff] }
  0xfb   :  { %3520 = vmatprep.subr.bf16.mxu0 %v4479_v59  ;;  %v4177_v59 = vcombine.high %v96_v51, %v100_v52  ;;  %v184_v42 = vld [vmem:[%s6701_s1 + $0x3d0] sm:$0xff] }
  0xfc   :  { %3572 = vmatpush2.bf16.msra.mxu1 %v4614_v57  ;;  %v4312_v57 = vcombine.low %v232_v44, %v236_v45  ;;  %v188_v43 = vld [vmem:[%s6701_s1 + $0x3f0] sm:$0xff] }
  0xfd   :  { %3573 = vmatprep.subr.bf16.mxu1 %v4607_v60  ;;  %v4305_v60 = vcombine.high %v224_v53, %v228_v55  ;;  %v312_v44 = vld [vmem:[%s6701_s1 + $0x7d0] sm:$0xff] }
  0xfe   :  { %3521 = vmatpush2.bf16.msra.mxu0 %v4478_v5  ;;  %v4176_v5 = vcombine.low %v96_v51, %v100_v52  ;;  %v316_v45 = vld [vmem:[%s6701_s1 + $0x7f0] sm:$0xff] }
  0xff   :  { %3522 = vmatprep.subr.bf16.mxu0 %v4471_v8  ;;  %v4169_v8 = vcombine.high %v88_v61, %v92_v62  ;;  %v176_v51 = vld [vmem:[%s6701_s1 + $0x390] sm:$0xff] }
 0x100   :  { %3574 = vmatpush2.bf16.msra.mxu1 %v4606_v6  ;;  %v4304_v6 = vcombine.low %v224_v53, %v228_v55  ;;  %v180_v52 = vld [vmem:[%s6701_s1 + $0x3b0] sm:$0xff] }
 0x101   :  { %3575 = vmatprep.subr.bf16.mxu1 %v4599_v9  ;;  %v4297_v9 = vcombine.high %v216_v1, %v220_v4  ;;  %v304_v53 = vld [vmem:[%s6701_s1 + $0x790] sm:$0xff] }
 0x102   :  { %3523 = vmatpush2.bf16.msra.mxu0 %v4470_v15  ;;  %v4168_v15 = vcombine.low %v88_v61, %v92_v62  ;;  %v308_v55 = vld [vmem:[%s6701_s1 + $0x7b0] sm:$0xff] }
 0x103   :  { %3524 = vmatprep.subr.bf16.mxu0 %v4463_v17  ;;  %v4161_v17 = vcombine.high %v80_v10, %v84_v11  ;;  %v168_v61 = vld [vmem:[%s6701_s1 + $0x350] sm:$0xff] }
 0x104   :  { %3576 = vmatpush2.bf16.msra.mxu1 %v4598_v16  ;;  %v4296_v16 = vcombine.low %v216_v1, %v220_v4  ;;  %v172_v62 = vld [vmem:[%s6701_s1 + $0x370] sm:$0xff] }
 0x105   :  { %3577 = vmatprep.subr.bf16.mxu1 %v4591_v18  ;;  %v4289_v18 = vcombine.high %v208_v12, %v212_v13  ;;  %v296_v1 = vld [vmem:[%s6701_s1 + $0x750] sm:$0xff] }
 0x106   :  { %3525 = vmatpush2.bf16.msra.mxu0 %v4462_v26  ;;  %v4160_v26 = vcombine.low %v80_v10, %v84_v11  ;;  %v300_v4 = vld [vmem:[%s6701_s1 + $0x770] sm:$0xff] }
 0x107   :  { %3600 = vmatprep.subr.bf16.mxu0 %v4201_v28  ;;  %v4153_v28 = vcombine.high %v72_v20, %v76_v22  ;;  %v160_v10 = vld [vmem:[%s6701_s1 + $0x310] sm:$0xff] }
 0x108   :  { %3578 = vmatpush2.bf16.msra.mxu1 %v4590_v27  ;;  %v4288_v27 = vcombine.low %v208_v12, %v212_v13  ;;  %v164_v11 = vld [vmem:[%s6701_s1 + $0x330] sm:$0xff] }
 0x109   :  { %3653 = vmatprep.subr.bf16.mxu1 %v4329_v29  ;;  %3527 = vmatmul.mubr.bf16.vlgmr.msra.gmra.mxu0 %v5212_v2  ;;  %v4281_v29 = vcombine.high %v200_v23, %v204_v24  ;;  %v5773_v12 = vpop.f32.mrf.mxu0  ;;  %v288_v13 = vld [vmem:[%s6701_s1 + $0x710] sm:$0xff] }
 0x10a   :  { %3601 = vmatpush1.bf16.msra.mxu0 %v4200_v36  ;;  %3536 = vmatprep.mubr.bf16.mxu0 %v5231_v14  ;;  %v4152_v36 = vcombine.low %v72_v20, %v76_v22  ;;  %v4241_v20 = vcombine.high %v160_v10, %v164_v11 }
 0x10b   :  { %3580 = vmatmul.mubr.bf16.vlgmr.msra.gmra.mxu1 %v5223_v7  ;;  %3602 = vmatprep.subr.bf16.mxu0 %v4193_v40  ;;  %v4145_v40 = vcombine.high %v64_v30, %v68_v31 }
 0x10c   :  { %3654 = vmatpush1.bf16.msra.mxu1 %v4328_v39  ;;  %3589 = vmatprep.mubr.bf16.mxu1 %v5246_v19  ;;  %v4280_v39 = vcombine.low %v200_v23, %v204_v24  ;;  %v152_v23 = vld [vmem:[%s6701_s1 + $0x2d0] sm:$0xff] }
 0x10d   :  { %3655 = vmatprep.subr.bf16.mxu1 %v4321_v41  ;;  %v4273_v41 = vcombine.high %v192_v33, %v196_v35  ;;  %v156_v24 = vld [vmem:[%s6701_s1 + $0x2f0] sm:$0xff] }
 0x10e   :  { %3603 = vmatpush1.bf16.msra.mxu0 %v4192_v46  ;;  %v4144_v46 = vcombine.low %v64_v30, %v68_v31  ;;  %v4240_v30 = vcombine.low %v160_v10, %v164_v11  ;;  %v256_v10 = vld [vmem:[%s6701_s1 + $0x610] sm:$0xff] }
 0x10f   :  { %3604 = vmatprep.subr.bf16.mxu0 %v4185_v48  ;;  %v4265_v48 = vcombine.high %v184_v42, %v188_v43  ;;  %v260_v11 = vld [vmem:[%s6701_s1 + $0x630] sm:$0xff] }
 0x110   :  { %3656 = vmatpush1.bf16.msra.mxu1 %v4320_v47  ;;  %v4272_v47 = vcombine.low %v192_v33, %v196_v35  ;;  %v4233_v33 = vcombine.high %v152_v23, %v156_v24  ;;  %v576_v35 = vlaneseq }
 0x111   :  { %3657 = vmatprep.subr.bf16.mxu1 %v4313_v49  ;;  %3537 = vmatmul.mubr.bf16.gmra.mxu0 %v5268_v32  ;;  %v4393_v49 = vcombine.high %v312_v44, %v316_v45 }
 0x112   :  { %3605 = vmatpush1.bf16.msra.mxu0 %v4184_v56  ;;  %3632 = vmatprep.mubr.bf16.mxu0 %v4801_v58  ;;  %v4264_v56 = vcombine.low %v184_v42, %v188_v43  ;;  %v272_v42 = vld [vmem:[%s6701_s1 + $0x690] sm:$0xff] }
 0x113   :  { %3590 = vmatmul.mubr.bf16.gmra.mxu1 %v5277_v38  ;;  %3606 = vmatprep.subr.bf16.mxu0 %v4177_v59  ;;  %v4257_v59 = vcombine.high %v176_v51, %v180_v52  ;;  %v276_v43 = vld [vmem:[%s6701_s1 + $0x6b0] sm:$0xff] }
 0x114   :  { %3658 = vmatpush1.bf16.msra.mxu1 %v4312_v57  ;;  %3685 = vmatprep.mubr.bf16.mxu1 %v4815_v63  ;;  %v4392_v57 = vcombine.low %v312_v44, %v316_v45  ;;  %v4232_v45 = vcombine.low %v152_v23, %v156_v24  ;;  %v4337_v24 = vcombine.high %v256_v10, %v260_v11 }
 0x115   :  { %3659 = vmatprep.subr.bf16.mxu1 %v4305_v60  ;;  %v4385_v60 = vcombine.high %v304_v53, %v308_v55 }
 0x116   :  { %3607 = vmatpush1.bf16.msra.mxu0 %v4176_v5  ;;  %v4256_v5 = vcombine.low %v176_v51, %v180_v52  ;;  %v136_v51 = vld [vmem:[%s6701_s1 + $0x250] sm:$0xff] }
 0x117   :  { %3608 = vmatprep.subr.bf16.mxu0 %v4169_v8  ;;  %v4249_v8 = vcombine.high %v168_v61, %v172_v62  ;;  %v140_v52 = vld [vmem:[%s6701_s1 + $0x270] sm:$0xff] }
 0x118   :  { %3660 = vmatpush1.bf16.msra.mxu1 %v4304_v6  ;;  %v4384_v6 = vcombine.low %v304_v53, %v308_v55  ;;  %v264_v55 = vld [vmem:[%s6701_s1 + $0x650] sm:$0xff] }
 0x119   :  { %3661 = vmatprep.subr.bf16.mxu1 %v4297_v9  ;;  %v4377_v9 = vcombine.high %v296_v1, %v300_v4 }
 0x11a   :  { %3609 = vmatpush1.bf16.msra.mxu0 %v4168_v15  ;;  %v292_v15 = vld [vmem:[%s6701_s1 + $0x730] sm:$0xff] }
 0x11b   :  { %3610 = vmatprep.subr.bf16.mxu0 %v4161_v17  ;;  %v4248_v17 = vcombine.low %v168_v61, %v172_v62  ;;  %v4369_v22 = vcombine.high %v288_v13, %v292_v15  ;;  %v4368_v31 = vcombine.low %v288_v13, %v292_v15  ;;  %v4352_v61 = vcombine.low %v272_v42, %v276_v43 }
 0x11c   :  { %3662 = vmatpush1.bf16.msra.mxu1 %v4296_v16  ;;  %v5781_v16 = vpop.f32.mrf.mxu1  ;;  %v4217_v62 = vcombine.high %v136_v51, %v140_v52  ;;  %v4216_v15 = vcombine.low %v136_v51, %v140_v52 }
 0x11d   :  { %3663 = vmatprep.subr.bf16.mxu1 %v4289_v18  ;;  %v4376_v18 = vcombine.low %v296_v1, %v300_v4 }
 0x11e   :  { %3611 = vmatpush1.bf16.msra.mxu0 %v4160_v26  ;;  %v5789_v26 = vpop.f32.mrf.mxu0 }
 0x11f   :  { %3612 = vmatprep.subr.bf16.mxu0 %v4153_v28  ;;  %v284_v28 = vld [vmem:[%s6701_s1 + $0x6f0] sm:$0xff] }
 0x120   :  { %3664 = vmatpush1.bf16.msra.mxu1 %v4288_v27  ;;  %v280_v27 = vld [vmem:[%s6701_s1 + $0x6d0] sm:$0xff] }
 0x121   :  { %3665 = vmatprep.subr.bf16.mxu1 %v4281_v29  ;;  %v5797_v29 = vpop.f32.mrf.mxu1 }
 0x122   :  { %3613 = vmatpush1.bf16.msra.mxu0 %v4152_v36  ;;  %v4361_v36 = vcombine.high %v280_v27, %v284_v28 }
 0x123   :  { %3614 = vmatprep.subr.bf16.mxu0 %v4145_v40  ;;  %v148_v40 = vld [vmem:[%s6701_s1 + $0x2b0] sm:$0xff]  ;;  %v5813_v44 = vpop.f32.mrf.mxu1 }
 0x124   :  { %3666 = vmatpush1.bf16.msra.mxu1 %v4280_v39  ;;  %v144_v39 = vld [vmem:[%s6701_s1 + $0x290] sm:$0xff] }
 0x125   :  { %3667 = vmatprep.subr.bf16.mxu1 %v4273_v41  ;;  %v5805_v41 = vpop.f32.mrf.mxu0 }
 0x126   :  { %3615 = vmatpush1.bf16.msra.mxu0 %v4144_v46  ;;  %v4360_v46 = vcombine.low %v280_v27, %v284_v28  ;;  %v376_v27 = vld [vmem:[%s6701_s1 + $0x9d0] sm:$0xff] }
 0x127   :  { %3616 = vmatprep.subr.bf16.mxu0 %v4265_v48  ;;  %v5815_v48 = vshrl.u32 %v576_v35, 7  ;;  %v5823_v53 = vpop.f32.mrf.mxu0  ;;  %v380_v28 = vld [vmem:[%s6701_s1 + $0x9f0] sm:$0xff] }
 0x128   :  { %3668 = vmatpush1.bf16.msra.mxu1 %v4272_v47  ;;  %v4225_v47 = vcombine.high %v144_v39, %v148_v40  ;;  %v4456_v52 = vcombine.low %v376_v27, %v380_v28 }
 0x129   :  { %3669 = vmatprep.subr.bf16.mxu1 %v4393_v49  ;;  %v4353_v49 = vcombine.high %v272_v42, %v276_v43  ;;  %v578_v1 = vsub.s32 0, %v5815_v48  ;;  %v582_v13 = vsub.s32 1, %v5815_v48 }
 0x12a   :  { %3617 = vmatpush2.bf16.msra.mxu0 %v4264_v56  ;;  %v268_v56 = vld [vmem:[%s6701_s1 + $0x670] sm:$0xff] }
 0x12b   :  { %3618 = vmatprep.subr.bf16.mxu0 %v4257_v59  ;;  %v4224_v59 = vcombine.low %v144_v39, %v148_v40  ;;  %v4336_v39 = vcombine.low %v256_v10, %v260_v11  ;;  %v4457_v40 = vcombine.high %v376_v27, %v380_v28 }
 0x12c   :  { %3670 = vmatpush2.bf16.msra.mxu1 %v4392_v57  ;;  %v5831_v57 = vpop.f32.mrf.mxu1 }
 0x12d   :  { %3671 = vmatprep.subr.bf16.mxu1 %v4385_v60  ;;  %v5833_v60 = vpop.f32.mrf.mxu0 }
 0x12e   :  { %3619 = vmatpush2.bf16.msra.mxu0 %v4256_v5  ;;  %v5836_v4 = vpop.f32.mrf.mxu1  ;;  %v4345_v5 = vcombine.high %v264_v55, %v268_v56 }
 0x12f   :  { %3620 = vmatprep.subr.bf16.mxu0 %v4249_v8  ;;  %v132_v8 = vld [vmem:[%s6701_s1 + $0x230] sm:$0xff] }
 0x130   :  { %3672 = vmatpush2.bf16.msra.mxu1 %v4384_v6  ;;  %v128_v6 = vld [vmem:[%s6701_s1 + $0x210] sm:$0xff]  ;;  %v5861_v23 = vpop.f32.mrf.mxu1 }
 0x131   :  { %3673 = vmatprep.subr.bf16.mxu1 %v4377_v9  ;;  %v5847_v9 = vld [vmem:[%s6703_s2] sm:$0xff]  ;;  %v4208_v35 = vcombine.low %v128_v6, %v132_v8 }
 0x132   :  { %3621 = vmatpush2.bf16.msra.mxu0 %v4248_v17  ;;  %v5856_v17 = vpop.f32.mrf.mxu0  ;;  %v5882_v43 = vpop.f32.mrf.mxu1 }
 0x133   :  { %3622 = vmatprep.subr.bf16.mxu0 %v4241_v20  ;;  %v4209_v20 = vcombine.high %v128_v6, %v132_v8  ;;  %v5913_v6 = vld [vmem:[%s6701_s1 + $0x970] sm:$0xff] }
 0x134   :  { %3674 = vmatpush2.bf16.msra.mxu1 %v4376_v18  ;;  %v4344_v18 = vcombine.low %v264_v55, %v268_v56  ;;  %v5918_v8 = vld [vmem:[%s6701_s1 + $0xd50] sm:$0xff] }
 0x135   :  { %3675 = vmatprep.subr.bf16.mxu1 %v4369_v22  ;;  %v5859_v22 = vrot.slane %v5847_v9, %v578_v1 }
 0x136   :  { %3623 = vmatpush2.bf16.msra.mxu0 %v4240_v30  ;;  %v504_v30 = vld [vmem:[%s6701_s1 + $0xdd0] sm:$0xff] }
 0x137   :  { %3624 = vmatprep.subr.bf16.mxu0 %v4233_v33  ;;  %v5876_v33 = vrot.slane %v5847_v9, %v582_v13  ;;  %v3211_v42 = vadd.f32 %v5773_v12, %v5859_v22  ;;  %v500_v12 = vld [vmem:[%s6701_s1 + $0xdb0] sm:$0xff]  ;;  %v3215_v1 = vadd.f32 %v5805_v41, %v5859_v22 }
 0x138   :  { %3676 = vmatpush2.bf16.msra.mxu1 %v4368_v31  ;;  %v508_v31 = vld [vmem:[%s6701_s1 + $0xdf0] sm:$0xff] }
 0x139   :  { %3677 = vmatprep.subr.bf16.mxu1 %v4361_v36  ;;  %v5878_v36 = vpop.f32.mrf.mxu0  ;;  %v3213_v51 = vadd.f32 %v5789_v26, %v5876_v33  ;;  %v4584_v56 = vcombine.low %v504_v30, %v508_v31  ;;  %v3217_v13 = vadd.f32 %v5823_v53, %v5876_v33  ;;  %v3268_v53 = vadd.f32 %v5813_v44, %v3215_v1  ;;  %v5955_v44 = vld [vmem:[%s6701_s1 + $0xd30] sm:$0xff] }
 0x13a   :  { %3625 = vmatpush2.bf16.msra.mxu0 %v4232_v45  ;;  %v4585_v45 = vcombine.high %v504_v30, %v508_v31  ;;  %v3221_v30 = vadd.f32 %v5833_v60, %v5859_v22  ;;  %v3223_v60 = vadd.f32 %v5856_v17, %v5876_v33 }
 0x13b   :  { %3626 = vmatprep.subr.bf16.mxu0 %v4225_v47  ;;  %v372_v47 = vld [vmem:[%s6701_s1 + $0x9b0] sm:$0xff]  ;;  %v5898_v55 = vpop.f32.mrf.mxu0  ;;  %v3266_v11 = vadd.f32 %v5797_v29, %v3213_v51 }
 0x13c   :  { %3678 = vmatpush2.bf16.msra.mxu1 %v4360_v46  ;;  %v368_v46 = vld [vmem:[%s6701_s1 + $0x990] sm:$0xff] }
 0x13d   :  { %3679 = vmatprep.subr.bf16.mxu1 %v4353_v49  ;;  %v496_v49 = vld [vmem:[%s6701_s1 + $0xd90] sm:$0xff]  ;;  %v4448_v10 = vcombine.low %v368_v46, %v372_v47 }
 0x13e   :  { %3627 = vmatpush2.bf16.msra.mxu0 %v4224_v59  ;;  %v4449_v59 = vcombine.high %v368_v46, %v372_v47  ;;  %v4577_v26 = vcombine.high %v496_v49, %v500_v12  ;;  %v5937_v29 = vld [vmem:[%s6701_s1 + $0x910] sm:$0xff]  ;;  %v3270_v46 = vadd.f32 %v5831_v57, %v3217_v13 }
 0x13f   :  { %3628 = vmatprep.subr.bf16.mxu0 %v4217_v62  ;;  %v3264_v62 = vadd.f32 %v5781_v16, %v3211_v42  ;;  %v5923_v16 = vld [vmem:[%s6701_s1 + $0xd70] sm:$0xff] }
 0x140   :  { %3680 = vmatpush2.bf16.msra.mxu1 %v4352_v61  ;;  %v5903_v61 = vld [vmem:[%s6701_s1 + $0x950] sm:$0xff]  ;;  %v4569_v28 = vcombine.high %v5918_v8, %v5923_v16 }
 0x141   :  { %3681 = vmatprep.subr.bf16.mxu1 %v4345_v5  ;;  %v5908_v5 = vpop.f32.mrf.mxu1  ;;  %v4441_v27 = vcombine.high %v5903_v61, %v5913_v6  ;;  %v5973_v57 = vld [vmem:[%s6701_s1 + $0x8d0] sm:$0xff] }
 0x142   :  { %3629 = vmatpush2.bf16.msra.mxu0 %v4216_v15 }
 0x143   :  { %3630 = vmatprep.subr.bf16.mxu0 %v4209_v20 }
 0x144   :  { %3682 = vmatpush2.bf16.msra.mxu1 %v4344_v18 }
 0x145   :  { %3683 = vmatprep.subr.bf16.mxu1 %v4337_v24  ;;  %v4576_v24 = vcombine.low %v496_v49, %v500_v12 }
 0x146   :  { %3631 = vmatpush2.bf16.msra.mxu0 %v4208_v35 }
 0x147   :  { %3706 = vmatprep.subr.bf16.mxu0 %v4457_v40  ;;  %v5950_v40 = vld [vmem:[%s6701_s1 + $0xd10] sm:$0xff] }
 0x148   :  { %3684 = vmatpush2.bf16.msra.mxu1 %v4336_v39  ;;  %v5945_v39 = vld [vmem:[%s6701_s1 + $0x930] sm:$0xff] }
 0x149   :  { %3759 = vmatprep.subr.bf16.mxu1 %v4585_v45  ;;  %v3316_v41 = vpop.f32.mrf.mxu0  ;;  %3633 = vmatmul.mubr.bf16.vlgmr.msra.gmra.mxu0 %v4948_v21  ;;  %v4440_v45 = vcombine.low %v5903_v61, %v5913_v6  ;;  %v4433_v17 = vcombine.high %v5937_v29, %v5945_v39  ;;  %v3274_v61 = vadd.f32 %v5836_v4, %v3221_v30  ;;  %v340_v30 = vld [vmem:[%s6701_s1 + $0x8b0] sm:$0xff] }
 0x14a   :  { %v3317_v15 = vadd.f32 %v3316_v41, %v3264_v62  ;;  %3707 = vmatpush1.bf16.msra.mxu0 %v4456_v52  ;;  %3642 = vmatprep.mubr.bf16.mxu0 %v4973_v34  ;;  %v3225_v62 = vadd.f32 %v5878_v36, %v5859_v22  ;;  %v476_v41 = vld [vmem:[%s6701_s1 + $0xcf0] sm:$0xff]  ;;  %v3276_v4 = vadd.f32 %v5861_v23, %v3223_v60 }
 0x14b   :  { %v3369_v18 = vpop.f32.mrf.mxu1  ;;  %3686 = vmatmul.mubr.bf16.vlgmr.msra.gmra.mxu1 %v4959_v25  ;;  %v3318_v20 = vpop.f32.mrf.mxu0  ;;  %3708 = vmatprep.subr.bf16.mxu0 %v4449_v59  ;;  %v4561_v59 = vcombine.high %v5950_v40, %v5955_v44  ;;  %v3227_v22 = vadd.f32 %v5898_v55, %v5876_v33  ;;  %v4560_v33 = vcombine.low %v5950_v40, %v5955_v44 }
 0x14c   :  { %3760 = vmatpush1.bf16.msra.mxu1 %v4584_v56  ;;  %v3319_v31 = vadd.f32 %v3318_v20, %v3266_v11  ;;  %3695 = vmatprep.mubr.bf16.mxu1 %v4982_v37  ;;  %v3370_v47 = vadd.f32 %v3369_v18, %v3317_v15  ;;  %v4568_v56 = vcombine.low %v5918_v8, %v5923_v16  ;;  %v348_v8 = vld [vmem:[%s6701_s1 + $0x8f0] sm:$0xff] }
 0x14d   :  { %v3371_v35 = vpop.f32.mrf.mxu1  ;;  %3761 = vmatprep.subr.bf16.mxu1 %v4577_v26  ;;  %v3320_v42 = vpop.f32.mrf.mxu0  ;;  %v472_v16 = vld [vmem:[%s6701_s1 + $0xcd0] sm:$0xff]  ;;  %v4425_v55 = vcombine.high %v5973_v57, %v348_v8  ;;  %v3280_v40 = vadd.f32 %v5908_v5, %v3227_v22 }
 0x14e   :  { %v3372_v49 = vadd.f32 %v3371_v35, %v3319_v31  ;;  %v3321_v12 = vadd.f32 %v3320_v42, %v3268_v53  ;;  %3709 = vmatpush1.bf16.msra.mxu0 %v4448_v10  ;;  %v4432_v10 = vcombine.low %v5937_v29, %v5945_v39  ;;  %v4553_v20 = vcombine.high %v472_v16, %v476_v41  ;;  %v336_v53 = vld [vmem:[%s6701_s1 + $0x890] sm:$0xff] }
 0x14f   :  { %v3373_v51 = vpop.f32.mrf.mxu1  ;;  %v3322_v52 = vpop.f32.mrf.mxu0  ;;  %3710 = vmatprep.subr.bf16.mxu0 %v4441_v27  ;;  %v4424_v35 = vcombine.low %v5973_v57, %v348_v8  ;;  %v468_v39 = vld [vmem:[%s6701_s1 + $0xcb0] sm:$0xff] }
 0x150   :  { %3762 = vmatpush1.bf16.msra.mxu1 %v4576_v24  ;;  %v4668_v1 = vpack.c.bf16 %v3372_v49, %v3370_v47  ;;  %v3323_v26 = vadd.f32 %v3322_v52, %v3270_v46  ;;  %v3374_v11 = vadd.f32 %v3373_v51, %v3321_v12  ;;  %v3278_v24 = vadd.f32 %v5882_v43, %v3225_v62  ;;  %v464_v43 = vld [vmem:[%s6701_s1 + $0xc90] sm:$0xff] }
 0x151   :  { %v3375_v6 = vpop.f32.mrf.mxu1  ;;  %3763 = vmatprep.subr.bf16.mxu1 %v4569_v28  ;;  %v3326_v36 = vpop.f32.mrf.mxu0  ;;  %3643 = vmatmul.mubr.bf16.gmra.mxu0 %v5010_v50  ;;  %v4552_v47 = vcombine.low %v472_v16, %v476_v41  ;;  %v4417_v49 = vcombine.high %v336_v53, %v340_v30  ;;  %v328_v5 = vld [vmem:[%s6701_s1 + $0x850] sm:$0xff] }
 0x152   :  { %4120 = vst [vmem:[%s6704_s3] sm:$0xff] %v4668_v1  ;;  %v3376_v13 = vadd.f32 %v3375_v6, %v3323_v26  ;;  %v3327_v15 = vadd.f32 %v3326_v36, %v3274_v61  ;;  %3711 = vmatpush1.bf16.msra.mxu0 %v4440_v45  ;;  %3738 = vmatprep.mubr.bf16.mxu0 %v5033_v0  ;;  %v460_v57 = vld [vmem:[%s6701_s1 + $0xc70] sm:$0xff] }
 0x153   :  { %v3379_v18 = vpop.f32.mrf.mxu1  ;;  %3696 = vmatmul.mubr.bf16.gmra.mxu1 %v5019_v54  ;;  %v3328_v23 = vpop.f32.mrf.mxu0  ;;  %3712 = vmatprep.subr.bf16.mxu0 %v4433_v17  ;;  %v332_v17 = vld [vmem:[%s6701_s1 + $0x870] sm:$0xff]  ;;  %v4416_v1 = vcombine.low %v336_v53, %v340_v30  ;;  %v4544_v26 = vcombine.low %v464_v43, %v468_v39 }
 0x154   :  { %3764 = vmatpush1.bf16.msra.mxu1 %v4568_v56  ;;  %v4672_v27 = vpack.c.bf16 %v3376_v13, %v3374_v11  ;;  %v3329_v28 = vadd.f32 %v3328_v23, %v3276_v4  ;;  %3791 = vmatprep.mubr.bf16.mxu1 %v5042_v3  ;;  %v3380_v44 = vadd.f32 %v3379_v18, %v3327_v15  ;;  %v320_v41 = vld [vmem:[%s6701_s1 + $0x810] sm:$0xff] }
 0x155   :  { %v3381_v29 = vpop.f32.mrf.mxu1  ;;  %3765 = vmatprep.subr.bf16.mxu1 %v4561_v59  ;;  %v3330_v31 = vpop.f32.mrf.mxu0  ;;  %v4545_v56 = vcombine.high %v464_v43, %v468_v39  ;;  %v456_v59 = vld [vmem:[%s6701_s1 + $0xc50] sm:$0xff]  ;;  %v4409_v6 = vcombine.high %v328_v5, %v332_v17 }
 0x156   :  { %4124 = vst [vmem:[%s6704_s3 + $0x20] sm:$0xff] %v4672_v27  ;;  %v3331_v60 = vadd.f32 %v3330_v31, %v3278_v24  ;;  %v3382_v42 = vadd.f32 %v3381_v29, %v3329_v28  ;;  %3713 = vmatpush1.bf16.msra.mxu0 %v4432_v10  ;;  %v4537_v16 = vcombine.high %v456_v59, %v460_v57  ;;  %v324_v4 = vld [vmem:[%s6701_s1 + $0x830] sm:$0xff] }
 0x157   :  { %v3383_v45 = vpop.f32.mrf.mxu1  ;;  %v3332_v46 = vpop.f32.mrf.mxu0  ;;  %3714 = vmatprep.subr.bf16.mxu0 %v4425_v55  ;;  %v448_v22 = vld [vmem:[%s6701_s1 + $0xc10] sm:$0xff]  ;;  %v4408_v10 = vcombine.low %v328_v5, %v332_v17  ;;  %v4536_v11 = vcombine.low %v456_v59, %v460_v57  ;;  %v4401_v13 = vcombine.high %v320_v41, %v324_v4 }
 0x158   :  { %3766 = vmatpush1.bf16.msra.mxu1 %v4560_v33  ;;  %v4676_v12 = vpack.c.bf16 %v3382_v42, %v3380_v44  ;;  %v3333_v51 = vadd.f32 %v3332_v46, %v3280_v40  ;;  %v3384_v61 = vadd.f32 %v3383_v45, %v3331_v60  ;;  %v452_v36 = vld [vmem:[%s6701_s1 + $0xc30] sm:$0xff] }
 0x159   :  { %v3385_v52 = vpop.f32.mrf.mxu1  ;;  %3767 = vmatprep.subr.bf16.mxu1 %v4553_v20  ;;  %v4529_v15 = vcombine.high %v448_v22, %v452_v36  ;;  %v440_v18 = vld [vmem:[%s6701_s1 + $0xbd0] sm:$0xff]  ;;  %v4400_v20 = vcombine.low %v320_v41, %v324_v4  ;;  %v4528_v24 = vcombine.low %v448_v22, %v452_v36 }
 0x15a   :  { %4128 = vst [vmem:[%s6704_s3 + $0x40] sm:$0xff] %v4676_v12  ;;  %v3386_v62 = vadd.f32 %v3385_v52, %v3333_v51  ;;  %3715 = vmatpush1.bf16.msra.mxu0 %v4424_v35  ;;  %v444_v23 = vld [vmem:[%s6701_s1 + $0xbf0] sm:$0xff] }
 0x15b   :  { %3716 = vmatprep.subr.bf16.mxu0 %v4417_v49  ;;  %v568_v33 = vld [vmem:[%s6701_s1 + $0xfd0] sm:$0xff]  ;;  %v4521_v27 = vcombine.high %v440_v18, %v444_v23  ;;  %v4520_v35 = vcombine.low %v440_v18, %v444_v23 }
 0x15c   :  { %3768 = vmatpush1.bf16.msra.mxu1 %v4552_v47  ;;  %v4680_v8 = vpack.c.bf16 %v3386_v62, %v3384_v61  ;;  %v572_v55 = vld [vmem:[%s6701_s1 + $0xff0] sm:$0xff] }
 0x15d   :  { %3769 = vmatprep.subr.bf16.mxu1 %v4545_v56  ;;  %v4649_v28 = vcombine.high %v568_v33, %v572_v55  ;;  %v432_v29 = vld [vmem:[%s6701_s1 + $0xb90] sm:$0xff]  ;;  %v4648_v43 = vcombine.low %v568_v33, %v572_v55 }
 0x15e   :  { %4132 = vst [vmem:[%s6704_s3 + $0x60] sm:$0xff] %v4680_v8  ;;  %3717 = vmatpush1.bf16.msra.mxu0 %v4416_v1  ;;  %v436_v53 = vld [vmem:[%s6701_s1 + $0xbb0] sm:$0xff] }
 0x15f   :  { %3718 = vmatprep.subr.bf16.mxu0 %v4409_v6  ;;  %v560_v30 = vld [vmem:[%s6701_s1 + $0xf90] sm:$0xff]  ;;  %v4513_v39 = vcombine.high %v432_v29, %v436_v53  ;;  %v4512_v46 = vcombine.low %v432_v29, %v436_v53 }
 0x160   :  { %3770 = vmatpush1.bf16.msra.mxu1 %v4544_v26  ;;  %v564_v31 = vld [vmem:[%s6701_s1 + $0xfb0] sm:$0xff] }
 0x161   :  { %3771 = vmatprep.subr.bf16.mxu1 %v4537_v16  ;;  %v4641_v40 = vcombine.high %v560_v30, %v564_v31  ;;  %v424_v44 = vld [vmem:[%s6701_s1 + $0xb50] sm:$0xff]  ;;  %v4640_v47 = vcombine.low %v560_v30, %v564_v31 }
 0x162   :  { %3719 = vmatpush1.bf16.msra.mxu0 %v4408_v10  ;;  %v428_v60 = vld [vmem:[%s6701_s1 + $0xb70] sm:$0xff] }
 0x163   :  { %3720 = vmatprep.subr.bf16.mxu0 %v4401_v13  ;;  %v552_v42 = vld [vmem:[%s6701_s1 + $0xf50] sm:$0xff]  ;;  %v4505_v49 = vcombine.high %v424_v44, %v428_v60  ;;  %v4504_v17 = vcombine.low %v424_v44, %v428_v60 }
 0x164   :  { %3772 = vmatpush1.bf16.msra.mxu1 %v4536_v11  ;;  %v556_v45 = vld [vmem:[%s6701_s1 + $0xf70] sm:$0xff] }
 0x165   :  { %3773 = vmatprep.subr.bf16.mxu1 %v4529_v15  ;;  %v4633_v12 = vcombine.high %v552_v42, %v556_v45  ;;  %v416_v51 = vld [vmem:[%s6701_s1 + $0xb10] sm:$0xff]  ;;  %v4632_v59 = vcombine.low %v552_v42, %v556_v45  ;;  %v121_v42 = vld [vmem:[%s6701_s1 + $0x1d8] sm:$0xff] }
 0x166   :  { %3721 = vmatpush1.bf16.msra.mxu0 %v4400_v20  ;;  %v420_v52 = vld [vmem:[%s6701_s1 + $0xb30] sm:$0xff]  ;;  %v125_v45 = vld [vmem:[%s6701_s1 + $0x1f8] sm:$0xff] }
 0x167   :  { %3722 = vmatprep.subr.bf16.mxu0 %v4521_v27  ;;  %v544_v56 = vld [vmem:[%s6701_s1 + $0xf10] sm:$0xff]  ;;  %v4497_v57 = vcombine.high %v416_v51, %v420_v52  ;;  %v4496_v8 = vcombine.low %v416_v51, %v420_v52  ;;  %v4203_v51 = vcombine.high %v121_v42, %v125_v45 }
 0x168   :  { %3774 = vmatpush1.bf16.msra.mxu1 %v4528_v24  ;;  %v548_v5 = vld [vmem:[%s6701_s1 + $0xf30] sm:$0xff] }
 0x169   :  { %3775 = vmatprep.subr.bf16.mxu1 %v4649_v28  ;;  %v4625_v61 = vcombine.high %v544_v56, %v548_v5  ;;  %v408_v62 = vld [vmem:[%s6701_s1 + $0xad0] sm:$0xff]  ;;  %v4624_v16 = vcombine.low %v544_v56, %v548_v5  ;;  %v113_v56 = vld [vmem:[%s6701_s1 + $0x198] sm:$0xff] }
 0x16a   :  { %3723 = vmatpush2.bf16.msra.mxu0 %v4520_v35  ;;  %v412_v1 = vld [vmem:[%s6701_s1 + $0xaf0] sm:$0xff]  ;;  %v117_v5 = vld [vmem:[%s6701_s1 + $0x1b8] sm:$0xff] }
 0x16b   :  { %3724 = vmatprep.subr.bf16.mxu0 %v4513_v39  ;;  %v536_v26 = vld [vmem:[%s6701_s1 + $0xed0] sm:$0xff]  ;;  %v4489_v41 = vcombine.high %v408_v62, %v412_v1  ;;  %v4488_v13 = vcombine.low %v408_v62, %v412_v1  ;;  %v4195_v62 = vcombine.high %v113_v56, %v117_v5 }
 0x16c   :  { %3776 = vmatpush2.bf16.msra.mxu1 %v4648_v43  ;;  %v540_v6 = vld [vmem:[%s6701_s1 + $0xef0] sm:$0xff] }
 0x16d   :  { %3777 = vmatprep.subr.bf16.mxu1 %v4641_v40  ;;  %v4617_v4 = vcombine.high %v536_v26, %v540_v6  ;;  %v400_v22 = vld [vmem:[%s6701_s1 + $0xa90] sm:$0xff]  ;;  %v4616_v15 = vcombine.low %v536_v26, %v540_v6  ;;  %v105_v26 = vld [vmem:[%s6701_s1 + $0x158] sm:$0xff] }
 0x16e   :  { %3725 = vmatpush2.bf16.msra.mxu0 %v4512_v46  ;;  %v404_v36 = vld [vmem:[%s6701_s1 + $0xab0] sm:$0xff]  ;;  %v249_v46 = vld [vmem:[%s6701_s1 + $0x5d8] sm:$0xff] }
 0x16f   :  { %3726 = vmatprep.subr.bf16.mxu0 %v4505_v49  ;;  %v528_v10 = vld [vmem:[%s6701_s1 + $0xe90] sm:$0xff]  ;;  %v4481_v18 = vcombine.high %v400_v22, %v404_v36  ;;  %v4480_v27 = vcombine.low %v400_v22, %v404_v36  ;;  %v109_v6 = vld [vmem:[%s6701_s1 + $0x178] sm:$0xff] }
 0x170   :  { %3778 = vmatpush2.bf16.msra.mxu1 %v4640_v47  ;;  %v532_v11 = vld [vmem:[%s6701_s1 + $0xeb0] sm:$0xff]  ;;  %v253_v47 = vld [vmem:[%s6701_s1 + $0x5f8] sm:$0xff]  ;;  %v4187_v22 = vcombine.high %v105_v26, %v109_v6 }
 0x171   :  { %3779 = vmatprep.subr.bf16.mxu1 %v4633_v12  ;;  %v4609_v23 = vcombine.high %v528_v10, %v532_v11  ;;  %v392_v33 = vld [vmem:[%s6701_s1 + $0xa50] sm:$0xff]  ;;  %v4608_v28 = vcombine.low %v528_v10, %v532_v11  ;;  %v4331_v52 = vcombine.high %v249_v46, %v253_v47  ;;  %v97_v10 = vld [vmem:[%s6701_s1 + $0x118] sm:$0xff] }
 0x172   :  { %3727 = vmatpush2.bf16.msra.mxu0 %v4504_v17  ;;  %v396_v55 = vld [vmem:[%s6701_s1 + $0xa70] sm:$0xff]  ;;  %v241_v17 = vld [vmem:[%s6701_s1 + $0x598] sm:$0xff] }
 0x173   :  { %3728 = vmatprep.subr.bf16.mxu0 %v4497_v57  ;;  %v520_v20 = vld [vmem:[%s6701_s1 + $0xe50] sm:$0xff]  ;;  %v4473_v29 = vcombine.high %v392_v33, %v396_v55  ;;  %v4472_v39 = vcombine.low %v392_v33, %v396_v55  ;;  %v4202_v57 = vcombine.low %v121_v42, %v125_v45  ;;  %v101_v11 = vld [vmem:[%s6701_s1 + $0x138] sm:$0xff] }
 0x174   :  { %3780 = vmatpush2.bf16.msra.mxu1 %v4632_v59  ;;  %v524_v24 = vld [vmem:[%s6701_s1 + $0xe70] sm:$0xff]  ;;  %v245_v59 = vld [vmem:[%s6701_s1 + $0x5b8] sm:$0xff]  ;;  %v4179_v33 = vcombine.high %v97_v10, %v101_v11 }
 0x175   :  { %3781 = vmatprep.subr.bf16.mxu1 %v4625_v61  ;;  %v4601_v53 = vcombine.high %v520_v20, %v524_v24  ;;  %v384_v30 = vld [vmem:[%s6701_s1 + $0xa10] sm:$0xff]  ;;  %v4600_v40 = vcombine.low %v520_v20, %v524_v24  ;;  %v4330_v61 = vcombine.low %v249_v46, %v253_v47  ;;  %v4323_v1 = vcombine.high %v241_v17, %v245_v59  ;;  %v89_v20 = vld [vmem:[%s6701_s1 + $0xd8] sm:$0xff] }
 0x176   :  { %3729 = vmatpush2.bf16.msra.mxu0 %v4496_v8  ;;  %v388_v31 = vld [vmem:[%s6701_s1 + $0xa30] sm:$0xff]  ;;  %v233_v8 = vld [vmem:[%s6701_s1 + $0x558] sm:$0xff] }
 0x177   :  { %3730 = vmatprep.subr.bf16.mxu0 %v4489_v41  ;;  %v512_v35 = vld [vmem:[%s6701_s1 + $0xe10] sm:$0xff]  ;;  %v4465_v44 = vcombine.high %v384_v30, %v388_v31  ;;  %v4464_v49 = vcombine.low %v384_v30, %v388_v31  ;;  %v4194_v41 = vcombine.low %v113_v56, %v117_v5  ;;  %v93_v24 = vld [vmem:[%s6701_s1 + $0xf8] sm:$0xff] }
 0x178   :  { %3782 = vmatpush2.bf16.msra.mxu1 %v4624_v16  ;;  %v516_v43 = vld [vmem:[%s6701_s1 + $0xe30] sm:$0xff]  ;;  %v237_v16 = vld [vmem:[%s6701_s1 + $0x578] sm:$0xff]  ;;  %v4171_v30 = vcombine.high %v89_v20, %v93_v24 }
 0x179   :  { %3783 = vmatprep.subr.bf16.mxu1 %v4617_v4  ;;  %v4593_v60 = vcombine.high %v512_v35, %v516_v43  ;;  %v4592_v12 = vcombine.low %v512_v35, %v516_v43  ;;  %v4322_v4 = vcombine.low %v241_v17, %v245_v59  ;;  %v4315_v36 = vcombine.high %v233_v8, %v237_v16  ;;  %v81_v35 = vld [vmem:[%s6701_s1 + $0x98] sm:$0xff] }
 0x17a   :  { %3731 = vmatpush2.bf16.msra.mxu0 %v4488_v13  ;;  %v225_v13 = vld [vmem:[%s6701_s1 + $0x518] sm:$0xff] }
 0x17b   :  { %3732 = vmatprep.subr.bf16.mxu0 %v4481_v18  ;;  %v4186_v18 = vcombine.low %v105_v26, %v109_v6  ;;  %v85_v43 = vld [vmem:[%s6701_s1 + $0xb8] sm:$0xff] }
 0x17c   :  { %3784 = vmatpush2.bf16.msra.mxu1 %v4616_v15  ;;  %v229_v15 = vld [vmem:[%s6701_s1 + $0x538] sm:$0xff]  ;;  %v4163_v42 = vcombine.high %v81_v35, %v85_v43 }
 0x17d   :  { %3785 = vmatprep.subr.bf16.mxu1 %v4609_v23  ;;  %v4314_v23 = vcombine.low %v233_v8, %v237_v16  ;;  %v4307_v55 = vcombine.high %v225_v13, %v229_v15  ;;  %v77_v46 = vld [vmem:[%s6701_s1 + $0x78] sm:$0xff] }
 0x17e   :  { %3733 = vmatpush2.bf16.msra.mxu0 %v4480_v27  ;;  %v217_v27 = vld [vmem:[%s6701_s1 + $0x4d8] sm:$0xff] }
 0x17f   :  { %3734 = vmatprep.subr.bf16.mxu0 %v4473_v29  ;;  %v4178_v29 = vcombine.low %v97_v10, %v101_v11  ;;  %v205_v47 = vld [vmem:[%s6701_s1 + $0x478] sm:$0xff] }
 0x180   :  { %3786 = vmatpush2.bf16.msra.mxu1 %v4608_v28  ;;  %v221_v28 = vld [vmem:[%s6701_s1 + $0x4f8] sm:$0xff] }
 0x181   :  { %3787 = vmatprep.subr.bf16.mxu1 %v4601_v53  ;;  %v4306_v53 = vcombine.low %v225_v13, %v229_v15  ;;  %v4299_v31 = vcombine.high %v217_v27, %v221_v28  ;;  %v65_v56 = vld [vmem:[%s6701_s1 + $0x18] sm:$0xff] }
 0x182   :  { %3735 = vmatpush2.bf16.msra.mxu0 %v4472_v39  ;;  %v209_v39 = vld [vmem:[%s6701_s1 + $0x498] sm:$0xff] }
 0x183   :  { %3736 = vmatprep.subr.bf16.mxu0 %v4465_v44  ;;  %v4170_v44 = vcombine.low %v89_v20, %v93_v24  ;;  %v69_v5 = vld [vmem:[%s6701_s1 + $0x38] sm:$0xff] }
 0x184   :  { %3788 = vmatpush2.bf16.msra.mxu1 %v4600_v40  ;;  %v213_v40 = vld [vmem:[%s6701_s1 + $0x4b8] sm:$0xff] }
 0x185   :  { %3789 = vmatprep.subr.bf16.mxu1 %v4593_v60  ;;  %v4298_v60 = vcombine.low %v217_v27, %v221_v28  ;;  %v4291_v45 = vcombine.high %v209_v39, %v213_v40  ;;  %v193_v17 = vld [vmem:[%s6701_s1 + $0x418] sm:$0xff] }
 0x186   :  { %3737 = vmatpush2.bf16.msra.mxu0 %v4464_v49  ;;  %v4162_v49 = vcombine.low %v81_v35, %v85_v43  ;;  %v197_v59 = vld [vmem:[%s6701_s1 + $0x438] sm:$0xff] }
 0x187   :  { %3812 = vmatprep.subr.bf16.mxu0 %v4203_v51  ;;  %v185_v26 = vld [vmem:[%s6701_s1 + $0x3d8] sm:$0xff] }
 0x188   :  { %3790 = vmatpush2.bf16.msra.mxu1 %v4592_v12  ;;  %v4290_v12 = vcombine.low %v209_v39, %v213_v40  ;;  %v189_v6 = vld [vmem:[%s6701_s1 + $0x3f8] sm:$0xff] }
 0x189   :  { %3865 = vmatprep.subr.bf16.mxu1 %v4331_v52  ;;  %3739 = vmatmul.mubr.bf16.vlgmr.msra.gmra.mxu0 %v5212_v2  ;;  %v313_v8 = vld [vmem:[%s6701_s1 + $0x7d8] sm:$0xff]  ;;  %v6292_v39 = vpop.f32.mrf.mxu0 }
 0x18a   :  { %3813 = vmatpush1.bf16.msra.mxu0 %v4202_v57  ;;  %3748 = vmatprep.mubr.bf16.mxu0 %v5231_v14  ;;  %v317_v16 = vld [vmem:[%s6701_s1 + $0x7f8] sm:$0xff] }
 0x18b   :  { %3792 = vmatmul.mubr.bf16.vlgmr.msra.gmra.mxu1 %v5223_v7  ;;  %3814 = vmatprep.subr.bf16.mxu0 %v4195_v62  ;;  %v4147_v62 = vcombine.high %v65_v56, %v69_v5  ;;  %v177_v10 = vld [vmem:[%s6701_s1 + $0x398] sm:$0xff] }
 0x18c   :  { %3866 = vmatpush1.bf16.msra.mxu1 %v4330_v61  ;;  %3801 = vmatprep.mubr.bf16.mxu1 %v5246_v19  ;;  %v181_v11 = vld [vmem:[%s6701_s1 + $0x3b8] sm:$0xff] }
 0x18d   :  { %3867 = vmatprep.subr.bf16.mxu1 %v4323_v1  ;;  %v4275_v1 = vcombine.high %v193_v17, %v197_v59  ;;  %v305_v13 = vld [vmem:[%s6701_s1 + $0x798] sm:$0xff] }
 0x18e   :  { %3815 = vmatpush1.bf16.msra.mxu0 %v4194_v41  ;;  %v4146_v41 = vcombine.low %v65_v56, %v69_v5  ;;  %v309_v15 = vld [vmem:[%s6701_s1 + $0x7b8] sm:$0xff] }
 0x18f   :  { %3816 = vmatprep.subr.bf16.mxu0 %v4187_v22  ;;  %v4267_v22 = vcombine.high %v185_v26, %v189_v6  ;;  %v169_v20 = vld [vmem:[%s6701_s1 + $0x358] sm:$0xff] }
 0x190   :  { %3868 = vmatpush1.bf16.msra.mxu1 %v4322_v4  ;;  %v4274_v4 = vcombine.low %v193_v17, %v197_v59  ;;  %v173_v24 = vld [vmem:[%s6701_s1 + $0x378] sm:$0xff] }
 0x191   :  { %3869 = vmatprep.subr.bf16.mxu1 %v4315_v36  ;;  %3749 = vmatmul.mubr.bf16.gmra.mxu0 %v5268_v32  ;;  %v4395_v36 = vcombine.high %v313_v8, %v317_v16  ;;  %v297_v27 = vld [vmem:[%s6701_s1 + $0x758] sm:$0xff] }
 0x192   :  { %3817 = vmatpush1.bf16.msra.mxu0 %v4186_v18  ;;  %3844 = vmatprep.mubr.bf16.mxu0 %v4801_v58  ;;  %v73_v58 = vld [vmem:[%s6701_s1 + $0x58] sm:$0xff]  ;;  %v4266_v18 = vcombine.low %v185_v26, %v189_v6 }
 0x193   :  { %3802 = vmatmul.mubr.bf16.gmra.mxu1 %v5277_v38  ;;  %3818 = vmatprep.subr.bf16.mxu0 %v4179_v33  ;;  %v4155_v51 = vcombine.high %v73_v58, %v77_v46  ;;  %v4154_v57 = vcombine.low %v73_v58, %v77_v46  ;;  %v4259_v33 = vcombine.high %v177_v10, %v181_v11  ;;  %v301_v28 = vld [vmem:[%s6701_s1 + $0x778] sm:$0xff] }
 0x194   :  { %3870 = vmatpush1.bf16.msra.mxu1 %v4314_v23  ;;  %3897 = vmatprep.mubr.bf16.mxu1 %v4815_v63  ;;  %v201_v63 = vld [vmem:[%s6701_s1 + $0x458] sm:$0xff]  ;;  %v4394_v23 = vcombine.low %v313_v8, %v317_v16 }
 0x195   :  { %3871 = vmatprep.subr.bf16.mxu1 %v4307_v55  ;;  %v4283_v52 = vcombine.high %v201_v63, %v205_v47  ;;  %v4282_v61 = vcombine.low %v201_v63, %v205_v47  ;;  %v4387_v55 = vcombine.high %v305_v13, %v309_v15  ;;  %v161_v35 = vld [vmem:[%s6701_s1 + $0x318] sm:$0xff] }
 0x196   :  { %3819 = vmatpush1.bf16.msra.mxu0 %v4178_v29  ;;  %v4258_v29 = vcombine.low %v177_v10, %v181_v11  ;;  %v165_v43 = vld [vmem:[%s6701_s1 + $0x338] sm:$0xff] }
 0x197   :  { %3820 = vmatprep.subr.bf16.mxu0 %v4171_v30  ;;  %v4251_v30 = vcombine.high %v169_v20, %v173_v24  ;;  %v289_v40 = vld [vmem:[%s6701_s1 + $0x718] sm:$0xff]  ;;  %v4243_v58 = vcombine.high %v161_v35, %v165_v43  ;;  %v4242_v56 = vcombine.low %v161_v35, %v165_v43 }
 0x198   :  { %3872 = vmatpush1.bf16.msra.mxu1 %v4306_v53  ;;  %v4386_v53 = vcombine.low %v305_v13, %v309_v15  ;;  %v153_v63 = vld [vmem:[%s6701_s1 + $0x2d8] sm:$0xff] }
 0x199   :  { %3873 = vmatprep.subr.bf16.mxu1 %v4299_v31  ;;  %v4379_v31 = vcombine.high %v297_v27, %v301_v28  ;;  %v157_v47 = vld [vmem:[%s6701_s1 + $0x2f8] sm:$0xff] }
 0x19a   :  { %3821 = vmatpush1.bf16.msra.mxu0 %v4170_v44  ;;  %v293_v44 = vld [vmem:[%s6701_s1 + $0x738] sm:$0xff]  ;;  %v4235_v17 = vcombine.high %v153_v63, %v157_v47  ;;  %v4234_v8 = vcombine.low %v153_v63, %v157_v47 }
 0x19b   :  { %3822 = vmatprep.subr.bf16.mxu0 %v4163_v42  ;;  %v4250_v42 = vcombine.low %v169_v20, %v173_v24  ;;  %v4371_v46 = vcombine.high %v289_v40, %v293_v44  ;;  %v4370_v5 = vcombine.low %v289_v40, %v293_v44  ;;  %v277_v26 = vld [vmem:[%s6701_s1 + $0x6b8] sm:$0xff]  ;;  %v586_v20 = vsub.s32 2, %v5815_v48 }
 0x19c   :  { %3874 = vmatpush1.bf16.msra.mxu1 %v4298_v60  ;;  %v6300_v60 = vpop.f32.mrf.mxu1  ;;  %v265_v11 = vld [vmem:[%s6701_s1 + $0x658] sm:$0xff] }
 0x19d   :  { %3875 = vmatprep.subr.bf16.mxu1 %v4291_v45  ;;  %v4378_v45 = vcombine.low %v297_v27, %v301_v28  ;;  %v269_v13 = vld [vmem:[%s6701_s1 + $0x678] sm:$0xff] }
 0x19e   :  { %3823 = vmatpush1.bf16.msra.mxu0 %v4162_v49  ;;  %v6308_v49 = vpop.f32.mrf.mxu0  ;;  %v4347_v27 = vcombine.high %v265_v11, %v269_v13  ;;  %v129_v28 = vld [vmem:[%s6701_s1 + $0x218] sm:$0xff]  ;;  %v4346_v40 = vcombine.low %v265_v11, %v269_v13 }
 0x19f   :  { %3824 = vmatprep.subr.bf16.mxu0 %v4155_v51  ;;  %v285_v51 = vld [vmem:[%s6701_s1 + $0x6f8] sm:$0xff] }
 0x1a0   :  { %3876 = vmatpush1.bf16.msra.mxu1 %v4290_v12  ;;  %v281_v12 = vld [vmem:[%s6701_s1 + $0x6d8] sm:$0xff] }
 0x1a1   :  { %3877 = vmatprep.subr.bf16.mxu1 %v4283_v52  ;;  %v6316_v52 = vpop.f32.mrf.mxu1  ;;  %v4363_v59 = vcombine.high %v281_v12, %v285_v51  ;;  %v4362_v16 = vcombine.low %v281_v12, %v285_v51  ;;  %v381_v63 = vld [vmem:[%s6701_s1 + $0x9f8] sm:$0xff] }
 0x1a2   :  { %3825 = vmatpush1.bf16.msra.mxu0 %v4154_v57  ;;  %v145_v57 = vld [vmem:[%s6701_s1 + $0x298] sm:$0xff] }
 0x1a3   :  { %3826 = vmatprep.subr.bf16.mxu0 %v4147_v62  ;;  %v6324_v62 = vpop.f32.mrf.mxu0  ;;  %v6332_v6 = vpop.f32.mrf.mxu1  ;;  %v505_v47 = vld [vmem:[%s6701_s1 + $0xdd8] sm:$0xff] }
 0x1a4   :  { %3878 = vmatpush1.bf16.msra.mxu1 %v4282_v61  ;;  %v149_v61 = vld [vmem:[%s6701_s1 + $0x2b8] sm:$0xff] }
 0x1a5   :  { %3879 = vmatprep.subr.bf16.mxu1 %v4275_v1  ;;  %v273_v1 = vld [vmem:[%s6701_s1 + $0x698] sm:$0xff]  ;;  %v6340_v10 = vpop.f32.mrf.mxu0  ;;  %v6348_v15 = vpop.f32.mrf.mxu1 }
 0x1a6   :  { %3827 = vmatpush1.bf16.msra.mxu0 %v4146_v41  ;;  %v4227_v41 = vcombine.high %v145_v57, %v149_v61  ;;  %v509_v12 = vld [vmem:[%s6701_s1 + $0xdf8] sm:$0xff] }
 0x1a7   :  { %3828 = vmatprep.subr.bf16.mxu0 %v4267_v22  ;;  %v137_v22 = vld [vmem:[%s6701_s1 + $0x258] sm:$0xff]  ;;  %v6353_v24 = vpop.f32.mrf.mxu1 }
 0x1a8   :  { %3880 = vmatpush1.bf16.msra.mxu1 %v4274_v4  ;;  %v4355_v4 = vcombine.high %v273_v1, %v277_v26  ;;  %v6415_v11 = vld [vmem:[%s6701_s1 + $0x958] sm:$0xff] }
 0x1a9   :  { %3881 = vmatprep.subr.bf16.mxu1 %v4395_v36  ;;  %v141_v36 = vld [vmem:[%s6701_s1 + $0x278] sm:$0xff] }
 0x1aa   :  { %3829 = vmatpush2.bf16.msra.mxu0 %v4266_v18  ;;  %v4226_v18 = vcombine.low %v145_v57, %v149_v61  ;;  %v4218_v35 = vcombine.low %v137_v22, %v141_v36 }
 0x1ab   :  { %3830 = vmatprep.subr.bf16.mxu0 %v4259_v33  ;;  %v4354_v33 = vcombine.low %v273_v1, %v277_v26  ;;  %v4587_v1 = vcombine.high %v505_v47, %v509_v12  ;;  %v373_v26 = vld [vmem:[%s6701_s1 + $0x9b8] sm:$0xff] }
 0x1ac   :  { %3882 = vmatpush2.bf16.msra.mxu1 %v4394_v23  ;;  %v6350_v23 = vpop.f32.mrf.mxu0 }
 0x1ad   :  { %3883 = vmatprep.subr.bf16.mxu1 %v4387_v55  ;;  %v4219_v55 = vcombine.high %v137_v22, %v141_v36  ;;  %v4586_v22 = vcombine.low %v505_v47, %v509_v12 }
 0x1ae   :  { %3831 = vmatpush2.bf16.msra.mxu0 %v4258_v29  ;;  %v133_v29 = vld [vmem:[%s6701_s1 + $0x238] sm:$0xff]  ;;  %v6368_v43 = vpop.f32.mrf.mxu0 }
 0x1af   :  { %3832 = vmatprep.subr.bf16.mxu0 %v4251_v30  ;;  %v261_v30 = vld [vmem:[%s6701_s1 + $0x638] sm:$0xff]  ;;  %v4211_v44 = vcombine.high %v129_v28, %v133_v29 }
 0x1b0   :  { %3884 = vmatpush2.bf16.msra.mxu1 %v4386_v53  ;;  %v257_v53 = vld [vmem:[%s6701_s1 + $0x618] sm:$0xff] }
 0x1b1   :  { %3885 = vmatprep.subr.bf16.mxu1 %v4379_v31  ;;  %v590_v31 = vsub.s32 3, %v5815_v48 }
 0x1b2   :  { %3833 = vmatpush2.bf16.msra.mxu0 %v4250_v42  ;;  %v6371_v42 = vrot.slane %v5847_v9, %v586_v20  ;;  %v6430_v20 = vld [vmem:[%s6701_s1 + $0xd58] sm:$0xff] }
 0x1b3   :  { %3834 = vmatprep.subr.bf16.mxu0 %v4243_v58  ;;  %v4339_v58 = vcombine.high %v257_v53, %v261_v30  ;;  %v6388_v51 = vrot.slane %v5847_v9, %v590_v31  ;;  %v369_v9 = vld [vmem:[%s6701_s1 + $0x998] sm:$0xff] }
 0x1b4   :  { %3886 = vmatpush2.bf16.msra.mxu1 %v4378_v45  ;;  %v6373_v45 = vpop.f32.mrf.mxu1  ;;  %v3423_v57 = vadd.f32 %v6292_v39, %v6371_v42  ;;  %v501_v39 = vld [vmem:[%s6701_s1 + $0xdb8] sm:$0xff]  ;;  %v4451_v36 = vcombine.high %v369_v9, %v373_v26 }
 0x1b5   :  { %3887 = vmatprep.subr.bf16.mxu1 %v4371_v46  ;;  %v377_v46 = vld [vmem:[%s6701_s1 + $0x9d8] sm:$0xff] }
 0x1b6   :  { %3835 = vmatpush2.bf16.msra.mxu0 %v4242_v56  ;;  %v4210_v56 = vcombine.low %v129_v28, %v133_v29  ;;  %v6394_v61 = vpop.f32.mrf.mxu1  ;;  %v3476_v13 = vadd.f32 %v6300_v60, %v3423_v57  ;;  %v6435_v60 = vld [vmem:[%s6701_s1 + $0xd78] sm:$0xff]  ;;  %v3429_v29 = vadd.f32 %v6340_v10, %v6388_v51 }
 0x1b7   :  { %3836 = vmatprep.subr.bf16.mxu0 %v4235_v17  ;;  %v4338_v17 = vcombine.low %v257_v53, %v261_v30 }
 0x1b8   :  { %3888 = vmatpush2.bf16.msra.mxu1 %v4370_v5  ;;  %v6390_v5 = vpop.f32.mrf.mxu0 }
 0x1b9   :  { %3889 = vmatprep.subr.bf16.mxu1 %v4363_v59  ;;  %v4459_v59 = vcombine.high %v377_v46, %v381_v63 }
 0x1ba   :  { %3837 = vmatpush2.bf16.msra.mxu0 %v4234_v8  ;;  %v497_v8 = vld [vmem:[%s6701_s1 + $0xd98] sm:$0xff] }
 0x1bb   :  { %3838 = vmatprep.subr.bf16.mxu0 %v4227_v41  ;;  %v4458_v41 = vcombine.low %v377_v46, %v381_v63  ;;  %v6457_v46 = vld [vmem:[%s6701_s1 + $0x938] sm:$0xff] }
 0x1bc   :  { %3890 = vmatpush2.bf16.msra.mxu1 %v4362_v16  ;;  %v3425_v16 = vadd.f32 %v6308_v49, %v6388_v51  ;;  %v4579_v49 = vcombine.high %v497_v8, %v501_v39  ;;  %v6462_v63 = vld [vmem:[%s6701_s1 + $0xd18] sm:$0xff] }
 0x1bd   :  { %3891 = vmatprep.subr.bf16.mxu1 %v4355_v4  ;;  %v6410_v4 = vpop.f32.mrf.mxu0 }
 0x1be   :  { %3839 = vmatpush2.bf16.msra.mxu0 %v4226_v18  ;;  %v3427_v18 = vadd.f32 %v6324_v62, %v6371_v42  ;;  %v3478_v28 = vadd.f32 %v6316_v52, %v3425_v16  ;;  %v6449_v52 = vld [vmem:[%s6701_s1 + $0x918] sm:$0xff] }
 0x1bf   :  { %3840 = vmatprep.subr.bf16.mxu0 %v4219_v55  ;;  %v6425_v55 = vld [vmem:[%s6701_s1 + $0x978] sm:$0xff] }
 0x1c0   :  { %3892 = vmatpush2.bf16.msra.mxu1 %v4354_v33  ;;  %v6420_v33 = vpop.f32.mrf.mxu1  ;;  %v3480_v10 = vadd.f32 %v6332_v6, %v3427_v18  ;;  %v6467_v6 = vld [vmem:[%s6701_s1 + $0xd38] sm:$0xff]  ;;  %v4442_v12 = vcombine.low %v6415_v11, %v6425_v55 }
 0x1c1   :  { %3893 = vmatprep.subr.bf16.mxu1 %v4347_v27  ;;  %v4450_v27 = vcombine.low %v369_v9, %v373_v26  ;;  %v4563_v26 = vcombine.high %v6462_v63, %v6467_v6 }
 0x1c2   :  { %3841 = vmatpush2.bf16.msra.mxu0 %v4218_v35  ;;  %v4578_v35 = vcombine.low %v497_v8, %v501_v39  ;;  %v3437_v8 = vadd.f32 %v6390_v5, %v6371_v42 }
 0x1c3   :  { %3842 = vmatprep.subr.bf16.mxu0 %v4211_v44 }
 0x1c4   :  { %3894 = vmatpush2.bf16.msra.mxu1 %v4346_v40  ;;  %v4443_v40 = vcombine.high %v6415_v11, %v6425_v55  ;;  %v477_v11 = vld [vmem:[%s6701_s1 + $0xcf8] sm:$0xff] }
 0x1c5   :  { %3895 = vmatprep.subr.bf16.mxu1 %v4339_v58 }
 0x1c6   :  { %3843 = vmatpush2.bf16.msra.mxu0 %v4210_v56  ;;  %v3482_v56 = vadd.f32 %v6348_v15, %v3429_v29  ;;  %v337_v29 = vld [vmem:[%s6701_s1 + $0x898] sm:$0xff] }
 0x1c7   :  { %3918 = vmatprep.subr.bf16.mxu0 %v4459_v59 }
 0x1c8   :  { %3896 = vmatpush2.bf16.msra.mxu1 %v4338_v17 }
 0x1c9   :  { %3971 = vmatprep.subr.bf16.mxu1 %v4587_v1  ;;  %v3528_v62 = vpop.f32.mrf.mxu0  ;;  %3845 = vmatmul.mubr.bf16.vlgmr.msra.gmra.mxu0 %v4948_v21  ;;  %v4571_v21 = vcombine.high %v6430_v20, %v6435_v60 }
 0x1ca   :  { %v3529_v53 = vadd.f32 %v3528_v62, %v3476_v13  ;;  %3919 = vmatpush1.bf16.msra.mxu0 %v4458_v41  ;;  %3854 = vmatprep.mubr.bf16.mxu0 %v4973_v34  ;;  %v4570_v34 = vcombine.low %v6430_v20, %v6435_v60  ;;  %v4434_v13 = vcombine.low %v6449_v52, %v6457_v46 }
 0x1cb   :  { %v3581_v30 = vpop.f32.mrf.mxu1  ;;  %3898 = vmatmul.mubr.bf16.vlgmr.msra.gmra.mxu1 %v4959_v25  ;;  %v3530_v31 = vpop.f32.mrf.mxu0  ;;  %3920 = vmatprep.subr.bf16.mxu0 %v4451_v36  ;;  %v3433_v25 = vadd.f32 %v6350_v23, %v6371_v42  ;;  %v3435_v23 = vadd.f32 %v6368_v43, %v6388_v51  ;;  %v4435_v43 = vcombine.high %v6449_v52, %v6457_v46  ;;  %v473_v36 = vld [vmem:[%s6701_s1 + $0xcd8] sm:$0xff] }
 0x1cc   :  { %3972 = vmatpush1.bf16.msra.mxu1 %v4586_v22  ;;  %v3531_v44 = vadd.f32 %v3530_v31, %v3478_v28  ;;  %3907 = vmatprep.mubr.bf16.mxu1 %v4982_v37  ;;  %v3582_v17 = vadd.f32 %v3581_v30, %v3529_v53  ;;  %v6485_v37 = vld [vmem:[%s6701_s1 + $0x8d8] sm:$0xff]  ;;  %v3439_v42 = vadd.f32 %v6410_v4, %v6388_v51 }
 0x1cd   :  { %v3583_v58 = vpop.f32.mrf.mxu1  ;;  %3973 = vmatprep.subr.bf16.mxu1 %v4579_v49  ;;  %v3532_v47 = vpop.f32.mrf.mxu0  ;;  %v3486_v15 = vadd.f32 %v6353_v24, %v3433_v25  ;;  %v349_v22 = vld [vmem:[%s6701_s1 + $0x8f8] sm:$0xff]  ;;  %v3488_v24 = vadd.f32 %v6373_v45, %v3435_v23  ;;  %v4562_v51 = vcombine.low %v6462_v63, %v6467_v6  ;;  %v3490_v60 = vadd.f32 %v6394_v61, %v3437_v8 }
 0x1ce   :  { %v3584_v59 = vadd.f32 %v3583_v58, %v3531_v44  ;;  %v3533_v57 = vadd.f32 %v3532_v47, %v3480_v10  ;;  %3921 = vmatpush1.bf16.msra.mxu0 %v4450_v27  ;;  %v4427_v4 = vcombine.high %v6485_v37, %v349_v22  ;;  %v4426_v30 = vcombine.low %v6485_v37, %v349_v22  ;;  %v465_v61 = vld [vmem:[%s6701_s1 + $0xc98] sm:$0xff] }
 0x1cf   :  { %v3585_v1 = vpop.f32.mrf.mxu1  ;;  %v3534_v9 = vpop.f32.mrf.mxu0  ;;  %3922 = vmatprep.subr.bf16.mxu0 %v4443_v40  ;;  %v469_v31 = vld [vmem:[%s6701_s1 + $0xcb8] sm:$0xff]  ;;  %v4554_v25 = vcombine.low %v473_v36, %v477_v11 }
 0x1d0   :  { %3974 = vmatpush1.bf16.msra.mxu1 %v4578_v35  ;;  %v4669_v39 = vpack.c.bf16 %v3584_v59, %v3582_v17  ;;  %v3535_v16 = vadd.f32 %v3534_v9, %v3482_v56  ;;  %v3586_v18 = vadd.f32 %v3585_v1, %v3533_v57  ;;  %v3492_v35 = vadd.f32 %v6420_v33, %v3439_v42  ;;  %v329_v33 = vld [vmem:[%s6701_s1 + $0x858] sm:$0xff] }
 0x1d1   :  { %v3587_v41 = vpop.f32.mrf.mxu1  ;;  %3975 = vmatprep.subr.bf16.mxu1 %v4571_v21  ;;  %v3538_v5 = vpop.f32.mrf.mxu0  ;;  %3855 = vmatmul.mubr.bf16.gmra.mxu0 %v5010_v50  ;;  %v4555_v50 = vcombine.high %v473_v36, %v477_v11  ;;  %v333_v6 = vld [vmem:[%s6701_s1 + $0x878] sm:$0xff]  ;;  %v4546_v59 = vcombine.low %v465_v61, %v469_v31 }
 0x1d2   :  { %4121 = vst [vmem:[%s6704_s3 + $0x8] sm:$0xff] %v4669_v39  ;;  %v3588_v49 = vadd.f32 %v3587_v41, %v3535_v16  ;;  %v3539_v55 = vadd.f32 %v3538_v5, %v3486_v15  ;;  %3923 = vmatpush1.bf16.msra.mxu0 %v4442_v12  ;;  %3950 = vmatprep.mubr.bf16.mxu0 %v5033_v0  ;;  %v457_v23 = vld [vmem:[%s6701_s1 + $0xc58] sm:$0xff] }
 0x1d3   :  { %v3591_v20 = vpop.f32.mrf.mxu1  ;;  %3908 = vmatmul.mubr.bf16.gmra.mxu1 %v5019_v54  ;;  %v3540_v45 = vpop.f32.mrf.mxu0  ;;  %3924 = vmatprep.subr.bf16.mxu0 %v4435_v43  ;;  %v341_v54 = vld [vmem:[%s6701_s1 + $0x8b8] sm:$0xff]  ;;  %v4411_v57 = vcombine.high %v329_v33, %v333_v6  ;;  %v4410_v15 = vcombine.low %v329_v33, %v333_v6 }
 0x1d4   :  { %3976 = vmatpush1.bf16.msra.mxu1 %v4570_v34  ;;  %v4673_v62 = vpack.c.bf16 %v3588_v49, %v3586_v18  ;;  %v3541_v27 = vadd.f32 %v3540_v45, %v3488_v24  ;;  %4003 = vmatprep.mubr.bf16.mxu1 %v5042_v3  ;;  %v3592_v0 = vadd.f32 %v3591_v20, %v3539_v55  ;;  %v461_v47 = vld [vmem:[%s6701_s1 + $0xc78] sm:$0xff] }
 0x1d5   :  { %v3593_v28 = vpop.f32.mrf.mxu1  ;;  %3977 = vmatprep.subr.bf16.mxu1 %v4563_v26  ;;  %v3542_v53 = vpop.f32.mrf.mxu0  ;;  %v4419_v44 = vcombine.high %v337_v29, %v341_v54  ;;  %v4547_v3 = vcombine.high %v465_v61, %v469_v31  ;;  %v4418_v17 = vcombine.low %v337_v29, %v341_v54  ;;  %v4539_v9 = vcombine.high %v457_v23, %v461_v47  ;;  %v321_v34 = vld [vmem:[%s6701_s1 + $0x818] sm:$0xff] }
 0x1d6   :  { %4125 = vst [vmem:[%s6704_s3 + $0x28] sm:$0xff] %v4673_v62  ;;  %v3543_v40 = vadd.f32 %v3542_v53, %v3490_v60  ;;  %v3594_v21 = vadd.f32 %v3593_v28, %v3541_v27  ;;  %3925 = vmatpush1.bf16.msra.mxu0 %v4434_v13  ;;  %v325_v43 = vld [vmem:[%s6701_s1 + $0x838] sm:$0xff]  ;;  %v4538_v8 = vcombine.low %v457_v23, %v461_v47 }
 0x1d7   :  { %v3595_v52 = vpop.f32.mrf.mxu1  ;;  %v3544_v10 = vpop.f32.mrf.mxu0  ;;  %3926 = vmatprep.subr.bf16.mxu0 %v4427_v4  ;;  %v449_v26 = vld [vmem:[%s6701_s1 + $0xc18] sm:$0xff]  ;;  %v4403_v39 = vcombine.high %v321_v34, %v325_v43  ;;  %v4402_v24 = vcombine.low %v321_v34, %v325_v43 }
 0x1d8   :  { %3978 = vmatpush1.bf16.msra.mxu1 %v4562_v51  ;;  %v4677_v58 = vpack.c.bf16 %v3594_v21, %v3592_v0  ;;  %v3545_v46 = vadd.f32 %v3544_v10, %v3492_v35  ;;  %v3596_v12 = vadd.f32 %v3595_v52, %v3543_v40  ;;  %v453_v37 = vld [vmem:[%s6701_s1 + $0xc38] sm:$0xff] }
 0x1d9   :  { %v3597_v63 = vpop.f32.mrf.mxu1  ;;  %3979 = vmatprep.subr.bf16.mxu1 %v4555_v50  ;;  %v4531_v16 = vcombine.high %v449_v26, %v453_v37  ;;  %v441_v41 = vld [vmem:[%s6701_s1 + $0xbd8] sm:$0xff]  ;;  %v4530_v42 = vcombine.low %v449_v26, %v453_v37 }
 0x1da   :  { %4129 = vst [vmem:[%s6704_s3 + $0x48] sm:$0xff] %v4677_v58  ;;  %v3598_v56 = vadd.f32 %v3597_v63, %v3545_v46  ;;  %3927 = vmatpush1.bf16.msra.mxu0 %v4426_v30  ;;  %v445_v22 = vld [vmem:[%s6701_s1 + $0xbf8] sm:$0xff] }
 0x1db   :  { %3928 = vmatprep.subr.bf16.mxu0 %v4419_v44  ;;  %v569_v36 = vld [vmem:[%s6701_s1 + $0xfd8] sm:$0xff]  ;;  %v4523_v5 = vcombine.high %v441_v41, %v445_v22  ;;  %v4522_v45 = vcombine.low %v441_v41, %v445_v22 }
 0x1dc   :  { %3980 = vmatpush1.bf16.msra.mxu1 %v4554_v25  ;;  %v4681_v1 = vpack.c.bf16 %v3598_v56, %v3596_v12  ;;  %v573_v11 = vld [vmem:[%s6701_s1 + $0xff8] sm:$0xff] }
 0x1dd   :  { %3981 = vmatprep.subr.bf16.mxu1 %v4547_v3  ;;  %v4651_v13 = vcombine.high %v569_v36, %v573_v11  ;;  %v433_v18 = vld [vmem:[%s6701_s1 + $0xb98] sm:$0xff]  ;;  %v4650_v51 = vcombine.low %v569_v36, %v573_v11 }
 0x1de   :  { %4133 = vst [vmem:[%s6704_s3 + $0x68] sm:$0xff] %v4681_v1  ;;  %3929 = vmatpush1.bf16.msra.mxu0 %v4418_v17  ;;  %v437_v49 = vld [vmem:[%s6701_s1 + $0xbb8] sm:$0xff] }
 0x1df   :  { %3930 = vmatprep.subr.bf16.mxu0 %v4411_v57  ;;  %v561_v55 = vld [vmem:[%s6701_s1 + $0xf98] sm:$0xff]  ;;  %v4515_v4 = vcombine.high %v433_v18, %v437_v49  ;;  %v4514_v29 = vcombine.low %v433_v18, %v437_v49 }
 0x1e0   :  { %3982 = vmatpush1.bf16.msra.mxu1 %v4546_v59  ;;  %v565_v20 = vld [vmem:[%s6701_s1 + $0xfb8] sm:$0xff] }
 0x1e1   :  { %3983 = vmatprep.subr.bf16.mxu1 %v4539_v9  ;;  %v4643_v50 = vcombine.high %v561_v55, %v565_v20  ;;  %v425_v60 = vld [vmem:[%s6701_s1 + $0xb58] sm:$0xff]  ;;  %v4642_v54 = vcombine.low %v561_v55, %v565_v20 }
 0x1e2   :  { %3931 = vmatpush1.bf16.msra.mxu0 %v4410_v15  ;;  %v429_v62 = vld [vmem:[%s6701_s1 + $0xb78] sm:$0xff] }
 0x1e3   :  { %3932 = vmatprep.subr.bf16.mxu0 %v4403_v39  ;;  %v553_v27 = vld [vmem:[%s6701_s1 + $0xf58] sm:$0xff]  ;;  %v4507_v53 = vcombine.high %v425_v60, %v429_v62  ;;  %v4506_v40 = vcombine.low %v425_v60, %v429_v62 }
 0x1e4   :  { %3984 = vmatpush1.bf16.msra.mxu1 %v4538_v8  ;;  %v557_v28 = vld [vmem:[%s6701_s1 + $0xf78] sm:$0xff] }
 0x1e5   :  { %3985 = vmatprep.subr.bf16.mxu1 %v4531_v16  ;;  %v4635_v30 = vcombine.high %v553_v27, %v557_v28  ;;  %v417_v61 = vld [vmem:[%s6701_s1 + $0xb18] sm:$0xff]  ;;  %v4634_v21 = vcombine.low %v553_v27, %v557_v28 }
 0x1e6   :  { %3933 = vmatpush1.bf16.msra.mxu0 %v4402_v24  ;;  %v421_v31 = vld [vmem:[%s6701_s1 + $0xb38] sm:$0xff] }
 0x1e7   :  { %3934 = vmatprep.subr.bf16.mxu0 %v4523_v5  ;;  %v545_v35 = vld [vmem:[%s6701_s1 + $0xf18] sm:$0xff]  ;;  %v4499_v52 = vcombine.high %v417_v61, %v421_v31  ;;  %v4498_v63 = vcombine.low %v417_v61, %v421_v31 }
 0x1e8   :  { %3986 = vmatpush1.bf16.msra.mxu1 %v4530_v42  ;;  %v549_v0 = vld [vmem:[%s6701_s1 + $0xf38] sm:$0xff] }
 0x1e9   :  { %3987 = vmatprep.subr.bf16.mxu1 %v4651_v13  ;;  %v4627_v10 = vcombine.high %v545_v35, %v549_v0  ;;  %v409_v25 = vld [vmem:[%s6701_s1 + $0xad8] sm:$0xff]  ;;  %v4626_v3 = vcombine.low %v545_v35, %v549_v0 }
 0x1ea   :  { %3935 = vmatpush2.bf16.msra.mxu0 %v4522_v45  ;;  %v413_v44 = vld [vmem:[%s6701_s1 + $0xaf8] sm:$0xff] }
 0x1eb   :  { %3936 = vmatprep.subr.bf16.mxu0 %v4515_v4  ;;  %v537_v58 = vld [vmem:[%s6701_s1 + $0xed8] sm:$0xff]  ;;  %v4491_v33 = vcombine.high %v409_v25, %v413_v44  ;;  %v4490_v17 = vcombine.low %v409_v25, %v413_v44 }
 0x1ec   :  { %3988 = vmatpush2.bf16.msra.mxu1 %v4650_v51  ;;  %v541_v46 = vld [vmem:[%s6701_s1 + $0xef8] sm:$0xff] }
 0x1ed   :  { %3989 = vmatprep.subr.bf16.mxu1 %v4643_v50  ;;  %v4619_v6 = vcombine.high %v537_v58, %v541_v46  ;;  %v401_v23 = vld [vmem:[%s6701_s1 + $0xa98] sm:$0xff]  ;;  %v4618_v59 = vcombine.low %v537_v58, %v541_v46 }
 0x1ee   :  { %3937 = vmatpush2.bf16.msra.mxu0 %v4514_v29  ;;  %v405_v47 = vld [vmem:[%s6701_s1 + $0xab8] sm:$0xff] }
 0x1ef   :  { %3938 = vmatprep.subr.bf16.mxu0 %v4507_v53  ;;  %v529_v12 = vld [vmem:[%s6701_s1 + $0xe98] sm:$0xff]  ;;  %v4483_v57 = vcombine.high %v401_v23, %v405_v47  ;;  %v4482_v37 = vcombine.low %v401_v23, %v405_v47 }
 0x1f0   :  { %3990 = vmatpush2.bf16.msra.mxu1 %v4642_v54  ;;  %v533_v56 = vld [vmem:[%s6701_s1 + $0xeb8] sm:$0xff] }
 0x1f1   :  { %3991 = vmatprep.subr.bf16.mxu1 %v4635_v30  ;;  %v4611_v1 = vcombine.high %v529_v12, %v533_v56  ;;  %v393_v9 = vld [vmem:[%s6701_s1 + $0xa58] sm:$0xff]  ;;  %v4610_v15 = vcombine.low %v529_v12, %v533_v56 }
 0x1f2   :  { %3939 = vmatpush2.bf16.msra.mxu0 %v4506_v40  ;;  %v397_v34 = vld [vmem:[%s6701_s1 + $0xa78] sm:$0xff] }
 0x1f3   :  { %3940 = vmatprep.subr.bf16.mxu0 %v4499_v52  ;;  %v521_v43 = vld [vmem:[%s6701_s1 + $0xe58] sm:$0xff]  ;;  %v4475_v8 = vcombine.high %v393_v9, %v397_v34  ;;  %v4474_v11 = vcombine.low %v393_v9, %v397_v34 }
 0x1f4   :  { %3992 = vmatpush2.bf16.msra.mxu1 %v4634_v21  ;;  %v525_v26 = vld [vmem:[%s6701_s1 + $0xe78] sm:$0xff] }
 0x1f5   :  { %3993 = vmatprep.subr.bf16.mxu1 %v4627_v10  ;;  %v4603_v39 = vcombine.high %v521_v43, %v525_v26  ;;  %v385_v16 = vld [vmem:[%s6701_s1 + $0xa18] sm:$0xff]  ;;  %v4602_v24 = vcombine.low %v521_v43, %v525_v26 }
 0x1f6   :  { %3941 = vmatpush2.bf16.msra.mxu0 %v4498_v63  ;;  %v389_v41 = vld [vmem:[%s6701_s1 + $0xa38] sm:$0xff] }
 0x1f7   :  { %3942 = vmatprep.subr.bf16.mxu0 %v4491_v33  ;;  %v513_v22 = vld [vmem:[%s6701_s1 + $0xe18] sm:$0xff]  ;;  %v4467_v42 = vcombine.high %v385_v16, %v389_v41  ;;  %v4466_v13 = vcombine.low %v385_v16, %v389_v41 }
 0x1f8   :  { %3994 = vmatpush2.bf16.msra.mxu1 %v4626_v3  ;;  %v517_v36 = vld [vmem:[%s6701_s1 + $0xe38] sm:$0xff] }
 0x1f9   :  { %3995 = vmatprep.subr.bf16.mxu1 %v4619_v6  ;;  %v4595_v5 = vcombine.high %v513_v22, %v517_v36  ;;  %v4594_v18 = vcombine.low %v513_v22, %v517_v36 }
 0x1fa   :  { %3943 = vmatpush2.bf16.msra.mxu0 %v4490_v17 }
 0x1fb   :  { %3944 = vmatprep.subr.bf16.mxu0 %v4483_v57 }
 0x1fc   :  { %3996 = vmatpush2.bf16.msra.mxu1 %v4618_v59 }
 0x1fd   :  { %3997 = vmatprep.subr.bf16.mxu1 %v4611_v1 }
 0x1fe   :  { %3945 = vmatpush2.bf16.msra.mxu0 %v4482_v37 }
 0x1ff   :  { %3946 = vmatprep.subr.bf16.mxu0 %v4475_v8 }
 0x200   :  { %3998 = vmatpush2.bf16.msra.mxu1 %v4610_v15 }
 0x201   :  { %3999 = vmatprep.subr.bf16.mxu1 %v4603_v39 }
 0x202   :  { %3947 = vmatpush2.bf16.msra.mxu0 %v4474_v11 }
 0x203   :  { %3948 = vmatprep.subr.bf16.mxu0 %v4467_v42 }
 0x204   :  { %4000 = vmatpush2.bf16.msra.mxu1 %v4602_v24 }
 0x205   :  { %4001 = vmatprep.subr.bf16.mxu1 %v4595_v5 }
 0x206   :  { %3949 = vmatpush2.bf16.msra.mxu0 %v4466_v13 }
 0x208   :  { %4002 = vmatpush2.bf16.msra.mxu1 %v4594_v18 }
 0x209   :  { %3951 = vmatmul.mubr.bf16.vlgmr.msra.gmra.mxu0 %v5212_v2  ;;  %v3634_v49 = vpop.f32.mrf.mxu0  ;;  %v594_v2 = vsub.s32 4, %v5815_v48 }
 0x20a   :  { %3960 = vmatprep.mubr.bf16.mxu0 %v5231_v14  ;;  %v598_v14 = vsub.s32 5, %v5815_v48 }
 0x20b   :  { %4004 = vmatmul.mubr.bf16.vlgmr.msra.gmra.mxu1 %v5223_v7  ;;  %v3687_v55 = vpop.f32.mrf.mxu1  ;;  %v3636_v20 = vpop.f32.mrf.mxu0 }
 0x20c   :  { %4013 = vmatprep.mubr.bf16.mxu1 %v5246_v19  ;;  %v6669_v19 = vld [vmem:[%s6703_s2] sm:$0xff] }
 0x20d   :  { %v3689_v45 = vpop.f32.mrf.mxu1  ;;  %v3638_v51 = vpop.f32.mrf.mxu0  ;;  %v599_v28 = vrot.slane %v6669_v19, %v598_v14 }
 0x20f   :  { %v3691_v4 = vpop.f32.mrf.mxu1  ;;  %v3640_v50 = vpop.f32.mrf.mxu0  ;;  %v3637_v30 = vadd.f32 %v3636_v20, %v599_v28 }
 0x210   :  { %v3641_v52 = vadd.f32 %v3640_v50, %v599_v28 }
 0x211   :  { %3961 = vmatmul.mubr.bf16.gmra.mxu0 %v5268_v32  ;;  %v3693_v60 = vpop.f32.mrf.mxu1  ;;  %v3644_v62 = vpop.f32.mrf.mxu0  ;;  %v595_v32 = vrot.slane %v6669_v19, %v594_v2  ;;  %v3690_v21 = vadd.f32 %v3689_v45, %v3637_v30  ;;  %v602_v30 = vsub.s32 6, %v5815_v48 }
 0x212   :  { %v3694_v23 = vadd.f32 %v3693_v60, %v3641_v52 }
 0x213   :  { %4014 = vmatmul.mubr.bf16.gmra.mxu1 %v5277_v38  ;;  %v3697_v7 = vpop.f32.mrf.mxu1  ;;  %v3646_v27 = vpop.f32.mrf.mxu0  ;;  %v3635_v54 = vadd.f32 %v3634_v49, %v595_v32  ;;  %v3639_v35 = vadd.f32 %v3638_v51, %v595_v32  ;;  %v3645_v46 = vadd.f32 %v3644_v62, %v595_v32 }
 0x214   :  { %v3647_v33 = vadd.f32 %v3646_v27, %v599_v28 }
 0x215   :  { %v3699_v38 = vpop.f32.mrf.mxu1  ;;  %v3648_v29 = vpop.f32.mrf.mxu0  ;;  %v3688_v31 = vadd.f32 %v3687_v55, %v3635_v54  ;;  %v3692_v58 = vadd.f32 %v3691_v4, %v3639_v35  ;;  %v3698_v57 = vadd.f32 %v3697_v7, %v3645_v46 }
 0x216   :  { %v3649_v1 = vadd.f32 %v3648_v29, %v595_v32  ;;  %v3700_v26 = vadd.f32 %v3699_v38, %v3647_v33 }
 0x217   :  { %v3701_v53 = vpop.f32.mrf.mxu1  ;;  %v3650_v61 = vpop.f32.mrf.mxu0 }
 0x218   :  { %v3651_v15 = vadd.f32 %v3650_v61, %v599_v28  ;;  %v3702_v36 = vadd.f32 %v3701_v53, %v3649_v1 }
 0x219   :  { %v3703_v0 = vpop.f32.mrf.mxu1 }
 0x21a   :  { %v3704_v13 = vadd.f32 %v3703_v0, %v3651_v15  ;;  %v603_v0 = vrot.slane %v6669_v19, %v602_v30 }
 0x249   :  { %v3740_v40 = vpop.f32.mrf.mxu0 }
 0x24a   :  { %v3741_v10 = vadd.f32 %v3740_v40, %v3688_v31  ;;  %v606_v31 = vsub.s32 7, %v5815_v48 }
 0x24b   :  { %v3793_v25 = vpop.f32.mrf.mxu1  ;;  %v3742_v44 = vpop.f32.mrf.mxu0 }
 0x24c   :  { %v3743_v63 = vadd.f32 %v3742_v44, %v3690_v21  ;;  %v3794_v47 = vadd.f32 %v3793_v25, %v3741_v10  ;;  %v607_v21 = vrot.slane %v6669_v19, %v606_v31 }
 0x24d   :  { %v3795_v3 = vpop.f32.mrf.mxu1  ;;  %v3744_v6 = vpop.f32.mrf.mxu0 }
 0x24e   :  { %v3796_v12 = vadd.f32 %v3795_v3, %v3743_v63  ;;  %v3745_v56 = vadd.f32 %v3744_v6, %v3692_v58 }
 0x24f   :  { %v3797_v17 = vpop.f32.mrf.mxu1  ;;  %v3746_v59 = vpop.f32.mrf.mxu0 }
 0x250   :  { %v4670_v9 = vpack.c.bf16 %v3796_v12, %v3794_v47  ;;  %v3747_v34 = vadd.f32 %v3746_v59, %v3694_v23  ;;  %v3798_v8 = vadd.f32 %v3797_v17, %v3745_v56 }
 0x251   :  { %v3799_v43 = vpop.f32.mrf.mxu1  ;;  %v3750_v37 = vpop.f32.mrf.mxu0 }
 0x252   :  { %4122 = vst [vmem:[%s6704_s3 + $0x10] sm:$0xff] %v4670_v9  ;;  %v3800_v39 = vadd.f32 %v3799_v43, %v3747_v34  ;;  %v3751_v16 = vadd.f32 %v3750_v37, %v3698_v57 }
 0x253   :  { %v3803_v41 = vpop.f32.mrf.mxu1  ;;  %v3752_v22 = vpop.f32.mrf.mxu0 }
 0x254   :  { %v4674_v11 = vpack.c.bf16 %v3800_v39, %v3798_v8  ;;  %v3753_v24 = vadd.f32 %v3752_v22, %v3700_v26  ;;  %v3804_v18 = vadd.f32 %v3803_v41, %v3751_v16 }
 0x255   :  { %v3805_v42 = vpop.f32.mrf.mxu1  ;;  %v3754_v5 = vpop.f32.mrf.mxu0 }
 0x256   :  { %4126 = vst [vmem:[%s6704_s3 + $0x30] sm:$0xff] %v4674_v11  ;;  %v3755_v49 = vadd.f32 %v3754_v5, %v3702_v36  ;;  %v3806_v55 = vadd.f32 %v3805_v42, %v3753_v24 }
 0x257   :  { %v3807_v20 = vpop.f32.mrf.mxu1  ;;  %v3756_v45 = vpop.f32.mrf.mxu0 }
 0x258   :  { %v4678_v51 = vpack.c.bf16 %v3806_v55, %v3804_v18  ;;  %v3757_v4 = vadd.f32 %v3756_v45, %v3704_v13  ;;  %v3808_v60 = vadd.f32 %v3807_v20, %v3755_v49 }
 0x259   :  { %v3809_v50 = vpop.f32.mrf.mxu1 }
 0x25a   :  { %4130 = vst [vmem:[%s6704_s3 + $0x50] sm:$0xff] %v4678_v51  ;;  %v3810_v62 = vadd.f32 %v3809_v50, %v3757_v4 }
 0x25c   :  { %v4682_v2 = vpack.c.bf16 %v3810_v62, %v3808_v60 }
 0x25e   :  { %4134 = vst [vmem:[%s6704_s3 + $0x70] sm:$0xff] %v4682_v2 }
 0x289   :  { %v3846_v7 = vpop.f32.mrf.mxu0 }
 0x28a   :  { %v3847_v10 = vadd.f32 %v3846_v7, %v603_v0 }
 0x28b   :  { %v3899_v14 = vpop.f32.mrf.mxu1  ;;  %v3848_v27 = vpop.f32.mrf.mxu0 }
 0x28c   :  { %v3849_v44 = vadd.f32 %v3848_v27, %v607_v21  ;;  %v3900_v46 = vadd.f32 %v3899_v14, %v3847_v10 }
 0x28d   :  { %v3901_v32 = vpop.f32.mrf.mxu1  ;;  %v3850_v38 = vpop.f32.mrf.mxu0 }
 0x28e   :  { %v3851_v63 = vadd.f32 %v3850_v38, %v603_v0  ;;  %v3902_v6 = vadd.f32 %v3901_v32, %v3849_v44 }
 0x28f   :  { %v3903_v28 = vpop.f32.mrf.mxu1  ;;  %v3852_v29 = vpop.f32.mrf.mxu0 }
 0x290   :  { %v3853_v23 = vadd.f32 %v3852_v29, %v607_v21  ;;  %v3904_v56 = vadd.f32 %v3903_v28, %v3851_v63 }
 0x291   :  { %v3905_v54 = vpop.f32.mrf.mxu1  ;;  %v3856_v53 = vpop.f32.mrf.mxu0 }
 0x292   :  { %v3857_v17 = vadd.f32 %v3856_v53, %v603_v0  ;;  %v3906_v9 = vadd.f32 %v3905_v54, %v3853_v23 }
 0x293   :  { %v3909_v61 = vpop.f32.mrf.mxu1  ;;  %v3858_v35 = vpop.f32.mrf.mxu0 }
 0x294   :  { %v3859_v1 = vadd.f32 %v3858_v35, %v607_v21  ;;  %v3910_v8 = vadd.f32 %v3909_v61, %v3857_v17 }
 0x295   :  { %v3911_v40 = vpop.f32.mrf.mxu1  ;;  %v3860_v52 = vpop.f32.mrf.mxu0 }
 0x296   :  { %v3861_v39 = vadd.f32 %v3860_v52, %v603_v0  ;;  %v3912_v36 = vadd.f32 %v3911_v40, %v3859_v1 }
 0x297   :  { %v3913_v25 = vpop.f32.mrf.mxu1  ;;  %v3862_v58 = vpop.f32.mrf.mxu0 }
 0x298   :  { %v3863_v24 = vadd.f32 %v3862_v58, %v607_v21  ;;  %v3914_v55 = vadd.f32 %v3913_v25, %v3861_v39 }
 0x299   :  { %v3915_v3 = vpop.f32.mrf.mxu1 }
 0x29a   :  { %v3916_v50 = vadd.f32 %v3915_v3, %v3863_v24 }
 0x2c9   :  { %v3952_v33 = vpop.f32.mrf.mxu0 }
 0x2ca   :  { %v3953_v47 = vadd.f32 %v3952_v33, %v3900_v46 }
 0x2cb   :  { %v4005_v12 = vpop.f32.mrf.mxu1  ;;  %v3954_v48 = vpop.f32.mrf.mxu0 }
 0x2cc   :  { %v3955_v59 = vadd.f32 %v3954_v48, %v3902_v6  ;;  %v4006_v34 = vadd.f32 %v4005_v12, %v3953_v47 }
 0x2cd   :  { %v4007_v57 = vpop.f32.mrf.mxu1  ;;  %v3956_v19 = vpop.f32.mrf.mxu0 }
 0x2ce   :  { %v4008_v43 = vadd.f32 %v4007_v57, %v3955_v59  ;;  %v3957_v26 = vadd.f32 %v3956_v19, %v3904_v56 }
 0x2cf   :  { %v4009_v37 = vpop.f32.mrf.mxu1  ;;  %v3958_v15 = vpop.f32.mrf.mxu0 }
 0x2d0   :  { %v4671_v16 = vpack.c.bf16 %v4008_v43, %v4006_v34  ;;  %v3959_v41 = vadd.f32 %v3958_v15, %v3906_v9  ;;  %v4010_v42 = vadd.f32 %v4009_v37, %v3957_v26 }
 0x2d1   :  { %v4011_v22 = vpop.f32.mrf.mxu1  ;;  %v3962_v11 = vpop.f32.mrf.mxu0 }
 0x2d2   :  { %4123 = vst [vmem:[%s6704_s3 + $0x18] sm:$0xff] %v4671_v16  ;;  %v4012_v5 = vadd.f32 %v4011_v22, %v3959_v41  ;;  %v3963_v13 = vadd.f32 %v3962_v11, %v3910_v8 }
 0x2d3   :  { %v4015_v18 = vpop.f32.mrf.mxu1  ;;  %v3964_v49 = vpop.f32.mrf.mxu0 }
 0x2d4   :  { %v4675_v20 = vpack.c.bf16 %v4012_v5, %v4010_v42  ;;  %v3965_v45 = vadd.f32 %v3964_v49, %v3912_v36  ;;  %v4016_v60 = vadd.f32 %v4015_v18, %v3963_v13 }
 0x2d5   :  { %v4017_v51 = vpop.f32.mrf.mxu1  ;;  %v3966_v4 = vpop.f32.mrf.mxu0 }
 0x2d6   :  { %4127 = vst [vmem:[%s6704_s3 + $0x38] sm:$0xff] %v4675_v20  ;;  %v4018_v62 = vadd.f32 %v4017_v51, %v3965_v45  ;;  %v3967_v2 = vadd.f32 %v3966_v4, %v3914_v55 }
 0x2d7   :  { %v4019_v7 = vpop.f32.mrf.mxu1  ;;  %v3968_v14 = vpop.f32.mrf.mxu0 }
 0x2d8   :  { %v4679_v27 = vpack.c.bf16 %v4018_v62, %v4016_v60  ;;  %v3969_v32 = vadd.f32 %v3968_v14, %v3916_v50  ;;  %v4020_v28 = vadd.f32 %v4019_v7, %v3967_v2 }
 0x2d9   :  { %v4021_v38 = vpop.f32.mrf.mxu1 }
 0x2da   :  { %4131 = vst [vmem:[%s6704_s3 + $0x58] sm:$0xff] %v4679_v27  ;;  %v4022_v29 = vadd.f32 %v4021_v38, %v3969_v32 }
 0x2dc   :  { %v4683_v54 = vpack.c.bf16 %v4022_v29, %v4020_v28 }
 0x2de   :  { %4135 = vst [vmem:[%s6704_s3 + $0x78] sm:$0xff] %v4683_v54 }

</bundles_post_ra>
